<compile_context>
chip_gen: v7x
topology: tpu7x:2x2x1
jax: 0.10.0
libtpu: 0.0.40
codegen_flags: <defaults>
</compile_context>

<pallas_src>
import jax
import jax.numpy as jnp
from jax import lax
from jax.experimental import pallas as pl
from jax.experimental.pallas import tpu as pltpu

F32 = jnp.float32
BF16 = jnp.bfloat16
HIGHEST = lax.Precision.HIGHEST    # reference only

# Static network dimensions (dictated by the torch module: Linear(736 -> 2) => W = 750).
B = 2            # batch
H = 2            # EEG "height" (electrode pairs)
W = 750          # time samples
K1 = 51          # firstconv kernel width
P1 = 25          # firstconv padding
WP4 = W // 4     # 187  after AvgPool(1,4)
K3 = 15          # separable conv kernel width
P3 = 7
WP8 = WP4 // 8   # 23   after AvgPool(1,8)
EPS = 1e-5

WB1 = 896        # stage-1 per-batch lane block (7*128 >= W + K1 - 1 = 800)
WB2 = 256        # stage-2 per-batch lane block (2*128 >= WP4 + 2*P3 = 201)
TAIL = 128       # extra zero lanes so full-width shifted im2col loads never go OOB


def _eegnet_kernel(x_ref, w1_ref, b1_ref, p4_ref, w3_ref, b3_ref, wl_ref, bl_ref,
                   out_ref, xpad_ref, col1_ref, ppad_ref, col2_ref):
    # x_ref   : (H, nb*W)     f32   input, time on lanes, per-batch W-blocks
    # w1_ref  : (32, K1*H)    bf16  fused firstconv∘depthwise weights (BN1/BN2 folded), cols=(k,h)
    # b1_ref  : (32, 1)       f32   fused BN1/BN2 bias
    # p4_ref  : (WB1, WB2)    bf16  AvgPool(1,4) selection/average matrix (hoisted constant)
    # w3_ref  : (32, K3*32)   bf16  BN3-scaled separable-conv weights, cols = (tap, in_ch)
    # b3_ref  : (32, 1)       f32   BN3 bias
    # wl_ref  : (2, 32, WB2)  f32   AvgPool(1,8)+flatten+Linear folded into per-class lane masks
    # bl_ref  : (1, 2)        f32   classifier bias
    # out_ref : (nb, 2)       f32   logits
    nb = out_ref.shape[0]

    # ---- stage-1 padded input: zero only the pad strips, cast to bf16 on the copy ----
    for b in range(nb):
        o = b * WB1
        xpad_ref[:, o:o + P1] = jnp.zeros((H, P1), BF16)
        xpad_ref[:, o + P1 + W:o + WB1] = jnp.zeros((H, WB1 - P1 - W), BF16)
        xpad_ref[:, o + P1:o + P1 + W] = x_ref[:, b * W:(b + 1) * W].astype(BF16)
    xpad_ref[:, nb * WB1:] = jnp.zeros((H, TAIL), BF16)

    # ---- im2col for fused firstconv∘depthwise: ONE full-width shifted copy per tap ----
    # per-batch validity: dst lane b*WB1+t (t<750) reads src lane b*WB1+t+k <= b*WB1+799 < (b+1)*WB1
    for k in range(K1):
        col1_ref[k * H:(k + 1) * H, :] = xpad_ref[:, k:k + nb * WB1]

    # ---- conv1 (firstconv∘depthwise, BN1/BN2 folded); batch folded into the lane/N dim ----
    z1 = jnp.dot(w1_ref[...], col1_ref[...], preferred_element_type=F32) + b1_ref[...]
    e1 = jnp.where(z1 > 0, z1, jnp.exp(jnp.minimum(z1, 0.0)) - 1.0)     # ELU(1.0), overflow-safe
    e1 = e1.astype(BF16)                                                 # (32, nb*WB1)

    # ---- AvgPool(1,4) via hoisted matrix + stage-2 zero padding, per 128-aligned batch block ----
    p4 = p4_ref[...]
    for b in range(nb):
        pooled = jnp.dot(e1[:, b * WB1:(b + 1) * WB1], p4,
                         preferred_element_type=F32)                     # (32, WB2); cols >= 187 are 0
        o = b * WB2
        ppad_ref[:, o:o + P3] = jnp.zeros((32, P3), BF16)
        ppad_ref[:, o + P3 + WP4:o + WB2] = jnp.zeros((32, WB2 - P3 - WP4), BF16)
        ppad_ref[:, o + P3:o + P3 + WP4] = pooled[:, :WP4].astype(BF16)
    ppad_ref[:, nb * WB2:] = jnp.zeros((32, TAIL), BF16)

    # ---- im2col for separableConv: ONE full-width 32-row (sublane-aligned) copy per tap ----
    for k in range(K3):
        col2_ref[k * 32:(k + 1) * 32, :] = ppad_ref[:, k:k + nb * WB2]

    # ---- separableConv (+BN3) as one MXU matmul: (32, 480) @ (480, nb*256) ----
    z2 = jnp.dot(w3_ref[...], col2_ref[...], preferred_element_type=F32) + b3_ref[...]
    e2 = jnp.where(z2 > 0, z2, jnp.exp(jnp.minimum(z2, 0.0)) - 1.0)      # (32, nb*WB2) f32

    # ---- AvgPool(1,8) + flatten + Linear(736,2): per-class masked f32 reductions,
    #      collapsed into a single (nb, 2) store ----
    wl0 = wl_ref[0]
    wl1 = wl_ref[1]
    rows = []
    for b in range(nb):
        blk = e2[:, b * WB2:(b + 1) * WB2]                               # lane-aligned slice
        cols = []
        for mask in (wl0, wl1):
            prod = blk * mask                                            # f32 (v5e-safe)
            s = jnp.sum(prod, axis=1, keepdims=True)                     # (32, 1)
            cols.append(jnp.sum(s, axis=0, keepdims=True))               # (1, 1)
        rows.append(jnp.concatenate(cols, axis=1))                       # (1, 2)
    out_ref[...] = jnp.concatenate(rows, axis=0) + bl_ref[...]


def eegnet_pallas(x, p):
    nb = x.shape[0]

    # ---- fold eval-mode BatchNorm into conv weights (scale) + per-channel bias ----
    s1 = p["g1"] / jnp.sqrt(p["v1"] + EPS); t1 = p["b1"] - p["m1"] * s1
    s2 = p["g2"] / jnp.sqrt(p["v2"] + EPS); t2 = p["b2"] - p["m2"] * s2
    s3 = p["g3"] / jnp.sqrt(p["v3"] + EPS); t3 = p["b3"] - p["m3"] * s3

    w1f = s1[:, None] * p["w1"].reshape(16, K1)                 # (16, 51)
    w2f = s2[:, None] * p["w2"].reshape(32, 2)                  # (32, 2)  [oc, h], group = oc//2

    # fuse firstconv and depthwise conv (both linear, nothing nonlinear in between)
    weff = w2f[:, :, None] * jnp.repeat(w1f, 2, axis=0)[:, None, :]          # (32, 2, 51) [oc, h, k]
    beff = (w2f[:, 0] + w2f[:, 1]) * jnp.repeat(t1, 2) + t2                  # (32,)
    w1mat = jnp.transpose(weff, (0, 2, 1)).reshape(32, K1 * H).astype(BF16)  # (32, 102), cols (k, h)
    b1 = beff.reshape(32, 1)

    # AvgPool(1,4) selection/average matrix, hoisted out of the kernel (0 / 0.25 exact in bf16)
    t_idx = jnp.arange(WB1)[:, None]
    u_idx = jnp.arange(WB2)[None, :]
    p4 = jnp.where((t_idx // 4 == u_idx) & (t_idx < 4 * WP4), 0.25, 0.0).astype(BF16)  # (896, 256)

    w3f = s3[:, None, None] * p["w3"].reshape(32, 32, K3)                     # (32, 32, 15)
    w3mat = jnp.transpose(w3f, (0, 2, 1)).reshape(32, K3 * 32).astype(BF16)   # (32, 480), cols (k, ic)
    b3 = t3.reshape(32, 1)

    # AvgPool(1,8) + flatten (channel-major, matches torch .view) + Linear folded into two
    # per-class lane masks over a single 256-lane batch block (NOT tiled over batch).
    u = jnp.arange(WB2)
    wl32 = p["wl"].reshape(2, 32, WP8)
    wl_mask = jnp.where(u[None, None, :] < 8 * WP8,
                        wl32[:, :, jnp.minimum(u // 8, WP8 - 1)] / 8.0, 0.0)  # (2, 32, 256) f32
    bl = p["bl"].reshape(1, 2)

    # input layout: time on lanes, per-batch W-blocks -> (H, nb*W)
    x4 = jnp.transpose(x[:, 0], (1, 0, 2)).reshape(H, nb * W)

    vmem = pl.BlockSpec(memory_space=pltpu.MemorySpace.VMEM)
    return pl.pallas_call(
        _eegnet_kernel,
        in_specs=[vmem] * 8,
        out_specs=vmem,
        out_shape=jax.ShapeDtypeStruct((nb, 2), F32),
        scratch_shapes=[
            pltpu.VMEM((H, nb * WB1 + TAIL), BF16),          # padded stage-1 input
            pltpu.VMEM((K1 * H, nb * WB1), BF16),            # im2col for fused conv1
            pltpu.VMEM((32, nb * WB2 + TAIL), BF16),         # padded pooled activation
            pltpu.VMEM((32 * K3, nb * WB2), BF16),           # im2col for separable conv
        ],
    )(x4, w1mat, b1, p4, w3mat, b3, wl_mask, bl)


def eegnet_reference(x, p):
    """Pure-JAX reference matching PyTorch eval-mode forward."""
    def bn(y, g, bta, m, v):
        return ((y - m[None, :, None, None]) / jnp.sqrt(v[None, :, None, None] + EPS)
                * g[None, :, None, None] + bta[None, :, None, None])

    def conv(lhs, rhs, pad, groups=1):
        return lax.conv_general_dilated(
            lhs, rhs, window_strides=(1, 1), padding=pad,
            dimension_numbers=("NCHW", "OIHW", "NCHW"),
            feature_group_count=groups, precision=HIGHEST)

    y = conv(x, p["w1"], ((0, 0), (P1, P1)))
    y = bn(y, p["g1"], p["b1"], p["m1"], p["v1"])
    y = conv(y, p["w2"], ((0, 0), (0, 0)), groups=16)
    y = bn(y, p["g2"], p["b2"], p["m2"], p["v2"])
    y = jax.nn.elu(y)
    y = y[..., :4 * WP4].reshape(y.shape[0], 32, 1, WP4, 4).mean(-1)
    y = conv(y, p["w3"], ((0, 0), (P3, P3)))
    y = bn(y, p["g3"], p["b3"], p["m3"], p["v3"])
    y = jax.nn.elu(y)
    y = y[..., :8 * WP8].reshape(y.shape[0], 32, 1, WP8, 8).mean(-1)
    flat = y.reshape(y.shape[0], -1)
    return jnp.dot(flat, p["wl"].T, precision=HIGHEST) + p["bl"][None, :]


def init_params(key):
    ks = jax.random.split(key, 17)
    p = {}
    p["w1"] = 0.2 * jax.random.normal(ks[0], (16, 1, 1, K1), F32)
    p["g1"] = 1.0 + 0.1 * jax.random.normal(ks[1], (16,), F32)
    p["b1"] = 0.1 * jax.random.normal(ks[2], (16,), F32)
    p["m1"] = 0.1 * jax.random.normal(ks[3], (16,), F32)
    p["v1"] = 0.5 + jax.random.uniform(ks[4], (16,), F32)
    p["w2"] = 0.5 * jax.random.normal(ks[5], (32, 1, 2, 1), F32)
    p["g2"] = 1.0 + 0.1 * jax.random.normal(ks[6], (32,), F32)
    p["b2"] = 0.1 * jax.random.normal(ks[7], (32,), F32)
    p["m2"] = 0.1 * jax.random.normal(ks[8], (32,), F32)
    p["v2"] = 0.5 + jax.random.uniform(ks[9], (32,), F32)
    p["w3"] = 0.1 * jax.random.normal(ks[10], (32, 32, 1, K3), F32)
    p["g3"] = 1.0 + 0.1 * jax.random.normal(ks[11], (32,), F32)
    p["b3"] = 0.1 * jax.random.normal(ks[12], (32,), F32)
    p["m3"] = 0.1 * jax.random.normal(ks[13], (32,), F32)
    p["v3"] = 0.5 + jax.random.uniform(ks[14], (32,), F32)
    p["wl"] = 0.05 * jax.random.normal(ks[15], (2, 32 * WP8), F32)   # Linear(736, 2) weight
    p["bl"] = 0.1 * jax.random.normal(ks[16], (2,), F32)
    return p


if __name__ == "__main__":
    key = jax.random.PRNGKey(0)
    kx, kp = jax.random.split(key)
    params = init_params(kp)
    x = jax.random.normal(kx, (B, 1, H, W), F32)     # NCHW, like torch

    out = jax.jit(eegnet_pallas)(x, params)
    out = jax.block_until_ready(out)

    if out.shape != (B, 2):
        raise RuntimeError(f"bad output shape {out.shape}")

    ref = eegnet_reference(x, params)
    err = float(jnp.max(jnp.abs(out - ref)))
    if not (err < 1e-2) or not bool(jnp.all(jnp.isfinite(out))):
        raise RuntimeError(f"mismatch vs reference, max abs err = {err}")

    print("KERNEL_OK")
</pallas_src>

<mosaic_0001>
module attributes {stable_mosaic.version = 11 : i64} {
  func.func @_eegnet_kernel(%arg0: memref<2x1500xf32, #tpu.memory_space<vmem>>, %arg1: memref<32x102xbf16, #tpu.memory_space<vmem>>, %arg2: memref<32x1xf32, #tpu.memory_space<vmem>>, %arg3: memref<896x256xbf16, #tpu.memory_space<vmem>>, %arg4: memref<32x480xbf16, #tpu.memory_space<vmem>>, %arg5: memref<32x1xf32, #tpu.memory_space<vmem>>, %arg6: memref<2x32x256xf32, #tpu.memory_space<vmem>>, %arg7: memref<1x2xf32, #tpu.memory_space<vmem>>, %arg8: memref<2x2xf32, #tpu.memory_space<vmem>>, %arg9: memref<2x1920xbf16, #tpu.memory_space<vmem>>, %arg10: memref<102x1792xbf16, #tpu.memory_space<vmem>>, %arg11: memref<32x640xbf16, #tpu.memory_space<vmem>>, %arg12: memref<480x512xbf16, #tpu.memory_space<vmem>>) attributes {dimension_semantics = [], scalar_prefetch = 0 : i64, scratch_operands = 4 : i64, tpu.core_type = #tpu.core_type<tc>} {
    %cst = arith.constant 0.000000e+00 : bf16
    %0 = vector.broadcast %cst : bf16 to vector<2x25xbf16>
    %c0 = arith.constant 0 : index
    %c0_0 = arith.constant 0 : index
    %1 = vector.load %arg9[%c0, %c0_0] : memref<2x1920xbf16, #tpu.memory_space<vmem>>, vector<2x25xbf16>
    tpu.vector_store %arg9[%c0, %c0_0], %0 {strides = array<i32>} : memref<2x1920xbf16, #tpu.memory_space<vmem>>, vector<2x25xbf16>,
    %cst_1 = arith.constant 0.000000e+00 : bf16
    %2 = vector.broadcast %cst_1 : bf16 to vector<2x121xbf16>
    %c0_2 = arith.constant 0 : index
    %c775 = arith.constant 775 : index
    %3 = vector.load %arg9[%c0_2, %c775] : memref<2x1920xbf16, #tpu.memory_space<vmem>>, vector<2x121xbf16>
    tpu.vector_store %arg9[%c0_2, %c775], %2 {strides = array<i32>} : memref<2x1920xbf16, #tpu.memory_space<vmem>>, vector<2x121xbf16>,
    %c0_3 = arith.constant 0 : index
    %c0_4 = arith.constant 0 : index
    %4 = vector.load %arg0[%c0_3, %c0_4] : memref<2x1500xf32, #tpu.memory_space<vmem>>, vector<2x750xf32>
    %5 = arith.truncf %4 : vector<2x750xf32> to vector<2x750xbf16>
    %c0_5 = arith.constant 0 : index
    %c25 = arith.constant 25 : index
    %6 = vector.load %arg9[%c0_5, %c25] : memref<2x1920xbf16, #tpu.memory_space<vmem>>, vector<2x750xbf16>
    tpu.vector_store %arg9[%c0_5, %c25], %5 {strides = array<i32>} : memref<2x1920xbf16, #tpu.memory_space<vmem>>, vector<2x750xbf16>,
    %cst_6 = arith.constant 0.000000e+00 : bf16
    %7 = vector.broadcast %cst_6 : bf16 to vector<2x25xbf16>
    %c0_7 = arith.constant 0 : index
    %c896 = arith.constant 896 : index
    %8 = vector.load %arg9[%c0_7, %c896] : memref<2x1920xbf16, #tpu.memory_space<vmem>>, vector<2x25xbf16>
    tpu.vector_store %arg9[%c0_7, %c896], %7 {strides = array<i32>} : memref<2x1920xbf16, #tpu.memory_space<vmem>>, vector<2x25xbf16>,
    %cst_8 = arith.constant 0.000000e+00 : bf16
    %9 = vector.broadcast %cst_8 : bf16 to vector<2x121xbf16>
    %c0_9 = arith.constant 0 : index
    %c1671 = arith.constant 1671 : index
    %10 = vector.load %arg9[%c0_9, %c1671] : memref<2x1920xbf16, #tpu.memory_space<vmem>>, vector<2x121xbf16>
    tpu.vector_store %arg9[%c0_9, %c1671], %9 {strides = array<i32>} : memref<2x1920xbf16, #tpu.memory_space<vmem>>, vector<2x121xbf16>,
    %c0_10 = arith.constant 0 : index
    %c750 = arith.constant 750 : index
    %11 = vector.load %arg0[%c0_10, %c750] : memref<2x1500xf32, #tpu.memory_space<vmem>>, vector<2x750xf32>
    %12 = arith.truncf %11 : vector<2x750xf32> to vector<2x750xbf16>
    %c0_11 = arith.constant 0 : index
    %c921 = arith.constant 921 : index
    %13 = vector.load %arg9[%c0_11, %c921] : memref<2x1920xbf16, #tpu.memory_space<vmem>>, vector<2x750xbf16>
    tpu.vector_store %arg9[%c0_11, %c921], %12 {strides = array<i32>} : memref<2x1920xbf16, #tpu.memory_space<vmem>>, vector<2x750xbf16>,
    %cst_12 = arith.constant 0.000000e+00 : bf16
    %14 = vector.broadcast %cst_12 : bf16 to vector<2x128xbf16>
    %c0_13 = arith.constant 0 : index
    %c1792 = arith.constant 1792 : index
    %15 = vector.load %arg9[%c0_13, %c1792] : memref<2x1920xbf16, #tpu.memory_space<vmem>>, vector<2x128xbf16>
    tpu.vector_store %arg9[%c0_13, %c1792], %14 {strides = array<i32>} : memref<2x1920xbf16, #tpu.memory_space<vmem>>, vector<2x128xbf16>,
    %c0_14 = arith.constant 0 : index
    %c0_15 = arith.constant 0 : index
    %16 = vector.load %arg9[%c0_14, %c0_15] : memref<2x1920xbf16, #tpu.memory_space<vmem>>, vector<2x1792xbf16>
    %c0_16 = arith.constant 0 : index
    %c0_17 = arith.constant 0 : index
    %17 = vector.load %arg10[%c0_16, %c0_17] : memref<102x1792xbf16, #tpu.memory_space<vmem>>, vector<2x1792xbf16>
    tpu.vector_store %arg10[%c0_16, %c0_17], %16 {strides = array<i32>} : memref<102x1792xbf16, #tpu.memory_space<vmem>>, vector<2x1792xbf16>,
    %c0_18 = arith.constant 0 : index
    %c1 = arith.constant 1 : index
    %18 = vector.load %arg9[%c0_18, %c1] : memref<2x1920xbf16, #tpu.memory_space<vmem>>, vector<2x1792xbf16>
    %c2 = arith.constant 2 : index
    %c0_19 = arith.constant 0 : index
    %19 = vector.load %arg10[%c2, %c0_19] : memref<102x1792xbf16, #tpu.memory_space<vmem>>, vector<2x1792xbf16>
    tpu.vector_store %arg10[%c2, %c0_19], %18 {strides = array<i32>} : memref<102x1792xbf16, #tpu.memory_space<vmem>>, vector<2x1792xbf16>,
    %c0_20 = arith.constant 0 : index
    %c2_21 = arith.constant 2 : index
    %20 = vector.load %arg9[%c0_20, %c2_21] : memref<2x1920xbf16, #tpu.memory_space<vmem>>, vector<2x1792xbf16>
    %c4 = arith.constant 4 : index
    %c0_22 = arith.constant 0 : index
    %21 = vector.load %arg10[%c4, %c0_22] : memref<102x1792xbf16, #tpu.memory_space<vmem>>, vector<2x1792xbf16>
    tpu.vector_store %arg10[%c4, %c0_22], %20 {strides = array<i32>} : memref<102x1792xbf16, #tpu.memory_space<vmem>>, vector<2x1792xbf16>,
    %c0_23 = arith.constant 0 : index
    %c3 = arith.constant 3 : index
    %22 = vector.load %arg9[%c0_23, %c3] : memref<2x1920xbf16, #tpu.memory_space<vmem>>, vector<2x1792xbf16>
    %c6 = arith.constant 6 : index
    %c0_24 = arith.constant 0 : index
    %23 = vector.load %arg10[%c6, %c0_24] : memref<102x1792xbf16, #tpu.memory_space<vmem>>, vector<2x1792xbf16>
    tpu.vector_store %arg10[%c6, %c0_24], %22 {strides = array<i32>} : memref<102x1792xbf16, #tpu.memory_space<vmem>>, vector<2x1792xbf16>,
    %c0_25 = arith.constant 0 : index
    %c4_26 = arith.constant 4 : index
    %24 = vector.load %arg9[%c0_25, %c4_26] : memref<2x1920xbf16, #tpu.memory_space<vmem>>, vector<2x1792xbf16>
    %c8 = arith.constant 8 : index
    %c0_27 = arith.constant 0 : index
    %25 = vector.load %arg10[%c8, %c0_27] : memref<102x1792xbf16, #tpu.memory_space<vmem>>, vector<2x1792xbf16>
    tpu.vector_store %arg10[%c8, %c0_27], %24 {strides = array<i32>} : memref<102x1792xbf16, #tpu.memory_space<vmem>>, vector<2x1792xbf16>,
    %c0_28 = arith.constant 0 : index
    %c5 = arith.constant 5 : index
    %26 = vector.load %arg9[%c0_28, %c5] : memref<2x1920xbf16, #tpu.memory_space<vmem>>, vector<2x1792xbf16>
    %c10 = arith.constant 10 : index
    %c0_29 = arith.constant 0 : index
    %27 = vector.load %arg10[%c10, %c0_29] : memref<102x1792xbf16, #tpu.memory_space<vmem>>, vector<2x1792xbf16>
    tpu.vector_store %arg10[%c10, %c0_29], %26 {strides = array<i32>} : memref<102x1792xbf16, #tpu.memory_space<vmem>>, vector<2x1792xbf16>,
    %c0_30 = arith.constant 0 : index
    %c6_31 = arith.constant 6 : index
    %28 = vector.load %arg9[%c0_30, %c6_31] : memref<2x1920xbf16, #tpu.memory_space<vmem>>, vector<2x1792xbf16>
    %c12 = arith.constant 12 : index
    %c0_32 = arith.constant 0 : index
    %29 = vector.load %arg10[%c12, %c0_32] : memref<102x1792xbf16, #tpu.memory_space<vmem>>, vector<2x1792xbf16>
    tpu.vector_store %arg10[%c12, %c0_32], %28 {strides = array<i32>} : memref<102x1792xbf16, #tpu.memory_space<vmem>>, vector<2x1792xbf16>,
    %c0_33 = arith.constant 0 : index
    %c7 = arith.constant 7 : index
    %30 = vector.load %arg9[%c0_33, %c7] : memref<2x1920xbf16, #tpu.memory_space<vmem>>, vector<2x1792xbf16>
    %c14 = arith.constant 14 : index
    %c0_34 = arith.constant 0 : index
    %31 = vector.load %arg10[%c14, %c0_34] : memref<102x1792xbf16, #tpu.memory_space<vmem>>, vector<2x1792xbf16>
    tpu.vector_store %arg10[%c14, %c0_34], %30 {strides = array<i32>} : memref<102x1792xbf16, #tpu.memory_space<vmem>>, vector<2x1792xbf16>,
    %c0_35 = arith.constant 0 : index
    %c8_36 = arith.constant 8 : index
    %32 = vector.load %arg9[%c0_35, %c8_36] : memref<2x1920xbf16, #tpu.memory_space<vmem>>, vector<2x1792xbf16>
    %c16 = arith.constant 16 : index
    %c0_37 = arith.constant 0 : index
    %33 = vector.load %arg10[%c16, %c0_37] : memref<102x1792xbf16, #tpu.memory_space<vmem>>, vector<2x1792xbf16>
    tpu.vector_store %arg10[%c16, %c0_37], %32 {strides = array<i32>} : memref<102x1792xbf16, #tpu.memory_space<vmem>>, vector<2x1792xbf16>,
    %c0_38 = arith.constant 0 : index
    %c9 = arith.constant 9 : index
    %34 = vector.load %arg9[%c0_38, %c9] : memref<2x1920xbf16, #tpu.memory_space<vmem>>, vector<2x1792xbf16>
    %c18 = arith.constant 18 : index
    %c0_39 = arith.constant 0 : index
    %35 = vector.load %arg10[%c18, %c0_39] : memref<102x1792xbf16, #tpu.memory_space<vmem>>, vector<2x1792xbf16>
    tpu.vector_store %arg10[%c18, %c0_39], %34 {strides = array<i32>} : memref<102x1792xbf16, #tpu.memory_space<vmem>>, vector<2x1792xbf16>,
    %c0_40 = arith.constant 0 : index
    %c10_41 = arith.constant 10 : index
    %36 = vector.load %arg9[%c0_40, %c10_41] : memref<2x1920xbf16, #tpu.memory_space<vmem>>, vector<2x1792xbf16>
    %c20 = arith.constant 20 : index
    %c0_42 = arith.constant 0 : index
    %37 = vector.load %arg10[%c20, %c0_42] : memref<102x1792xbf16, #tpu.memory_space<vmem>>, vector<2x1792xbf16>
    tpu.vector_store %arg10[%c20, %c0_42], %36 {strides = array<i32>} : memref<102x1792xbf16, #tpu.memory_space<vmem>>, vector<2x1792xbf16>,
    %c0_43 = arith.constant 0 : index
    %c11 = arith.constant 11 : index
    %38 = vector.load %arg9[%c0_43, %c11] : memref<2x1920xbf16, #tpu.memory_space<vmem>>, vector<2x1792xbf16>
    %c22 = arith.constant 22 : index
    %c0_44 = arith.constant 0 : index
    %39 = vector.load %arg10[%c22, %c0_44] : memref<102x1792xbf16, #tpu.memory_space<vmem>>, vector<2x1792xbf16>
    tpu.vector_store %arg10[%c22, %c0_44], %38 {strides = array<i32>} : memref<102x1792xbf16, #tpu.memory_space<vmem>>, vector<2x1792xbf16>,
    %c0_45 = arith.constant 0 : index
    %c12_46 = arith.constant 12 : index
    %40 = vector.load %arg9[%c0_45, %c12_46] : memref<2x1920xbf16, #tpu.memory_space<vmem>>, vector<2x1792xbf16>
    %c24 = arith.constant 24 : index
    %c0_47 = arith.constant 0 : index
    %41 = vector.load %arg10[%c24, %c0_47] : memref<102x1792xbf16, #tpu.memory_space<vmem>>, vector<2x1792xbf16>
    tpu.vector_store %arg10[%c24, %c0_47], %40 {strides = array<i32>} : memref<102x1792xbf16, #tpu.memory_space<vmem>>, vector<2x1792xbf16>,
    %c0_48 = arith.constant 0 : index
    %c13 = arith.constant 13 : index
    %42 = vector.load %arg9[%c0_48, %c13] : memref<2x1920xbf16, #tpu.memory_space<vmem>>, vector<2x1792xbf16>
    %c26 = arith.constant 26 : index
    %c0_49 = arith.constant 0 : index
    %43 = vector.load %arg10[%c26, %c0_49] : memref<102x1792xbf16, #tpu.memory_space<vmem>>, vector<2x1792xbf16>
    tpu.vector_store %arg10[%c26, %c0_49], %42 {strides = array<i32>} : memref<102x1792xbf16, #tpu.memory_space<vmem>>, vector<2x1792xbf16>,
    %c0_50 = arith.constant 0 : index
    %c14_51 = arith.constant 14 : index
    %44 = vector.load %arg9[%c0_50, %c14_51] : memref<2x1920xbf16, #tpu.memory_space<vmem>>, vector<2x1792xbf16>
    %c28 = arith.constant 28 : index
    %c0_52 = arith.constant 0 : index
    %45 = vector.load %arg10[%c28, %c0_52] : memref<102x1792xbf16, #tpu.memory_space<vmem>>, vector<2x1792xbf16>
    tpu.vector_store %arg10[%c28, %c0_52], %44 {strides = array<i32>} : memref<102x1792xbf16, #tpu.memory_space<vmem>>, vector<2x1792xbf16>,
    %c0_53 = arith.constant 0 : index
    %c15 = arith.constant 15 : index
    %46 = vector.load %arg9[%c0_53, %c15] : memref<2x1920xbf16, #tpu.memory_space<vmem>>, vector<2x1792xbf16>
    %c30 = arith.constant 30 : index
    %c0_54 = arith.constant 0 : index
    %47 = vector.load %arg10[%c30, %c0_54] : memref<102x1792xbf16, #tpu.memory_space<vmem>>, vector<2x1792xbf16>
    tpu.vector_store %arg10[%c30, %c0_54], %46 {strides = array<i32>} : memref<102x1792xbf16, #tpu.memory_space<vmem>>, vector<2x1792xbf16>,
    %c0_55 = arith.constant 0 : index
    %c16_56 = arith.constant 16 : index
    %48 = vector.load %arg9[%c0_55, %c16_56] : memref<2x1920xbf16, #tpu.memory_space<vmem>>, vector<2x1792xbf16>
    %c32 = arith.constant 32 : index
    %c0_57 = arith.constant 0 : index
    %49 = vector.load %arg10[%c32, %c0_57] : memref<102x1792xbf16, #tpu.memory_space<vmem>>, vector<2x1792xbf16>
    tpu.vector_store %arg10[%c32, %c0_57], %48 {strides = array<i32>} : memref<102x1792xbf16, #tpu.memory_space<vmem>>, vector<2x1792xbf16>,
    %c0_58 = arith.constant 0 : index
    %c17 = arith.constant 17 : index
    %50 = vector.load %arg9[%c0_58, %c17] : memref<2x1920xbf16, #tpu.memory_space<vmem>>, vector<2x1792xbf16>
    %c34 = arith.constant 34 : index
    %c0_59 = arith.constant 0 : index
    %51 = vector.load %arg10[%c34, %c0_59] : memref<102x1792xbf16, #tpu.memory_space<vmem>>, vector<2x1792xbf16>
    tpu.vector_store %arg10[%c34, %c0_59], %50 {strides = array<i32>} : memref<102x1792xbf16, #tpu.memory_space<vmem>>, vector<2x1792xbf16>,
    %c0_60 = arith.constant 0 : index
    %c18_61 = arith.constant 18 : index
    %52 = vector.load %arg9[%c0_60, %c18_61] : memref<2x1920xbf16, #tpu.memory_space<vmem>>, vector<2x1792xbf16>
    %c36 = arith.constant 36 : index
    %c0_62 = arith.constant 0 : index
    %53 = vector.load %arg10[%c36, %c0_62] : memref<102x1792xbf16, #tpu.memory_space<vmem>>, vector<2x1792xbf16>
    tpu.vector_store %arg10[%c36, %c0_62], %52 {strides = array<i32>} : memref<102x1792xbf16, #tpu.memory_space<vmem>>, vector<2x1792xbf16>,
    %c0_63 = arith.constant 0 : index
    %c19 = arith.constant 19 : index
    %54 = vector.load %arg9[%c0_63, %c19] : memref<2x1920xbf16, #tpu.memory_space<vmem>>, vector<2x1792xbf16>
    %c38 = arith.constant 38 : index
    %c0_64 = arith.constant 0 : index
    %55 = vector.load %arg10[%c38, %c0_64] : memref<102x1792xbf16, #tpu.memory_space<vmem>>, vector<2x1792xbf16>
    tpu.vector_store %arg10[%c38, %c0_64], %54 {strides = array<i32>} : memref<102x1792xbf16, #tpu.memory_space<vmem>>, vector<2x1792xbf16>,
    %c0_65 = arith.constant 0 : index
    %c20_66 = arith.constant 20 : index
    %56 = vector.load %arg9[%c0_65, %c20_66] : memref<2x1920xbf16, #tpu.memory_space<vmem>>, vector<2x1792xbf16>
    %c40 = arith.constant 40 : index
    %c0_67 = arith.constant 0 : index
    %57 = vector.load %arg10[%c40, %c0_67] : memref<102x1792xbf16, #tpu.memory_space<vmem>>, vector<2x1792xbf16>
    tpu.vector_store %arg10[%c40, %c0_67], %56 {strides = array<i32>} : memref<102x1792xbf16, #tpu.memory_space<vmem>>, vector<2x1792xbf16>,
    %c0_68 = arith.constant 0 : index
    %c21 = arith.constant 21 : index
    %58 = vector.load %arg9[%c0_68, %c21] : memref<2x1920xbf16, #tpu.memory_space<vmem>>, vector<2x1792xbf16>
    %c42 = arith.constant 42 : index
    %c0_69 = arith.constant 0 : index
    %59 = vector.load %arg10[%c42, %c0_69] : memref<102x1792xbf16, #tpu.memory_space<vmem>>, vector<2x1792xbf16>
    tpu.vector_store %arg10[%c42, %c0_69], %58 {strides = array<i32>} : memref<102x1792xbf16, #tpu.memory_space<vmem>>, vector<2x1792xbf16>,
    %c0_70 = arith.constant 0 : index
    %c22_71 = arith.constant 22 : index
    %60 = vector.load %arg9[%c0_70, %c22_71] : memref<2x1920xbf16, #tpu.memory_space<vmem>>, vector<2x1792xbf16>
    %c44 = arith.constant 44 : index
    %c0_72 = arith.constant 0 : index
    %61 = vector.load %arg10[%c44, %c0_72] : memref<102x1792xbf16, #tpu.memory_space<vmem>>, vector<2x1792xbf16>
    tpu.vector_store %arg10[%c44, %c0_72], %60 {strides = array<i32>} : memref<102x1792xbf16, #tpu.memory_space<vmem>>, vector<2x1792xbf16>,
    %c0_73 = arith.constant 0 : index
    %c23 = arith.constant 23 : index
    %62 = vector.load %arg9[%c0_73, %c23] : memref<2x1920xbf16, #tpu.memory_space<vmem>>, vector<2x1792xbf16>
    %c46 = arith.constant 46 : index
    %c0_74 = arith.constant 0 : index
    %63 = vector.load %arg10[%c46, %c0_74] : memref<102x1792xbf16, #tpu.memory_space<vmem>>, vector<2x1792xbf16>
    tpu.vector_store %arg10[%c46, %c0_74], %62 {strides = array<i32>} : memref<102x1792xbf16, #tpu.memory_space<vmem>>, vector<2x1792xbf16>,
    %c0_75 = arith.constant 0 : index
    %c24_76 = arith.constant 24 : index
    %64 = vector.load %arg9[%c0_75, %c24_76] : memref<2x1920xbf16, #tpu.memory_space<vmem>>, vector<2x1792xbf16>
    %c48 = arith.constant 48 : index
    %c0_77 = arith.constant 0 : index
    %65 = vector.load %arg10[%c48, %c0_77] : memref<102x1792xbf16, #tpu.memory_space<vmem>>, vector<2x1792xbf16>
    tpu.vector_store %arg10[%c48, %c0_77], %64 {strides = array<i32>} : memref<102x1792xbf16, #tpu.memory_space<vmem>>, vector<2x1792xbf16>,
    %c0_78 = arith.constant 0 : index
    %c25_79 = arith.constant 25 : index
    %66 = vector.load %arg9[%c0_78, %c25_79] : memref<2x1920xbf16, #tpu.memory_space<vmem>>, vector<2x1792xbf16>
    %c50 = arith.constant 50 : index
    %c0_80 = arith.constant 0 : index
    %67 = vector.load %arg10[%c50, %c0_80] : memref<102x1792xbf16, #tpu.memory_space<vmem>>, vector<2x1792xbf16>
    tpu.vector_store %arg10[%c50, %c0_80], %66 {strides = array<i32>} : memref<102x1792xbf16, #tpu.memory_space<vmem>>, vector<2x1792xbf16>,
    %c0_81 = arith.constant 0 : index
    %c26_82 = arith.constant 26 : index
    %68 = vector.load %arg9[%c0_81, %c26_82] : memref<2x1920xbf16, #tpu.memory_space<vmem>>, vector<2x1792xbf16>
    %c52 = arith.constant 52 : index
    %c0_83 = arith.constant 0 : index
    %69 = vector.load %arg10[%c52, %c0_83] : memref<102x1792xbf16, #tpu.memory_space<vmem>>, vector<2x1792xbf16>
    tpu.vector_store %arg10[%c52, %c0_83], %68 {strides = array<i32>} : memref<102x1792xbf16, #tpu.memory_space<vmem>>, vector<2x1792xbf16>,
    %c0_84 = arith.constant 0 : index
    %c27 = arith.constant 27 : index
    %70 = vector.load %arg9[%c0_84, %c27] : memref<2x1920xbf16, #tpu.memory_space<vmem>>, vector<2x1792xbf16>
    %c54 = arith.constant 54 : index
    %c0_85 = arith.constant 0 : index
    %71 = vector.load %arg10[%c54, %c0_85] : memref<102x1792xbf16, #tpu.memory_space<vmem>>, vector<2x1792xbf16>
    tpu.vector_store %arg10[%c54, %c0_85], %70 {strides = array<i32>} : memref<102x1792xbf16, #tpu.memory_space<vmem>>, vector<2x1792xbf16>,
    %c0_86 = arith.constant 0 : index
    %c28_87 = arith.constant 28 : index
    %72 = vector.load %arg9[%c0_86, %c28_87] : memref<2x1920xbf16, #tpu.memory_space<vmem>>, vector<2x1792xbf16>
    %c56 = arith.constant 56 : index
    %c0_88 = arith.constant 0 : index
    %73 = vector.load %arg10[%c56, %c0_88] : memref<102x1792xbf16, #tpu.memory_space<vmem>>, vector<2x1792xbf16>
    tpu.vector_store %arg10[%c56, %c0_88], %72 {strides = array<i32>} : memref<102x1792xbf16, #tpu.memory_space<vmem>>, vector<2x1792xbf16>,
    %c0_89 = arith.constant 0 : index
    %c29 = arith.constant 29 : index
    %74 = vector.load %arg9[%c0_89, %c29] : memref<2x1920xbf16, #tpu.memory_space<vmem>>, vector<2x1792xbf16>
    %c58 = arith.constant 58 : index
    %c0_90 = arith.constant 0 : index
    %75 = vector.load %arg10[%c58, %c0_90] : memref<102x1792xbf16, #tpu.memory_space<vmem>>, vector<2x1792xbf16>
    tpu.vector_store %arg10[%c58, %c0_90], %74 {strides = array<i32>} : memref<102x1792xbf16, #tpu.memory_space<vmem>>, vector<2x1792xbf16>,
    %c0_91 = arith.constant 0 : index
    %c30_92 = arith.constant 30 : index
    %76 = vector.load %arg9[%c0_91, %c30_92] : memref<2x1920xbf16, #tpu.memory_space<vmem>>, vector<2x1792xbf16>
    %c60 = arith.constant 60 : index
    %c0_93 = arith.constant 0 : index
    %77 = vector.load %arg10[%c60, %c0_93] : memref<102x1792xbf16, #tpu.memory_space<vmem>>, vector<2x1792xbf16>
    tpu.vector_store %arg10[%c60, %c0_93], %76 {strides = array<i32>} : memref<102x1792xbf16, #tpu.memory_space<vmem>>, vector<2x1792xbf16>,
    %c0_94 = arith.constant 0 : index
    %c31 = arith.constant 31 : index
    %78 = vector.load %arg9[%c0_94, %c31] : memref<2x1920xbf16, #tpu.memory_space<vmem>>, vector<2x1792xbf16>
    %c62 = arith.constant 62 : index
    %c0_95 = arith.constant 0 : index
    %79 = vector.load %arg10[%c62, %c0_95] : memref<102x1792xbf16, #tpu.memory_space<vmem>>, vector<2x1792xbf16>
    tpu.vector_store %arg10[%c62, %c0_95], %78 {strides = array<i32>} : memref<102x1792xbf16, #tpu.memory_space<vmem>>, vector<2x1792xbf16>,
    %c0_96 = arith.constant 0 : index
    %c32_97 = arith.constant 32 : index
    %80 = vector.load %arg9[%c0_96, %c32_97] : memref<2x1920xbf16, #tpu.memory_space<vmem>>, vector<2x1792xbf16>
    %c64 = arith.constant 64 : index
    %c0_98 = arith.constant 0 : index
    %81 = vector.load %arg10[%c64, %c0_98] : memref<102x1792xbf16, #tpu.memory_space<vmem>>, vector<2x1792xbf16>
    tpu.vector_store %arg10[%c64, %c0_98], %80 {strides = array<i32>} : memref<102x1792xbf16, #tpu.memory_space<vmem>>, vector<2x1792xbf16>,
    %c0_99 = arith.constant 0 : index
    %c33 = arith.constant 33 : index
    %82 = vector.load %arg9[%c0_99, %c33] : memref<2x1920xbf16, #tpu.memory_space<vmem>>, vector<2x1792xbf16>
    %c66 = arith.constant 66 : index
    %c0_100 = arith.constant 0 : index
    %83 = vector.load %arg10[%c66, %c0_100] : memref<102x1792xbf16, #tpu.memory_space<vmem>>, vector<2x1792xbf16>
    tpu.vector_store %arg10[%c66, %c0_100], %82 {strides = array<i32>} : memref<102x1792xbf16, #tpu.memory_space<vmem>>, vector<2x1792xbf16>,
    %c0_101 = arith.constant 0 : index
    %c34_102 = arith.constant 34 : index
    %84 = vector.load %arg9[%c0_101, %c34_102] : memref<2x1920xbf16, #tpu.memory_space<vmem>>, vector<2x1792xbf16>
    %c68 = arith.constant 68 : index
    %c0_103 = arith.constant 0 : index
    %85 = vector.load %arg10[%c68, %c0_103] : memref<102x1792xbf16, #tpu.memory_space<vmem>>, vector<2x1792xbf16>
    tpu.vector_store %arg10[%c68, %c0_103], %84 {strides = array<i32>} : memref<102x1792xbf16, #tpu.memory_space<vmem>>, vector<2x1792xbf16>,
    %c0_104 = arith.constant 0 : index
    %c35 = arith.constant 35 : index
    %86 = vector.load %arg9[%c0_104, %c35] : memref<2x1920xbf16, #tpu.memory_space<vmem>>, vector<2x1792xbf16>
    %c70 = arith.constant 70 : index
    %c0_105 = arith.constant 0 : index
    %87 = vector.load %arg10[%c70, %c0_105] : memref<102x1792xbf16, #tpu.memory_space<vmem>>, vector<2x1792xbf16>
    tpu.vector_store %arg10[%c70, %c0_105], %86 {strides = array<i32>} : memref<102x1792xbf16, #tpu.memory_space<vmem>>, vector<2x1792xbf16>,
    %c0_106 = arith.constant 0 : index
    %c36_107 = arith.constant 36 : index
    %88 = vector.load %arg9[%c0_106, %c36_107] : memref<2x1920xbf16, #tpu.memory_space<vmem>>, vector<2x1792xbf16>
    %c72 = arith.constant 72 : index
    %c0_108 = arith.constant 0 : index
    %89 = vector.load %arg10[%c72, %c0_108] : memref<102x1792xbf16, #tpu.memory_space<vmem>>, vector<2x1792xbf16>
    tpu.vector_store %arg10[%c72, %c0_108], %88 {strides = array<i32>} : memref<102x1792xbf16, #tpu.memory_space<vmem>>, vector<2x1792xbf16>,
    %c0_109 = arith.constant 0 : index
    %c37 = arith.constant 37 : index
    %90 = vector.load %arg9[%c0_109, %c37] : memref<2x1920xbf16, #tpu.memory_space<vmem>>, vector<2x1792xbf16>
    %c74 = arith.constant 74 : index
    %c0_110 = arith.constant 0 : index
    %91 = vector.load %arg10[%c74, %c0_110] : memref<102x1792xbf16, #tpu.memory_space<vmem>>, vector<2x1792xbf16>
    tpu.vector_store %arg10[%c74, %c0_110], %90 {strides = array<i32>} : memref<102x1792xbf16, #tpu.memory_space<vmem>>, vector<2x1792xbf16>,
    %c0_111 = arith.constant 0 : index
    %c38_112 = arith.constant 38 : index
    %92 = vector.load %arg9[%c0_111, %c38_112] : memref<2x1920xbf16, #tpu.memory_space<vmem>>, vector<2x1792xbf16>
    %c76 = arith.constant 76 : index
    %c0_113 = arith.constant 0 : index
    %93 = vector.load %arg10[%c76, %c0_113] : memref<102x1792xbf16, #tpu.memory_space<vmem>>, vector<2x1792xbf16>
    tpu.vector_store %arg10[%c76, %c0_113], %92 {strides = array<i32>} : memref<102x1792xbf16, #tpu.memory_space<vmem>>, vector<2x1792xbf16>,
    %c0_114 = arith.constant 0 : index
    %c39 = arith.constant 39 : index
    %94 = vector.load %arg9[%c0_114, %c39] : memref<2x1920xbf16, #tpu.memory_space<vmem>>, vector<2x1792xbf16>
    %c78 = arith.constant 78 : index
    %c0_115 = arith.constant 0 : index
    %95 = vector.load %arg10[%c78, %c0_115] : memref<102x1792xbf16, #tpu.memory_space<vmem>>, vector<2x1792xbf16>
    tpu.vector_store %arg10[%c78, %c0_115], %94 {strides = array<i32>} : memref<102x1792xbf16, #tpu.memory_space<vmem>>, vector<2x1792xbf16>,
    %c0_116 = arith.constant 0 : index
    %c40_117 = arith.constant 40 : index
    %96 = vector.load %arg9[%c0_116, %c40_117] : memref<2x1920xbf16, #tpu.memory_space<vmem>>, vector<2x1792xbf16>
    %c80 = arith.constant 80 : index
    %c0_118 = arith.constant 0 : index
    %97 = vector.load %arg10[%c80, %c0_118] : memref<102x1792xbf16, #tpu.memory_space<vmem>>, vector<2x1792xbf16>
    tpu.vector_store %arg10[%c80, %c0_118], %96 {strides = array<i32>} : memref<102x1792xbf16, #tpu.memory_space<vmem>>, vector<2x1792xbf16>,
    %c0_119 = arith.constant 0 : index
    %c41 = arith.constant 41 : index
    %98 = vector.load %arg9[%c0_119, %c41] : memref<2x1920xbf16, #tpu.memory_space<vmem>>, vector<2x1792xbf16>
    %c82 = arith.constant 82 : index
    %c0_120 = arith.constant 0 : index
    %99 = vector.load %arg10[%c82, %c0_120] : memref<102x1792xbf16, #tpu.memory_space<vmem>>, vector<2x1792xbf16>
    tpu.vector_store %arg10[%c82, %c0_120], %98 {strides = array<i32>} : memref<102x1792xbf16, #tpu.memory_space<vmem>>, vector<2x1792xbf16>,
    %c0_121 = arith.constant 0 : index
    %c42_122 = arith.constant 42 : index
    %100 = vector.load %arg9[%c0_121, %c42_122] : memref<2x1920xbf16, #tpu.memory_space<vmem>>, vector<2x1792xbf16>
    %c84 = arith.constant 84 : index
    %c0_123 = arith.constant 0 : index
    %101 = vector.load %arg10[%c84, %c0_123] : memref<102x1792xbf16, #tpu.memory_space<vmem>>, vector<2x1792xbf16>
    tpu.vector_store %arg10[%c84, %c0_123], %100 {strides = array<i32>} : memref<102x1792xbf16, #tpu.memory_space<vmem>>, vector<2x1792xbf16>,
    %c0_124 = arith.constant 0 : index
    %c43 = arith.constant 43 : index
    %102 = vector.load %arg9[%c0_124, %c43] : memref<2x1920xbf16, #tpu.memory_space<vmem>>, vector<2x1792xbf16>
    %c86 = arith.constant 86 : index
    %c0_125 = arith.constant 0 : index
    %103 = vector.load %arg10[%c86, %c0_125] : memref<102x1792xbf16, #tpu.memory_space<vmem>>, vector<2x1792xbf16>
    tpu.vector_store %arg10[%c86, %c0_125], %102 {strides = array<i32>} : memref<102x1792xbf16, #tpu.memory_space<vmem>>, vector<2x1792xbf16>,
    %c0_126 = arith.constant 0 : index
    %c44_127 = arith.constant 44 : index
    %104 = vector.load %arg9[%c0_126, %c44_127] : memref<2x1920xbf16, #tpu.memory_space<vmem>>, vector<2x1792xbf16>
    %c88 = arith.constant 88 : index
    %c0_128 = arith.constant 0 : index
    %105 = vector.load %arg10[%c88, %c0_128] : memref<102x1792xbf16, #tpu.memory_space<vmem>>, vector<2x1792xbf16>
    tpu.vector_store %arg10[%c88, %c0_128], %104 {strides = array<i32>} : memref<102x1792xbf16, #tpu.memory_space<vmem>>, vector<2x1792xbf16>,
    %c0_129 = arith.constant 0 : index
    %c45 = arith.constant 45 : index
    %106 = vector.load %arg9[%c0_129, %c45] : memref<2x1920xbf16, #tpu.memory_space<vmem>>, vector<2x1792xbf16>
    %c90 = arith.constant 90 : index
    %c0_130 = arith.constant 0 : index
    %107 = vector.load %arg10[%c90, %c0_130] : memref<102x1792xbf16, #tpu.memory_space<vmem>>, vector<2x1792xbf16>
    tpu.vector_store %arg10[%c90, %c0_130], %106 {strides = array<i32>} : memref<102x1792xbf16, #tpu.memory_space<vmem>>, vector<2x1792xbf16>,
    %c0_131 = arith.constant 0 : index
    %c46_132 = arith.constant 46 : index
    %108 = vector.load %arg9[%c0_131, %c46_132] : memref<2x1920xbf16, #tpu.memory_space<vmem>>, vector<2x1792xbf16>
    %c92 = arith.constant 92 : index
    %c0_133 = arith.constant 0 : index
    %109 = vector.load %arg10[%c92, %c0_133] : memref<102x1792xbf16, #tpu.memory_space<vmem>>, vector<2x1792xbf16>
    tpu.vector_store %arg10[%c92, %c0_133], %108 {strides = array<i32>} : memref<102x1792xbf16, #tpu.memory_space<vmem>>, vector<2x1792xbf16>,
    %c0_134 = arith.constant 0 : index
    %c47 = arith.constant 47 : index
    %110 = vector.load %arg9[%c0_134, %c47] : memref<2x1920xbf16, #tpu.memory_space<vmem>>, vector<2x1792xbf16>
    %c94 = arith.constant 94 : index
    %c0_135 = arith.constant 0 : index
    %111 = vector.load %arg10[%c94, %c0_135] : memref<102x1792xbf16, #tpu.memory_space<vmem>>, vector<2x1792xbf16>
    tpu.vector_store %arg10[%c94, %c0_135], %110 {strides = array<i32>} : memref<102x1792xbf16, #tpu.memory_space<vmem>>, vector<2x1792xbf16>,
    %c0_136 = arith.constant 0 : index
    %c48_137 = arith.constant 48 : index
    %112 = vector.load %arg9[%c0_136, %c48_137] : memref<2x1920xbf16, #tpu.memory_space<vmem>>, vector<2x1792xbf16>
    %c96 = arith.constant 96 : index
    %c0_138 = arith.constant 0 : index
    %113 = vector.load %arg10[%c96, %c0_138] : memref<102x1792xbf16, #tpu.memory_space<vmem>>, vector<2x1792xbf16>
    tpu.vector_store %arg10[%c96, %c0_138], %112 {strides = array<i32>} : memref<102x1792xbf16, #tpu.memory_space<vmem>>, vector<2x1792xbf16>,
    %c0_139 = arith.constant 0 : index
    %c49 = arith.constant 49 : index
    %114 = vector.load %arg9[%c0_139, %c49] : memref<2x1920xbf16, #tpu.memory_space<vmem>>, vector<2x1792xbf16>
    %c98 = arith.constant 98 : index
    %c0_140 = arith.constant 0 : index
    %115 = vector.load %arg10[%c98, %c0_140] : memref<102x1792xbf16, #tpu.memory_space<vmem>>, vector<2x1792xbf16>
    tpu.vector_store %arg10[%c98, %c0_140], %114 {strides = array<i32>} : memref<102x1792xbf16, #tpu.memory_space<vmem>>, vector<2x1792xbf16>,
    %c0_141 = arith.constant 0 : index
    %c50_142 = arith.constant 50 : index
    %116 = vector.load %arg9[%c0_141, %c50_142] : memref<2x1920xbf16, #tpu.memory_space<vmem>>, vector<2x1792xbf16>
    %c100 = arith.constant 100 : index
    %c0_143 = arith.constant 0 : index
    %117 = vector.load %arg10[%c100, %c0_143] : memref<102x1792xbf16, #tpu.memory_space<vmem>>, vector<2x1792xbf16>
    tpu.vector_store %arg10[%c100, %c0_143], %116 {strides = array<i32>} : memref<102x1792xbf16, #tpu.memory_space<vmem>>, vector<2x1792xbf16>,
    %c0_144 = arith.constant 0 : index
    %c0_145 = arith.constant 0 : index
    %118 = vector.load %arg1[%c0_144, %c0_145] : memref<32x102xbf16, #tpu.memory_space<vmem>>, vector<32x102xbf16>
    %c0_146 = arith.constant 0 : index
    %c0_147 = arith.constant 0 : index
    %119 = vector.load %arg10[%c0_146, %c0_147] : memref<102x1792xbf16, #tpu.memory_space<vmem>>, vector<102x1792xbf16>
    %cst_148 = arith.constant dense<0.000000e+00> : vector<32x1792xf32>
    %120 = tpu.matmul %118, %119, %cst_148 {dimension_numbers = #tpu.dot_dimension_numbers<[1], [0], [0], [1], [0, 0, 1, 1], [], []>} : vector<32x102xbf16>, vector<102x1792xbf16>, vector<32x1792xf32> -> vector<32x1792xf32>
    %c0_149 = arith.constant 0 : index
    %c0_150 = arith.constant 0 : index
    %121 = vector.load %arg2[%c0_149, %c0_150] : memref<32x1xf32, #tpu.memory_space<vmem>>, vector<32x1xf32>
    %122 = vector.broadcast %121 : vector<32x1xf32> to vector<32x1792xf32>
    %123 = arith.addf %120, %122 : vector<32x1792xf32>
    %cst_151 = arith.constant 0.000000e+00 : f32
    %124 = vector.broadcast %cst_151 : f32 to vector<32x1792xf32>
    %125 = arith.cmpf ogt, %123, %124 : vector<32x1792xf32>
    %cst_152 = arith.constant 0.000000e+00 : f32
    %126 = vector.broadcast %cst_152 : f32 to vector<32x1792xf32>
    %127 = arith.minimumf %123, %126 : vector<32x1792xf32>
    %128 = math.exp %127 : vector<32x1792xf32>
    %cst_153 = arith.constant 1.000000e+00 : f32
    %129 = vector.broadcast %cst_153 : f32 to vector<32x1792xf32>
    %130 = arith.subf %128, %129 : vector<32x1792xf32>
    %131 = arith.select %125, %123, %130 : vector<32x1792xi1>, vector<32x1792xf32>
    %132 = arith.truncf %131 : vector<32x1792xf32> to vector<32x1792xbf16>
    %c0_154 = arith.constant 0 : index
    %c0_155 = arith.constant 0 : index
    %133 = vector.load %arg3[%c0_154, %c0_155] : memref<896x256xbf16, #tpu.memory_space<vmem>>, vector<896x256xbf16>
    %134 = vector.extract_strided_slice %132 {offsets = [0, 0], sizes = [32, 896], strides = [1, 1]} : vector<32x1792xbf16> to vector<32x896xbf16>
    %cst_156 = arith.constant dense<0.000000e+00> : vector<32x256xf32>
    %135 = tpu.matmul %134, %133, %cst_156 {dimension_numbers = #tpu.dot_dimension_numbers<[1], [0], [0], [1], [0, 0, 1, 1], [], []>} : vector<32x896xbf16>, vector<896x256xbf16>, vector<32x256xf32> -> vector<32x256xf32>
    %cst_157 = arith.constant 0.000000e+00 : bf16
    %136 = vector.broadcast %cst_157 : bf16 to vector<32x7xbf16>
    %c0_158 = arith.constant 0 : index
    %c0_159 = arith.constant 0 : index
    %137 = vector.load %arg11[%c0_158, %c0_159] : memref<32x640xbf16, #tpu.memory_space<vmem>>, vector<32x7xbf16>
    tpu.vector_store %arg11[%c0_158, %c0_159], %136 {strides = array<i32>} : memref<32x640xbf16, #tpu.memory_space<vmem>>, vector<32x7xbf16>,
    %cst_160 = arith.constant 0.000000e+00 : bf16
    %138 = vector.broadcast %cst_160 : bf16 to vector<32x62xbf16>
    %c0_161 = arith.constant 0 : index
    %c194 = arith.constant 194 : index
    %139 = vector.load %arg11[%c0_161, %c194] : memref<32x640xbf16, #tpu.memory_space<vmem>>, vector<32x62xbf16>
    tpu.vector_store %arg11[%c0_161, %c194], %138 {strides = array<i32>} : memref<32x640xbf16, #tpu.memory_space<vmem>>, vector<32x62xbf16>,
    %140 = vector.extract_strided_slice %135 {offsets = [0, 0], sizes = [32, 187], strides = [1, 1]} : vector<32x256xf32> to vector<32x187xf32>
    %141 = arith.truncf %140 : vector<32x187xf32> to vector<32x187xbf16>
    %c0_162 = arith.constant 0 : index
    %c7_163 = arith.constant 7 : index
    %142 = vector.load %arg11[%c0_162, %c7_163] : memref<32x640xbf16, #tpu.memory_space<vmem>>, vector<32x187xbf16>
    tpu.vector_store %arg11[%c0_162, %c7_163], %141 {strides = array<i32>} : memref<32x640xbf16, #tpu.memory_space<vmem>>, vector<32x187xbf16>,
    %143 = vector.extract_strided_slice %132 {offsets = [0, 896], sizes = [32, 896], strides = [1, 1]} : vector<32x1792xbf16> to vector<32x896xbf16>
    %cst_164 = arith.constant dense<0.000000e+00> : vector<32x256xf32>
    %144 = tpu.matmul %143, %133, %cst_164 {dimension_numbers = #tpu.dot_dimension_numbers<[1], [0], [0], [1], [0, 0, 1, 1], [], []>} : vector<32x896xbf16>, vector<896x256xbf16>, vector<32x256xf32> -> vector<32x256xf32>
    %cst_165 = arith.constant 0.000000e+00 : bf16
    %145 = vector.broadcast %cst_165 : bf16 to vector<32x7xbf16>
    %c0_166 = arith.constant 0 : index
    %c256 = arith.constant 256 : index
    %146 = vector.load %arg11[%c0_166, %c256] : memref<32x640xbf16, #tpu.memory_space<vmem>>, vector<32x7xbf16>
    tpu.vector_store %arg11[%c0_166, %c256], %145 {strides = array<i32>} : memref<32x640xbf16, #tpu.memory_space<vmem>>, vector<32x7xbf16>,
    %cst_167 = arith.constant 0.000000e+00 : bf16
    %147 = vector.broadcast %cst_167 : bf16 to vector<32x62xbf16>
    %c0_168 = arith.constant 0 : index
    %c450 = arith.constant 450 : index
    %148 = vector.load %arg11[%c0_168, %c450] : memref<32x640xbf16, #tpu.memory_space<vmem>>, vector<32x62xbf16>
    tpu.vector_store %arg11[%c0_168, %c450], %147 {strides = array<i32>} : memref<32x640xbf16, #tpu.memory_space<vmem>>, vector<32x62xbf16>,
    %149 = vector.extract_strided_slice %144 {offsets = [0, 0], sizes = [32, 187], strides = [1, 1]} : vector<32x256xf32> to vector<32x187xf32>
    %150 = arith.truncf %149 : vector<32x187xf32> to vector<32x187xbf16>
    %c0_169 = arith.constant 0 : index
    %c263 = arith.constant 263 : index
    %151 = vector.load %arg11[%c0_169, %c263] : memref<32x640xbf16, #tpu.memory_space<vmem>>, vector<32x187xbf16>
    tpu.vector_store %arg11[%c0_169, %c263], %150 {strides = array<i32>} : memref<32x640xbf16, #tpu.memory_space<vmem>>, vector<32x187xbf16>,
    %cst_170 = arith.constant 0.000000e+00 : bf16
    %152 = vector.broadcast %cst_170 : bf16 to vector<32x128xbf16>
    %c0_171 = arith.constant 0 : index
    %c512 = arith.constant 512 : index
    %153 = vector.load %arg11[%c0_171, %c512] : memref<32x640xbf16, #tpu.memory_space<vmem>>, vector<32x128xbf16>
    tpu.vector_store %arg11[%c0_171, %c512], %152 {strides = array<i32>} : memref<32x640xbf16, #tpu.memory_space<vmem>>, vector<32x128xbf16>,
    %c0_172 = arith.constant 0 : index
    %c0_173 = arith.constant 0 : index
    %154 = vector.load %arg11[%c0_172, %c0_173] : memref<32x640xbf16, #tpu.memory_space<vmem>>, vector<32x512xbf16>
    %c0_174 = arith.constant 0 : index
    %c0_175 = arith.constant 0 : index
    %155 = vector.load %arg12[%c0_174, %c0_175] : memref<480x512xbf16, #tpu.memory_space<vmem>>, vector<32x512xbf16>
    tpu.vector_store %arg12[%c0_174, %c0_175], %154 {strides = array<i32>} : memref<480x512xbf16, #tpu.memory_space<vmem>>, vector<32x512xbf16>,
    %c0_176 = arith.constant 0 : index
    %c1_177 = arith.constant 1 : index
    %156 = vector.load %arg11[%c0_176, %c1_177] : memref<32x640xbf16, #tpu.memory_space<vmem>>, vector<32x512xbf16>
    %c32_178 = arith.constant 32 : index
    %c0_179 = arith.constant 0 : index
    %157 = vector.load %arg12[%c32_178, %c0_179] : memref<480x512xbf16, #tpu.memory_space<vmem>>, vector<32x512xbf16>
    tpu.vector_store %arg12[%c32_178, %c0_179], %156 {strides = array<i32>} : memref<480x512xbf16, #tpu.memory_space<vmem>>, vector<32x512xbf16>,
    %c0_180 = arith.constant 0 : index
    %c2_181 = arith.constant 2 : index
    %158 = vector.load %arg11[%c0_180, %c2_181] : memref<32x640xbf16, #tpu.memory_space<vmem>>, vector<32x512xbf16>
    %c64_182 = arith.constant 64 : index
    %c0_183 = arith.constant 0 : index
    %159 = vector.load %arg12[%c64_182, %c0_183] : memref<480x512xbf16, #tpu.memory_space<vmem>>, vector<32x512xbf16>
    tpu.vector_store %arg12[%c64_182, %c0_183], %158 {strides = array<i32>} : memref<480x512xbf16, #tpu.memory_space<vmem>>, vector<32x512xbf16>,
    %c0_184 = arith.constant 0 : index
    %c3_185 = arith.constant 3 : index
    %160 = vector.load %arg11[%c0_184, %c3_185] : memref<32x640xbf16, #tpu.memory_space<vmem>>, vector<32x512xbf16>
    %c96_186 = arith.constant 96 : index
    %c0_187 = arith.constant 0 : index
    %161 = vector.load %arg12[%c96_186, %c0_187] : memref<480x512xbf16, #tpu.memory_space<vmem>>, vector<32x512xbf16>
    tpu.vector_store %arg12[%c96_186, %c0_187], %160 {strides = array<i32>} : memref<480x512xbf16, #tpu.memory_space<vmem>>, vector<32x512xbf16>,
    %c0_188 = arith.constant 0 : index
    %c4_189 = arith.constant 4 : index
    %162 = vector.load %arg11[%c0_188, %c4_189] : memref<32x640xbf16, #tpu.memory_space<vmem>>, vector<32x512xbf16>
    %c128 = arith.constant 128 : index
    %c0_190 = arith.constant 0 : index
    %163 = vector.load %arg12[%c128, %c0_190] : memref<480x512xbf16, #tpu.memory_space<vmem>>, vector<32x512xbf16>
    tpu.vector_store %arg12[%c128, %c0_190], %162 {strides = array<i32>} : memref<480x512xbf16, #tpu.memory_space<vmem>>, vector<32x512xbf16>,
    %c0_191 = arith.constant 0 : index
    %c5_192 = arith.constant 5 : index
    %164 = vector.load %arg11[%c0_191, %c5_192] : memref<32x640xbf16, #tpu.memory_space<vmem>>, vector<32x512xbf16>
    %c160 = arith.constant 160 : index
    %c0_193 = arith.constant 0 : index
    %165 = vector.load %arg12[%c160, %c0_193] : memref<480x512xbf16, #tpu.memory_space<vmem>>, vector<32x512xbf16>
    tpu.vector_store %arg12[%c160, %c0_193], %164 {strides = array<i32>} : memref<480x512xbf16, #tpu.memory_space<vmem>>, vector<32x512xbf16>,
    %c0_194 = arith.constant 0 : index
    %c6_195 = arith.constant 6 : index
    %166 = vector.load %arg11[%c0_194, %c6_195] : memref<32x640xbf16, #tpu.memory_space<vmem>>, vector<32x512xbf16>
    %c192 = arith.constant 192 : index
    %c0_196 = arith.constant 0 : index
    %167 = vector.load %arg12[%c192, %c0_196] : memref<480x512xbf16, #tpu.memory_space<vmem>>, vector<32x512xbf16>
    tpu.vector_store %arg12[%c192, %c0_196], %166 {strides = array<i32>} : memref<480x512xbf16, #tpu.memory_space<vmem>>, vector<32x512xbf16>,
    %c0_197 = arith.constant 0 : index
    %c7_198 = arith.constant 7 : index
    %168 = vector.load %arg11[%c0_197, %c7_198] : memref<32x640xbf16, #tpu.memory_space<vmem>>, vector<32x512xbf16>
    %c224 = arith.constant 224 : index
    %c0_199 = arith.constant 0 : index
    %169 = vector.load %arg12[%c224, %c0_199] : memref<480x512xbf16, #tpu.memory_space<vmem>>, vector<32x512xbf16>
    tpu.vector_store %arg12[%c224, %c0_199], %168 {strides = array<i32>} : memref<480x512xbf16, #tpu.memory_space<vmem>>, vector<32x512xbf16>,
    %c0_200 = arith.constant 0 : index
    %c8_201 = arith.constant 8 : index
    %170 = vector.load %arg11[%c0_200, %c8_201] : memref<32x640xbf16, #tpu.memory_space<vmem>>, vector<32x512xbf16>
    %c256_202 = arith.constant 256 : index
    %c0_203 = arith.constant 0 : index
    %171 = vector.load %arg12[%c256_202, %c0_203] : memref<480x512xbf16, #tpu.memory_space<vmem>>, vector<32x512xbf16>
    tpu.vector_store %arg12[%c256_202, %c0_203], %170 {strides = array<i32>} : memref<480x512xbf16, #tpu.memory_space<vmem>>, vector<32x512xbf16>,
    %c0_204 = arith.constant 0 : index
    %c9_205 = arith.constant 9 : index
    %172 = vector.load %arg11[%c0_204, %c9_205] : memref<32x640xbf16, #tpu.memory_space<vmem>>, vector<32x512xbf16>
    %c288 = arith.constant 288 : index
    %c0_206 = arith.constant 0 : index
    %173 = vector.load %arg12[%c288, %c0_206] : memref<480x512xbf16, #tpu.memory_space<vmem>>, vector<32x512xbf16>
    tpu.vector_store %arg12[%c288, %c0_206], %172 {strides = array<i32>} : memref<480x512xbf16, #tpu.memory_space<vmem>>, vector<32x512xbf16>,
    %c0_207 = arith.constant 0 : index
    %c10_208 = arith.constant 10 : index
    %174 = vector.load %arg11[%c0_207, %c10_208] : memref<32x640xbf16, #tpu.memory_space<vmem>>, vector<32x512xbf16>
    %c320 = arith.constant 320 : index
    %c0_209 = arith.constant 0 : index
    %175 = vector.load %arg12[%c320, %c0_209] : memref<480x512xbf16, #tpu.memory_space<vmem>>, vector<32x512xbf16>
    tpu.vector_store %arg12[%c320, %c0_209], %174 {strides = array<i32>} : memref<480x512xbf16, #tpu.memory_space<vmem>>, vector<32x512xbf16>,
    %c0_210 = arith.constant 0 : index
    %c11_211 = arith.constant 11 : index
    %176 = vector.load %arg11[%c0_210, %c11_211] : memref<32x640xbf16, #tpu.memory_space<vmem>>, vector<32x512xbf16>
    %c352 = arith.constant 352 : index
    %c0_212 = arith.constant 0 : index
    %177 = vector.load %arg12[%c352, %c0_212] : memref<480x512xbf16, #tpu.memory_space<vmem>>, vector<32x512xbf16>
    tpu.vector_store %arg12[%c352, %c0_212], %176 {strides = array<i32>} : memref<480x512xbf16, #tpu.memory_space<vmem>>, vector<32x512xbf16>,
    %c0_213 = arith.constant 0 : index
    %c12_214 = arith.constant 12 : index
    %178 = vector.load %arg11[%c0_213, %c12_214] : memref<32x640xbf16, #tpu.memory_space<vmem>>, vector<32x512xbf16>
    %c384 = arith.constant 384 : index
    %c0_215 = arith.constant 0 : index
    %179 = vector.load %arg12[%c384, %c0_215] : memref<480x512xbf16, #tpu.memory_space<vmem>>, vector<32x512xbf16>
    tpu.vector_store %arg12[%c384, %c0_215], %178 {strides = array<i32>} : memref<480x512xbf16, #tpu.memory_space<vmem>>, vector<32x512xbf16>,
    %c0_216 = arith.constant 0 : index
    %c13_217 = arith.constant 13 : index
    %180 = vector.load %arg11[%c0_216, %c13_217] : memref<32x640xbf16, #tpu.memory_space<vmem>>, vector<32x512xbf16>
    %c416 = arith.constant 416 : index
    %c0_218 = arith.constant 0 : index
    %181 = vector.load %arg12[%c416, %c0_218] : memref<480x512xbf16, #tpu.memory_space<vmem>>, vector<32x512xbf16>
    tpu.vector_store %arg12[%c416, %c0_218], %180 {strides = array<i32>} : memref<480x512xbf16, #tpu.memory_space<vmem>>, vector<32x512xbf16>,
    %c0_219 = arith.constant 0 : index
    %c14_220 = arith.constant 14 : index
    %182 = vector.load %arg11[%c0_219, %c14_220] : memref<32x640xbf16, #tpu.memory_space<vmem>>, vector<32x512xbf16>
    %c448 = arith.constant 448 : index
    %c0_221 = arith.constant 0 : index
    %183 = vector.load %arg12[%c448, %c0_221] : memref<480x512xbf16, #tpu.memory_space<vmem>>, vector<32x512xbf16>
    tpu.vector_store %arg12[%c448, %c0_221], %182 {strides = array<i32>} : memref<480x512xbf16, #tpu.memory_space<vmem>>, vector<32x512xbf16>,
    %c0_222 = arith.constant 0 : index
    %c0_223 = arith.constant 0 : index
    %184 = vector.load %arg4[%c0_222, %c0_223] : memref<32x480xbf16, #tpu.memory_space<vmem>>, vector<32x480xbf16>
    %c0_224 = arith.constant 0 : index
    %c0_225 = arith.constant 0 : index
    %185 = vector.load %arg12[%c0_224, %c0_225] : memref<480x512xbf16, #tpu.memory_space<vmem>>, vector<480x512xbf16>
    %cst_226 = arith.constant dense<0.000000e+00> : vector<32x512xf32>
    %186 = tpu.matmul %184, %185, %cst_226 {dimension_numbers = #tpu.dot_dimension_numbers<[1], [0], [0], [1], [0, 0, 1, 1], [], []>} : vector<32x480xbf16>, vector<480x512xbf16>, vector<32x512xf32> -> vector<32x512xf32>
    %c0_227 = arith.constant 0 : index
    %c0_228 = arith.constant 0 : index
    %187 = vector.load %arg5[%c0_227, %c0_228] : memref<32x1xf32, #tpu.memory_space<vmem>>, vector<32x1xf32>
    %188 = vector.broadcast %187 : vector<32x1xf32> to vector<32x512xf32>
    %189 = arith.addf %186, %188 : vector<32x512xf32>
    %cst_229 = arith.constant 0.000000e+00 : f32
    %190 = vector.broadcast %cst_229 : f32 to vector<32x512xf32>
    %191 = arith.cmpf ogt, %189, %190 : vector<32x512xf32>
    %cst_230 = arith.constant 0.000000e+00 : f32
    %192 = vector.broadcast %cst_230 : f32 to vector<32x512xf32>
    %193 = arith.minimumf %189, %192 : vector<32x512xf32>
    %194 = math.exp %193 : vector<32x512xf32>
    %cst_231 = arith.constant 1.000000e+00 : f32
    %195 = vector.broadcast %cst_231 : f32 to vector<32x512xf32>
    %196 = arith.subf %194, %195 : vector<32x512xf32>
    %197 = arith.select %191, %189, %196 : vector<32x512xi1>, vector<32x512xf32>
    %c0_232 = arith.constant 0 : index
    %c0_233 = arith.constant 0 : index
    %c0_234 = arith.constant 0 : index
    %198 = vector.load %arg6[%c0_232, %c0_233, %c0_234] : memref<2x32x256xf32, #tpu.memory_space<vmem>>, vector<1x32x256xf32>
    %199 = vector.shape_cast %198 : vector<1x32x256xf32> to vector<32x256xf32>
    %c1_235 = arith.constant 1 : index
    %c0_236 = arith.constant 0 : index
    %c0_237 = arith.constant 0 : index
    %200 = vector.load %arg6[%c1_235, %c0_236, %c0_237] : memref<2x32x256xf32, #tpu.memory_space<vmem>>, vector<1x32x256xf32>
    %201 = vector.shape_cast %200 : vector<1x32x256xf32> to vector<32x256xf32>
    %202 = vector.extract_strided_slice %197 {offsets = [0, 0], sizes = [32, 256], strides = [1, 1]} : vector<32x512xf32> to vector<32x256xf32>
    %203 = arith.mulf %202, %199 : vector<32x256xf32>
    %cst_238 = arith.constant dense<0.000000e+00> : vector<32xf32>
    %204 = vector.multi_reduction <add>, %203, %cst_238 [1] : vector<32x256xf32> to vector<32xf32>
    %205 = vector.shape_cast %204 : vector<32xf32> to vector<32x1xf32>
    %cst_239 = arith.constant dense<0.000000e+00> : vector<1xf32>
    %206 = vector.multi_reduction <add>, %205, %cst_239 [0] : vector<32x1xf32> to vector<1xf32>
    %207 = vector.shape_cast %206 : vector<1xf32> to vector<1x1xf32>
    %208 = arith.mulf %202, %201 : vector<32x256xf32>
    %cst_240 = arith.constant dense<0.000000e+00> : vector<32xf32>
    %209 = vector.multi_reduction <add>, %208, %cst_240 [1] : vector<32x256xf32> to vector<32xf32>
    %210 = vector.shape_cast %209 : vector<32xf32> to vector<32x1xf32>
    %cst_241 = arith.constant dense<0.000000e+00> : vector<1xf32>
    %211 = vector.multi_reduction <add>, %210, %cst_241 [0] : vector<32x1xf32> to vector<1xf32>
    %212 = vector.shape_cast %211 : vector<1xf32> to vector<1x1xf32>
    %213 = tpu.concatenate %207, %212 in 1 : vector<1x1xf32>, vector<1x1xf32> -> vector<1x2xf32>
    %214 = vector.extract_strided_slice %197 {offsets = [0, 256], sizes = [32, 256], strides = [1, 1]} : vector<32x512xf32> to vector<32x256xf32>
    %215 = arith.mulf %214, %199 : vector<32x256xf32>
    %cst_242 = arith.constant dense<0.000000e+00> : vector<32xf32>
    %216 = vector.multi_reduction <add>, %215, %cst_242 [1] : vector<32x256xf32> to vector<32xf32>
    %217 = vector.shape_cast %216 : vector<32xf32> to vector<32x1xf32>
    %cst_243 = arith.constant dense<0.000000e+00> : vector<1xf32>
    %218 = vector.multi_reduction <add>, %217, %cst_243 [0] : vector<32x1xf32> to vector<1xf32>
    %219 = vector.shape_cast %218 : vector<1xf32> to vector<1x1xf32>
    %220 = arith.mulf %214, %201 : vector<32x256xf32>
    %cst_244 = arith.constant dense<0.000000e+00> : vector<32xf32>
    %221 = vector.multi_reduction <add>, %220, %cst_244 [1] : vector<32x256xf32> to vector<32xf32>
    %222 = vector.shape_cast %221 : vector<32xf32> to vector<32x1xf32>
    %cst_245 = arith.constant dense<0.000000e+00> : vector<1xf32>
    %223 = vector.multi_reduction <add>, %222, %cst_245 [0] : vector<32x1xf32> to vector<1xf32>
    %224 = vector.shape_cast %223 : vector<1xf32> to vector<1x1xf32>
    %225 = tpu.concatenate %219, %224 in 1 : vector<1x1xf32>, vector<1x1xf32> -> vector<1x2xf32>
    %226 = tpu.concatenate %213, %225 in 0 : vector<1x2xf32>, vector<1x2xf32> -> vector<2x2xf32>
    %c0_246 = arith.constant 0 : index
    %c0_247 = arith.constant 0 : index
    %227 = vector.load %arg7[%c0_246, %c0_247] : memref<1x2xf32, #tpu.memory_space<vmem>>, vector<1x2xf32>
    %228 = vector.broadcast %227 : vector<1x2xf32> to vector<2x2xf32>
    %229 = arith.addf %226, %228 : vector<2x2xf32>
    %c0_248 = arith.constant 0 : index
    %c0_249 = arith.constant 0 : index
    %230 = vector.load %arg8[%c0_248, %c0_249] : memref<2x2xf32, #tpu.memory_space<vmem>>, vector<2x2xf32>
    tpu.vector_store %arg8[%c0_248, %c0_249], %229 {strides = array<i32>} : memref<2x2xf32, #tpu.memory_space<vmem>>, vector<2x2xf32>,
    return
  }
}

</mosaic_0001>

<bundles_post_ra>
// kernel: eegnet_pallas.1
= control target key start
LH: loop header
LB: loop body
LE: loop exit
PB: predicated region body
PF: predicated region fallthrough
CT: control target
= control target key end

     0   :  { %s19439_s0 = inlined_call_operand.vmem [shape: f32[2,1500], index: 0, kind: input, shape index: {}]   ;;  %s19440_s1 = inlined_call_operand.vmem [shape: bf16[32,102], index: 1, kind: input, shape index: {}]   ;;  %s19441_s2 = inlined_call_operand.vmem [shape: f32[32,1], index: 2, kind: input, shape index: {}]   ;;  %s19442_s3 = inlined_call_operand.vmem [shape: bf16[896,256], index: 3, kind: input, shape index: {}]   ;;  %s19443_s4 = inlined_call_operand.vmem [shape: bf16[32,480], index: 4, kind: input, shape index: {}]   ;;  %s19444_s5 = inlined_call_operand.vmem [shape: f32[32,1], index: 5, kind: input, shape index: {}]   ;;  %s19445_s6 = inlined_call_operand.vmem [shape: f32[2,32,256], index: 6, kind: input, shape index: {}]   ;;  %s19446_s7 = inlined_call_operand.vmem [shape: f32[1,2], index: 7, kind: input, shape index: {}]   ;;  %s19447_s8 = inlined_call_operand.hbm [shape: f32[2,2], index: 8, kind: output, shape index: {}]  }
   0x1   :  { %20000 = sst [smem:[#allocation64_spill]] %s19440_s1 }
   0x2   :  { %20001 = sst [smem:[#allocation65_spill]] %s19441_s2 }
   0x3   :  { %20002 = sst [smem:[#allocation66_spill]] %s19442_s3 }
   0x4   :  { %20003 = sst [smem:[#allocation67_spill]] %s19443_s4 }
   0x5   :  { %20004 = sst [smem:[#allocation68_spill]] %s19444_s5 }
   0x6   :  { %20005 = sst [smem:[#allocation69_spill]] %s19445_s6 }
   0x7   :  { %20006 = sst [smem:[#allocation70_spill]] %s19446_s7 }
   0x8   :  { %20007 = sst [smem:[#allocation71_spill]] %s19447_s8 }
   0x9   :  { %v11823_v0 = vld.sshfl [vmem:[%s19439_s0 + $0x8] sm:$0x33 pattern:$0x76325410]  ;;  %v43_v1 = vlaneseq  ;;  %v35_v2 = vld [vmem:[%s19439_s0] sm:$0xff]  ;;  %vm31_vm0 = vcmask 196608  }
   0xa   :  { %v13011_v3 = vmov 1983009808   ;;  %v63_v6 = vcombine.high %v11823_v0, %v11823_v0  ;;  %v13012_v7 = vmov 1966171168   ;;  %v144_v9 = vld [vmem:[%s19439_s0 + $0xa] sm:$0xff]  ;;  %v39_v11 = vcombine.high %v35_v2, %v35_v2  ;;  %s13015_s13 = smov 43  }
   0xb   :  { %v41_v4 = vunpack.c.l.s4 %v13011_v3  ;;  %v13120_v5 = vshrl.u32 %v43_v1, 7  ;;  %v86_v8 = vunpack.c.l.s4 %v13012_v7  ;;  %v145_v10 = vld [vmem:[%s19439_s0 + $0x12] sm:$0x3f]  ;;  %v148_v14 = vcombine.high %v144_v9, %v144_v9  ;;  %s13014_s0 = smov 25  }
   0xc   :  { %v165_v15 = vcombine.high %v145_v10, %v145_v10  ;;  %v11826_v17 = vpack.c.bf16 %v63_v6, %v11823_v0  ;;  %v13013_v35 = vmov 0   ;;  %vm33_vm1 = vcmask 1040440  }
   0xd   :  { %v42_v12 = vunpack.c.0.s8 %v41_v4  ;;  %v87_v13 = vunpack.c.0.s8 %v86_v8  ;;  %32 = vst.msk [vmem:[#allocation2] sm:$0x1] %vm31_vm0, %v13013_v35  ;;  %142 = vst.msk [vmem:[#allocation2 + $0x7] sm:$0x1] %vm31_vm0, %v13013_v35  ;;  %8375 = vmatprep.mubr.bf16.mxu0 %v13013_v35  ;;  %8428 = vmatprep.mubr.bf16.mxu1 %v13013_v35 }
   0xe   :  { %257 = vst [vmem:[#allocation2 + $0xe] sm:$0x1] %v13013_v35  ;;  %10239 = vst [vmem:[#allocation4 + $0x20] sm:$0xff] %v13013_v35  ;;  %12301 = vset.pattern.permute.xlu0 %v13013_v35  ;;  %12302 = vset.pattern.permute.xlu1 %v13013_v35 }
   0xf   :  { %v45_v16 = vsub.s32 %v42_v12, %v13120_v5  ;;  %v90_v20 = vsub.s32 %v87_v13, %v13120_v5  ;;  %34 = vst.msk [vmem:[#allocation2 + $0x6] sm:$0x1] %vm33_vm1, %v13013_v35  ;;  %143 = vst.msk [vmem:[#allocation2 + $0xd] sm:$0x1] %vm33_vm1, %v13013_v35 }
  0x11   :  { %v46_v18 = vrot.slane %v35_v2, %v45_v16  ;;  %v53_v19 = vrot.slane %v39_v11, %v45_v16  ;;  %v155_v21 = vrot.slane %v144_v9, %v45_v16  ;;  %v162_v22 = vrot.slane %v148_v14, %v45_v16 }
  0x12   :  { %v172_v23 = vrot.slane %v145_v10, %v45_v16  ;;  %v179_v24 = vrot.slane %v165_v15, %v45_v16  ;;  %v105_v27 = vrot.slane %v11826_v17, %v90_v20 }
  0x13   :  { %v54_v25 = vcombine.high %v46_v18, %v46_v18  ;;  %v55_v26 = vcombine.high %v53_v19, %v53_v19  ;;  %v163_v28 = vcombine.high %v155_v21, %v155_v21  ;;  %v164_v29 = vcombine.high %v162_v22, %v162_v22 }
  0x14   :  { %v180_v30 = vcombine.high %v172_v23, %v172_v23  ;;  %v194_v31 = vpack.c.bf16 %v179_v24, %v179_v24  ;;  %v120_v45 = vrot.slane %v105_v27, %v90_v20 }
  0x15   :  { %v11824_v32 = vpack.c.bf16 %v54_v25, %v46_v18  ;;  %v11825_v33 = vpack.c.bf16 %v55_v26, %v53_v19  ;;  %v11827_v34 = vpack.c.bf16 %v163_v28, %v155_v21  ;;  %v11828_v36 = vpack.c.bf16 %v164_v29, %v162_v22 }
  0x16   :  { %v11829_v37 = vpack.c.bf16 %v180_v30, %v172_v23  ;;  %v232_v38 = vrot.slane %v194_v31, %v90_v20 }
  0x17   :  { %v91_v39 = vrot.slane %v11824_v32, %v90_v20  ;;  %v98_v40 = vrot.slane %v11825_v33, %v90_v20  ;;  %v211_v41 = vrot.slane %v11827_v34, %v90_v20  ;;  %v218_v42 = vrot.slane %v11828_v36, %v90_v20 }
  0x18   :  { %v225_v43 = vrot.slane %v11829_v37, %v90_v20 }
  0x19   :  { %v106_v44 = vcombine.low %v91_v39, %v98_v40  ;;  %v233_v46 = vcombine.low %v211_v41, %v218_v42 }
  0x1a   :  { %v234_v47 = vcombine.low %v225_v43, %v232_v38 }
  0x1b   :  { %v113_v48 = vrot.slane %v106_v44, %v90_v20  ;;  %v241_v49 = vrot.slane %v233_v46, %v90_v20 }
  0x1c   :  { %v248_v50 = vrot.slane %v234_v47, %v90_v20 }
  0x1d   :  { %v121_v51 = vcombine.low %v113_v48, %v120_v45 }
  0x1e   :  { %v249_v52 = vcombine.low %v241_v49, %v248_v50 }
  0x1f   :  { %122 = vrot.lane.b32.xlu0 %v121_v51, %s13014_s0 }
  0x23   :  { %250 = vrot.lane.b32.xlu0 %v249_v52, %s13015_s13 }
  0x24   :  { %13 = vsyncpa [#allocation7], 0  ;;  %vm128_vm2 = vcmask 1040584   ;;  %vm129_vm3 = vcmask 1041409   ;;  %vm131_vm5 = vcmask 1042434   ;;  %vm133_vm7 = vcmask 1043459  }
  0x25   :  { %vm130_vm4 = vmor %vm129_vm3, %vm128_vm2  ;;  %vm135_vm9 = vcmask 1044484   ;;  %vm137_vm11 = vcmask 1045509   ;;  %vm139_vm13 = vcmask 55302   ;;  %vm125_vm14 = vcmask 203776   ;;  %s19454_s14 = smov 124   ;;  %s19450_s15 = smov 127  }
  0x26   :  { %vm132_vm6 = vmor %vm131_vm5, %vm130_vm4  ;;  %v13016_v56 = vmov 1935823168   ;;  %vm253_vm0 = vcmask 351232   ;;  %s19458_s16 = smov 120   ;;  %s19448_s17 = smov 123   ;;  %vm476_vm1 = vcmask 1043456  }
  0x27   :  { %vm134_vm8 = vmor %vm133_vm7, %vm132_vm6  ;;  %v264_v57 = vunpack.c.l.s4 %v13016_v56  ;;  %s19462_s18 = smov 116   ;;  %s19452_s19 = smov 119   ;;  %vm19992_vm2 = vcmask 1006592   ;;  %vm19640_vm3 = vcmask 1039360   ;;  %vm19666_vm4 = vcmask 973824  }
  0x28   :  { %vm136_vm10 = vmor %vm135_vm9, %vm134_vm8  ;;  %s19466_s20 = smov 112   ;;  %s19456_s21 = smov 115   ;;  %vm19993_vm5 = vcmask 1014784   ;;  %vm19546_vm6 = vcmask 941056   ;;  %vm1507_vm7 = vcmask 982016   ;;  %vm19540_vm8 = vcmask 908288  }
  0x29   :  { %vm138_vm12 = vmor %vm137_vm11, %vm136_vm10  ;;  %v265_v61 = vunpack.c.0.s8 %v264_v57  ;;  %s19591_s22 = smov 108   ;;  %s19460_s23 = smov 111   ;;  %vm19552_vm9 = vcmask 949248   ;;  %vm19536_vm10 = vcmask 875520   ;;  %vm19545_vm11 = vcmask 916480  }
  0x2a   :  { %vm140_vm15 = vmor %vm139_vm13, %vm138_vm12  ;;  %s19472_s24 = smov 104   ;;  %s19464_s25 = smov 107   ;;  %vm19507_vm12 = vcmask 842752   ;;  %vm19539_vm13 = vcmask 883712  }
  0x2b   :  { %v13131_v62 = vsub.s32 %v265_v61, %v13120_v5  ;;  %s19476_s26 = smov 100   ;;  %s19468_s27 = smov 103  }
  0x2c   :  { %s19645_s28 = smov 96   ;;  %s19470_s29 = smov 99  }
  0x2d   :  { %s19480_s30 = smov 92   ;;  %s19474_s9 = smov 95  }
  0x2e   :  { %s19508_s10 = smov 126   ;;  %s19478_s11 = smov 91  }
  0x2f   :  { %s19664_s12 = smov 122   ;;  %s19520_s0 = smov 125  }
  0x30   :  { %s19549_s13 = smov 118   ;;  %s20059_s8 = smov 85  }
  0x31   :  { %s20063_s7 = smov 84   ;;  %s20067_s6 = smov 83  }
  0x32   :  { %s20071_s5 = smov 82   ;;  %s20075_s4 = smov 81  }
  0x33   :  { %s20079_s3 = smov 80   ;;  %s20083_s2 = smov 79  }
  0x91   :  { %v123_v53 = vpop.permute.xlu0 %122 }
  0x92   :  { %v124_v54 = vrot.slane %v123_v53, 7 }
  0x94   :  { %v126_v55 = vsel %vm125_vm14, %v124_v54, %v123_v53  ;;  %vm19515_vm14 = vcmask 809984  }
  0x95   :  { %141 = vst.msk [vmem:[#allocation2] sm:$0x7f] %vm140_vm15, %v126_v55  ;;  %v251_v58 = vpop.permute.xlu0 %250 }
  0x96   :  { %v252_v59 = vrot.slane %v251_v58, 1 }
  0x98   :  { %v254_v60 = vsel %vm253_vm0, %v251_v58, %v252_v59  ;;  %vm19516_vm0 = vcmask 777216  }
  0x99   :  { %256 = vst.msk [vmem:[#allocation2 + $0x7] sm:$0x7f] %vm140_vm15, %v254_v60  ;;  %vm19523_vm15 = vcmask 850944  }
  0xa0   :  { %v13133_v63 = vld [vmem:[#allocation2] sm:$0xff]  ;;  %v13269_v14 = vld [vmem:[#allocation2 + $0x8] sm:$0x3f] }
  0xa1   :  { %v13135_v0 = vld [vmem:[#allocation2] sm:$0xff]  ;;  %v811_v1 = vrot.slane %v13133_v63, %v13131_v62  ;;  %v510_v4 = vcombine.low %v13133_v63, %v13133_v63  ;;  %v13282_v16 = vrot.slane %v13269_v14, %v13131_v62 }
  0xa2   :  { %v13141_v2 = vrot.slane %v13135_v0, %v13131_v62  ;;  %v7272_v8 = vcombine.high %v13135_v0, %v13135_v0 }
  0xa3   :  { %v13144_v3 = vrot.slane %v811_v1, %v13131_v62  ;;  %v13182_v5 = vrot.slane %v510_v4, %v13131_v62  ;;  %v377_v6 = vcombine.low %v811_v1, %v811_v1  ;;  %v819_v12 = vcombine.high %v811_v1, %v811_v1  ;;  %11834 = vst.sshfl [vmem:[#allocation3 + $0x20] sm:$0x5 pattern:$0x75316420] %v13282_v16 }
  0xa4   :  { %11830 = vst.sshfl [vmem:[#allocation3] sm:$0x5 pattern:$0x75316420] %v13141_v2  ;;  %v13200_v9 = vcombine.high %v13141_v2, %v13141_v2  ;;  %v13206_v11 = vrot.slane %v7272_v8, %v13131_v62 }
  0xa5   :  { %894 = vrot.lane.b32.xlu0 %v13144_v3, %s19454_s14  ;;  %454 = vrot.lane.b32.xlu1 %v13144_v3, %s19450_s15  ;;  %v13190_v7 = vrot.slane %v13182_v5, %v13131_v62  ;;  %v13203_v10 = vrot.slane %v377_v6, %v13131_v62  ;;  %v13219_v13 = vrot.slane %v819_v12, %v13131_v62 }
  0xa6   :  { %11831 = vst.sshfl [vmem:[#allocation3 + $0x8] sm:$0x5 pattern:$0x75316420] %v13200_v9  ;;  %v13273_v15 = vcombine.high %v13206_v11, %v13206_v11  ;;  %v672_v17 = vcombine.low %v13182_v5, %v13182_v5  ;;  %v525_v19 = vcombine.high %v13182_v5, %v13182_v5  ;;  %v7125_v6 = vcombine.low %v13135_v0, %v13135_v0 }
  0xa7   :  { %11832 = vst.sshfl [vmem:[#allocation3 + $0x10] sm:$0x5 pattern:$0x75316420] %v13206_v11 }
  0xa8   :  { %11833 = vst.sshfl [vmem:[#allocation3 + $0x18] sm:$0x5 pattern:$0x75316420] %v13273_v15  ;;  %v13300_v18 = vrot.slane %v672_v17, %v13131_v62  ;;  %v13313_v22 = vrot.slane %v525_v19, %v13131_v62  ;;  %v13444_v17 = vrot.slane %v7125_v6, %v13131_v62 }
  0xa9   :  { %1482 = vrot.lane.b32.xlu0 %v13144_v3, %s19458_s16  ;;  %1043 = vrot.lane.b32.xlu1 %v13144_v3, %s19448_s17 }
  0xad   :  { %2070 = vrot.lane.b32.xlu0 %v13144_v3, %s19462_s18  ;;  %1631 = vrot.lane.b32.xlu1 %v13144_v3, %s19452_s19 }
  0xb1   :  { %2658 = vrot.lane.b32.xlu0 %v13144_v3, %s19466_s20  ;;  %2219 = vrot.lane.b32.xlu1 %v13144_v3, %s19456_s21 }
  0xb5   :  { %3246 = vrot.lane.b32.xlu0 %v13144_v3, %s19591_s22  ;;  %2807 = vrot.lane.b32.xlu1 %v13144_v3, %s19460_s23 }
  0xb9   :  { %3834 = vrot.lane.b32.xlu0 %v13144_v3, %s19472_s24  ;;  %3395 = vrot.lane.b32.xlu1 %v13144_v3, %s19464_s25 }
  0xbd   :  { %4422 = vrot.lane.b32.xlu0 %v13144_v3, %s19476_s26  ;;  %3983 = vrot.lane.b32.xlu1 %v13144_v3, %s19468_s27 }
  0xc1   :  { %5010 = vrot.lane.b32.xlu0 %v13144_v3, %s19645_s28  ;;  %4571 = vrot.lane.b32.xlu1 %v13144_v3, %s19470_s29 }
  0xc5   :  { %5598 = vrot.lane.b32.xlu0 %v13144_v3, %s19480_s30  ;;  %5159 = vrot.lane.b32.xlu1 %v13144_v3, %s19474_s9 }
  0xc9   :  { %600 = vrot.lane.b32.xlu0 %v13190_v7, %s19508_s10  ;;  %5747 = vrot.lane.b32.xlu1 %v13144_v3, %s19478_s11 }
  0xcd   :  { %1041 = vrot.lane.b32.xlu0 %v13203_v10, %s19448_s17  ;;  %452 = vrot.lane.b32.xlu1 %v13203_v10, %s19450_s15  ;;  %s19543_s17 = smov 121   ;;  %s19570_s15 = smov 114  }
  0xd1   :  { %1188 = vrot.lane.b32.xlu0 %v13190_v7, %s19664_s12  ;;  %749 = vrot.lane.b32.xlu1 %v13190_v7, %s19520_s0 }
  0xd5   :  { %1629 = vrot.lane.b32.xlu0 %v13203_v10, %s19452_s19  ;;  %896 = vrot.lane.b32.xlu1 %v13219_v13, %s19454_s14  ;;  %s19564_s19 = smov 117   ;;  %s19580_s14 = smov 110  }
  0xd9   :  { %1776 = vrot.lane.b32.xlu0 %v13190_v7, %s19549_s13  ;;  %1337 = vrot.lane.b32.xlu1 %v13190_v7, %s19543_s17 }
  0xdd   :  { %2217 = vrot.lane.b32.xlu0 %v13203_v10, %s19456_s21  ;;  %1484 = vrot.lane.b32.xlu1 %v13219_v13, %s19458_s16  ;;  %s19661_s21 = smov 113   ;;  %s19594_s16 = smov 106  }
  0xe1   :  { %2364 = vrot.lane.b32.xlu0 %v13190_v7, %s19570_s15  ;;  %1925 = vrot.lane.b32.xlu1 %v13190_v7, %s19564_s19 }
  0xe5   :  { %2805 = vrot.lane.b32.xlu0 %v13203_v10, %s19460_s23  ;;  %2072 = vrot.lane.b32.xlu1 %v13219_v13, %s19462_s18  ;;  %s19657_s23 = smov 109   ;;  %s19613_s18 = smov 102  }
  0xe9   :  { %2952 = vrot.lane.b32.xlu0 %v13190_v7, %s19580_s14  ;;  %2513 = vrot.lane.b32.xlu1 %v13190_v7, %s19661_s21 }
  0xed   :  { %3393 = vrot.lane.b32.xlu0 %v13203_v10, %s19464_s25  ;;  %2660 = vrot.lane.b32.xlu1 %v13219_v13, %s19466_s20  ;;  %s19607_s25 = smov 105   ;;  %s19638_s20 = smov 98  }
  0xf1   :  { %3540 = vrot.lane.b32.xlu0 %v13190_v7, %s19594_s16  ;;  %3101 = vrot.lane.b32.xlu1 %v13190_v7, %s19657_s23 }
  0xf5   :  { %3981 = vrot.lane.b32.xlu0 %v13203_v10, %s19468_s27  ;;  %3248 = vrot.lane.b32.xlu1 %v13219_v13, %s19591_s22  ;;  %s19649_s27 = smov 101  }
  0xf9   :  { %4128 = vrot.lane.b32.xlu0 %v13190_v7, %s19613_s18  ;;  %3689 = vrot.lane.b32.xlu1 %v13190_v7, %s19607_s25 }
  0xfd   :  { %4569 = vrot.lane.b32.xlu0 %v13203_v10, %s19470_s29  ;;  %3836 = vrot.lane.b32.xlu1 %v13219_v13, %s19472_s24  ;;  %s19652_s29 = smov 94   ;;  %s19643_s24 = smov 97  }
 0x101   :  { %4716 = vrot.lane.b32.xlu0 %v13190_v7, %s19638_s20  ;;  %4277 = vrot.lane.b32.xlu1 %v13190_v7, %s19649_s27 }
 0x105   :  { %5157 = vrot.lane.b32.xlu0 %v13203_v10, %s19474_s9  ;;  %4424 = vrot.lane.b32.xlu1 %v13219_v13, %s19476_s26  ;;  %s19484_s9 = smov 90   ;;  %s19482_s26 = smov 93  }
 0x109   :  { %5304 = vrot.lane.b32.xlu0 %v13190_v7, %s19652_s29  ;;  %4865 = vrot.lane.b32.xlu1 %v13190_v7, %s19643_s24 }
 0x10d   :  { %5745 = vrot.lane.b32.xlu0 %v13203_v10, %s19478_s11  ;;  %5012 = vrot.lane.b32.xlu1 %v13219_v13, %s19645_s28  ;;  %s19486_s11 = smov 89  }
 0x111   :  { %5892 = vrot.lane.b32.xlu0 %v13190_v7, %s19484_s9  ;;  %5453 = vrot.lane.b32.xlu1 %v13190_v7, %s19482_s26 }
 0x115   :  { %747 = vrot.lane.b32.xlu0 %v13300_v18, %s19520_s0  ;;  %5600 = vrot.lane.b32.xlu1 %v13219_v13, %s19480_s30  ;;  %s19490_s30 = smov 88  }
 0x117   :  { %v13308_v20 = vpop.permute.xlu0 %894  ;;  %v13310_v21 = vpop.permute.xlu1 %454 }
 0x118   :  { %v19590_v43 = vrot.slane %v13310_v21, 4  ;;  %v910_v55 = vrot.slane %v13308_v20, 4 }
 0x119   :  { %1335 = vrot.lane.b32.xlu0 %v13300_v18, %s19543_s17  ;;  %602 = vrot.lane.b32.xlu1 %v13313_v22, %s19508_s10 }
 0x11b   :  { %v13319_v23 = vpop.permute.xlu0 %1482  ;;  %v13321_v24 = vpop.permute.xlu1 %1043 }
 0x11c   :  { %v19534_v44 = vrot.slane %v13321_v24, 4 }
 0x11d   :  { %1923 = vrot.lane.b32.xlu0 %v13300_v18, %s19564_s19  ;;  %1190 = vrot.lane.b32.xlu1 %v13313_v22, %s19664_s12 }
 0x11f   :  { %v13327_v25 = vpop.permute.xlu0 %2070  ;;  %v13329_v26 = vpop.permute.xlu1 %1631 }
 0x120   :  { %v19532_v56 = vrot.slane %v13329_v26, 4 }
 0x121   :  { %2511 = vrot.lane.b32.xlu0 %v13300_v18, %s19661_s21  ;;  %1778 = vrot.lane.b32.xlu1 %v13313_v22, %s19549_s13 }
 0x123   :  { %v13335_v27 = vpop.permute.xlu0 %2658  ;;  %v13337_v28 = vpop.permute.xlu1 %2219 }
 0x124   :  { %v19529_v0 = vrot.slane %v13337_v28, 4 }
 0x125   :  { %3099 = vrot.lane.b32.xlu0 %v13300_v18, %s19657_s23  ;;  %2366 = vrot.lane.b32.xlu1 %v13313_v22, %s19570_s15 }
 0x127   :  { %v13343_v29 = vpop.permute.xlu0 %3246  ;;  %v13345_v30 = vpop.permute.xlu1 %2807 }
 0x129   :  { %3687 = vrot.lane.b32.xlu0 %v13300_v18, %s19607_s25  ;;  %2954 = vrot.lane.b32.xlu1 %v13313_v22, %s19580_s14 }
 0x12b   :  { %v13351_v31 = vpop.permute.xlu0 %3834  ;;  %v13353_v32 = vpop.permute.xlu1 %3395 }
 0x12d   :  { %4275 = vrot.lane.b32.xlu0 %v13300_v18, %s19649_s27  ;;  %3542 = vrot.lane.b32.xlu1 %v13313_v22, %s19594_s16 }
 0x12f   :  { %v13359_v33 = vpop.permute.xlu0 %4422  ;;  %v13361_v34 = vpop.permute.xlu1 %3983 }
 0x131   :  { %4863 = vrot.lane.b32.xlu0 %v13300_v18, %s19643_s24  ;;  %4130 = vrot.lane.b32.xlu1 %v13313_v22, %s19613_s18 }
 0x133   :  { %v13367_v35 = vpop.permute.xlu0 %5010  ;;  %v13369_v36 = vpop.permute.xlu1 %4571 }
 0x135   :  { %5451 = vrot.lane.b32.xlu0 %v13300_v18, %s19482_s26  ;;  %4718 = vrot.lane.b32.xlu1 %v13313_v22, %s19638_s20  ;;  %s19488_s26 = smov 87  }
 0x137   :  { %v13375_v37 = vpop.permute.xlu0 %5598  ;;  %v13377_v38 = vpop.permute.xlu1 %5159 }
 0x139   :  { %6039 = vrot.lane.b32.xlu0 %v13300_v18, %s19486_s11  ;;  %5306 = vrot.lane.b32.xlu1 %v13313_v22, %s19652_s29 }
 0x13b   :  { %v13383_v39 = vpop.permute.xlu0 %600  ;;  %v13385_v40 = vpop.permute.xlu1 %5747 }
 0x13d   :  { %6186 = vrot.lane.b32.xlu0 %v13144_v3, %s19490_s30  ;;  %5894 = vrot.lane.b32.xlu1 %v13313_v22, %s19484_s9  ;;  %s19494_s9 = smov 86  }
 0x13f   :  { %v1042_v41 = vpop.permute.xlu0 %1041  ;;  %v453_v42 = vpop.permute.xlu1 %452 }
 0x140   :  { %v1057_v45 = vrot.slane %v1042_v41, 4  ;;  %v468_v46 = vrot.slane %v453_v42, 4 }
 0x141   :  { %6333 = vrot.lane.b32.xlu0 %v13203_v10, %s19488_s26  ;;  %6041 = vrot.lane.b32.xlu1 %v13190_v7, %s19486_s11  ;;  %s19492_s11 = smov 85  }
 0x142   :  { %v1065_v47 = vsel %vm476_vm1, %v1057_v45, %v19534_v44  ;;  %v477_v48 = vsel %vm476_vm1, %v468_v46, %v19590_v43 }
 0x143   :  { %v1067_v49 = vsel %vm19992_vm2, %v1042_v41, %v1065_v47  ;;  %v479_v50 = vsel %vm19640_vm3, %v453_v42, %v477_v48  ;;  %v13405_v51 = vpop.permute.xlu0 %1188  ;;  %v13407_v52 = vpop.permute.xlu1 %749 }
 0x144   :  { %1087 = vst [vmem:[#allocation3 + $0x38] sm:$0x22] %v1067_v49  ;;  %499 = vst [vmem:[#allocation3] sm:$0x22] %v479_v50  ;;  %v7140_v49 = vcombine.low %v13444_v17, %v13444_v17  ;;  %v322_v50 = vcombine.high %v13282_v16, %v13282_v16  ;;  %v804_v16 = vcombine.high %v13133_v63, %v13133_v63 }
 0x145   :  { %6480 = vrot.lane.b32.xlu0 %v13190_v7, %s19494_s9  ;;  %6188 = vrot.lane.b32.xlu1 %v13219_v13, %s19490_s30  ;;  %s19496_s30 = smov 83   ;;  %v7295_v63 = vrot.slane %v13141_v2, %v13131_v62 }
 0x146   :  { %11835 = vst.sshfl [vmem:[#allocation3 + $0x28] sm:$0x5 pattern:$0x75316420] %v322_v50  ;;  %v19512_v50 = vrot.slane %v13353_v32, 4 }
 0x147   :  { %v1630_v53 = vpop.permute.xlu0 %1629  ;;  %v13413_v54 = vpop.permute.xlu1 %896 }
 0x148   :  { %v1645_v57 = vrot.slane %v1630_v53, 4  ;;  %v19541_v58 = vrot.slane %v13413_v54, 4 }
 0x149   :  { %6627 = vrot.lane.b32.xlu0 %v13300_v18, %s19492_s11  ;;  %6335 = vrot.lane.b32.xlu1 %v13144_v3, %s19488_s26  ;;  %s19668_s26 = smov 84   ;;  %v1498_v18 = vrot.slane %v13319_v23, 4 }
 0x14a   :  { %v1653_v59 = vsel %vm476_vm1, %v1645_v57, %v19532_v56  ;;  %v918_v60 = vsel %vm476_vm1, %v910_v55, %v19541_v58  ;;  %v7148_v55 = vrot.slane %v7140_v49, %v13131_v62  ;;  %v2086_v57 = vrot.slane %v13327_v25, 4 }
 0x14b   :  { %v1655_v61 = vsel %vm19666_vm4, %v1630_v53, %v1653_v59  ;;  %v920_v1 = vsel %vm19993_vm5, %v13308_v20, %v918_v60  ;;  %v13431_v4 = vpop.permute.xlu0 %1776  ;;  %v13433_v5 = vpop.permute.xlu1 %1337  ;;  %v19514_v59 = vrot.slane %v13345_v30, 4  ;;  %v2674_v49 = vrot.slane %v13335_v27, 4 }
 0x14c   :  { %1675 = vst [vmem:[#allocation3 + $0x70] sm:$0x22] %v1655_v61  ;;  %940 = vst [vmem:[#allocation3 + $0x38] sm:$0x11] %v920_v1  ;;  %v616_v56 = vrot.slane %v13383_v39, 4 }
 0x14d   :  { %6774 = vrot.lane.b32.xlu0 %v13144_v3, %s19668_s26  ;;  %6482 = vrot.lane.b32.xlu1 %v13313_v22, %s19494_s9  ;;  %s19500_s9 = smov 81  }
 0x14f   :  { %v2218_v8 = vpop.permute.xlu0 %2217  ;;  %v13441_v12 = vpop.permute.xlu1 %1484 }
 0x150   :  { %v2233_v19 = vrot.slane %v2218_v8, 4  ;;  %v19533_v20 = vrot.slane %v13441_v12, 4 }
 0x151   :  { %6921 = vrot.lane.b32.xlu0 %v13203_v10, %s19496_s30  ;;  %6629 = vrot.lane.b32.xlu1 %v13190_v7, %s19492_s11  ;;  %s19498_s11 = smov 82  }
 0x152   :  { %v2241_v41 = vsel %vm476_vm1, %v2233_v19, %v19529_v0  ;;  %v1506_v42 = vsel %vm476_vm1, %v1498_v18, %v19533_v20  ;;  %v19538_v20 = vrot.slane %v13433_v5, 4 }
 0x153   :  { %v2243_v45 = vsel %vm19546_vm6, %v2218_v8, %v2241_v41  ;;  %v1508_v46 = vsel %vm1507_vm7, %v13319_v23, %v1506_v42  ;;  %v13462_v47 = vpop.permute.xlu0 %2364  ;;  %v13464_v48 = vpop.permute.xlu1 %1925  ;;  %v7434_v41 = vcombine.low %v13141_v2, %v13141_v2  ;;  %v7155_v2 = vrot.slane %v13444_v17, %v13131_v62 }
 0x154   :  { %2263 = vst [vmem:[#allocation3 + $0xa8] sm:$0x22] %v2243_v45  ;;  %1528 = vst [vmem:[#allocation3 + $0x70] sm:$0x11] %v1508_v46  ;;  %vm19557_vm6 = vcmask 932864  }
 0x155   :  { %7068 = vrot.lane.b32.xlu0 %v13190_v7, %s19498_s11  ;;  %6776 = vrot.lane.b32.xlu1 %v13219_v13, %s19668_s26  ;;  %v7442_v46 = vrot.slane %v7434_v41, %v13131_v62  ;;  %s20056_s26 = smov 86  }
 0x157   :  { %v2806_v23 = vpop.permute.xlu0 %2805  ;;  %v13474_v53 = vpop.permute.xlu1 %2072 }
 0x158   :  { %v2821_v60 = vrot.slane %v2806_v23, 4  ;;  %v19531_v7 = vrot.slane %v13474_v53, 4 }
 0x159   :  { %7215 = vrot.lane.b32.xlu0 %v7148_v55, %s19500_s9  ;;  %6923 = vrot.lane.b32.xlu1 %v13144_v3, %s19496_s30  ;;  %s19502_s30 = smov 80  }
 0x15a   :  { %v2829_v61 = vsel %vm476_vm1, %v2821_v60, %v19514_v59  ;;  %v2094_v1 = vsel %vm476_vm1, %v2086_v57, %v19531_v7 }
 0x15b   :  { %v2831_v6 = vsel %vm19540_vm8, %v2806_v23, %v2829_v61  ;;  %v2096_v8 = vsel %vm19552_vm9, %v13327_v25, %v2094_v1  ;;  %v13494_v18 = vpop.permute.xlu0 %2952  ;;  %v13496_v19 = vpop.permute.xlu1 %2513  ;;  %v13506_v25 = vrot.slane %v804_v16, %v13131_v62  ;;  %vm19991_vm8 = vcmask 965632  }
 0x15c   :  { %2851 = vst [vmem:[#allocation3 + $0xe0] sm:$0x22] %v2831_v6  ;;  %2116 = vst [vmem:[#allocation3 + $0xa8] sm:$0x11] %v2096_v8  ;;  %v7302_v6 = vrot.slane %v13200_v9, %v13131_v62  ;;  %v19548_v58 = vrot.slane %v13496_v19, 4  ;;  %vm19561_vm9 = vcmask 900096  }
 0x15d   :  { %7362 = vrot.lane.b32.xlu0 %v7295_v63, %s19502_s30  ;;  %7070 = vrot.lane.b32.xlu1 %v13313_v22, %s19498_s11  ;;  %s19524_s11 = smov 79   ;;  %v378_v8 = vcombine.low %v13506_v25, %v13506_v25 }
 0x15f   :  { %v3394_v42 = vpop.permute.xlu0 %3393  ;;  %v13508_v45 = vpop.permute.xlu1 %2660  ;;  %v13542_v9 = vrot.slane %v378_v8, %v13131_v62 }
 0x160   :  { %v3409_v23 = vrot.slane %v3394_v42, 4  ;;  %v19519_v22 = vrot.slane %v13508_v45, 4 }
 0x161   :  { %7509 = vrot.lane.b32.xlu0 %v7442_v46, %s19524_s11  ;;  %7217 = vrot.lane.b32.xlu1 %v7155_v2, %s19500_s9  ;;  %s19505_s9 = smov 78   ;;  %v7581_v46 = vcombine.high %v13444_v17, %v13444_v17 }
 0x162   :  { %v3417_v55 = vsel %vm476_vm1, %v3409_v23, %v19512_v50  ;;  %v2682_v57 = vsel %vm476_vm1, %v2674_v49, %v19519_v22  ;;  %v3262_v49 = vrot.slane %v13343_v29, 4 }
 0x163   :  { %v3419_v60 = vsel %vm19536_vm10, %v3394_v42, %v3417_v55  ;;  %v2684_v16 = vsel %vm19545_vm11, %v13335_v27, %v2682_v57  ;;  %v13527_v61 = vpop.permute.xlu0 %3540  ;;  %v13529_v1 = vpop.permute.xlu1 %3101  ;;  %v307_v27 = vcombine.high %v13269_v14, %v13269_v14  ;;  %v7596_v8 = vrot.slane %v7581_v46, %v13131_v62 }
 0x164   :  { %3439 = vst [vmem:[#allocation3 + $0x118] sm:$0x22] %v3419_v60  ;;  %2704 = vst [vmem:[#allocation3 + $0xe0] sm:$0x11] %v2684_v16  ;;  %v19510_v46 = vrot.slane %v13369_v36, 4  ;;  %vm1213_vm10 = vcmask 998400  }
 0x165   :  { %7656 = vrot.lane.b32.xlu0 %v7155_v2, %s19505_s9  ;;  %7364 = vrot.lane.b32.xlu1 %v7302_v6, %s19502_s30  ;;  %v19504_v2 = vrot.slane %v13361_v34, 4  ;;  %s20008_s30 = smov 127   ;;  %v321_v14 = vrot.slane %v307_v27, %v13131_v62  ;;  %v13572_v27 = vrot.slane %v13506_v25, %v13131_v62  ;;  %vm19556_vm11 = vcmask 891904  }
 0x167   :  { %v3982_v41 = vpop.permute.xlu0 %3981  ;;  %v13539_v42 = vpop.permute.xlu1 %3248  ;;  %11836 = vst.sshfl [vmem:[#allocation3 + $0x30] sm:$0x5 pattern:$0x75316420] %v321_v14 }
 0x168   :  { %v3997_v23 = vrot.slane %v3982_v41, 4  ;;  %v19513_v55 = vrot.slane %v13539_v42, 4 }
 0x169   :  { %7511 = vrot.lane.b32.xlu1 %v7295_v63, %s19524_s11  ;;  %456 = vrot.lane.b32.xlu0 %v13542_v9, %s20008_s30  ;;  %s20012_s11 = smov 119  }
 0x16a   :  { %v4005_v57 = vsel %vm476_vm1, %v3997_v23, %v19504_v2  ;;  %v3270_v17 = vsel %vm476_vm1, %v3262_v49, %v19513_v55  ;;  %v3850_v49 = vrot.slane %v13351_v31, 4 }
 0x16b   :  { %v4007_v60 = vsel %vm19507_vm12, %v3982_v41, %v4005_v57  ;;  %v3272_v16 = vsel %vm19539_vm13, %v13343_v29, %v3270_v17  ;;  %v13562_v6 = vpop.permute.xlu0 %4128  ;;  %v13564_v63 = vpop.permute.xlu1 %3689  ;;  %vm19522_vm12 = vcmask 818176   ;;  %vm19551_vm13 = vcmask 924672  }
 0x16c   :  { %4027 = vst [vmem:[#allocation3 + $0x150] sm:$0x22] %v4007_v60  ;;  %3292 = vst [vmem:[#allocation3 + $0x118] sm:$0x11] %v3272_v16 }
 0x16d   :  { %7658 = vrot.lane.b32.xlu1 %v7596_v8, %s19505_s9  ;;  %604 = vrot.lane.b32.xlu0 %v13144_v3, %s19508_s10  ;;  %s20009_s9 = smov 124  }
 0x16f   :  { %v4570_v29 = vpop.permute.xlu0 %4569  ;;  %v13574_v41 = vpop.permute.xlu1 %3836 }
 0x170   :  { %v4585_v23 = vrot.slane %v4570_v29, 4  ;;  %v19511_v14 = vrot.slane %v13574_v41, 4 }
 0x171   :  { %458 = vrot.lane.b32.xlu1 %v13572_v27, %s20008_s30  ;;  %751 = vrot.lane.b32.xlu0 %v13203_v10, %s19520_s0 }
 0x172   :  { %v4593_v57 = vsel %vm476_vm1, %v4585_v23, %v19510_v46  ;;  %v3858_v17 = vsel %vm476_vm1, %v3850_v49, %v19511_v14 }
 0x173   :  { %v4595_v60 = vsel %vm19515_vm14, %v4570_v29, %v4593_v57  ;;  %v3860_v16 = vsel %vm19523_vm15, %v13351_v31, %v3858_v17  ;;  %v13592_v8 = vpop.permute.xlu0 %4716  ;;  %v13594_v2 = vpop.permute.xlu1 %4277  ;;  %v820_v31 = vcombine.high %v13506_v25, %v13506_v25  ;;  %v4438_v29 = vrot.slane %v13359_v33, 4 }
 0x174   :  { %4615 = vst [vmem:[#allocation3 + $0x188] sm:$0x22] %v4595_v60  ;;  %3880 = vst [vmem:[#allocation3 + $0x150] sm:$0x11] %v3860_v16  ;;  %v19517_v57 = vrot.slane %v13377_v38, 4  ;;  %vm19528_vm14 = vcmask 744448  }
 0x175   :  { %606 = vrot.lane.b32.xlu1 %v13219_v13, %s19508_s10  ;;  %898 = vrot.lane.b32.xlu0 %v13572_v27, %s20009_s9  ;;  %s20010_s10 = smov 123   ;;  %v13625_v59 = vrot.slane %v820_v31, %v13131_v62  ;;  %vm19535_vm15 = vcmask 752640  }
 0x177   :  { %v5158_v23 = vpop.permute.xlu0 %5157  ;;  %v13600_v49 = vpop.permute.xlu1 %4424 }
 0x178   :  { %v5173_v17 = vrot.slane %v5158_v23, 4  ;;  %v19518_v60 = vrot.slane %v13600_v49, 4 }
 0x179   :  { %753 = vrot.lane.b32.xlu1 %v13144_v3, %s19520_s0  ;;  %1045 = vrot.lane.b32.xlu0 %v13542_v9, %s20010_s10  ;;  %s20011_s0 = smov 120  }
 0x17a   :  { %v5181_v16 = vsel %vm476_vm1, %v5173_v17, %v19517_v57  ;;  %v4446_v25 = vsel %vm476_vm1, %v4438_v29, %v19518_v60  ;;  %v19526_v17 = vrot.slane %v13385_v40, 4 }
 0x17b   :  { %v5183_v46 = vsel %vm19516_vm0, %v5158_v23, %v5181_v16  ;;  %v4448_v14 = vsel %vm19522_vm12, %v13359_v33, %v4446_v25  ;;  %v13620_v50 = vpop.permute.xlu0 %5304  ;;  %v13622_v55 = vpop.permute.xlu1 %4865  ;;  %vm19530_vm0 = vcmask 785408   ;;  %v5026_v33 = vrot.slane %v13367_v35, 4 }
 0x17c   :  { %5203 = vst [vmem:[#allocation3 + $0x1c0] sm:$0x22] %v5183_v46  ;;  %4468 = vst [vmem:[#allocation3 + $0x188] sm:$0x11] %v4448_v14  ;;  %vm772_vm12 = vcmask 1022976  }
 0x17d   :  { %900 = vrot.lane.b32.xlu1 %v13625_v59, %s20009_s9  ;;  %1192 = vrot.lane.b32.xlu0 %v13144_v3, %s19664_s12 }
 0x17f   :  { %v5746_v23 = vpop.permute.xlu0 %5745  ;;  %v13631_v29 = vpop.permute.xlu1 %5012 }
 0x180   :  { %v5761_v16 = vrot.slane %v5746_v23, 4  ;;  %v19527_v31 = vrot.slane %v13631_v29, 4 }
 0x181   :  { %1047 = vrot.lane.b32.xlu1 %v13572_v27, %s20010_s10  ;;  %1339 = vrot.lane.b32.xlu0 %v13203_v10, %s19543_s17 }
 0x182   :  { %v5769_v46 = vsel %vm476_vm1, %v5761_v16, %v19526_v17  ;;  %v5034_v14 = vsel %vm476_vm1, %v5026_v33, %v19527_v31 }
 0x183   :  { %v5771_v25 = vsel %vm19528_vm14, %v5746_v23, %v5769_v46  ;;  %v5036_v57 = vsel %vm19530_vm0, %v13367_v35, %v5034_v14  ;;  %v13649_v60 = vpop.permute.xlu0 %5892  ;;  %v13651_v22 = vpop.permute.xlu1 %5453  ;;  %v5614_v23 = vrot.slane %v13375_v37, 4  ;;  %v19554_v35 = vrot.slane %v13407_v52, 4 }
 0x184   :  { %5791 = vst [vmem:[#allocation3 + $0x1f8] sm:$0x22] %v5771_v25  ;;  %5056 = vst [vmem:[#allocation3 + $0x1c0] sm:$0x11] %v5036_v57  ;;  %vm1360_vm14 = vcmask 990208   ;;  %vm625_vm0 = vcmask 1031168  }
 0x185   :  { %1194 = vrot.lane.b32.xlu1 %v13219_v13, %s19664_s12  ;;  %1486 = vrot.lane.b32.xlu0 %v13572_v27, %s20011_s0  ;;  %s20053_s12 = smov 87  }
 0x187   :  { %v748_v16 = vpop.permute.xlu0 %747  ;;  %v13657_v33 = vpop.permute.xlu1 %5600 }
 0x188   :  { %v763_v46 = vrot.slane %v748_v16, 4  ;;  %v19537_v14 = vrot.slane %v13657_v33, 4 }
 0x189   :  { %1341 = vrot.lane.b32.xlu1 %v13144_v3, %s19543_s17  ;;  %1633 = vrot.lane.b32.xlu0 %v13542_v9, %s20012_s11  ;;  %s20013_s17 = smov 116  }
 0x18a   :  { %v771_v57 = vsel %vm476_vm1, %v763_v46, %v19554_v35  ;;  %v5622_v25 = vsel %vm476_vm1, %v5614_v23, %v19537_v14  ;;  %v19542_v14 = vrot.slane %v13464_v48, 4  ;;  %v2968_v35 = vrot.slane %v13494_v18, 4 }
 0x18b   :  { %v773_v17 = vsel %vm772_vm12, %v748_v16, %v771_v57  ;;  %v5624_v31 = vsel %vm19535_vm15, %v13375_v37, %v5622_v25  ;;  %v1336_v0 = vpop.permute.xlu0 %1335  ;;  %v13675_v7 = vpop.permute.xlu1 %602  ;;  %vm19671_vm15 = vcmask 957440   ;;  %v1204_v25 = vrot.slane %v13405_v51, 4 }
 0x18c   :  { %793 = vst [vmem:[#allocation3] sm:$0x88] %v773_v17  ;;  %5644 = vst [vmem:[#allocation3 + $0x1f8] sm:$0x11] %v5624_v31  ;;  %v1351_v46 = vrot.slane %v1336_v0, 4  ;;  %v19587_v44 = vrot.slane %v13675_v7, 4 }
 0x18d   :  { %1488 = vrot.lane.b32.xlu1 %v13625_v59, %s20011_s0  ;;  %1780 = vrot.lane.b32.xlu0 %v13144_v3, %s19549_s13 }
 0x18e   :  { %v1359_v37 = vsel %vm476_vm1, %v1351_v46, %v19538_v20  ;;  %v624_v16 = vsel %vm476_vm1, %v616_v56, %v19587_v44 }
 0x18f   :  { %v1361_v17 = vsel %vm1360_vm14, %v1336_v0, %v1359_v37  ;;  %v626_v31 = vsel %vm625_vm0, %v13383_v39, %v624_v16  ;;  %v1924_v23 = vpop.permute.xlu0 %1923  ;;  %v13693_v57 = vpop.permute.xlu1 %1190 }
 0x190   :  { %1381 = vst [vmem:[#allocation3 + $0x38] sm:$0x88] %v1361_v17  ;;  %646 = vst [vmem:[#allocation3] sm:$0x44] %v626_v31  ;;  %v1939_v46 = vrot.slane %v1924_v23, 4  ;;  %v19547_v20 = vrot.slane %v13693_v57, 4 }
 0x191   :  { %1635 = vrot.lane.b32.xlu1 %v13572_v27, %s20012_s11  ;;  %1927 = vrot.lane.b32.xlu0 %v13203_v10, %s19564_s19  ;;  %v1792_v31 = vrot.slane %v13431_v4, 4 }
 0x192   :  { %v1947_v39 = vsel %vm476_vm1, %v1939_v46, %v19542_v14  ;;  %v1212_v56 = vsel %vm476_vm1, %v1204_v25, %v19547_v20  ;;  %v19555_v20 = vrot.slane %v13529_v1, 4 }
 0x193   :  { %v1949_v0 = vsel %vm19671_vm15, %v1924_v23, %v1947_v39  ;;  %v1214_v37 = vsel %vm1213_vm10, %v13405_v51, %v1212_v56  ;;  %v2512_v16 = vpop.permute.xlu0 %2511  ;;  %v13711_v17 = vpop.permute.xlu1 %1778 }
 0x194   :  { %1969 = vst [vmem:[#allocation3 + $0x70] sm:$0x88] %v1949_v0  ;;  %1234 = vst [vmem:[#allocation3 + $0x38] sm:$0x44] %v1214_v37  ;;  %v2527_v46 = vrot.slane %v2512_v16, 4  ;;  %v19553_v14 = vrot.slane %v13711_v17, 4 }
 0x195   :  { %1782 = vrot.lane.b32.xlu1 %v13219_v13, %s19549_s13  ;;  %2074 = vrot.lane.b32.xlu0 %v13572_v27, %s20013_s17  ;;  %v2380_v37 = vrot.slane %v13462_v47, 4  ;;  %s20014_s13 = smov 115  }
 0x196   :  { %v2535_v51 = vsel %vm476_vm1, %v2527_v46, %v19548_v58  ;;  %v1800_v23 = vsel %vm476_vm1, %v1792_v31, %v19553_v14 }
 0x197   :  { %v2537_v25 = vsel %vm19551_vm13, %v2512_v16, %v2535_v51  ;;  %v1802_v39 = vsel %vm19991_vm8, %v13431_v4, %v1800_v23  ;;  %v3100_v56 = vpop.permute.xlu0 %3099  ;;  %v13729_v0 = vpop.permute.xlu1 %2366  ;;  %vm19560_vm13 = vcmask 859136  }
 0x198   :  { %2557 = vst [vmem:[#allocation3 + $0xa8] sm:$0x88] %v2537_v25  ;;  %1822 = vst [vmem:[#allocation3 + $0x70] sm:$0x44] %v1802_v39  ;;  %v3115_v46 = vrot.slane %v3100_v56, 4  ;;  %v19558_v58 = vrot.slane %v13729_v0, 4 }
 0x199   :  { %1929 = vrot.lane.b32.xlu1 %v13144_v3, %s19564_s19  ;;  %2221 = vrot.lane.b32.xlu0 %v13542_v9, %s20014_s13  ;;  %s20015_s19 = smov 112  }
 0x19a   :  { %v3123_v4 = vsel %vm476_vm1, %v3115_v46, %v19555_v20  ;;  %v2388_v16 = vsel %vm476_vm1, %v2380_v37, %v19558_v58  ;;  %v19559_v46 = vrot.slane %v13564_v63, 4  ;;  %v3556_v58 = vrot.slane %v13527_v61, 4 }
 0x19b   :  { %v3125_v31 = vsel %vm19556_vm11, %v3100_v56, %v3123_v4  ;;  %v2390_v51 = vsel %vm19557_vm6, %v13462_v47, %v2388_v16  ;;  %v3688_v23 = vpop.permute.xlu0 %3687  ;;  %v13747_v25 = vpop.permute.xlu1 %2954  ;;  %v12380_v39 = vld [vmem:[#allocation3 + $0x4] ss:$56 sps:$4 sm:$0xff]   ;;  %v12382_v14 = vld [vmem:[#allocation3] ss:$56 sps:$4 sm:$0xff]   ;;  %vm19566_vm11 = vcmask 826368   ;;  %vm19567_vm6 = vcmask 867328  }
 0x19c   :  { %3145 = vst [vmem:[#allocation3 + $0xe0] sm:$0x88] %v3125_v31  ;;  %2410 = vst [vmem:[#allocation3 + $0xa8] sm:$0x44] %v2390_v51  ;;  %v3703_v20 = vrot.slane %v3688_v23, 4  ;;  %v19562_v37 = vrot.slane %v13747_v25, 4  ;;  %8343 = vmatprep.subr.bf16.mxu0 %v12380_v39 }
 0x19d   :  { %2076 = vrot.lane.b32.xlu1 %v13625_v59, %s20013_s17  ;;  %2368 = vrot.lane.b32.xlu0 %v13144_v3, %s19570_s15 }
 0x19e   :  { %v3711_v47 = vsel %vm476_vm1, %v3703_v20, %v19559_v46  ;;  %v2976_v56 = vsel %vm476_vm1, %v2968_v35, %v19562_v37  ;;  %8344 = vmatpush1.bf16.msra.mxu0 %v12382_v14  ;;  %v19563_v20 = vrot.slane %v13594_v2, 4  ;;  %v4144_v37 = vrot.slane %v13562_v6, 4 }
 0x19f   :  { %v3713_v4 = vsel %vm19560_vm13, %v3688_v23, %v3711_v47  ;;  %v2978_v16 = vsel %vm19561_vm9, %v13494_v18, %v2976_v56  ;;  %v4276_v31 = vpop.permute.xlu0 %4275  ;;  %v13765_v51 = vpop.permute.xlu1 %3542  ;;  %vm19573_vm13 = vcmask 793600   ;;  %vm4153_vm9 = vcmask 834560  }
 0x1a0   :  { %3733 = vst [vmem:[#allocation3 + $0x118] sm:$0x88] %v3713_v4  ;;  %2998 = vst [vmem:[#allocation3 + $0xe0] sm:$0x44] %v2978_v16  ;;  %v4291_v46 = vrot.slane %v4276_v31, 4  ;;  %v19568_v35 = vrot.slane %v13765_v51, 4 }
 0x1a1   :  { %2223 = vrot.lane.b32.xlu1 %v13572_v27, %s20014_s13  ;;  %2515 = vrot.lane.b32.xlu0 %v13203_v10, %s19661_s21 }
 0x1a2   :  { %v4299_v18 = vsel %vm476_vm1, %v4291_v46, %v19563_v20  ;;  %v3564_v14 = vsel %vm476_vm1, %v3556_v58, %v19568_v35  ;;  %v19569_v46 = vrot.slane %v13622_v55, 4  ;;  %v4732_v35 = vrot.slane %v13592_v8, 4 }
 0x1a3   :  { %v4301_v23 = vsel %vm19566_vm11, %v4276_v31, %v4299_v18  ;;  %v3566_v39 = vsel %vm19567_vm6, %v13527_v61, %v3564_v14  ;;  %v4864_v47 = vpop.permute.xlu0 %4863  ;;  %v13783_v56 = vpop.permute.xlu1 %4130  ;;  %v12383_v4 = vld [vmem:[#allocation3 + $0x74] ss:$56 sps:$4 sm:$0xff]   ;;  %v12385_v16 = vld [vmem:[#allocation3 + $0x70] ss:$56 sps:$4 sm:$0xff]   ;;  %vm19574_vm11 = vcmask 760832   ;;  %vm4741_vm6 = vcmask 801792  }
 0x1a4   :  { %4321 = vst [vmem:[#allocation3 + $0x150] sm:$0x88] %v4301_v23  ;;  %3586 = vst [vmem:[#allocation3 + $0x118] sm:$0x44] %v3566_v39  ;;  %v4879_v20 = vrot.slane %v4864_v47, 4  ;;  %v19572_v58 = vrot.slane %v13783_v56, 4  ;;  %8345 = vmatprep.subr.bf16.mxu0 %v12383_v4 }
 0x1a5   :  { %2370 = vrot.lane.b32.xlu1 %v13219_v13, %s19570_s15  ;;  %2662 = vrot.lane.b32.xlu0 %v13572_v27, %s20015_s19  ;;  %s20016_s15 = smov 111  }
 0x1a6   :  { %v4887_v61 = vsel %vm476_vm1, %v4879_v20, %v19569_v46  ;;  %v4152_v31 = vsel %vm476_vm1, %v4144_v37, %v19572_v58  ;;  %8346 = vmatpush1.bf16.msra.mxu0 %v12385_v16  ;;  %v19576_v20 = vrot.slane %v13651_v22, 4  ;;  %v5320_v58 = vrot.slane %v13620_v50, 4 }
 0x1a7   :  { %v4889_v18 = vsel %vm19573_vm13, %v4864_v47, %v4887_v61  ;;  %v4154_v14 = vsel %vm4153_vm9, %v13562_v6, %v4152_v31  ;;  %v5452_v23 = vpop.permute.xlu0 %5451  ;;  %v13801_v39 = vpop.permute.xlu1 %4718  ;;  %vm19575_vm13 = vcmask 769024  }
 0x1a8   :  { %4909 = vst [vmem:[#allocation3 + $0x188] sm:$0x88] %v4889_v18  ;;  %4174 = vst [vmem:[#allocation3 + $0x150] sm:$0x44] %v4154_v14  ;;  %v5467_v46 = vrot.slane %v5452_v23, 4  ;;  %v19585_v37 = vrot.slane %v13801_v39, 4 }
 0x1a9   :  { %2517 = vrot.lane.b32.xlu1 %v13144_v3, %s19661_s21  ;;  %2809 = vrot.lane.b32.xlu0 %v13542_v9, %s20016_s15  ;;  %s20051_s21 = smov 88  }
 0x1aa   :  { %v5475_v6 = vsel %vm476_vm1, %v5467_v46, %v19576_v20  ;;  %v4740_v47 = vsel %vm476_vm1, %v4732_v35, %v19585_v37 }
 0x1ab   :  { %v5477_v4 = vsel %vm19574_vm11, %v5452_v23, %v5475_v6  ;;  %v4742_v16 = vsel %vm4741_vm6, %v13592_v8, %v4740_v47  ;;  %v6040_v61 = vpop.permute.xlu0 %6039  ;;  %v13819_v31 = vpop.permute.xlu1 %5306  ;;  %v12386_v18 = vld [vmem:[#allocation3 + $0xe4] ss:$56 sps:$4 sm:$0xff]   ;;  %v12388_v14 = vld [vmem:[#allocation3 + $0xe0] ss:$56 sps:$4 sm:$0xff]   ;;  %v5908_v47 = vrot.slane %v13649_v60, 4  ;;  %vm19578_vm11 = vcmask 736256  }
 0x1ac   :  { %5497 = vst [vmem:[#allocation3 + $0x1c0] sm:$0x88] %v5477_v4  ;;  %4762 = vst [vmem:[#allocation3 + $0x188] sm:$0x44] %v4742_v16  ;;  %v19579_v46 = vrot.slane %v13819_v31, 4  ;;  %8347 = vmatprep.subr.bf16.mxu0 %v12386_v18 }
 0x1ad   :  { %2664 = vrot.lane.b32.xlu1 %v13625_v59, %s20015_s19  ;;  %2956 = vrot.lane.b32.xlu0 %v13144_v3, %s19580_s14 }
 0x1ae   :  { %v5328_v8 = vsel %vm476_vm1, %v5320_v58, %v19579_v46  ;;  %8348 = vmatpush1.bf16.msra.mxu0 %v12388_v14 }
 0x1af   :  { %v5330_v35 = vsel %vm19575_vm13, %v13620_v50, %v5328_v8  ;;  %v6187_v23 = vpop.permute.xlu0 %6186  ;;  %v13832_v6 = vpop.permute.xlu1 %5894  ;;  %vm19582_vm13 = vcmask 728064  }
 0x1b0   :  { %5350 = vst [vmem:[#allocation3 + $0x1c0] sm:$0x44] %v5330_v35  ;;  %v19577_v4 = vrot.slane %v13832_v6, 4  ;;  %v6055_v35 = vrot.slane %v6040_v61, 4 }
 0x1b1   :  { %2811 = vrot.lane.b32.xlu1 %v13572_v27, %s20016_s15  ;;  %3103 = vrot.lane.b32.xlu0 %v13203_v10, %s19657_s23 }
 0x1b2   :  { %v5916_v50 = vsel %vm476_vm1, %v5908_v47, %v19577_v4 }
 0x1b3   :  { %v5918_v58 = vsel %vm19578_vm11, %v13649_v60, %v5916_v50  ;;  %v6334_v16 = vpop.permute.xlu0 %6333  ;;  %v13845_v18 = vpop.permute.xlu1 %6041  ;;  %v12389_v14 = vld [vmem:[#allocation3 + $0x154] ss:$56 sps:$4 sm:$0xff]   ;;  %v12391_v8 = vld [vmem:[#allocation3 + $0x150] ss:$56 sps:$4 sm:$0xff]   ;;  %vm19586_vm11 = vcmask 719872  }
 0x1b4   :  { %20017 = vst [vmem:[#allocation9_spill] sm:$0xff] %v13845_v18  ;;  %5938 = vst [vmem:[#allocation3 + $0x1f8] sm:$0x44] %v5918_v58  ;;  %v19584_v20 = vrot.slane %v13845_v18, 4  ;;  %8349 = vmatprep.subr.bf16.mxu0 %v12389_v14  ;;  %v6202_v58 = vrot.slane %v6187_v23, 4 }
 0x1b5   :  { %2958 = vrot.lane.b32.xlu1 %v13219_v13, %s19580_s14  ;;  %3250 = vrot.lane.b32.xlu0 %v13572_v27, %s19591_s22  ;;  %s20019_s14 = smov 107  }
 0x1b6   :  { %v6063_v60 = vsel %vm476_vm1, %v6055_v35, %v19584_v20  ;;  %8350 = vmatpush1.bf16.msra.mxu0 %v12391_v8  ;;  %v6349_v8 = vrot.slane %v6334_v16, 4 }
 0x1b7   :  { %v6065_v47 = vsel %vm19582_vm13, %v6040_v61, %v6063_v60  ;;  %v6481_v50 = vpop.permute.xlu0 %6480  ;;  %v13856_v4 = vpop.permute.xlu1 %6188  ;;  %vm19589_vm13 = vcmask 711680  }
 0x1b8   :  { %20018 = vst [vmem:[#allocation10_spill] sm:$0xff] %v13856_v4  ;;  %6085 = vst [vmem:[#allocation3 + $0x1f8] sm:$0x88] %v6065_v47  ;;  %v19583_v46 = vrot.slane %v13856_v4, 4  ;;  %v6496_v37 = vrot.slane %v6481_v50, 4 }
 0x1b9   :  { %3105 = vrot.lane.b32.xlu1 %v13144_v3, %s19657_s23  ;;  %3397 = vrot.lane.b32.xlu0 %v13542_v9, %s20019_s14  ;;  %s20049_s23 = smov 89  }
 0x1ba   :  { %v6210_v14 = vsel %vm476_vm1, %v6202_v58, %v19583_v46 }
 0x1bb   :  { %v6212_v61 = vsel %vm19586_vm11, %v6187_v23, %v6210_v14  ;;  %v6628_v35 = vpop.permute.xlu0 %6627  ;;  %v13867_v60 = vpop.permute.xlu1 %6335  ;;  %vm19593_vm11 = vcmask 703488  }
 0x1bc   :  { %20020 = vst [vmem:[#allocation11_spill] sm:$0xff] %v13867_v60  ;;  %6232 = vst [vmem:[#allocation3 + $0x230] sm:$0x11] %v6212_v61  ;;  %v19588_v47 = vrot.slane %v13867_v60, 4 }
 0x1bd   :  { %3252 = vrot.lane.b32.xlu1 %v13625_v59, %s19591_s22  ;;  %3544 = vrot.lane.b32.xlu0 %v13144_v3, %s19594_s16  ;;  %s20023_s22 = smov 104  }
 0x1be   :  { %v6357_v58 = vsel %vm476_vm1, %v6349_v8, %v19588_v47 }
 0x1bf   :  { %v6359_v23 = vsel %vm19589_vm13, %v6334_v16, %v6357_v58  ;;  %v6775_v14 = vpop.permute.xlu0 %6774  ;;  %v13878_v46 = vpop.permute.xlu1 %6482  ;;  %v12392_v20 = vld [vmem:[#allocation3 + $0x1c4] ss:$56 sps:$4 sm:$0xff]   ;;  %v12394_v61 = vld [vmem:[#allocation3 + $0x1c0] ss:$56 sps:$4 sm:$0xff]   ;;  %vm19598_vm13 = vcmask 695296  }
 0x1c0   :  { %20021 = vst [vmem:[#allocation12_spill] sm:$0xff] %v13878_v46  ;;  %6379 = vst [vmem:[#allocation3 + $0x230] sm:$0x22] %v6359_v23  ;;  %v19597_v44 = vrot.slane %v13878_v46, 4  ;;  %8351 = vmatprep.subr.bf16.mxu0 %v12392_v20  ;;  %v6643_v23 = vrot.slane %v6628_v35, 4 }
 0x1c1   :  { %3399 = vrot.lane.b32.xlu1 %v13572_v27, %s20019_s14  ;;  %3691 = vrot.lane.b32.xlu0 %v13203_v10, %s19607_s25 }
 0x1c2   :  { %v6504_v16 = vsel %vm476_vm1, %v6496_v37, %v19597_v44  ;;  %8352 = vmatpush1.bf16.msra.mxu0 %v12394_v61  ;;  %v6790_v61 = vrot.slane %v6775_v14, 4 }
 0x1c3   :  { %v6506_v8 = vsel %vm19593_vm11, %v6481_v50, %v6504_v16  ;;  %v6922_v58 = vpop.permute.xlu0 %6921  ;;  %v13889_v47 = vpop.permute.xlu1 %6629  ;;  %vm19602_vm11 = vcmask 687104  }
 0x1c4   :  { %20022 = vst [vmem:[#allocation13_spill] sm:$0xff] %v13889_v47  ;;  %6526 = vst [vmem:[#allocation3 + $0x230] sm:$0x44] %v6506_v8  ;;  %v19596_v43 = vrot.slane %v13889_v47, 4  ;;  %v6937_v44 = vrot.slane %v6922_v58, 4 }
 0x1c5   :  { %3546 = vrot.lane.b32.xlu1 %v13219_v13, %s19594_s16  ;;  %3838 = vrot.lane.b32.xlu0 %v13572_v27, %s20023_s22  ;;  %s20025_s16 = smov 103  }
 0x1c6   :  { %v6651_v20 = vsel %vm476_vm1, %v6643_v23, %v19596_v43 }
 0x1c7   :  { %v6653_v37 = vsel %vm19598_vm13, %v6628_v35, %v6651_v20  ;;  %v7069_v50 = vpop.permute.xlu0 %7068  ;;  %v13900_v16 = vpop.permute.xlu1 %6776  ;;  %vm19606_vm13 = vcmask 678912  }
 0x1c8   :  { %20024 = vst [vmem:[#allocation14_spill] sm:$0xff] %v13900_v16  ;;  %6673 = vst [vmem:[#allocation3 + $0x230] sm:$0x88] %v6653_v37  ;;  %v19599_v8 = vrot.slane %v13900_v16, 4  ;;  %v7084_v16 = vrot.slane %v7069_v50, 4 }
 0x1c9   :  { %3693 = vrot.lane.b32.xlu1 %v13144_v3, %s19607_s25  ;;  %3985 = vrot.lane.b32.xlu0 %v13542_v9, %s20025_s16  ;;  %s20029_s25 = smov 100  }
 0x1ca   :  { %v6798_v23 = vsel %vm476_vm1, %v6790_v61, %v19599_v8 }
 0x1cb   :  { %v6800_v35 = vsel %vm19602_vm11, %v6775_v14, %v6798_v23  ;;  %v7216_v20 = vpop.permute.xlu0 %7215  ;;  %v13911_v43 = vpop.permute.xlu1 %6923  ;;  %vm19612_vm11 = vcmask 670720  }
 0x1cc   :  { %20026 = vst [vmem:[#allocation15_spill] sm:$0xff] %v13911_v43  ;;  %6820 = vst [vmem:[#allocation3 + $0x268] sm:$0x11] %v6800_v35  ;;  %v19603_v37 = vrot.slane %v13911_v43, 4  ;;  %v7231_v43 = vrot.slane %v7216_v20, 4 }
 0x1cd   :  { %3840 = vrot.lane.b32.xlu1 %v13625_v59, %s20023_s22  ;;  %4132 = vrot.lane.b32.xlu0 %v13144_v3, %s19613_s18 }
 0x1ce   :  { %v6945_v61 = vsel %vm476_vm1, %v6937_v44, %v19603_v37 }
 0x1cf   :  { %v6947_v14 = vsel %vm19606_vm13, %v6922_v58, %v6945_v61  ;;  %v7363_v23 = vpop.permute.xlu0 %7362  ;;  %v13922_v8 = vpop.permute.xlu1 %7070  ;;  %vm19618_vm13 = vcmask 662528  }
 0x1d0   :  { %20027 = vst [vmem:[#allocation16_spill] sm:$0xff] %v13922_v8  ;;  %6967 = vst [vmem:[#allocation3 + $0x268] sm:$0x22] %v6947_v14  ;;  %v19609_v35 = vrot.slane %v13922_v8, 4  ;;  %v7378_v8 = vrot.slane %v7363_v23, 4 }
 0x1d1   :  { %3987 = vrot.lane.b32.xlu1 %v13572_v27, %s20025_s16  ;;  %4279 = vrot.lane.b32.xlu0 %v13203_v10, %s19649_s27 }
 0x1d2   :  { %v7092_v44 = vsel %vm476_vm1, %v7084_v16, %v19609_v35 }
 0x1d3   :  { %v7094_v58 = vsel %vm19612_vm11, %v7069_v50, %v7092_v44  ;;  %v7510_v61 = vpop.permute.xlu0 %7509  ;;  %v13933_v37 = vpop.permute.xlu1 %7217  ;;  %vm19632_vm11 = vcmask 654336  }
 0x1d4   :  { %20028 = vst [vmem:[#allocation17_spill] sm:$0xff] %v13933_v37  ;;  %7114 = vst [vmem:[#allocation3 + $0x268] sm:$0x44] %v7094_v58  ;;  %v19615_v14 = vrot.slane %v13933_v37, 4  ;;  %v7525_v37 = vrot.slane %v7510_v61, 4 }
 0x1d5   :  { %4134 = vrot.lane.b32.xlu1 %v13219_v13, %s19613_s18  ;;  %4426 = vrot.lane.b32.xlu0 %v13572_v27, %s20029_s25  ;;  %s20031_s18 = smov 99  }
 0x1d6   :  { %v7239_v16 = vsel %vm476_vm1, %v7231_v43, %v19615_v14 }
 0x1d7   :  { %v7241_v50 = vsel %vm19618_vm13, %v7216_v20, %v7239_v16  ;;  %v7657_v44 = vpop.permute.xlu0 %7656  ;;  %v13944_v35 = vpop.permute.xlu1 %7364  ;;  %vm7534_vm13 = vcmask 646144  }
 0x1d8   :  { %20030 = vst [vmem:[#allocation18_spill] sm:$0xff] %v13944_v35  ;;  %7261 = vst [vmem:[#allocation3 + $0x268] sm:$0x88] %v7241_v50  ;;  %v19621_v58 = vrot.slane %v13944_v35, 4  ;;  %v7672_v18 = vrot.slane %v7657_v44, 4 }
 0x1d9   :  { %4281 = vrot.lane.b32.xlu1 %v13144_v3, %s19649_s27  ;;  %4573 = vrot.lane.b32.xlu0 %v13542_v9, %s20031_s18  ;;  %s20040_s27 = smov 93  }
 0x1da   :  { %v7386_v43 = vsel %vm476_vm1, %v7378_v8, %v19621_v58 }
 0x1db   :  { %v7388_v20 = vsel %vm19632_vm11, %v7363_v23, %v7386_v43  ;;  %v13955_v16 = vpop.permute.xlu1 %7511  ;;  %v457_v14 = vpop.permute.xlu0 %456  ;;  %v20033_v23 = vrot.slane %v13310_v21, 4  ;;  %vm7681_vm11 = vcmask 637952  }
 0x1dc   :  { %20032 = vst [vmem:[#allocation19_spill] sm:$0xff] %v13955_v16  ;;  %7408 = vst [vmem:[#allocation3 + $0x2a0] sm:$0x11] %v7388_v20  ;;  %v19633_v50 = vrot.slane %v13955_v16, 4  ;;  %v470_v47 = vrot.slane %v457_v14, 4 }
 0x1dd   :  { %4428 = vrot.lane.b32.xlu1 %v13625_v59, %s20029_s25  ;;  %4720 = vrot.lane.b32.xlu0 %v13144_v3, %s19638_s20 }
 0x1de   :  { %v7533_v8 = vsel %vm476_vm1, %v7525_v37, %v19633_v50  ;;  %v480_v43 = vsel %vm476_vm1, %v20033_v23, %v470_v47 }
 0x1df   :  { %v7535_v20 = vsel %vm7534_vm13, %v7510_v61, %v7533_v8  ;;  %v481_v58 = vsel %vm19640_vm3, %v13310_v21, %v480_v43  ;;  %v13971_v35 = vpop.permute.xlu1 %7658  ;;  %v605_v46 = vpop.permute.xlu0 %604  ;;  %v12395_v60 = vld [vmem:[#allocation3 + $0x234] ss:$56 sps:$4 sm:$0xff]   ;;  %v12397_v4 = vld [vmem:[#allocation3 + $0x230] ss:$56 sps:$4 sm:$0xff]   ;;  %v20035_v61 = vrot.slane %v13675_v7, 4 }
 0x1e0   :  { %20034 = vst [vmem:[#allocation20_spill] sm:$0xff] %v13971_v35  ;;  %7555 = vst [vmem:[#allocation3 + $0x2a0] sm:$0x22] %v7535_v20  ;;  %v19648_v37 = vrot.slane %v13971_v35, 4  ;;  %v618_v50 = vrot.slane %v605_v46, 4  ;;  %8353 = vmatprep.subr.bf16.mxu0 %v12395_v60 }
 0x1e1   :  { %500 = vst [vmem:[#allocation3 + $0x8] sm:$0x22] %v481_v58  ;;  %4575 = vrot.lane.b32.xlu1 %v13572_v27, %s20031_s18  ;;  %4867 = vrot.lane.b32.xlu0 %v13203_v10, %s19643_s24 }
 0x1e2   :  { %v7680_v21 = vsel %vm476_vm1, %v7672_v18, %v19648_v37  ;;  %v627_v8 = vsel %vm476_vm1, %v20035_v61, %v618_v50  ;;  %8354 = vmatpush1.bf16.msra.mxu0 %v12397_v4  ;;  %v14000_v4 = vld.sshfl [vmem:[#allocation2] sm:$0xff pattern:$0x73625140] }
 0x1e3   :  { %v7682_v58 = vsel %vm7681_vm11, %v7657_v44, %v7680_v21  ;;  %v628_v23 = vsel %vm625_vm0, %v13675_v7, %v627_v8  ;;  %v13987_v43 = vpop.permute.xlu1 %458  ;;  %v752_v20 = vpop.permute.xlu0 %751  ;;  %v20036_v7 = vrot.slane %v13407_v52, 4 }
 0x1e4   :  { %7702 = vst [vmem:[#allocation3 + $0x2a0] sm:$0x44] %v7682_v58  ;;  %647 = vst [vmem:[#allocation3 + $0x8] sm:$0x44] %v628_v23  ;;  %v19642_v35 = vrot.slane %v13987_v43, 4  ;;  %v765_v16 = vrot.slane %v752_v20, 4  ;;  %v14020_v23 = vrot.slane %v14000_v4, %v13131_v62 }
 0x1e5   :  { %4722 = vrot.lane.b32.xlu1 %v13219_v13, %s19638_s20  ;;  %5014 = vrot.lane.b32.xlu0 %v13572_v27, %s19645_s28  ;;  %s20037_s20 = smov 95  }
 0x1e6   :  { %v482_v18 = vsel %vm476_vm1, %v470_v47, %v19642_v35  ;;  %v774_v60 = vsel %vm476_vm1, %v20036_v7, %v765_v16 }
 0x1e7   :  { %v483_v44 = vsel %vm19640_vm3, %v457_v14, %v482_v18  ;;  %v775_v21 = vsel %vm772_vm12, %v13407_v52, %v774_v60  ;;  %v14005_v61 = vpop.permute.xlu1 %606  ;;  %v899_v13 = vpop.permute.xlu0 %898  ;;  %v20038_v52 = vrot.slane %v13413_v54, 4  ;;  %vm8300_vm3 = vcmask 1042432  }
 0x1e8   :  { %501 = vst [vmem:[#allocation3 + $0x10] sm:$0x22] %v483_v44  ;;  %794 = vst [vmem:[#allocation3 + $0x8] sm:$0x88] %v775_v21  ;;  %v19641_v8 = vrot.slane %v14005_v61, 4  ;;  %v912_v58 = vrot.slane %v899_v13, 4 }
 0x1e9   :  { %4869 = vrot.lane.b32.xlu1 %v13144_v3, %s19643_s24  ;;  %5161 = vrot.lane.b32.xlu0 %v13542_v9, %s20037_s20  ;;  %s20042_s24 = smov 92  }
 0x1ea   :  { %v629_v47 = vsel %vm476_vm1, %v618_v50, %v19641_v8  ;;  %v921_v14 = vsel %vm476_vm1, %v20038_v52, %v912_v58 }
 0x1eb   :  { %v630_v18 = vsel %vm625_vm0, %v605_v46, %v629_v47  ;;  %v922_v7 = vsel %vm19993_vm5, %v13413_v54, %v921_v14  ;;  %v14025_v60 = vpop.permute.xlu1 %753  ;;  %v1046_v44 = vpop.permute.xlu0 %1045  ;;  %v7797_v21 = vld [vmem:[#allocation3 + $0x2a0] sm:$0x77]  ;;  %v20039_v46 = vrot.slane %v13321_v24, 4 }
 0x1ec   :  { %648 = vst [vmem:[#allocation3 + $0x10] sm:$0x44] %v630_v18  ;;  %941 = vst [vmem:[#allocation3 + $0x40] sm:$0x11] %v922_v7  ;;  %v19647_v50 = vrot.slane %v14025_v60, 4  ;;  %v1059_v8 = vrot.slane %v1046_v44, 4  ;;  %v11924_v52 = vcombine.high %v7797_v21, %v7797_v21  ;;  %v11923_v35 = vcombine.low %v7797_v21, %v7797_v21 }
 0x1ed   :  { %5016 = vrot.lane.b32.xlu1 %v13625_v59, %s19645_s28  ;;  %5308 = vrot.lane.b32.xlu0 %v14020_v23, %s19652_s29  ;;  %v5230_v18 = vcombine.high %v14000_v4, %v14000_v4  ;;  %v12406_v7 = vld [vmem:[%s19440_s1] sm:$0xff]   ;;  %s20044_s28 = smov 91  }
 0x1ee   :  { %v776_v54 = vsel %vm476_vm1, %v765_v16, %v19647_v50  ;;  %v1068_v47 = vsel %vm476_vm1, %v20039_v46, %v1059_v8  ;;  %11937 = vmatprep.subr.msk.bf16.mxu0 %vm8300_vm3, %v11924_v52  ;;  %v8302_v14 = vsel %vm8300_vm3, %v11923_v35, 0 }
 0x1ef   :  { %v777_v21 = vsel %vm772_vm12, %v752_v20, %v776_v54  ;;  %v1069_v16 = vsel %vm19992_vm2, %v13321_v24, %v1068_v47  ;;  %v14048_v50 = vpop.permute.xlu1 %900  ;;  %v1193_v37 = vpop.permute.xlu0 %1192  ;;  %8356 = vmatpush1.bf16.msra.mxu0 %v8302_v14  ;;  %v20041_v24 = vrot.slane %v13693_v57, 4 }
 0x1f0   :  { %795 = vst [vmem:[#allocation3 + $0x10] sm:$0x88] %v777_v21  ;;  %1088 = vst [vmem:[#allocation3 + $0x40] sm:$0x22] %v1069_v16  ;;  %v19651_v35 = vrot.slane %v14048_v50, 4  ;;  %v1206_v52 = vrot.slane %v1193_v37, 4 }
 0x1f1   :  { %5163 = vrot.lane.b32.xlu1 %v13572_v27, %s20037_s20  ;;  %5455 = vrot.lane.b32.xlu0 %v13203_v10, %s20040_s27  ;;  %v14068_v10 = vrot.slane %v5230_v18, %v13131_v62  ;;  %v14070_v16 = vld [vmem:[#allocation4 + $0x20] sm:$0xff] }
 0x1f2   :  { %v923_v20 = vsel %vm476_vm1, %v912_v58, %v19651_v35  ;;  %v1215_v54 = vsel %vm476_vm1, %v20041_v24, %v1206_v52  ;;  %11938 = vmatmul.mubr.msk.bf16.vlgmr.msra.gmra.mrb[0].mxu0 %vm4153_vm9, %v12406_v7 }
 0x1f3   :  { %v924_v46 = vsel %vm19993_vm5, %v899_v13, %v923_v20  ;;  %v1216_v47 = vsel %vm1213_vm10, %v13693_v57, %v1215_v54  ;;  %v14065_v14 = vpop.permute.xlu1 %1047  ;;  %v1340_v21 = vpop.permute.xlu0 %1339  ;;  %8385 = vmatprep.mubr.bf16.mxu0 %v14070_v16  ;;  %v20043_v13 = vrot.slane %v13433_v5, 4 }
 0x1f4   :  { %942 = vst [vmem:[#allocation3 + $0x48] sm:$0x11] %v924_v46  ;;  %1235 = vst [vmem:[#allocation3 + $0x40] sm:$0x44] %v1216_v47  ;;  %v19655_v58 = vrot.slane %v14065_v14, 4  ;;  %v1353_v7 = vrot.slane %v1340_v21, 4 }
 0x1f5   :  { %5310 = vrot.lane.b32.xlu1 %v14068_v10, %s19652_s29  ;;  %5602 = vrot.lane.b32.xlu0 %v13572_v27, %s20042_s24  ;;  %s20046_s29 = smov 90  }
 0x1f6   :  { %v1070_v57 = vsel %vm476_vm1, %v1059_v8, %v19655_v58  ;;  %v1362_v18 = vsel %vm476_vm1, %v20043_v13, %v1353_v7 }
 0x1f7   :  { %v1071_v20 = vsel %vm19992_vm2, %v1046_v44, %v1070_v57  ;;  %v1363_v24 = vsel %vm1360_vm14, %v13433_v5, %v1362_v18  ;;  %v14087_v54 = vpop.permute.xlu1 %1194  ;;  %v1487_v46 = vpop.permute.xlu0 %1486  ;;  %v20045_v5 = vrot.slane %v13441_v12, 4  ;;  %v5965_v57 = vcombine.low %v14000_v4, %v14000_v4 }
 0x1f8   :  { %1089 = vst [vmem:[#allocation3 + $0x48] sm:$0x22] %v1071_v20  ;;  %1382 = vst [vmem:[#allocation3 + $0x40] sm:$0x88] %v1363_v24  ;;  %v19654_v47 = vrot.slane %v14087_v54, 4  ;;  %v1500_v35 = vrot.slane %v1487_v46, 4 }
 0x1f9   :  { %5457 = vrot.lane.b32.xlu1 %v13144_v3, %s20040_s27  ;;  %5749 = vrot.lane.b32.xlu0 %v13542_v9, %s20044_s28 }
 0x1fa   :  { %v1217_v8 = vsel %vm476_vm1, %v1206_v52, %v19654_v47  ;;  %v1509_v44 = vsel %vm476_vm1, %v20045_v5, %v1500_v35 }
 0x1fb   :  { %v1218_v13 = vsel %vm1213_vm10, %v1193_v37, %v1217_v8  ;;  %v1510_v18 = vsel %vm1507_vm7, %v13441_v12, %v1509_v44  ;;  %v14105_v3 = vpop.permute.xlu1 %1341  ;;  %v1634_v20 = vpop.permute.xlu0 %1633  ;;  %v20047_v12 = vrot.slane %v13329_v26, 4  ;;  %v14119_v8 = vrot.slane %v5965_v57, %v13131_v62 }
 0x1fc   :  { %1236 = vst [vmem:[#allocation3 + $0x48] sm:$0x44] %v1218_v13  ;;  %1529 = vst [vmem:[#allocation3 + $0x78] sm:$0x11] %v1510_v18  ;;  %v19656_v24 = vrot.slane %v14105_v3, 4  ;;  %v1647_v52 = vrot.slane %v1634_v20, 4 }
 0x1fd   :  { %5604 = vrot.lane.b32.xlu1 %v13625_v59, %s20042_s24  ;;  %5896 = vrot.lane.b32.xlu0 %v14020_v23, %s20046_s29 }
 0x1fe   :  { %v1364_v37 = vsel %vm476_vm1, %v1353_v7, %v19656_v24  ;;  %v1656_v4 = vsel %vm476_vm1, %v20047_v12, %v1647_v52 }
 0x1ff   :  { %v1365_v5 = vsel %vm1360_vm14, %v1340_v21, %v1364_v37  ;;  %v1657_v44 = vsel %vm19666_vm4, %v13329_v26, %v1656_v4  ;;  %v14124_v13 = vpop.permute.xlu1 %1488  ;;  %v1781_v18 = vpop.permute.xlu0 %1780  ;;  %v12400_v47 = vld [vmem:[#allocation3 + $0xc] ss:$56 sps:$4 sm:$0xff]   ;;  %v12402_v58 = vld [vmem:[#allocation3 + $0x8] ss:$56 sps:$4 sm:$0xff]   ;;  %v20050_v21 = vrot.slane %v13711_v17, 4 }
 0x200   :  { %20048 = vst [vmem:[#allocation21_spill] sm:$0xff] %v14124_v13  ;;  %1383 = vst [vmem:[#allocation3 + $0x48] sm:$0x88] %v1365_v5  ;;  %v19663_v7 = vrot.slane %v14124_v13, 4  ;;  %v1794_v24 = vrot.slane %v1781_v18, 4  ;;  %8396 = vmatprep.subr.bf16.mxu1 %v12400_v47 }
 0x201   :  { %1676 = vst [vmem:[#allocation3 + $0x78] sm:$0x22] %v1657_v44  ;;  %5751 = vrot.lane.b32.xlu1 %v13572_v27, %s20044_s28  ;;  %6043 = vrot.lane.b32.xlu0 %v14119_v8, %s20049_s23 }
 0x202   :  { %v1511_v26 = vsel %vm476_vm1, %v1500_v35, %v19663_v7  ;;  %v1803_v57 = vsel %vm476_vm1, %v20050_v21, %v1794_v24  ;;  %8397 = vmatpush1.bf16.msra.mxu1 %v12402_v58 }
 0x203   :  { %v1512_v37 = vsel %vm1507_vm7, %v1487_v46, %v1511_v26  ;;  %v1804_v12 = vsel %vm19991_vm8, %v13711_v17, %v1803_v57  ;;  %v14140_v4 = vpop.permute.xlu1 %1635  ;;  %v1928_v5 = vpop.permute.xlu0 %1927  ;;  %v20052_v17 = vrot.slane %v13464_v48, 4 }
 0x204   :  { %1530 = vst [vmem:[#allocation3 + $0x80] sm:$0x11] %v1512_v37  ;;  %1823 = vst [vmem:[#allocation3 + $0x78] sm:$0x44] %v1804_v12  ;;  %v19667_v44 = vrot.slane %v14140_v4, 4  ;;  %v1941_v13 = vrot.slane %v1928_v5, 4 }
 0x205   :  { %5898 = vrot.lane.b32.xlu1 %v14068_v10, %s20046_s29  ;;  %6190 = vrot.lane.b32.xlu0 %v13572_v27, %s20051_s21 }
 0x206   :  { %v1658_v35 = vsel %vm476_vm1, %v1647_v52, %v19667_v44  ;;  %v1950_v46 = vsel %vm476_vm1, %v20052_v17, %v1941_v13 }
 0x207   :  { %v1659_v58 = vsel %vm19666_vm4, %v1634_v20, %v1658_v35  ;;  %v1951_v47 = vsel %vm19671_vm15, %v13464_v48, %v1950_v46  ;;  %v14156_v26 = vpop.permute.xlu1 %1782  ;;  %v2075_v21 = vpop.permute.xlu0 %2074  ;;  %v12403_v57 = vld [vmem:[#allocation3 + $0x10] ss:$56 sps:$4 sm:$0xff]   ;;  %v12405_v37 = vld [vmem:[#allocation3 + $0x14] ss:$56 sps:$4 sm:$0xff]   ;;  %v20054_v20 = vrot.slane %v13474_v53, 4  ;;  %vm20055_vm4 = vcmask 949248  }
 0x208   :  { %1677 = vst [vmem:[#allocation3 + $0x80] sm:$0x22] %v1659_v58  ;;  %1970 = vst [vmem:[#allocation3 + $0x78] sm:$0x88] %v1951_v47  ;;  %v19720_v12 = vrot.slane %v14156_v26, 4  ;;  %v2088_v7 = vrot.slane %v2075_v21, 4  ;;  %8449 = vmatprep.subr.bf16.mxu0 %v12405_v37 }
 0x209   :  { %6045 = vrot.lane.b32.xlu1 %v14020_v23, %s20049_s23  ;;  %6337 = vrot.lane.b32.xlu0 %v13542_v9, %s20053_s12 }
 0x20a   :  { %v1805_v48 = vsel %vm476_vm1, %v1794_v24, %v19720_v12  ;;  %v2097_v52 = vsel %vm476_vm1, %v20054_v20, %v2088_v7  ;;  %8450 = vmatpush1.bf16.msra.mxu0 %v12403_v57 }
 0x20b   :  { %v1806_v35 = vsel %vm19991_vm8, %v1781_v18, %v1805_v48  ;;  %v2098_v17 = vsel %vm20055_vm4, %v13474_v53, %v2097_v52  ;;  %v14172_v46 = vpop.permute.xlu1 %1929  ;;  %v2222_v58 = vpop.permute.xlu0 %2221  ;;  %v20057_v53 = vrot.slane %v13337_v28, 4  ;;  %vm20058_vm4 = vcmask 941056  }
 0x20c   :  { %1824 = vst [vmem:[#allocation3 + $0x80] sm:$0x44] %v1806_v35  ;;  %2117 = vst [vmem:[#allocation3 + $0xb0] sm:$0x11] %v2098_v17  ;;  %v19677_v47 = vrot.slane %v14172_v46, 4  ;;  %v2235_v44 = vrot.slane %v2222_v58, 4 }
 0x20d   :  { %6192 = vrot.lane.b32.xlu1 %v13625_v59, %s20051_s21  ;;  %6484 = vrot.lane.b32.xlu0 %v14020_v23, %s20056_s26 }
 0x20e   :  { %v1952_v24 = vsel %vm476_vm1, %v1941_v13, %v19677_v47  ;;  %v2244_v18 = vsel %vm476_vm1, %v20057_v53, %v2235_v44 }
 0x20f   :  { %v1953_v57 = vsel %vm19671_vm15, %v1928_v5, %v1952_v24  ;;  %v2245_v37 = vsel %vm20058_vm4, %v13337_v28, %v2244_v18  ;;  %v14188_v48 = vpop.permute.xlu1 %2076  ;;  %v2369_v20 = vpop.permute.xlu0 %2368  ;;  %v20060_v28 = vrot.slane %v13729_v0, 4  ;;  %vm20061_vm4 = vcmask 949248  }
 0x210   :  { %1971 = vst [vmem:[#allocation3 + $0x80] sm:$0x88] %v1953_v57  ;;  %2264 = vst [vmem:[#allocation3 + $0xb0] sm:$0x22] %v2245_v37  ;;  %v19674_v52 = vrot.slane %v14188_v48, 4  ;;  %v2382_v35 = vrot.slane %v2369_v20, 4 }
 0x211   :  { %6339 = vrot.lane.b32.xlu1 %v13572_v27, %s20053_s12  ;;  %6631 = vrot.lane.b32.xlu0 %v14119_v8, %s20059_s8  ;;  %vm20062_vm15 = vcmask 932864  }
 0x212   :  { %v2099_v13 = vsel %vm476_vm1, %v2088_v7, %v19674_v52  ;;  %v2391_v5 = vsel %vm476_vm1, %v20060_v28, %v2382_v35 }
 0x213   :  { %v2100_v17 = vsel %vm20061_vm4, %v2075_v21, %v2099_v13  ;;  %v2392_v24 = vsel %vm20062_vm15, %v13729_v0, %v2391_v5  ;;  %v14204_v53 = vpop.permute.xlu1 %2223  ;;  %v2516_v18 = vpop.permute.xlu0 %2515  ;;  %v20064_v0 = vrot.slane %v13496_v19, 4  ;;  %vm20065_vm15 = vcmask 941056  }
 0x214   :  { %2118 = vst [vmem:[#allocation3 + $0xb8] sm:$0x11] %v2100_v17  ;;  %2411 = vst [vmem:[#allocation3 + $0xb0] sm:$0x44] %v2392_v24  ;;  %v19672_v8 = vrot.slane %v14204_v53, 4  ;;  %v2529_v57 = vrot.slane %v2516_v18, 4 }
 0x215   :  { %6486 = vrot.lane.b32.xlu1 %v14068_v10, %s20056_s26  ;;  %6778 = vrot.lane.b32.xlu0 %v13572_v27, %s20063_s7  ;;  %vm20066_vm4 = vcmask 924672   ;;  %v12877_v17 = vld [vmem:[#allocation2] sm:$0xff] }
 0x216   :  { %v2246_v7 = vsel %vm476_vm1, %v2235_v44, %v19672_v8  ;;  %v2538_v21 = vsel %vm476_vm1, %v20064_v0, %v2529_v57  ;;  %v14223_v24 = vrot.slane %v12877_v17, %v13131_v62  ;;  %v7419_v0 = vcombine.high %v12877_v17, %v12877_v17 }
 0x217   :  { %v2247_v37 = vsel %vm20065_vm15, %v2222_v58, %v2246_v7  ;;  %v2539_v13 = vsel %vm20066_vm4, %v13496_v19, %v2538_v21  ;;  %v14220_v28 = vpop.permute.xlu1 %2370  ;;  %v2663_v5 = vpop.permute.xlu0 %2662  ;;  %v20068_v58 = vrot.slane %v13508_v45, 4  ;;  %vm20069_vm15 = vcmask 932864  }
 0x218   :  { %2265 = vst [vmem:[#allocation3 + $0xb8] sm:$0x22] %v2247_v37  ;;  %2558 = vst [vmem:[#allocation3 + $0xb0] sm:$0x88] %v2539_v13  ;;  %v19675_v44 = vrot.slane %v14220_v28, 4  ;;  %v2676_v8 = vrot.slane %v2663_v5, 4  ;;  %v14261_v47 = vrot.slane %v7419_v0, %v13131_v62 }
 0x219   :  { %6633 = vrot.lane.b32.xlu1 %v14020_v23, %s20059_s8  ;;  %6925 = vrot.lane.b32.xlu0 %v13542_v9, %s20067_s6  ;;  %vm20070_vm4 = vcmask 916480   ;;  %v7141_v9 = vcombine.low %v14223_v24, %v14223_v24 }
 0x21a   :  { %v2393_v19 = vsel %vm476_vm1, %v2382_v35, %v19675_v44  ;;  %v2685_v7 = vsel %vm476_vm1, %v20068_v58, %v2676_v8 }
 0x21b   :  { %v2394_v21 = vsel %vm20069_vm15, %v2369_v20, %v2393_v19  ;;  %v2686_v37 = vsel %vm20070_vm4, %v13508_v45, %v2685_v7  ;;  %v14239_v13 = vpop.permute.xlu1 %2517  ;;  %v2810_v52 = vpop.permute.xlu0 %2809  ;;  %v20072_v20 = vrot.slane %v13345_v30, 4  ;;  %vm20073_vm15 = vcmask 924672  }
 0x21c   :  { %2412 = vst [vmem:[#allocation3 + $0xb8] sm:$0x44] %v2394_v21  ;;  %2705 = vst [vmem:[#allocation3 + $0xe8] sm:$0x11] %v2686_v37  ;;  %v19683_v35 = vrot.slane %v14239_v13, 4  ;;  %v2823_v44 = vrot.slane %v2810_v52, 4 }
 0x21d   :  { %6780 = vrot.lane.b32.xlu1 %v13625_v59, %s20063_s7  ;;  %7072 = vrot.lane.b32.xlu0 %v14020_v23, %s20071_s5  ;;  %vm20074_vm4 = vcmask 908288   ;;  %v7162_v59 = vrot.slane %v7141_v9, %v13131_v62 }
 0x21e   :  { %v2540_v45 = vsel %vm476_vm1, %v2529_v57, %v19683_v35  ;;  %v2832_v17 = vsel %vm476_vm1, %v20072_v20, %v2823_v44 }
 0x21f   :  { %v2541_v19 = vsel %vm20073_vm15, %v2516_v18, %v2540_v45  ;;  %v2833_v58 = vsel %vm20074_vm4, %v13345_v30, %v2832_v17  ;;  %v14257_v7 = vpop.permute.xlu1 %2664  ;;  %v2957_v21 = vpop.permute.xlu0 %2956  ;;  %v12407_v37 = vld [vmem:[#allocation3 + $0x7c] ss:$56 sps:$4 sm:$0xff]   ;;  %v12409_v23 = vld [vmem:[#allocation3 + $0x78] ss:$56 sps:$4 sm:$0xff]   ;;  %v20076_v18 = vrot.slane %v13747_v25, 4  ;;  %vm20077_vm15 = vcmask 916480  }
 0x220   :  { %2559 = vst [vmem:[#allocation3 + $0xb8] sm:$0x88] %v2541_v19  ;;  %2852 = vst [vmem:[#allocation3 + $0xe8] sm:$0x22] %v2833_v58  ;;  %v19681_v57 = vrot.slane %v14257_v7, 4  ;;  %v2970_v20 = vrot.slane %v2957_v21, 4  ;;  %8398 = vmatprep.subr.bf16.mxu1 %v12407_v37 }
 0x221   :  { %6927 = vrot.lane.b32.xlu1 %v13572_v27, %s20067_s6  ;;  %7219 = vrot.lane.b32.xlu0 %v7162_v59, %s20075_s4  ;;  %vm20078_vm4 = vcmask 900096   ;;  %v7309_v27 = vrot.slane %v13206_v11, %v13131_v62  ;;  %v14282_v58 = vld.sshfl [vmem:[#allocation2 + $0x8] sm:$0x7f pattern:$0x73625140]  ;;  %v20080_v11 = vrot.slane %v13529_v1, 4 }
 0x222   :  { %v2687_v30 = vsel %vm476_vm1, %v2676_v8, %v19681_v57  ;;  %v2979_v9 = vsel %vm476_vm1, %v20076_v18, %v2970_v20  ;;  %8399 = vmatpush1.bf16.msra.mxu1 %v12409_v23  ;;  %v7435_v8 = vcombine.low %v14261_v47, %v14261_v47  ;;  %v7169_v23 = vrot.slane %v14223_v24, %v13131_v62  ;;  %v654_v57 = vld [vmem:[#allocation2 + $0x8] sm:$0x7f] }
 0x223   :  { %v2688_v0 = vsel %vm20077_vm15, %v2663_v5, %v2687_v30  ;;  %v2980_v45 = vsel %vm20078_vm4, %v13747_v25, %v2979_v9  ;;  %v14276_v17 = vpop.permute.xlu1 %2811  ;;  %v3104_v19 = vpop.permute.xlu0 %3103  ;;  %v507_v30 = vld [vmem:[#allocation2 + $0x8] sm:$0x7f]  ;;  %vm20081_vm15 = vcmask 908288   ;;  %vm20082_vm4 = vcmask 891904  }
 0x224   :  { %2706 = vst [vmem:[#allocation3 + $0xf0] sm:$0x11] %v2688_v0  ;;  %2999 = vst [vmem:[#allocation3 + $0xe8] sm:$0x44] %v2980_v45  ;;  %v19680_v59 = vrot.slane %v14276_v17, 4  ;;  %v3117_v5 = vrot.slane %v3104_v19, 4  ;;  %v7456_v45 = vrot.slane %v7435_v8, %v13131_v62 }
 0x225   :  { %7074 = vrot.lane.b32.xlu1 %v14068_v10, %s20071_s5  ;;  %7366 = vrot.lane.b32.xlu0 %v7309_v27, %s20079_s3 }
 0x226   :  { %v2834_v25 = vsel %vm476_vm1, %v2823_v44, %v19680_v59  ;;  %v3126_v37 = vsel %vm476_vm1, %v20080_v11, %v3117_v5 }
 0x227   :  { %v2835_v18 = vsel %vm20081_vm15, %v2810_v52, %v2834_v25  ;;  %v3127_v9 = vsel %vm20082_vm4, %v13529_v1, %v3126_v37  ;;  %v14299_v10 = vpop.permute.xlu1 %2958  ;;  %v3251_v0 = vpop.permute.xlu0 %3250  ;;  %v12410_v27 = vld [vmem:[#allocation3 + $0x80] ss:$56 sps:$4 sm:$0xff]   ;;  %v12412_v44 = vld [vmem:[#allocation3 + $0x84] ss:$56 sps:$4 sm:$0xff]   ;;  %v20084_v52 = vrot.slane %v13539_v42, 4  ;;  %v422_v25 = vcombine.low %v14282_v58, %v14282_v58 }
 0x228   :  { %2853 = vst [vmem:[#allocation3 + $0xf0] sm:$0x22] %v2835_v18  ;;  %3146 = vst [vmem:[#allocation3 + $0xe8] sm:$0x88] %v3127_v9  ;;  %v19684_v11 = vrot.slane %v14299_v10, 4  ;;  %v3264_v59 = vrot.slane %v3251_v0, 4  ;;  %8451 = vmatprep.subr.bf16.mxu0 %v12412_v44  ;;  %v555_v37 = vcombine.low %v507_v30, %v507_v30 }
 0x229   :  { %7221 = vrot.lane.b32.xlu1 %v7169_v23, %s20075_s4  ;;  %7513 = vrot.lane.b32.xlu0 %v7456_v45, %s20083_s2  ;;  %vm20085_vm15 = vcmask 900096   ;;  %vm20086_vm4 = vcmask 883712   ;;  %s20087_s4 = smov 78   ;;  %v20088_v30 = vrot.slane %v13353_v32, 4 }
 0x22a   :  { %v2981_v1 = vsel %vm476_vm1, %v2970_v20, %v19684_v11  ;;  %v3273_v8 = vsel %vm476_vm1, %v20084_v52, %v3264_v59  ;;  %8452 = vmatpush1.bf16.msra.mxu0 %v12410_v27  ;;  %v7316_v20 = vrot.slane %v13273_v15, %v13131_v62  ;;  %v702_v11 = vcombine.low %v654_v57, %v654_v57 }
 0x22b   :  { %v2982_v18 = vsel %vm20085_vm15, %v2957_v21, %v2981_v1  ;;  %v3274_v9 = vsel %vm20086_vm4, %v13539_v42, %v3273_v8  ;;  %v14316_v35 = vpop.permute.xlu1 %3105  ;;  %v3398_v45 = vpop.permute.xlu0 %3397  ;;  %v7582_v42 = vcombine.high %v14223_v24, %v14223_v24  ;;  %v7463_v57 = vrot.slane %v14261_v47, %v13131_v62 }
 0x22c   :  { %3000 = vst [vmem:[#allocation3 + $0xf0] sm:$0x44] %v2982_v18  ;;  %3293 = vst [vmem:[#allocation3 + $0x120] sm:$0x11] %v3274_v9  ;;  %v19695_v44 = vrot.slane %v14316_v35, 4  ;;  %v3411_v52 = vrot.slane %v3398_v45, 4  ;;  %v562_v27 = vrot.slane %v555_v37, %v13131_v62  ;;  %v430_v18 = vrot.slane %v422_v25, %v13131_v62 }
 0x22d   :  { %7368 = vrot.lane.b32.xlu1 %v7316_v20, %s20079_s3  ;;  %7660 = vrot.lane.b32.xlu0 %v7169_v23, %s20087_s4  ;;  %vm20089_vm15 = vcmask 891904   ;;  %vm20090_vm4 = vcmask 875520  }
 0x22e   :  { %v3128_v21 = vsel %vm476_vm1, %v3117_v5, %v19695_v44  ;;  %v3420_v15 = vsel %vm476_vm1, %v20088_v30, %v3411_v52  ;;  %v14341_v5 = vrot.slane %v702_v11, %v13131_v62  ;;  %v7610_v11 = vrot.slane %v7582_v42, %v13131_v62  ;;  %v1830_v44 = vld [vmem:[#allocation2 + $0x8] sm:$0x7f] }
 0x22f   :  { %v3129_v1 = vsel %vm20089_vm15, %v3104_v19, %v3128_v21  ;;  %v3421_v23 = vsel %vm20090_vm4, %v13353_v32, %v3420_v15  ;;  %v14337_v8 = vpop.permute.xlu1 %3252  ;;  %v3545_v24 = vpop.permute.xlu0 %3544  ;;  %v20091_v19 = vrot.slane %v13765_v51, 4  ;;  %vm20092_vm15 = vcmask 883712  }
 0x230   :  { %3147 = vst [vmem:[#allocation3 + $0xf0] sm:$0x88] %v3129_v1  ;;  %3440 = vst [vmem:[#allocation3 + $0x120] sm:$0x22] %v3421_v23  ;;  %v19687_v9 = vrot.slane %v14337_v8, 4  ;;  %v3558_v47 = vrot.slane %v3545_v24, 4  ;;  %v578_v15 = vrot.slane %v562_v27, %v13131_v62 }
 0x231   :  { %7515 = vrot.lane.b32.xlu1 %v7463_v57, %s20083_s2  ;;  %460 = vrot.lane.b32.xlu0 %v430_v18, %s20008_s30  ;;  %vm20093_vm4 = vcmask 867328   ;;  %v717_v57 = vcombine.low %v14341_v5, %v14341_v5  ;;  %v14364_v23 = vld.sshfl [vmem:[#allocation2 + $0x8] sm:$0x7f pattern:$0x73625140]  ;;  %s20094_s2 = smov 126  }
 0x232   :  { %v3275_v32 = vsel %vm476_vm1, %v3264_v59, %v19687_v9  ;;  %v3567_v25 = vsel %vm476_vm1, %v20091_v19, %v3558_v47  ;;  %v14361_v59 = vld.sshfl [vmem:[#allocation2 + $0x8] sm:$0x7f pattern:$0x73625140]  ;;  %v20095_v18 = vrot.slane %v13564_v63, 4  ;;  %v570_v19 = vcombine.high %v562_v27, %v562_v27 }
 0x233   :  { %v3276_v37 = vsel %vm20092_vm15, %v3251_v0, %v3275_v32  ;;  %v3568_v20 = vsel %vm20093_vm4, %v13765_v51, %v3567_v25  ;;  %v14356_v21 = vpop.permute.xlu1 %3399  ;;  %v3692_v30 = vpop.permute.xlu0 %3691  ;;  %v437_v51 = vrot.slane %v14282_v58, %v13131_v62  ;;  %v1095_v25 = vld [vmem:[#allocation2 + $0x8] sm:$0x7f]  ;;  %vm20096_vm15 = vcmask 875520  }
 0x234   :  { %3294 = vst [vmem:[#allocation3 + $0x128] sm:$0x11] %v3276_v37  ;;  %3587 = vst [vmem:[#allocation3 + $0x120] sm:$0x44] %v3568_v20  ;;  %v19688_v1 = vrot.slane %v14356_v21, 4  ;;  %v3705_v42 = vrot.slane %v3692_v30, 4  ;;  %v725_v58 = vrot.slane %v717_v57, %v13131_v62  ;;  %v1143_v27 = vcombine.low %v1095_v25, %v1095_v25 }
 0x235   :  { %7662 = vrot.lane.b32.xlu1 %v7610_v11, %s20087_s4  ;;  %608 = vrot.lane.b32.xlu0 %v578_v15, %s20094_s2  ;;  %vm20097_vm4 = vcmask 859136   ;;  %v1242_v9 = vld [vmem:[#allocation2 + $0x8] sm:$0x7f]  ;;  %s20098_s4 = smov 125   ;;  %v585_v57 = vrot.slane %v570_v19, %v13131_v62  ;;  %v872_v25 = vrot.slane %v14361_v59, %v13131_v62 }
 0x236   :  { %v3422_v0 = vsel %vm476_vm1, %v3411_v52, %v19688_v1  ;;  %v3714_v32 = vsel %vm476_vm1, %v20095_v18, %v3705_v42  ;;  %v1290_v18 = vcombine.low %v1242_v9, %v1242_v9  ;;  %v20102_v9 = vrot.slane %v13361_v34, 4 }
 0x237   :  { %v3423_v37 = vsel %vm20096_vm15, %v3398_v45, %v3422_v0  ;;  %v3715_v11 = vsel %vm20097_vm4, %v13564_v63, %v3714_v32  ;;  %v14379_v20 = vpop.permute.xlu1 %3546  ;;  %v3839_v15 = vpop.permute.xlu0 %3838  ;;  %v20099_v45 = vrot.slane %v13574_v41, 4  ;;  %vm20100_vm15 = vcmask 867328  }
 0x238   :  { %3441 = vst [vmem:[#allocation3 + $0x128] sm:$0x22] %v3423_v37  ;;  %3734 = vst [vmem:[#allocation3 + $0x120] sm:$0x88] %v3715_v11  ;;  %v19693_v52 = vrot.slane %v14379_v20, 4  ;;  %v3852_v1 = vrot.slane %v3839_v15, 4 }
 0x239   :  { %462 = vrot.lane.b32.xlu1 %v437_v51, %s20008_s30  ;;  %755 = vrot.lane.b32.xlu0 %v725_v58, %s20098_s4  ;;  %vm20101_vm4 = vcmask 850944  }
 0x23a   :  { %v3569_v63 = vsel %vm476_vm1, %v3558_v47, %v19693_v52  ;;  %v3861_v0 = vsel %vm476_vm1, %v20099_v45, %v3852_v1  ;;  %v1011_v47 = vcombine.low %v14364_v23, %v14364_v23  ;;  %v864_v45 = vcombine.high %v14361_v59, %v14361_v59 }
 0x23b   :  { %v3570_v32 = vsel %vm20100_vm15, %v3545_v24, %v3569_v63  ;;  %v3862_v37 = vsel %vm20101_vm4, %v13574_v41, %v3861_v0  ;;  %v14395_v51 = vpop.permute.xlu1 %3693  ;;  %v3986_v11 = vpop.permute.xlu0 %3985  ;;  %v732_v41 = vrot.slane %v14341_v5, %v13131_v62  ;;  %v14415_v0 = vrot.slane %v1143_v27, %v13131_v62 }
 0x23c   :  { %3588 = vst [vmem:[#allocation3 + $0x128] sm:$0x44] %v3570_v32  ;;  %3881 = vst [vmem:[#allocation3 + $0x158] sm:$0x11] %v3862_v37  ;;  %v19690_v58 = vrot.slane %v14395_v51, 4  ;;  %v3999_v19 = vrot.slane %v3986_v11, 4 }
 0x23d   :  { %610 = vrot.lane.b32.xlu1 %v585_v57, %s20094_s2  ;;  %902 = vrot.lane.b32.xlu0 %v872_v25, %s20009_s9  ;;  %vm20103_vm15 = vcmask 859136   ;;  %vm20104_vm4 = vcmask 842752   ;;  %s20107_s2 = smov 122  }
 0x23e   :  { %v3716_v24 = vsel %vm476_vm1, %v3705_v42, %v19690_v58  ;;  %v4008_v63 = vsel %vm476_vm1, %v20102_v9, %v3999_v19  ;;  %v1019_v42 = vrot.slane %v1011_v47, %v13131_v62  ;;  %v14424_v9 = vrot.slane %v1290_v18, %v13131_v62 }
 0x23f   :  { %v3717_v57 = vsel %vm20103_vm15, %v3692_v30, %v3716_v24  ;;  %v4009_v32 = vsel %vm20104_vm4, %v13361_v34, %v4008_v63  ;;  %v14420_v5 = vpop.permute.xlu1 %3840  ;;  %v4133_v37 = vpop.permute.xlu0 %4132  ;;  %v12415_v25 = vld [vmem:[#allocation3 + $0xec] ss:$56 sps:$4 sm:$0xff]   ;;  %v12417_v58 = vld [vmem:[#allocation3 + $0xe8] ss:$56 sps:$4 sm:$0xff]   ;;  %v20105_v30 = vrot.slane %v13783_v56, 4  ;;  %v879_v18 = vrot.slane %v864_v45, %v13131_v62 }
 0x240   :  { %3735 = vst [vmem:[#allocation3 + $0x128] sm:$0x88] %v3717_v57  ;;  %4028 = vst [vmem:[#allocation3 + $0x158] sm:$0x22] %v4009_v32  ;;  %v19692_v59 = vrot.slane %v14420_v5, 4  ;;  %v4146_v27 = vrot.slane %v4133_v37, 4  ;;  %8400 = vmatprep.subr.bf16.mxu1 %v12415_v25 }
 0x241   :  { %757 = vrot.lane.b32.xlu1 %v732_v41, %s20098_s4  ;;  %1049 = vrot.lane.b32.xlu0 %v1019_v42, %s20010_s10  ;;  %v14436_v24 = vld.sshfl [vmem:[#allocation2 + $0x8] sm:$0x7f pattern:$0x73625140]  ;;  %vm20106_vm15 = vcmask 850944   ;;  %v1305_v42 = vcombine.low %v14424_v9, %v14424_v9 }
 0x242   :  { %v3863_v34 = vsel %vm476_vm1, %v3852_v1, %v19692_v59  ;;  %v4155_v47 = vsel %vm476_vm1, %v20105_v30, %v4146_v27  ;;  %8401 = vmatpush1.bf16.msra.mxu1 %v12417_v58  ;;  %v1166_v1 = vrot.slane %v14415_v0, %v13131_v62  ;;  %v14447_v25 = vld.sshfl [vmem:[#allocation2 + $0x8] sm:$0x7f pattern:$0x73625140]  ;;  %v20108_v58 = vrot.slane %v13594_v2, 4 }
 0x243   :  { %v3864_v63 = vsel %vm20106_vm15, %v3839_v15, %v3863_v34  ;;  %v4156_v41 = vsel %vm4153_vm9, %v13783_v56, %v4155_v47  ;;  %v14441_v57 = vpop.permute.xlu1 %3987  ;;  %v4280_v32 = vpop.permute.xlu0 %4279  ;;  %v1026_v30 = vrot.slane %v14364_v23, %v13131_v62  ;;  %v1683_v47 = vld [vmem:[#allocation2 + $0x8] sm:$0x7f]  ;;  %vm20109_vm15 = vcmask 826368  }
 0x244   :  { %3882 = vst [vmem:[#allocation3 + $0x160] sm:$0x11] %v3864_v63  ;;  %4175 = vst [vmem:[#allocation3 + $0x158] sm:$0x44] %v4156_v41  ;;  %v19694_v45 = vrot.slane %v14441_v57, 4  ;;  %v4293_v15 = vrot.slane %v4280_v32, 4  ;;  %v1313_v59 = vrot.slane %v1305_v42, %v13131_v62 }
 0x245   :  { %904 = vrot.lane.b32.xlu1 %v879_v18, %s20009_s9  ;;  %1196 = vrot.lane.b32.xlu0 %v1166_v1, %s20107_s2  ;;  %s20110_s9 = smov 121   ;;  %v20111_v42 = vrot.slane %v13600_v49, 4 }
 0x246   :  { %v4010_v56 = vsel %vm476_vm1, %v3999_v19, %v19694_v45  ;;  %v4302_v34 = vsel %vm476_vm1, %v20108_v58, %v4293_v15  ;;  %v1158_v45 = vcombine.high %v14415_v0, %v14415_v0 }
 0x247   :  { %v4011_v63 = vsel %vm20104_vm4, %v3986_v11, %v4010_v56  ;;  %v4303_v41 = vsel %vm20109_vm15, %v13594_v2, %v4302_v34  ;;  %v14463_v18 = vpop.permute.xlu1 %4134  ;;  %v4427_v1 = vpop.permute.xlu0 %4426  ;;  %v12420_v52 = vld [vmem:[#allocation3 + $0xf0] ss:$56 sps:$4 sm:$0xff]   ;;  %v12422_v19 = vld [vmem:[#allocation3 + $0xf4] ss:$56 sps:$4 sm:$0xff]   ;;  %v1460_v2 = vrot.slane %v14436_v24, %v13131_v62  ;;  %v1599_v56 = vcombine.low %v14447_v25, %v14447_v25 }
 0x248   :  { %4029 = vst [vmem:[#allocation3 + $0x160] sm:$0x22] %v4011_v63  ;;  %4322 = vst [vmem:[#allocation3 + $0x158] sm:$0x88] %v4303_v41  ;;  %v19697_v23 = vrot.slane %v14463_v18, 4  ;;  %v4440_v58 = vrot.slane %v4427_v1, 4  ;;  %8453 = vmatprep.subr.bf16.mxu0 %v12422_v19  ;;  %v1731_v34 = vcombine.low %v1683_v47, %v1683_v47  ;;  %v1452_v47 = vcombine.high %v14436_v24, %v14436_v24 }
 0x249   :  { %1051 = vrot.lane.b32.xlu1 %v1026_v30, %s20010_s10  ;;  %1343 = vrot.lane.b32.xlu0 %v1313_v59, %s20110_s9  ;;  %vm20112_vm4 = vcmask 818176   ;;  %v12464_v24 = vld [vmem:[%s19440_s1 + $0x8] sm:$0xff]   ;;  %s20120_s10 = smov 117  }
 0x24a   :  { %v4157_v11 = vsel %vm476_vm1, %v4146_v27, %v19697_v23  ;;  %v4449_v0 = vsel %vm476_vm1, %v20111_v42, %v4440_v58  ;;  %8454 = vmatpush1.bf16.msra.mxu0 %v12420_v52  ;;  %v1173_v27 = vrot.slane %v1158_v45, %v13131_v62  ;;  %v1878_v23 = vcombine.low %v1830_v44, %v1830_v44 }
 0x24b   :  { %v4158_v30 = vsel %vm4153_vm9, %v4133_v37, %v4157_v11  ;;  %v4450_v59 = vsel %vm20112_vm4, %v13600_v49, %v4449_v0  ;;  %v14484_v63 = vpop.permute.xlu1 %4281  ;;  %v4574_v41 = vpop.permute.xlu0 %4573  ;;  %v1320_v37 = vrot.slane %v14424_v9, %v13131_v62  ;;  %v20113_v52 = vrot.slane %v13369_v36, 4  ;;  %11939 = vmatmul.mubr.msk.bf16.gmra.mrb[4].mxu0 %vm4153_vm9, %v12464_v24 }
 0x24c   :  { %4176 = vst [vmem:[#allocation3 + $0x160] sm:$0x44] %v4158_v30  ;;  %4469 = vst [vmem:[#allocation3 + $0x190] sm:$0x11] %v4450_v59  ;;  %v19706_v19 = vrot.slane %v14484_v63, 4  ;;  %v4587_v42 = vrot.slane %v4574_v41, 4  ;;  %v1607_v45 = vrot.slane %v1599_v56, %v13131_v62  ;;  %v1738_v30 = vrot.slane %v1731_v34, %v13131_v62  ;;  %8481 = vmatprep.mubr.bf16.mxu0 %v14070_v16 }
 0x24d   :  { %1198 = vrot.lane.b32.xlu1 %v1173_v27, %s20107_s2  ;;  %1490 = vrot.lane.b32.xlu0 %v1460_v2, %s20011_s0  ;;  %vm20114_vm4 = vcmask 809984   ;;  %v1467_v34 = vrot.slane %v1452_v47, %v13131_v62  ;;  %v14523_v27 = vld.sshfl [vmem:[#allocation2 + $0x8] sm:$0x7f pattern:$0x73625140]  ;;  %s20117_s2 = smov 118   ;;  %v1614_v16 = vrot.slane %v14447_v25, %v13131_v62 }
 0x24e   :  { %v4304_v49 = vsel %vm476_vm1, %v4293_v15, %v19706_v19  ;;  %v4596_v44 = vsel %vm476_vm1, %v20113_v52, %v4587_v42  ;;  %v14508_v15 = vrot.slane %v1878_v23, %v13131_v62 }
 0x24f   :  { %v4305_v11 = vsel %vm20109_vm15, %v4280_v32, %v4304_v49  ;;  %v4597_v2 = vsel %vm20114_vm4, %v13369_v36, %v4596_v44  ;;  %v14504_v0 = vpop.permute.xlu1 %4428  ;;  %v4721_v9 = vpop.permute.xlu0 %4720  ;;  %v20115_v32 = vrot.slane %v13801_v39, 4  ;;  %vm20116_vm15 = vcmask 818176  }
 0x250   :  { %4323 = vst [vmem:[#allocation3 + $0x160] sm:$0x88] %v4305_v11  ;;  %4616 = vst [vmem:[#allocation3 + $0x190] sm:$0x22] %v4597_v2  ;;  %v19701_v56 = vrot.slane %v14504_v0, 4  ;;  %v4734_v59 = vrot.slane %v4721_v9, 4 }
 0x251   :  { %1345 = vrot.lane.b32.xlu1 %v1320_v37, %s20110_s9  ;;  %1637 = vrot.lane.b32.xlu0 %v1607_v45, %s20012_s11  ;;  %v1893_v45 = vcombine.low %v14508_v15, %v14508_v15  ;;  %v14534_v11 = vld.sshfl [vmem:[#allocation2 + $0x8] sm:$0x7f pattern:$0x73625140]  ;;  %v20118_v2 = vrot.slane %v13622_v55, 4 }
 0x252   :  { %v4451_v36 = vsel %vm476_vm1, %v4440_v58, %v19701_v56  ;;  %v4743_v23 = vsel %vm476_vm1, %v20115_v32, %v4734_v59  ;;  %v1754_v58 = vrot.slane %v1738_v30, %v13131_v62 }
 0x253   :  { %v4452_v49 = vsel %vm20116_vm15, %v4427_v1, %v4451_v36  ;;  %v4744_v37 = vsel %vm4741_vm6, %v13801_v39, %v4743_v23  ;;  %v14529_v52 = vpop.permute.xlu1 %4575  ;;  %v4868_v44 = vpop.permute.xlu0 %4867  ;;  %vm20119_vm15 = vcmask 793600  }
 0x254   :  { %4470 = vst [vmem:[#allocation3 + $0x198] sm:$0x11] %v4452_v49  ;;  %4763 = vst [vmem:[#allocation3 + $0x190] sm:$0x44] %v4744_v37  ;;  %v19700_v47 = vrot.slane %v14529_v52, 4  ;;  %v4881_v1 = vrot.slane %v4868_v44, 4  ;;  %v1901_v49 = vrot.slane %v1893_v45, %v13131_v62  ;;  %v1746_v37 = vcombine.high %v1738_v30, %v1738_v30 }
 0x255   :  { %1492 = vrot.lane.b32.xlu1 %v1467_v34, %s20011_s0  ;;  %1784 = vrot.lane.b32.xlu0 %v1754_v58, %s20117_s2  ;;  %v2271_v58 = vld [vmem:[#allocation2 + $0x8] sm:$0x7f]  ;;  %v2187_v45 = vcombine.low %v14534_v11, %v14534_v11 }
 0x256   :  { %v4598_v39 = vsel %vm476_vm1, %v4587_v42, %v19700_v47  ;;  %v4890_v24 = vsel %vm476_vm1, %v20118_v2, %v4881_v1  ;;  %v2418_v47 = vld [vmem:[#allocation2 + $0x8] sm:$0x7f] }
 0x257   :  { %v4599_v36 = vsel %vm20114_vm4, %v4574_v41, %v4598_v39  ;;  %v4891_v32 = vsel %vm20119_vm15, %v13622_v55, %v4890_v24  ;;  %v14551_v23 = vpop.permute.xlu1 %4722  ;;  %v5015_v34 = vpop.permute.xlu0 %5014  ;;  %v2048_v55 = vrot.slane %v14523_v27, %v13131_v62  ;;  %v20121_v41 = vrot.slane %v13631_v29, 4 }
 0x258   :  { %4617 = vst [vmem:[#allocation3 + $0x198] sm:$0x22] %v4599_v36  ;;  %4910 = vst [vmem:[#allocation3 + $0x190] sm:$0x88] %v4891_v32  ;;  %v19705_v42 = vrot.slane %v14551_v23, 4  ;;  %v5028_v2 = vrot.slane %v5015_v34, 4  ;;  %v2319_v39 = vcombine.low %v2271_v58, %v2271_v58  ;;  %v2466_v56 = vcombine.low %v2418_v47, %v2418_v47 }
 0x259   :  { %1639 = vrot.lane.b32.xlu1 %v1614_v16, %s20012_s11  ;;  %1931 = vrot.lane.b32.xlu0 %v1901_v49, %s20120_s10  ;;  %vm20122_vm4 = vcmask 785408   ;;  %v1761_v49 = vrot.slane %v1746_v37, %v13131_v62  ;;  %v20123_v58 = vrot.slane %v13377_v38, 4  ;;  %v1908_v37 = vrot.slane %v14508_v15, %v13131_v62 }
 0x25a   :  { %v4745_v25 = vsel %vm476_vm1, %v4734_v59, %v19705_v42  ;;  %v5037_v30 = vsel %vm476_vm1, %v20121_v41, %v5028_v2 }
 0x25b   :  { %v4746_v24 = vsel %vm4741_vm6, %v4721_v9, %v4745_v25  ;;  %v5038_v16 = vsel %vm20122_vm4, %v13631_v29, %v5037_v30  ;;  %v14570_v36 = vpop.permute.xlu1 %4869  ;;  %v5162_v32 = vpop.permute.xlu0 %5161  ;;  %v2040_v9 = vcombine.high %v14523_v27, %v14523_v27  ;;  %v2195_v25 = vrot.slane %v2187_v45, %v13131_v62 }
 0x25c   :  { %4764 = vst [vmem:[#allocation3 + $0x198] sm:$0x44] %v4746_v24  ;;  %5057 = vst [vmem:[#allocation3 + $0x1c8] sm:$0x11] %v5038_v16  ;;  %v19702_v59 = vrot.slane %v14570_v36, 4  ;;  %v5175_v41 = vrot.slane %v5162_v32, 4 }
 0x25d   :  { %1786 = vrot.lane.b32.xlu1 %v1761_v49, %s20117_s2  ;;  %2078 = vrot.lane.b32.xlu0 %v2048_v55, %s20013_s17  ;;  %vm20124_vm4 = vcmask 777216   ;;  %s20128_s2 = smov 114  }
 0x25e   :  { %v4892_v29 = vsel %vm476_vm1, %v4881_v1, %v19702_v59  ;;  %v5184_v47 = vsel %vm476_vm1, %v20123_v58, %v5175_v41  ;;  %v2326_v1 = vrot.slane %v2319_v39, %v13131_v62  ;;  %v14594_v59 = vrot.slane %v2466_v56, %v13131_v62 }
 0x25f   :  { %v4893_v30 = vsel %vm20119_vm15, %v4868_v44, %v4892_v29  ;;  %v5185_v55 = vsel %vm20124_vm4, %v13377_v38, %v5184_v47  ;;  %v14590_v24 = vpop.permute.xlu1 %5016  ;;  %v5309_v27 = vpop.permute.xlu0 %5308  ;;  %v12425_v16 = vld [vmem:[#allocation3 + $0x15c] ss:$56 sps:$4 sm:$0xff]   ;;  %v12427_v49 = vld [vmem:[#allocation3 + $0x158] ss:$56 sps:$4 sm:$0xff]   ;;  %v20125_v44 = vrot.slane %v13819_v31, 4  ;;  %v2055_v56 = vrot.slane %v2040_v9, %v13131_v62 }
 0x260   :  { %4911 = vst [vmem:[#allocation3 + $0x198] sm:$0x88] %v4893_v30  ;;  %5204 = vst [vmem:[#allocation3 + $0x1c8] sm:$0x22] %v5185_v55  ;;  %v19704_v15 = vrot.slane %v14590_v24, 4  ;;  %v5322_v45 = vrot.slane %v5309_v27, 4  ;;  %8402 = vmatprep.subr.bf16.mxu1 %v12425_v16 }
 0x261   :  { %1933 = vrot.lane.b32.xlu1 %v1908_v37, %s20120_s10  ;;  %2225 = vrot.lane.b32.xlu0 %v2195_v25, %s20014_s13  ;;  %vm20126_vm15 = vcmask 785408   ;;  %vm20127_vm4 = vcmask 769024   ;;  %v2342_v25 = vrot.slane %v2326_v1, %v13131_v62  ;;  %v14614_v30 = vld.sshfl [vmem:[#allocation2 + $0x8] sm:$0x7f pattern:$0x73625140] }
 0x262   :  { %v5039_v38 = vsel %vm476_vm1, %v5028_v2, %v19704_v15  ;;  %v5331_v39 = vsel %vm476_vm1, %v20125_v44, %v5322_v45  ;;  %8403 = vmatpush1.bf16.msra.mxu1 %v12427_v49  ;;  %v2481_v2 = vcombine.low %v14594_v59, %v14594_v59  ;;  %v20129_v49 = vrot.slane %v13651_v22, 4 }
 0x263   :  { %v5040_v29 = vsel %vm20126_vm15, %v5015_v34, %v5039_v38  ;;  %v5332_v58 = vsel %vm20127_vm4, %v13819_v31, %v5331_v39  ;;  %v14609_v47 = vpop.permute.xlu1 %5163  ;;  %v5456_v37 = vpop.permute.xlu0 %5455  ;;  %v14617_v34 = vld.sshfl [vmem:[#allocation2 + $0x8] sm:$0x7f pattern:$0x73625140]  ;;  %v2202_v31 = vrot.slane %v14534_v11, %v13131_v62  ;;  %v2334_v44 = vcombine.high %v2326_v1, %v2326_v1 }
 0x264   :  { %5058 = vst [vmem:[#allocation3 + $0x1d0] sm:$0x11] %v5040_v29  ;;  %5351 = vst [vmem:[#allocation3 + $0x1c8] sm:$0x44] %v5332_v58  ;;  %v19717_v9 = vrot.slane %v14609_v47, 4  ;;  %v5469_v55 = vrot.slane %v5456_v37, 4  ;;  %v2489_v11 = vrot.slane %v2481_v2, %v13131_v62 }
 0x265   :  { %2080 = vrot.lane.b32.xlu1 %v2055_v56, %s20013_s17  ;;  %2372 = vrot.lane.b32.xlu0 %v2342_v25, %s20128_s2  ;;  %v2859_v39 = vld [vmem:[#allocation2 + $0x8] sm:$0x7f]  ;;  %vm20130_vm15 = vcmask 777216   ;;  %vm20131_vm4 = vcmask 760832   ;;  %s20132_s17 = smov 113   ;;  %v20133_v1 = vrot.slane %v13657_v33, 4 }
 0x266   :  { %v5186_v16 = vsel %vm476_vm1, %v5175_v41, %v19717_v9  ;;  %v5478_v38 = vsel %vm476_vm1, %v20129_v49, %v5469_v55  ;;  %v3006_v29 = vld [vmem:[#allocation2 + $0x8] sm:$0x7f] }
 0x267   :  { %v5187_v58 = vsel %vm20130_vm15, %v5162_v32, %v5186_v16  ;;  %v5479_v56 = vsel %vm20131_vm4, %v13651_v22, %v5478_v38  ;;  %v14632_v25 = vpop.permute.xlu1 %5310  ;;  %v5603_v15 = vpop.permute.xlu0 %5602  ;;  %v12430_v42 = vld [vmem:[#allocation3 + $0x160] ss:$56 sps:$4 sm:$0xff]   ;;  %v12432_v19 = vld [vmem:[#allocation3 + $0x164] ss:$56 sps:$4 sm:$0xff]   ;;  %v2907_v32 = vcombine.low %v2859_v39, %v2859_v39  ;;  %v2636_v16 = vrot.slane %v14614_v30, %v13131_v62 }
 0x268   :  { %5205 = vst [vmem:[#allocation3 + $0x1d0] sm:$0x22] %v5187_v58  ;;  %5498 = vst [vmem:[#allocation3 + $0x1c8] sm:$0x88] %v5479_v56  ;;  %v19712_v41 = vrot.slane %v14632_v25, 4  ;;  %v5616_v49 = vrot.slane %v5603_v15, 4  ;;  %8455 = vmatprep.subr.bf16.mxu0 %v12432_v19  ;;  %v3054_v38 = vcombine.low %v3006_v29, %v3006_v29  ;;  %v2496_v29 = vrot.slane %v14594_v59, %v13131_v62 }
 0x269   :  { %2227 = vrot.lane.b32.xlu1 %v2202_v31, %s20014_s13  ;;  %2519 = vrot.lane.b32.xlu0 %v2489_v11, %s20132_s17  ;;  %vm20134_vm15 = vcmask 769024   ;;  %vm20135_vm4 = vcmask 752640   ;;  %v2775_v11 = vcombine.low %v14617_v34, %v14617_v34 }
 0x26a   :  { %v5333_v22 = vsel %vm476_vm1, %v5322_v45, %v19712_v41  ;;  %v5625_v2 = vsel %vm476_vm1, %v20133_v1, %v5616_v49  ;;  %8456 = vmatpush1.bf16.msra.mxu0 %v12430_v42  ;;  %v2349_v45 = vrot.slane %v2334_v44, %v13131_v62  ;;  %v3594_v41 = vld [vmem:[#allocation2 + $0x8] sm:$0x7f] }
 0x26b   :  { %v5334_v58 = vsel %vm20134_vm15, %v5309_v27, %v5333_v22  ;;  %v5626_v31 = vsel %vm20135_vm4, %v13657_v33, %v5625_v2  ;;  %v14649_v56 = vpop.permute.xlu1 %5457  ;;  %v5750_v39 = vpop.permute.xlu0 %5749  ;;  %v2628_v33 = vcombine.high %v14614_v30, %v14614_v30  ;;  %v20136_v27 = vrot.slane %v13385_v40, 4 }
 0x26c   :  { %5352 = vst [vmem:[#allocation3 + $0x1d0] sm:$0x44] %v5334_v58  ;;  %5645 = vst [vmem:[#allocation3 + $0x200] sm:$0x11] %v5626_v31  ;;  %v19710_v19 = vrot.slane %v14649_v56, 4  ;;  %v5763_v1 = vrot.slane %v5750_v39, 4  ;;  %v2914_v22 = vrot.slane %v2907_v32, %v13131_v62  ;;  %v2783_v31 = vrot.slane %v2775_v11, %v13131_v62 }
 0x26d   :  { %2374 = vrot.lane.b32.xlu1 %v2349_v45, %s20128_s2  ;;  %2666 = vrot.lane.b32.xlu0 %v2636_v16, %s20015_s19  ;;  %vm20137_vm15 = vcmask 760832   ;;  %vm20138_vm4 = vcmask 744448   ;;  %s20142_s2 = smov 110  }
 0x26e   :  { %v5480_v42 = vsel %vm476_vm1, %v5469_v55, %v19710_v19  ;;  %v5772_v44 = vsel %vm476_vm1, %v20136_v27, %v5763_v1  ;;  %v14675_v55 = vrot.slane %v3054_v38, %v13131_v62  ;;  %v2643_v38 = vrot.slane %v2628_v33, %v13131_v62 }
 0x26f   :  { %v5481_v2 = vsel %vm20137_vm15, %v5456_v37, %v5480_v42  ;;  %v5773_v16 = vsel %vm20138_vm4, %v13385_v40, %v5772_v44  ;;  %v14671_v58 = vpop.permute.xlu1 %5604  ;;  %v5897_v30 = vpop.permute.xlu0 %5896  ;;  %v20139_v37 = vrot.slane %v13832_v6, 4  ;;  %vm20140_vm15 = vcmask 752640  }
 0x270   :  { %5499 = vst [vmem:[#allocation3 + $0x1d0] sm:$0x88] %v5481_v2  ;;  %5792 = vst [vmem:[#allocation3 + $0x200] sm:$0x22] %v5773_v16  ;;  %v19709_v45 = vrot.slane %v14671_v58, 4  ;;  %v5910_v59 = vrot.slane %v5897_v30, 4  ;;  %v3069_v2 = vcombine.low %v14675_v55, %v14675_v55 }
 0x271   :  { %2521 = vrot.lane.b32.xlu1 %v2496_v29, %s20132_s17  ;;  %2813 = vrot.lane.b32.xlu0 %v2783_v31, %s20016_s15  ;;  %vm20141_vm4 = vcmask 736256   ;;  %v2930_v29 = vrot.slane %v2914_v22, %v13131_v62  ;;  %v14698_v31 = vld.sshfl [vmem:[#allocation2 + $0x8] sm:$0x7f pattern:$0x73625140] }
 0x272   :  { %v5627_v40 = vsel %vm476_vm1, %v5616_v49, %v19709_v45  ;;  %v5919_v32 = vsel %vm476_vm1, %v20139_v37, %v5910_v59  ;;  %v14695_v49 = vld.sshfl [vmem:[#allocation2 + $0x8] sm:$0x7f pattern:$0x73625140] }
 0x273   :  { %v5628_v11 = vsel %vm20140_vm15, %v5603_v15, %v5627_v40  ;;  %v5920_v42 = vsel %vm20141_vm4, %v13832_v6, %v5919_v32  ;;  %v14690_v27 = vpop.permute.xlu1 %5751  ;;  %v6044_v44 = vpop.permute.xlu0 %6043  ;;  %v2790_v6 = vrot.slane %v14617_v34, %v13131_v62  ;;  %v20143_v40 = vld [vmem:[#allocation9_spill] sm:$0xff]  ;;  %vm20145_vm15 = vcmask 744448  }
 0x274   :  { %5646 = vst [vmem:[#allocation3 + $0x208] sm:$0x11] %v5628_v11  ;;  %5939 = vst [vmem:[#allocation3 + $0x200] sm:$0x44] %v5920_v42  ;;  %v19711_v16 = vrot.slane %v14690_v27, 4  ;;  %v6057_v33 = vrot.slane %v6044_v44, 4  ;;  %v2922_v11 = vcombine.high %v2914_v22, %v2914_v22  ;;  %v3077_v34 = vrot.slane %v3069_v2, %v13131_v62 }
 0x275   :  { %2668 = vrot.lane.b32.xlu1 %v2643_v38, %s20015_s19  ;;  %2960 = vrot.lane.b32.xlu0 %v2930_v29, %s20142_s2  ;;  %v20144_v37 = vrot.slane %v20143_v40, 4  ;;  %v3447_v42 = vld [vmem:[#allocation2 + $0x8] sm:$0x7f]  ;;  %vm20146_vm4 = vcmask 728064   ;;  %s20147_s19 = smov 109   ;;  %v3224_v2 = vrot.slane %v14695_v49, %v13131_v62 }
 0x276   :  { %v5774_v15 = vsel %vm476_vm1, %v5763_v1, %v19711_v16  ;;  %v3495_v22 = vcombine.low %v3447_v42, %v3447_v42 }
 0x277   :  { %v6066_v32 = vsel %vm476_vm1, %v20144_v37, %v6057_v33  ;;  %v5775_v45 = vsel %vm20145_vm15, %v5750_v39, %v5774_v15  ;;  %v14713_v19 = vpop.permute.xlu1 %5898  ;;  %v6191_v29 = vpop.permute.xlu0 %6190  ;;  %v20148_v15 = vld [vmem:[#allocation10_spill] sm:$0xff]  ;;  %vm20150_vm15 = vcmask 736256  }
 0x278   :  { %v6067_v38 = vsel %vm20146_vm4, %v20143_v40, %v6066_v32  ;;  %5793 = vst [vmem:[#allocation3 + $0x208] sm:$0x22] %v5775_v45  ;;  %v19715_v1 = vrot.slane %v14713_v19, 4  ;;  %v6204_v16 = vrot.slane %v6191_v29, 4  ;;  %v20149_v40 = vrot.slane %v20148_v15, 4 }
 0x279   :  { %6086 = vst [vmem:[#allocation3 + $0x200] sm:$0x88] %v6067_v38  ;;  %2815 = vrot.lane.b32.xlu1 %v2790_v6, %s20016_s15  ;;  %3107 = vrot.lane.b32.xlu0 %v3077_v34, %s20147_s19  ;;  %v2937_v45 = vrot.slane %v2922_v11, %v13131_v62  ;;  %vm20151_vm4 = vcmask 719872   ;;  %v3642_v34 = vcombine.low %v3594_v41, %v3594_v41  ;;  %s20153_s15 = smov 108  }
 0x27a   :  { %v5921_v39 = vsel %vm476_vm1, %v5910_v59, %v19715_v1  ;;  %v6213_v37 = vsel %vm476_vm1, %v20149_v40, %v6204_v16  ;;  %v3363_v59 = vcombine.low %v14698_v31, %v14698_v31 }
 0x27b   :  { %v5922_v32 = vsel %vm20150_vm15, %v5897_v30, %v5921_v39  ;;  %v6214_v6 = vsel %vm20151_vm4, %v20148_v15, %v6213_v37  ;;  %v14731_v38 = vpop.permute.xlu1 %6045  ;;  %v6338_v42 = vpop.permute.xlu0 %6337  ;;  %v3084_v30 = vrot.slane %v14675_v55, %v13131_v62  ;;  %v20154_v15 = vld [vmem:[#allocation11_spill] sm:$0xff]  ;;  %vm20156_vm15 = vcmask 728064  }
 0x27c   :  { %20152 = vst [vmem:[#allocation9_spill] sm:$0xff] %v14731_v38  ;;  %5940 = vst [vmem:[#allocation3 + $0x208] sm:$0x44] %v5922_v32  ;;  %v19716_v40 = vrot.slane %v14731_v38, 4  ;;  %v6351_v11 = vrot.slane %v6338_v42, 4  ;;  %v20155_v37 = vrot.slane %v20154_v15, 4  ;;  %v3216_v32 = vcombine.high %v14695_v49, %v14695_v49 }
 0x27d   :  { %6233 = vst [vmem:[#allocation3 + $0x238] sm:$0x11] %v6214_v6  ;;  %2962 = vrot.lane.b32.xlu1 %v2937_v45, %s20142_s2  ;;  %3254 = vrot.lane.b32.xlu0 %v3224_v2, %s20153_s15  ;;  %v14749_v6 = vrot.slane %v3495_v22, %v13131_v62  ;;  %vm20157_vm4 = vcmask 711680   ;;  %s20164_s2 = smov 106  }
 0x27e   :  { %v6068_v39 = vsel %vm476_vm1, %v6057_v33, %v19716_v40  ;;  %v6360_v41 = vsel %vm476_vm1, %v20155_v37, %v6351_v11  ;;  %v3371_v33 = vrot.slane %v3363_v59, %v13131_v62  ;;  %v14758_v37 = vrot.slane %v3642_v34, %v13131_v62 }
 0x27f   :  { %v6069_v45 = vsel %vm20156_vm15, %v6044_v44, %v6068_v39  ;;  %v6361_v2 = vsel %vm20157_vm4, %v20154_v15, %v6360_v41  ;;  %v14754_v55 = vpop.permute.xlu1 %6192  ;;  %v6485_v1 = vpop.permute.xlu0 %6484  ;;  %v20159_v39 = vld [vmem:[#allocation12_spill] sm:$0xff]  ;;  %v3231_v34 = vrot.slane %v3216_v32, %v13131_v62  ;;  %vm20161_vm15 = vcmask 719872  }
 0x280   :  { %20158 = vst [vmem:[#allocation10_spill] sm:$0xff] %v14754_v55  ;;  %v12435_v40 = vld [vmem:[#allocation3 + $0x1cc] ss:$56 sps:$4 sm:$0xff]   ;;  %v12437_v9 = vld [vmem:[#allocation3 + $0x1c8] ss:$56 sps:$4 sm:$0xff]   ;;  %v19718_v49 = vrot.slane %v14754_v55, 4 }
 0x281   :  { %6087 = vst [vmem:[#allocation3 + $0x208] sm:$0x88] %v6069_v45  ;;  %6380 = vst [vmem:[#allocation3 + $0x238] sm:$0x22] %v6361_v2  ;;  %v6498_v22 = vrot.slane %v6485_v1, 4  ;;  %3109 = vrot.lane.b32.xlu1 %v3084_v30, %s20147_s19  ;;  %3401 = vrot.lane.b32.xlu0 %v3371_v33, %s20019_s14  ;;  %v20160_v59 = vrot.slane %v20159_v39, 4  ;;  %v3518_v33 = vrot.slane %v14749_v6, %v13131_v62 }
 0x282   :  { %v6215_v44 = vsel %vm476_vm1, %v6204_v16, %v19718_v49  ;;  %8404 = vmatprep.subr.bf16.mxu1 %v12435_v40  ;;  %vm20162_vm4 = vcmask 703488   ;;  %v3657_v16 = vcombine.low %v14758_v37, %v14758_v37  ;;  %v14779_v49 = vld.sshfl [vmem:[#allocation2 + $0x8] sm:$0x7f pattern:$0x73625140] }
 0x283   :  { %v6507_v15 = vsel %vm476_vm1, %v20160_v59, %v6498_v22  ;;  %v6216_v41 = vsel %vm20161_vm15, %v6191_v29, %v6215_v44  ;;  %v14773_v2 = vpop.permute.xlu1 %6339  ;;  %v6632_v30 = vpop.permute.xlu0 %6631  ;;  %8405 = vmatpush1.bf16.msra.mxu1 %v12437_v9  ;;  %v14781_v40 = vld.sshfl [vmem:[#allocation2 + $0x8] sm:$0x7f pattern:$0x73625140]  ;;  %v3378_v9 = vrot.slane %v14698_v31, %v13131_v62  ;;  %vm20167_vm15 = vcmask 711680  }
 0x284   :  { %v6508_v45 = vsel %vm20162_vm4, %v20159_v39, %v6507_v15  ;;  %20163 = vst [vmem:[#allocation11_spill] sm:$0xff] %v14773_v2  ;;  %6234 = vst [vmem:[#allocation3 + $0x240] sm:$0x11] %v6216_v41  ;;  %v19725_v29 = vrot.slane %v14773_v2, 4  ;;  %v6645_v32 = vrot.slane %v6632_v30, 4  ;;  %v20165_v39 = vld [vmem:[#allocation13_spill] sm:$0xff]  ;;  %v3665_v55 = vrot.slane %v3657_v16, %v13131_v62 }
 0x285   :  { %6527 = vst [vmem:[#allocation3 + $0x238] sm:$0x44] %v6508_v45  ;;  %3256 = vrot.lane.b32.xlu1 %v3231_v34, %s20153_s15  ;;  %3548 = vrot.lane.b32.xlu0 %v3518_v33, %s20164_s2  ;;  %v20166_v59 = vrot.slane %v20165_v39, 4  ;;  %v4035_v41 = vld [vmem:[#allocation2 + $0x8] sm:$0x7f]  ;;  %vm20168_vm4 = vcmask 695296  }
 0x286   :  { %v6362_v44 = vsel %vm476_vm1, %v6351_v11, %v19725_v29  ;;  %v3510_v11 = vcombine.high %v14749_v6, %v14749_v6  ;;  %v4182_v2 = vld [vmem:[#allocation2 + $0x8] sm:$0x7f]  ;;  %s20169_s15 = smov 105   ;;  %v3951_v6 = vcombine.low %v14781_v40, %v14781_v40 }
 0x287   :  { %v6654_v15 = vsel %vm476_vm1, %v20166_v59, %v6645_v32  ;;  %v6363_v45 = vsel %vm20167_vm15, %v6338_v42, %v6362_v44  ;;  %v14797_v34 = vpop.permute.xlu1 %6486  ;;  %v6779_v33 = vpop.permute.xlu0 %6778  ;;  %v4083_v42 = vcombine.low %v4035_v41, %v4035_v41  ;;  %v20170_v44 = vld [vmem:[#allocation14_spill] sm:$0xff]  ;;  %vm20172_vm15 = vcmask 703488  }
 0x288   :  { %v6655_v12 = vsel %vm20168_vm4, %v20165_v39, %v6654_v15  ;;  %v12440_v31 = vld [vmem:[#allocation3 + $0x1d0] ss:$56 sps:$4 sm:$0xff]   ;;  %v12442_v38 = vld [vmem:[#allocation3 + $0x1d4] ss:$56 sps:$4 sm:$0xff]   ;;  %6381 = vst [vmem:[#allocation3 + $0x240] sm:$0x22] %v6363_v45 }
 0x289   :  { %6674 = vst [vmem:[#allocation3 + $0x238] sm:$0x88] %v6655_v12  ;;  %v19729_v59 = vrot.slane %v14797_v34, 4  ;;  %v6792_v29 = vrot.slane %v6779_v33, 4  ;;  %3403 = vrot.lane.b32.xlu1 %v3378_v9, %s20019_s14  ;;  %3695 = vrot.lane.b32.xlu0 %v3665_v55, %s20169_s15  ;;  %v20171_v39 = vrot.slane %v20170_v44, 4  ;;  %v3812_v12 = vrot.slane %v14779_v49, %v13131_v62 }
 0x28a   :  { %8457 = vmatprep.subr.bf16.mxu0 %v12442_v38  ;;  %vm20173_vm4 = vcmask 687104  }
 0x28b   :  { %v6509_v16 = vsel %vm476_vm1, %v6498_v22, %v19729_v59  ;;  %v6801_v15 = vsel %vm476_vm1, %v20171_v39, %v6792_v29  ;;  %v14818_v41 = vpop.permute.xlu1 %6633  ;;  %v6926_v45 = vpop.permute.xlu0 %6925  ;;  %8458 = vmatpush1.bf16.msra.mxu0 %v12440_v31  ;;  %v3525_v22 = vrot.slane %v3510_v11, %v13131_v62  ;;  %v4230_v59 = vcombine.low %v4182_v2, %v4182_v2  ;;  %v20175_v31 = vld [vmem:[#allocation15_spill] sm:$0xff] }
 0x28c   :  { %v6510_v9 = vsel %vm20172_vm15, %v6485_v1, %v6509_v16  ;;  %v6802_v55 = vsel %vm20173_vm4, %v20170_v44, %v6801_v15  ;;  %20174 = vst [vmem:[#allocation12_spill] sm:$0xff] %v14818_v41  ;;  %v19732_v38 = vrot.slane %v14818_v41, 4  ;;  %v6939_v39 = vrot.slane %v6926_v45, 4  ;;  %v4770_v41 = vld [vmem:[#allocation2 + $0x8] sm:$0x7f] }
 0x28d   :  { %6528 = vst [vmem:[#allocation3 + $0x240] sm:$0x44] %v6510_v9  ;;  %6821 = vst [vmem:[#allocation3 + $0x270] sm:$0x11] %v6802_v55  ;;  %3550 = vrot.lane.b32.xlu1 %v3525_v22, %s20164_s2  ;;  %3842 = vrot.lane.b32.xlu0 %v3812_v12, %s20023_s22  ;;  %v3804_v1 = vcombine.high %v14779_v49, %v14779_v49  ;;  %v20176_v44 = vrot.slane %v20175_v31, 4  ;;  %v3672_v11 = vrot.slane %v14758_v37, %v13131_v62  ;;  %vm20177_vm15 = vcmask 695296  }
 0x28e   :  { %v6656_v16 = vsel %vm476_vm1, %v6645_v32, %v19732_v38  ;;  %v4090_v15 = vrot.slane %v4083_v42, %v13131_v62  ;;  %vm20178_vm4 = vcmask 678912   ;;  %v3959_v22 = vrot.slane %v3951_v6, %v13131_v62  ;;  %v20180_v42 = vld [vmem:[#allocation16_spill] sm:$0xff]  ;;  %s20185_s2 = smov 102  }
 0x28f   :  { %v6948_v2 = vsel %vm476_vm1, %v20176_v44, %v6939_v39  ;;  %v6657_v9 = vsel %vm20177_vm15, %v6632_v30, %v6656_v16  ;;  %v14838_v55 = vpop.permute.xlu1 %6780  ;;  %v7073_v49 = vpop.permute.xlu0 %7072  ;;  %v14842_v32 = vrot.slane %v4230_v59, %v13131_v62  ;;  %v20181_v16 = vrot.slane %v20180_v42, 4 }
 0x290   :  { %v6949_v12 = vsel %vm20178_vm4, %v20175_v31, %v6948_v2  ;;  %20179 = vst [vmem:[#allocation13_spill] sm:$0xff] %v14838_v55  ;;  %6675 = vst [vmem:[#allocation3 + $0x240] sm:$0x88] %v6657_v9  ;;  %v19730_v44 = vrot.slane %v14838_v55, 4  ;;  %v7086_v37 = vrot.slane %v7073_v49, 4  ;;  %v3819_v59 = vrot.slane %v3804_v1, %v13131_v62 }
 0x291   :  { %6968 = vst [vmem:[#allocation3 + $0x270] sm:$0x22] %v6949_v12  ;;  %3697 = vrot.lane.b32.xlu1 %v3672_v11, %s20169_s15  ;;  %3989 = vrot.lane.b32.xlu0 %v3959_v22, %s20025_s16  ;;  %vm20182_vm15 = vcmask 687104   ;;  %vm20183_vm4 = vcmask 670720   ;;  %v4106_v12 = vrot.slane %v4090_v15, %v13131_v62  ;;  %v4245_v22 = vcombine.low %v14842_v32, %v14842_v32 }
 0x292   :  { %v6803_v30 = vsel %vm476_vm1, %v6792_v29, %v19730_v44  ;;  %v7095_v6 = vsel %vm476_vm1, %v20181_v16, %v7086_v37  ;;  %v14862_v29 = vld.sshfl [vmem:[#allocation2 + $0x8] sm:$0x7f pattern:$0x73625140] }
 0x293   :  { %v6804_v31 = vsel %vm20182_vm15, %v6779_v33, %v6803_v30  ;;  %v7096_v2 = vsel %vm20183_vm4, %v20180_v42, %v7095_v6  ;;  %v14857_v9 = vpop.permute.xlu1 %6927  ;;  %v7220_v11 = vpop.permute.xlu0 %7219  ;;  %v14865_v44 = vld.sshfl [vmem:[#allocation2 + $0x8] sm:$0x7f pattern:$0x73625140]  ;;  %v4098_v33 = vcombine.high %v4090_v15, %v4090_v15  ;;  %v20186_v42 = vld [vmem:[#allocation17_spill] sm:$0xff]  ;;  %vm20188_vm15 = vcmask 678912  }
 0x294   :  { %20184 = vst [vmem:[#allocation14_spill] sm:$0xff] %v14857_v9  ;;  %6822 = vst [vmem:[#allocation3 + $0x278] sm:$0x11] %v6804_v31  ;;  %v19740_v16 = vrot.slane %v14857_v9, 4  ;;  %v7233_v1 = vrot.slane %v7220_v11, 4  ;;  %v20187_v6 = vrot.slane %v20186_v42, 4  ;;  %v3966_v31 = vrot.slane %v14781_v40, %v13131_v62 }
 0x295   :  { %7115 = vst [vmem:[#allocation3 + $0x270] sm:$0x44] %v7096_v2  ;;  %3844 = vrot.lane.b32.xlu1 %v3819_v59, %s20023_s22  ;;  %4136 = vrot.lane.b32.xlu0 %v4106_v12, %s20185_s2  ;;  %vm20189_vm4 = vcmask 662528   ;;  %v4253_v15 = vrot.slane %v4245_v22, %v13131_v62  ;;  %v4623_v9 = vld [vmem:[#allocation2 + $0x8] sm:$0x7f]  ;;  %s20191_s22 = smov 101   ;;  %v4113_v40 = vrot.slane %v4098_v33, %v13131_v62 }
 0x296   :  { %v6950_v30 = vsel %vm476_vm1, %v6939_v39, %v19740_v16  ;;  %v7242_v38 = vsel %vm476_vm1, %v20187_v6, %v7233_v1  ;;  %v4400_v33 = vrot.slane %v14862_v29, %v13131_v62 }
 0x297   :  { %v6951_v2 = vsel %vm20188_vm15, %v6926_v45, %v6950_v30  ;;  %v7243_v55 = vsel %vm20189_vm4, %v20186_v42, %v7242_v38  ;;  %v14880_v59 = vpop.permute.xlu1 %7074  ;;  %v7367_v12 = vpop.permute.xlu0 %7366  ;;  %v20192_v38 = vld [vmem:[#allocation18_spill] sm:$0xff]  ;;  %v4671_v42 = vcombine.low %v4623_v9, %v4623_v9  ;;  %vm20194_vm15 = vcmask 670720  }
 0x298   :  { %20190 = vst [vmem:[#allocation15_spill] sm:$0xff] %v14880_v59  ;;  %6969 = vst [vmem:[#allocation3 + $0x278] sm:$0x22] %v6951_v2  ;;  %v19741_v39 = vrot.slane %v14880_v59, 4  ;;  %v7380_v6 = vrot.slane %v7367_v12, 4  ;;  %v20193_v30 = vrot.slane %v20192_v38, 4  ;;  %v4818_v2 = vcombine.low %v4770_v41, %v4770_v41 }
 0x299   :  { %7262 = vst [vmem:[#allocation3 + $0x270] sm:$0x88] %v7243_v55  ;;  %3991 = vrot.lane.b32.xlu1 %v3966_v31, %s20025_s16  ;;  %4283 = vrot.lane.b32.xlu0 %v4253_v15, %s20191_s22  ;;  %vm20195_vm4 = vcmask 654336   ;;  %v4260_v41 = vrot.slane %v14842_v32, %v13131_v62 }
 0x29a   :  { %v7097_v45 = vsel %vm476_vm1, %v7086_v37, %v19741_v39  ;;  %v7389_v22 = vsel %vm476_vm1, %v20193_v30, %v7380_v6  ;;  %v4539_v37 = vcombine.low %v14865_v44, %v14865_v44  ;;  %v14923_v59 = vrot.slane %v4818_v2, %v13131_v62 }
 0x29b   :  { %v7098_v55 = vsel %vm20194_vm15, %v7073_v49, %v7097_v45  ;;  %v7390_v16 = vsel %vm20195_vm4, %v20192_v38, %v7389_v22  ;;  %v14896_v31 = vpop.permute.xlu1 %7221  ;;  %v7514_v15 = vpop.permute.xlu0 %7513  ;;  %v20197_v45 = vld [vmem:[#allocation19_spill] sm:$0xff]  ;;  %vm20199_vm15 = vcmask 662528  }
 0x29c   :  { %20196 = vst [vmem:[#allocation16_spill] sm:$0xff] %v14896_v31  ;;  %7116 = vst [vmem:[#allocation3 + $0x278] sm:$0x44] %v7098_v55  ;;  %v19744_v30 = vrot.slane %v14896_v31, 4  ;;  %v7527_v9 = vrot.slane %v7514_v15, 4  ;;  %v20198_v38 = vrot.slane %v20197_v45, 4  ;;  %v4678_v55 = vrot.slane %v4671_v42, %v13131_v62 }
 0x29d   :  { %7409 = vst [vmem:[#allocation3 + $0x2a8] sm:$0x11] %v7390_v16  ;;  %4138 = vrot.lane.b32.xlu1 %v4113_v40, %s20185_s2  ;;  %4430 = vrot.lane.b32.xlu0 %v4400_v33, %s20029_s25  ;;  %v4392_v16 = vcombine.high %v14862_v29, %v14862_v29  ;;  %v4547_v31 = vrot.slane %v4539_v37, %v13131_v62  ;;  %s20204_s2 = smov 98  }
 0x29e   :  { %v7244_v49 = vsel %vm476_vm1, %v7233_v1, %v19744_v30  ;;  %v7536_v22 = vsel %vm476_vm1, %v20198_v38, %v7527_v9  ;;  %v14935_v38 = vld.sshfl [vmem:[#allocation2 + $0x8] sm:$0x7f pattern:$0x73625140] }
 0x29f   :  { %v7245_v40 = vsel %vm20199_vm15, %v7220_v11, %v7244_v49  ;;  %v7537_v33 = vsel %vm7534_vm13, %v20197_v45, %v7536_v22  ;;  %v14919_v39 = vpop.permute.xlu1 %7368  ;;  %v7661_v32 = vpop.permute.xlu0 %7660  ;;  %v20201_v49 = vld [vmem:[#allocation20_spill] sm:$0xff]  ;;  %v4407_v2 = vrot.slane %v4392_v16, %v13131_v62  ;;  %vm20206_vm15 = vcmask 1039360  }
 0x2a0   :  { %20200 = vst [vmem:[#allocation17_spill] sm:$0xff] %v14919_v39  ;;  %v12445_v1 = vld [vmem:[#allocation3 + $0x23c] ss:$56 sps:$4 sm:$0xff]   ;;  %v12447_v30 = vld [vmem:[#allocation3 + $0x238] ss:$56 sps:$4 sm:$0xff]   ;;  %v19748_v29 = vrot.slane %v14919_v39, 4 }
 0x2a1   :  { %7263 = vst [vmem:[#allocation3 + $0x278] sm:$0x88] %v7245_v40  ;;  %7556 = vst [vmem:[#allocation3 + $0x2a8] sm:$0x22] %v7537_v33  ;;  %v7674_v42 = vrot.slane %v7661_v32, 4  ;;  %4285 = vrot.lane.b32.xlu1 %v4260_v41, %s20191_s22  ;;  %4577 = vrot.lane.b32.xlu0 %v4547_v31, %s20031_s18  ;;  %v20202_v37 = vrot.slane %v20201_v49, 4  ;;  %v4833_v33 = vcombine.low %v14923_v59, %v14923_v59 }
 0x2a2   :  { %v7391_v11 = vsel %vm476_vm1, %v7380_v6, %v19748_v29  ;;  %8406 = vmatprep.subr.bf16.mxu1 %v12445_v1  ;;  %v4694_v6 = vrot.slane %v4678_v55, %v13131_v62  ;;  %s20214_s22 = smov 94  }
 0x2a3   :  { %v7683_v45 = vsel %vm476_vm1, %v20202_v37, %v7674_v42  ;;  %v7392_v22 = vsel %vm20195_vm4, %v7367_v12, %v7391_v11  ;;  %v14940_v40 = vpop.permute.xlu1 %7515  ;;  %v461_v31 = vpop.permute.xlu0 %460  ;;  %8407 = vmatpush1.bf16.msra.mxu1 %v12447_v30  ;;  %v14946_v37 = vld.sshfl [vmem:[#allocation2 + $0x8] sm:$0x7f pattern:$0x73625140]  ;;  %v20205_v30 = vrot.slane %v13987_v43, 4  ;;  %vm20212_vm4 = vmmov %vm20206_vm15 }
 0x2a4   :  { %v7684_v41 = vsel %vm7681_vm11, %v20201_v49, %v7683_v45  ;;  %20203 = vst [vmem:[#allocation18_spill] sm:$0xff] %v14940_v40  ;;  %7410 = vst [vmem:[#allocation3 + $0x2b0] sm:$0x11] %v7392_v22  ;;  %v19751_v16 = vrot.slane %v14940_v40, 4  ;;  %v472_v1 = vrot.slane %v461_v31, 4  ;;  %v4554_v49 = vrot.slane %v14865_v44, %v13131_v62 }
 0x2a5   :  { %7703 = vst [vmem:[#allocation3 + $0x2a8] sm:$0x44] %v7684_v41  ;;  %4432 = vrot.lane.b32.xlu1 %v4407_v2, %s20029_s25  ;;  %4724 = vrot.lane.b32.xlu0 %v4694_v6, %s20204_s2  ;;  %v4686_v45 = vcombine.high %v4678_v55, %v4678_v55  ;;  %v5211_v22 = vld [vmem:[#allocation2 + $0x8] sm:$0x7f]  ;;  %v4841_v40 = vrot.slane %v4833_v33, %v13131_v62  ;;  %s20208_s25 = smov 97   ;;  %v20209_v55 = vrot.slane %v14005_v61, 4 }
 0x2a6   :  { %v7538_v12 = vsel %vm476_vm1, %v7527_v9, %v19751_v16  ;;  %v484_v11 = vsel %vm476_vm1, %v20205_v30, %v472_v1  ;;  %v5358_v44 = vld [vmem:[#allocation2 + $0x8] sm:$0x7f] }
 0x2a7   :  { %v7539_v41 = vsel %vm7534_vm13, %v7514_v15, %v7538_v12  ;;  %v485_v2 = vsel %vm20206_vm15, %v13987_v43, %v484_v11  ;;  %v14961_v29 = vpop.permute.xlu1 %7662  ;;  %v609_v6 = vpop.permute.xlu0 %608  ;;  %v4988_v43 = vrot.slane %v14935_v38, %v13131_v62  ;;  %v4701_v12 = vrot.slane %v4686_v45, %v13131_v62 }
 0x2a8   :  { %20207 = vst [vmem:[#allocation19_spill] sm:$0xff] %v14961_v29  ;;  %v12450_v9 = vld [vmem:[#allocation3 + $0x240] ss:$56 sps:$4 sm:$0xff]   ;;  %v12452_v16 = vld [vmem:[#allocation3 + $0x244] ss:$56 sps:$4 sm:$0xff]   ;;  %v19757_v30 = vrot.slane %v14961_v29, 4  ;;  %v5259_v11 = vcombine.low %v5211_v22, %v5211_v22 }
 0x2a9   :  { %7557 = vst [vmem:[#allocation3 + $0x2b0] sm:$0x22] %v7539_v41  ;;  %502 = vst [vmem:[#allocation3 + $0x18] sm:$0x22] %v485_v2  ;;  %v620_v39 = vrot.slane %v609_v6, 4  ;;  %4579 = vrot.lane.b32.xlu1 %v4554_v49, %s20031_s18  ;;  %4871 = vrot.lane.b32.xlu0 %v4841_v40, %s20208_s25  ;;  %s20210_s18 = smov 96  }
 0x2aa   :  { %v7685_v15 = vsel %vm476_vm1, %v7674_v42, %v19757_v30  ;;  %8459 = vmatprep.subr.bf16.mxu0 %v12452_v16  ;;  %v5127_v42 = vcombine.low %v14946_v37, %v14946_v37  ;;  %v5406_v30 = vcombine.low %v5358_v44, %v5358_v44  ;;  %vm20221_vm15 = vcmask 973824  }
 0x2ab   :  { %v631_v33 = vsel %vm476_vm1, %v20209_v55, %v620_v39  ;;  %v7686_v41 = vsel %vm7681_vm11, %v7661_v32, %v7685_v15  ;;  %v14979_v49 = vpop.permute.xlu1 %462  ;;  %v14981_v2 = vpop.permute.xlu0 %755  ;;  %8460 = vmatpush1.bf16.msra.mxu0 %v12450_v9  ;;  %v4980_v9 = vcombine.high %v14935_v38, %v14935_v38  ;;  %v20211_v15 = vrot.slane %v14025_v60, 4 }
 0x2ac   :  { %v632_v40 = vsel %vm625_vm0, %v14005_v61, %v631_v33  ;;  %v7798_v29 = vld [vmem:[#allocation3 + $0x2a8] sm:$0x77]  ;;  %7704 = vst [vmem:[#allocation3 + $0x2b0] sm:$0x44] %v7686_v41  ;;  %v19762_v16 = vrot.slane %v14979_v49, 4  ;;  %v767_v45 = vrot.slane %v14981_v2, 4  ;;  %v4848_v61 = vrot.slane %v14923_v59, %v13131_v62 }
 0x2ad   :  { %649 = vst [vmem:[#allocation3 + $0x18] sm:$0x44] %v632_v40  ;;  %v11926_v32 = vcombine.high %v7798_v29, %v7798_v29  ;;  %v11925_v22 = vcombine.low %v7798_v29, %v7798_v29  ;;  %4726 = vrot.lane.b32.xlu1 %v4701_v12, %s20204_s2  ;;  %5018 = vrot.lane.b32.xlu0 %v4988_v43, %s20210_s18  ;;  %s20257_s2 = smov 79  }
 0x2ae   :  { %v486_v44 = vsel %vm476_vm1, %v472_v1, %v19762_v16  ;;  %v778_v55 = vsel %vm476_vm1, %v20211_v15, %v767_v45  ;;  %v15002_v43 = vrot.slane %v5259_v11, %v13131_v62  ;;  %v5135_v1 = vrot.slane %v5127_v42, %v13131_v62 }
 0x2af   :  { %11940 = vmatprep.subr.msk.bf16.mxu1 %vm8300_vm3, %v11926_v32  ;;  %v8308_v29 = vsel %vm8300_vm3, %v11925_v22, 0  ;;  %v487_v59 = vsel %vm20212_vm4, %v461_v31, %v486_v44  ;;  %v779_v38 = vsel %vm772_vm12, %v14025_v60, %v778_v55  ;;  %v15007_v33 = vpop.permute.xlu1 %610  ;;  %v15009_v12 = vpop.permute.xlu0 %902  ;;  %v15013_v41 = vrot.slane %v5406_v30, %v13131_v62  ;;  %v15026_v32 = vld.sshfl [vmem:[#allocation2 + $0x8] sm:$0x7f pattern:$0x73625140]  ;;  %vm20224_vm4 = vmmov %vm20221_vm15 }
 0x2b0   :  { %8409 = vmatpush1.bf16.msra.mxu1 %v8308_v29  ;;  %503 = vst [vmem:[#allocation3 + $0x20] sm:$0x22] %v487_v59  ;;  %796 = vst [vmem:[#allocation3 + $0x18] sm:$0x88] %v779_v38  ;;  %v19761_v11 = vrot.slane %v15007_v33, 4  ;;  %v914_v40 = vrot.slane %v15009_v12, 4  ;;  %v4995_v30 = vrot.slane %v4980_v9, %v13131_v62  ;;  %v5282_v9 = vrot.slane %v15002_v43, %v13131_v62 }
 0x2b1   :  { %4873 = vrot.lane.b32.xlu1 %v4848_v61, %s20208_s25  ;;  %5165 = vrot.lane.b32.xlu0 %v5135_v1, %s20037_s20  ;;  %v20213_v31 = vrot.slane %v14048_v50, 4  ;;  %v15028_v22 = vld.sshfl [vmem:[#allocation2 + $0x8] sm:$0x7f pattern:$0x73625140]  ;;  %v12878_v61 = vld [vmem:[%s19440_s1] sm:$0xff]   ;;  %v5421_v59 = vcombine.low %v15013_v41, %v15013_v41 }
 0x2b2   :  { %v633_v60 = vsel %vm476_vm1, %v620_v39, %v19761_v11  ;;  %v15043_v38 = vld [vmem:[#allocation4 + $0x20] sm:$0xff] }
 0x2b3   :  { %v925_v42 = vsel %vm476_vm1, %v20213_v31, %v914_v40  ;;  %11941 = vmatmul.mubr.msk.bf16.vlgmr.msra.gmra.mrb[0].mxu1 %vm4153_vm9, %v12878_v61  ;;  %v634_v44 = vsel %vm625_vm0, %v609_v6, %v633_v60  ;;  %v15037_v15 = vpop.permute.xlu1 %757  ;;  %v1050_v55 = vpop.permute.xlu0 %1049  ;;  %v7799_v29 = vld [vmem:[#allocation3 + $0x2b0] sm:$0x77] }
 0x2b4   :  { %v926_v39 = vsel %vm19993_vm5, %v14048_v50, %v925_v42  ;;  %8438 = vmatprep.mubr.bf16.mxu1 %v15043_v38  ;;  %650 = vst [vmem:[#allocation3 + $0x20] sm:$0x44] %v634_v44  ;;  %v19763_v6 = vrot.slane %v15037_v15, 4  ;;  %v1061_v1 = vrot.slane %v1050_v55, 4  ;;  %v11928_v50 = vcombine.high %v7799_v29, %v7799_v29 }
 0x2b5   :  { %943 = vst [vmem:[#allocation3 + $0x50] sm:$0x11] %v926_v39  ;;  %v11927_v60 = vcombine.low %v7799_v29, %v7799_v29  ;;  %5020 = vrot.lane.b32.xlu1 %v4995_v30, %s20210_s18  ;;  %5312 = vrot.lane.b32.xlu0 %v5282_v9, %s20214_s22  ;;  %v20215_v42 = vrot.slane %v14065_v14, 4  ;;  %v5274_v39 = vcombine.high %v15002_v43, %v15002_v43  ;;  %v5799_v29 = vld [vmem:[#allocation2 + $0x8] sm:$0x7f]  ;;  %s20248_s18 = smov 81  }
 0x2b6   :  { %v780_v31 = vsel %vm476_vm1, %v767_v45, %v19763_v6  ;;  %11943 = vmatprep.subr.msk.bf16.mxu0 %vm8300_vm3, %v11928_v50  ;;  %v5429_v50 = vrot.slane %v5421_v59, %v13131_v62  ;;  %v5946_v6 = vld [vmem:[#allocation2 + $0x8] sm:$0x7f]  ;;  %v20216_v59 = vrot.slane %v14087_v54, 4 }
 0x2b7   :  { %v1072_v11 = vsel %vm476_vm1, %v20215_v42, %v1061_v1  ;;  %v8314_v44 = vsel %vm8300_vm3, %v11927_v60, 0  ;;  %v781_v30 = vsel %vm772_vm12, %v14981_v2, %v780_v31  ;;  %v15063_v16 = vpop.permute.xlu1 %904  ;;  %v1197_v45 = vpop.permute.xlu0 %1196  ;;  %v5142_v42 = vrot.slane %v14946_v37, %v13131_v62 }
 0x2b8   :  { %v1073_v9 = vsel %vm19992_vm2, %v14065_v14, %v1072_v11  ;;  %8462 = vmatpush1.bf16.msra.mxu0 %v8314_v44  ;;  %797 = vst [vmem:[#allocation3 + $0x20] sm:$0x88] %v781_v30  ;;  %v19766_v43 = vrot.slane %v15063_v16, 4  ;;  %v1208_v60 = vrot.slane %v1197_v45, 4  ;;  %v5576_v14 = vrot.slane %v15026_v32, %v13131_v62  ;;  %v12880_v30 = vld [vmem:[%s19440_s1 + $0x8] sm:$0xff]   ;;  %s20262_s1 = smov 78  }
 0x2b9   :  { %1090 = vst [vmem:[#allocation3 + $0x50] sm:$0x22] %v1073_v9  ;;  %5167 = vrot.lane.b32.xlu1 %v5142_v42, %s20037_s20  ;;  %5459 = vrot.lane.b32.xlu0 %v5429_v50, %s20040_s27  ;;  %v5715_v2 = vcombine.low %v15028_v22, %v15028_v22  ;;  %v5847_v11 = vcombine.low %v5799_v29, %v5799_v29 }
 0x2ba   :  { %v927_v37 = vsel %vm476_vm1, %v914_v40, %v19766_v43  ;;  %v1219_v31 = vsel %vm476_vm1, %v20216_v59, %v1208_v60  ;;  %v5289_v44 = vrot.slane %v5274_v39, %v13131_v62  ;;  %v5994_v50 = vcombine.low %v5946_v6, %v5946_v6 }
 0x2bb   :  { %11944 = vmatmul.mubr.msk.bf16.vlgmr.msra.gmra.mrb[8].mxu0 %vm4153_vm9, %v12878_v61  ;;  %11942 = vmatmul.mubr.msk.bf16.gmra.mrb[4].mxu1 %vm4153_vm9, %v12880_v30  ;;  %v928_v29 = vsel %vm19993_vm5, %v15009_v12, %v927_v37  ;;  %v1220_v40 = vsel %vm1213_vm10, %v14087_v54, %v1219_v31  ;;  %v15091_v9 = vpop.permute.xlu1 %1051  ;;  %v1344_v42 = vpop.permute.xlu0 %1343  ;;  %v5436_v54 = vrot.slane %v15013_v41, %v13131_v62  ;;  %v20217_v6 = vrot.slane %v14105_v3, 4 }
 0x2bc   :  { %8491 = vmatprep.mubr.bf16.mxu0 %v15043_v38  ;;  %8534 = vmatprep.mubr.bf16.mxu1 %v15043_v38  ;;  %944 = vst [vmem:[#allocation3 + $0x58] sm:$0x11] %v928_v29  ;;  %1237 = vst [vmem:[#allocation3 + $0x50] sm:$0x44] %v1220_v40  ;;  %v19768_v61 = vrot.slane %v15091_v9, 4  ;;  %v1355_v39 = vrot.slane %v1344_v42, 4  ;;  %v5568_v59 = vcombine.high %v15026_v32, %v15026_v32 }
 0x2bd   :  { %5314 = vrot.lane.b32.xlu1 %v5289_v44, %s20214_s22  ;;  %5606 = vrot.lane.b32.xlu0 %v5576_v14, %s20042_s24  ;;  %v5854_v31 = vrot.slane %v5847_v11, %v13131_v62  ;;  %v5723_v40 = vrot.slane %v5715_v2, %v13131_v62 }
 0x2be   :  { %v1074_v12 = vsel %vm476_vm1, %v1061_v1, %v19768_v61  ;;  %v1366_v37 = vsel %vm476_vm1, %v20217_v6, %v1355_v39  ;;  %v15116_v1 = vrot.slane %v5994_v50, %v13131_v62  ;;  %v5583_v50 = vrot.slane %v5568_v59, %v13131_v62  ;;  %v15141_v59 = vld.sshfl [vmem:[#allocation2 + $0x8] sm:$0x7f pattern:$0x73625140] }
 0x2bf   :  { %v1075_v44 = vsel %vm19992_vm2, %v1050_v55, %v1074_v12  ;;  %v1367_v14 = vsel %vm1360_vm14, %v14105_v3, %v1366_v37  ;;  %v15112_v29 = vpop.permute.xlu1 %1198  ;;  %v1491_v41 = vpop.permute.xlu0 %1490  ;;  %v20218_v55 = vld [vmem:[#allocation21_spill] sm:$0xff]  ;;  %v6534_v61 = vld [vmem:[#allocation2 + $0x8] sm:$0x7f] }
 0x2c0   :  { %1091 = vst [vmem:[#allocation3 + $0x58] sm:$0x22] %v1075_v44  ;;  %1384 = vst [vmem:[#allocation3 + $0x50] sm:$0x88] %v1367_v14  ;;  %v19765_v6 = vrot.slane %v15112_v29, 4  ;;  %v1502_v32 = vrot.slane %v1491_v41, 4  ;;  %v5870_v14 = vrot.slane %v5854_v31, %v13131_v62 }
 0x2c1   :  { %5461 = vrot.lane.b32.xlu1 %v5436_v54, %s20040_s27  ;;  %5753 = vrot.lane.b32.xlu0 %v5723_v40, %s20044_s28  ;;  %v20219_v11 = vrot.slane %v20218_v55, 4  ;;  %v15137_v40 = vld.sshfl [vmem:[#allocation2 + $0x8] sm:$0x7f pattern:$0x73625140] }
 0x2c2   :  { %v1221_v3 = vsel %vm476_vm1, %v1208_v60, %v19765_v6  ;;  %v6009_v60 = vcombine.low %v15116_v1, %v15116_v1 }
 0x2c3   :  { %v1513_v2 = vsel %vm476_vm1, %v20219_v11, %v1502_v32  ;;  %11945 = vmatmul.mubr.msk.bf16.gmra.mrb[12].mxu0 %vm4153_vm9, %v12880_v30  ;;  %v1222_v12 = vsel %vm1213_vm10, %v1197_v45, %v1221_v3  ;;  %v15132_v54 = vpop.permute.xlu1 %1345  ;;  %v1638_v44 = vpop.permute.xlu0 %1637  ;;  %v5862_v3 = vcombine.high %v5854_v31, %v5854_v31  ;;  %v20220_v11 = vrot.slane %v14140_v4, 4 }
 0x2c4   :  { %v1514_v37 = vsel %vm1507_vm7, %v20218_v55, %v1513_v2  ;;  %8587 = vmatprep.mubr.bf16.mxu0 %v15043_v38  ;;  %1238 = vst [vmem:[#allocation3 + $0x58] sm:$0x44] %v1222_v12  ;;  %v19767_v30 = vrot.slane %v15132_v54, 4  ;;  %v1649_v45 = vrot.slane %v1638_v44, 4  ;;  %v5730_v2 = vrot.slane %v15028_v22, %v13131_v62  ;;  %v6387_v12 = vld [vmem:[#allocation2 + $0x8] sm:$0x7f] }
 0x2c5   :  { %1531 = vst [vmem:[#allocation3 + $0x88] sm:$0x11] %v1514_v37  ;;  %5608 = vrot.lane.b32.xlu1 %v5583_v50, %s20042_s24  ;;  %5900 = vrot.lane.b32.xlu0 %v5870_v14, %s20046_s29  ;;  %v6017_v14 = vrot.slane %v6009_v60, %v13131_v62  ;;  %v5877_v22 = vrot.slane %v5862_v3, %v13131_v62 }
 0x2c6   :  { %v1368_v55 = vsel %vm476_vm1, %v1355_v39, %v19767_v30  ;;  %v1660_v38 = vsel %vm476_vm1, %v20220_v11, %v1649_v45 }
 0x2c7   :  { %v1369_v37 = vsel %vm1360_vm14, %v1344_v42, %v1368_v55  ;;  %v1661_v50 = vsel %vm20221_vm15, %v14140_v4, %v1660_v38  ;;  %v15156_v6 = vpop.permute.xlu1 %1492  ;;  %v1785_v31 = vpop.permute.xlu0 %1784  ;;  %v12461_v43 = vld [vmem:[#allocation3 + $0x18] ss:$56 sps:$4 sm:$0xff]   ;;  %v12463_v39 = vld [vmem:[#allocation3 + $0x1c] ss:$56 sps:$4 sm:$0xff]   ;;  %v20222_v42 = vrot.slane %v14156_v26, 4  ;;  %v6164_v55 = vrot.slane %v15137_v40, %v13131_v62 }
 0x2c8   :  { %1385 = vst [vmem:[#allocation3 + $0x58] sm:$0x88] %v1369_v37  ;;  %1678 = vst [vmem:[#allocation3 + $0x88] sm:$0x22] %v1661_v50  ;;  %v19769_v11 = vrot.slane %v15156_v6, 4  ;;  %v1796_v30 = vrot.slane %v1785_v31, 4  ;;  %8502 = vmatprep.subr.bf16.mxu1 %v12463_v39  ;;  %v6435_v38 = vcombine.low %v6387_v12, %v6387_v12  ;;  %v6156_v12 = vcombine.high %v15137_v40, %v15137_v40 }
 0x2c9   :  { %5755 = vrot.lane.b32.xlu1 %v5730_v2, %s20044_s28  ;;  %6047 = vrot.lane.b32.xlu0 %v6017_v14, %s20049_s23  ;;  %v6582_v14 = vcombine.low %v6534_v61, %v6534_v61  ;;  %vm20225_vm15 = vcmask 957440  }
 0x2ca   :  { %v1515_v4 = vsel %vm476_vm1, %v1502_v32, %v19769_v11  ;;  %v1807_v60 = vsel %vm476_vm1, %v20222_v42, %v1796_v30  ;;  %8503 = vmatpush1.bf16.msra.mxu1 %v12461_v43  ;;  %v6303_v32 = vcombine.low %v15141_v59, %v15141_v59 }
 0x2cb   :  { %v1516_v37 = vsel %vm1507_vm7, %v1491_v41, %v1515_v4  ;;  %v1808_v2 = vsel %vm19991_vm8, %v14156_v26, %v1807_v60  ;;  %v15174_v50 = vpop.permute.xlu1 %1639  ;;  %v1932_v3 = vpop.permute.xlu0 %1931  ;;  %v6024_v26 = vrot.slane %v15116_v1, %v13131_v62  ;;  %v20223_v41 = vrot.slane %v14172_v46, 4 }
 0x2cc   :  { %1532 = vst [vmem:[#allocation3 + $0x90] sm:$0x11] %v1516_v37  ;;  %1825 = vst [vmem:[#allocation3 + $0x88] sm:$0x44] %v1808_v2  ;;  %v19772_v39 = vrot.slane %v15174_v50, 4  ;;  %v1943_v42 = vrot.slane %v1932_v3, 4  ;;  %v6442_v4 = vrot.slane %v6435_v38, %v13131_v62  ;;  %v6311_v37 = vrot.slane %v6303_v32, %v13131_v62 }
 0x2cd   :  { %5902 = vrot.lane.b32.xlu1 %v5877_v22, %s20046_s29  ;;  %6194 = vrot.lane.b32.xlu0 %v6164_v55, %s20051_s21  ;;  %v15199_v11 = vrot.slane %v6582_v14, %v13131_v62  ;;  %v6171_v14 = vrot.slane %v6156_v12, %v13131_v62 }
 0x2ce   :  { %v1662_v43 = vsel %vm476_vm1, %v1649_v45, %v19772_v39  ;;  %v1954_v61 = vsel %vm476_vm1, %v20223_v41, %v1943_v42 }
 0x2cf   :  { %v1663_v22 = vsel %vm20224_vm4, %v1638_v44, %v1662_v43  ;;  %v1955_v60 = vsel %vm20225_vm15, %v14172_v46, %v1954_v61  ;;  %v15195_v55 = vpop.permute.xlu1 %1786  ;;  %v2079_v1 = vpop.permute.xlu0 %2078  ;;  %v12465_v45 = vld [vmem:[#allocation3 + $0x20] ss:$56 sps:$4 sm:$0xff]   ;;  %v12467_v2 = vld [vmem:[#allocation3 + $0x24] ss:$56 sps:$4 sm:$0xff]   ;;  %v20227_v44 = vrot.slane %v14188_v48, 4  ;;  %vm20228_vm4 = vcmask 949248  }
 0x2d0   :  { %20226 = vst [vmem:[#allocation20_spill] sm:$0xff] %v15195_v55  ;;  %1679 = vst [vmem:[#allocation3 + $0x90] sm:$0x22] %v1663_v22  ;;  %v19770_v40 = vrot.slane %v15195_v55, 4  ;;  %v2090_v38 = vrot.slane %v2079_v1, 4  ;;  %8555 = vmatprep.subr.bf16.mxu0 %v12467_v2 }
 0x2d1   :  { %1972 = vst [vmem:[#allocation3 + $0x88] sm:$0x88] %v1955_v60  ;;  %6049 = vrot.lane.b32.xlu1 %v6024_v26, %s20049_s23  ;;  %6341 = vrot.lane.b32.xlu0 %v6311_v37, %s20053_s12  ;;  %v15211_v43 = vld.sshfl [vmem:[#allocation2 + $0x8] sm:$0x7f pattern:$0x73625140]  ;;  %v6597_v60 = vcombine.low %v15199_v11, %v15199_v11 }
 0x2d2   :  { %v1809_v46 = vsel %vm476_vm1, %v1796_v30, %v19770_v40  ;;  %v2101_v32 = vsel %vm476_vm1, %v20227_v44, %v2090_v38  ;;  %8556 = vmatpush1.bf16.msra.mxu0 %v12465_v45  ;;  %v6458_v30 = vrot.slane %v6442_v4, %v13131_v62  ;;  %v15221_v37 = vld.sshfl [vmem:[#allocation2 + $0x8] sm:$0x7f pattern:$0x73625140] }
 0x2d3   :  { %v1810_v41 = vsel %vm19991_vm8, %v1785_v31, %v1809_v46  ;;  %v2102_v26 = vsel %vm20228_vm4, %v14188_v48, %v2101_v32  ;;  %v15216_v61 = vpop.permute.xlu1 %1933  ;;  %v2226_v22 = vpop.permute.xlu0 %2225  ;;  %v20229_v31 = vrot.slane %v14204_v53, 4  ;;  %v6318_v46 = vrot.slane %v15141_v59, %v13131_v62  ;;  %v6975_v40 = vld [vmem:[#allocation2 + $0x8] sm:$0x7f] }
 0x2d4   :  { %1826 = vst [vmem:[#allocation3 + $0x90] sm:$0x44] %v1810_v41  ;;  %2119 = vst [vmem:[#allocation3 + $0xc0] sm:$0x11] %v2102_v26  ;;  %v19771_v12 = vrot.slane %v15216_v61, 4  ;;  %v2237_v2 = vrot.slane %v2226_v22, 4  ;;  %v6605_v26 = vrot.slane %v6597_v60, %v13131_v62  ;;  %v6891_v60 = vcombine.low %v15221_v37, %v15221_v37 }
 0x2d5   :  { %6196 = vrot.lane.b32.xlu1 %v6171_v14, %s20051_s21  ;;  %6488 = vrot.lane.b32.xlu0 %v6458_v30, %s20056_s26  ;;  %vm20230_vm4 = vcmask 941056   ;;  %v6450_v30 = vcombine.high %v6442_v4, %v6442_v4 }
 0x2d6   :  { %v1956_v48 = vsel %vm476_vm1, %v1943_v42, %v19771_v12  ;;  %v2248_v45 = vsel %vm476_vm1, %v20229_v31, %v2237_v2  ;;  %v7122_v12 = vld [vmem:[#allocation2 + $0x8] sm:$0x7f] }
 0x2d7   :  { %v1957_v44 = vsel %vm20225_vm15, %v1932_v3, %v1956_v48  ;;  %v2249_v32 = vsel %vm20230_vm4, %v14204_v53, %v2248_v45  ;;  %v15237_v41 = vpop.permute.xlu1 %2080  ;;  %v2373_v14 = vpop.permute.xlu0 %2372  ;;  %v6752_v53 = vrot.slane %v15211_v43, %v13131_v62  ;;  %v20232_v3 = vrot.slane %v14220_v28, 4 }
 0x2d8   :  { %20231 = vst [vmem:[#allocation21_spill] sm:$0xff] %v15237_v41  ;;  %1973 = vst [vmem:[#allocation3 + $0x90] sm:$0x88] %v1957_v44  ;;  %v19775_v42 = vrot.slane %v15237_v41, 4  ;;  %v2384_v31 = vrot.slane %v2373_v14, 4  ;;  %v7023_v48 = vcombine.low %v6975_v40, %v6975_v40  ;;  %vm20233_vm15 = vcmask 949248  }
 0x2d9   :  { %2266 = vst [vmem:[#allocation3 + $0xc0] sm:$0x22] %v2249_v32  ;;  %6343 = vrot.lane.b32.xlu1 %v6318_v46, %s20053_s12  ;;  %6635 = vrot.lane.b32.xlu0 %v6605_v26, %s20059_s8  ;;  %vm20234_vm4 = vcmask 932864   ;;  %v6465_v26 = vrot.slane %v6450_v30, %v13131_v62  ;;  %v7170_v39 = vcombine.low %v7122_v12, %v7122_v12  ;;  %v20236_v40 = vrot.slane %v14239_v13, 4 }
 0x2da   :  { %v2103_v59 = vsel %vm476_vm1, %v2090_v38, %v19775_v42  ;;  %v2395_v4 = vsel %vm476_vm1, %v20232_v3, %v2384_v31  ;;  %v6612_v30 = vrot.slane %v15199_v11, %v13131_v62 }
 0x2db   :  { %v2104_v45 = vsel %vm20233_vm15, %v2079_v1, %v2103_v59  ;;  %v2396_v46 = vsel %vm20234_vm4, %v14220_v28, %v2395_v4  ;;  %v15256_v44 = vpop.permute.xlu1 %2227  ;;  %v2520_v32 = vpop.permute.xlu0 %2519  ;;  %v6744_v1 = vcombine.high %v15211_v43, %v15211_v43  ;;  %v6899_v59 = vrot.slane %v6891_v60, %v13131_v62 }
 0x2dc   :  { %20235 = vst [vmem:[#allocation22_spill] sm:$0xff] %v15256_v44  ;;  %2120 = vst [vmem:[#allocation3 + $0xc8] sm:$0x11] %v2104_v45  ;;  %v19776_v38 = vrot.slane %v15256_v44, 4  ;;  %v2531_v3 = vrot.slane %v2520_v32, 4  ;;  %vm20237_vm15 = vcmask 941056  }
 0x2dd   :  { %2413 = vst [vmem:[#allocation3 + $0xc0] sm:$0x44] %v2396_v46  ;;  %6490 = vrot.lane.b32.xlu1 %v6465_v26, %s20056_s26  ;;  %6782 = vrot.lane.b32.xlu0 %v6752_v53, %s20063_s7  ;;  %vm20238_vm4 = vcmask 924672   ;;  %v7030_v46 = vrot.slane %v7023_v48, %v13131_v62 }
 0x2de   :  { %v2250_v28 = vsel %vm476_vm1, %v2237_v2, %v19776_v38  ;;  %v2542_v12 = vsel %vm476_vm1, %v20236_v40, %v2531_v3  ;;  %v15280_v2 = vrot.slane %v7170_v39, %v13131_v62  ;;  %v6759_v39 = vrot.slane %v6744_v1, %v13131_v62 }
 0x2df   :  { %v2251_v4 = vsel %vm20237_vm15, %v2226_v22, %v2250_v28  ;;  %v2543_v53 = vsel %vm20238_vm4, %v14239_v13, %v2542_v12  ;;  %v15276_v45 = vpop.permute.xlu1 %2374  ;;  %v2667_v43 = vpop.permute.xlu0 %2666  ;;  %v20240_v22 = vrot.slane %v14257_v7, 4  ;;  %vm20241_vm15 = vcmask 932864  }
 0x2e0   :  { %20239 = vst [vmem:[#allocation23_spill] sm:$0xff] %v15276_v45  ;;  %2267 = vst [vmem:[#allocation3 + $0xc8] sm:$0x22] %v2251_v4  ;;  %v19773_v26 = vrot.slane %v15276_v45, 4  ;;  %v2678_v11 = vrot.slane %v2667_v43, 4  ;;  %vm20242_vm4 = vcmask 916480   ;;  %v7038_v42 = vcombine.high %v7030_v46, %v7030_v46 }
 0x2e1   :  { %2560 = vst [vmem:[#allocation3 + $0xc0] sm:$0x88] %v2543_v53  ;;  %6637 = vrot.lane.b32.xlu1 %v6612_v30, %s20059_s8  ;;  %6929 = vrot.lane.b32.xlu0 %v6899_v59, %s20067_s6  ;;  %v7046_v30 = vrot.slane %v7030_v46, %v13131_v62  ;;  %v7185_v59 = vcombine.low %v15280_v2, %v15280_v2  ;;  %v15302_v4 = vld [vmem:[#allocation2 + $0x8] sm:$0x7f] }
 0x2e2   :  { %v2397_v13 = vsel %vm476_vm1, %v2384_v31, %v19773_v26  ;;  %v2689_v60 = vsel %vm476_vm1, %v20240_v22, %v2678_v11  ;;  %v15300_v31 = vld.sshfl [vmem:[#allocation2 + $0x8] sm:$0x7f pattern:$0x73625140] }
 0x2e3   :  { %v2398_v48 = vsel %vm20241_vm15, %v2373_v14, %v2397_v13  ;;  %v2690_v28 = vsel %vm20242_vm4, %v14257_v7, %v2689_v60  ;;  %v15295_v40 = vpop.permute.xlu1 %2521  ;;  %v2814_v12 = vpop.permute.xlu0 %2813  ;;  %v6906_v7 = vrot.slane %v15221_v37, %v13131_v62  ;;  %v20244_v13 = vrot.slane %v14276_v17, 4 }
 0x2e4   :  { %20243 = vst [vmem:[#allocation24_spill] sm:$0xff] %v15295_v40  ;;  %2414 = vst [vmem:[#allocation3 + $0xc8] sm:$0x44] %v2398_v48  ;;  %v19774_v1 = vrot.slane %v15295_v40, 4  ;;  %v2825_v14 = vrot.slane %v2814_v12, 4  ;;  %v15317_v60 = vrot.slane %v15302_v4, %v13131_v62  ;;  %vm20245_vm15 = vcmask 924672  }
 0x2e5   :  { %2707 = vst [vmem:[#allocation3 + $0xf8] sm:$0x11] %v2690_v28  ;;  %6784 = vrot.lane.b32.xlu1 %v6759_v39, %s20063_s7  ;;  %7076 = vrot.lane.b32.xlu0 %v7046_v30, %s20071_s5  ;;  %v7563_v48 = vld [vmem:[#allocation2 + $0x8] sm:$0x7f]  ;;  %vm20246_vm4 = vcmask 908288   ;;  %v7193_v26 = vrot.slane %v7185_v59, %v13131_v62  ;;  %v7340_v46 = vrot.slane %v15300_v31, %v13131_v62 }
 0x2e6   :  { %v2544_v53 = vsel %vm476_vm1, %v2531_v3, %v19774_v1  ;;  %v2836_v22 = vsel %vm476_vm1, %v20244_v13, %v2825_v14 }
 0x2e7   :  { %v2545_v39 = vsel %vm20245_vm15, %v2520_v32, %v2544_v53  ;;  %v2837_v28 = vsel %vm20246_vm4, %v14276_v17, %v2836_v22  ;;  %v15322_v30 = vpop.permute.xlu1 %2668  ;;  %v2961_v37 = vpop.permute.xlu0 %2960  ;;  %v7611_v32 = vcombine.low %v7563_v48, %v7563_v48  ;;  %v20249_v53 = vrot.slane %v14299_v10, 4  ;;  %v12881_v22 = vld [vmem:[#allocation2 + $0x8] sm:$0x7f] }
 0x2e8   :  { %20247 = vst [vmem:[#allocation25_spill] sm:$0xff] %v15322_v30  ;;  %v12472_v3 = vld [vmem:[#allocation3 + $0x88] ss:$56 sps:$4 sm:$0xff]   ;;  %v12474_v1 = vld [vmem:[#allocation3 + $0x8c] ss:$56 sps:$4 sm:$0xff]   ;;  %v19777_v13 = vrot.slane %v15322_v30, 4 }
 0x2e9   :  { %2561 = vst [vmem:[#allocation3 + $0xc8] sm:$0x88] %v2545_v39  ;;  %2854 = vst [vmem:[#allocation3 + $0xf8] sm:$0x22] %v2837_v28  ;;  %v2972_v38 = vrot.slane %v2961_v37, 4  ;;  %6931 = vrot.lane.b32.xlu1 %v6906_v7, %s20067_s6  ;;  %7223 = vrot.lane.b32.xlu0 %v7193_v26, %s20248_s18  ;;  %v407_v39 = vcombine.high %v12881_v22, %v12881_v22  ;;  %vm20250_vm15 = vcmask 916480  }
 0x2ea   :  { %v2691_v17 = vsel %vm476_vm1, %v2678_v11, %v19777_v13  ;;  %8504 = vmatprep.subr.bf16.mxu1 %v12474_v1  ;;  %vm20251_vm4 = vcmask 900096   ;;  %v7053_v11 = vrot.slane %v7038_v42, %v13131_v62  ;;  %v20253_v42 = vrot.slane %v14316_v35, 4 }
 0x2eb   :  { %v2983_v59 = vsel %vm476_vm1, %v20249_v53, %v2972_v38  ;;  %v2692_v28 = vsel %vm20250_vm15, %v2667_v43, %v2691_v17  ;;  %v15339_v7 = vpop.permute.xlu1 %2815  ;;  %v3108_v48 = vpop.permute.xlu0 %3107  ;;  %8505 = vmatpush1.bf16.msra.mxu1 %v12472_v3  ;;  %v7479_v53 = vcombine.low %v15317_v60, %v15317_v60  ;;  %v7200_v17 = vrot.slane %v15280_v2, %v13131_v62 }
 0x2ec   :  { %v2984_v26 = vsel %vm20251_vm4, %v14299_v10, %v2983_v59  ;;  %20252 = vst [vmem:[#allocation26_spill] sm:$0xff] %v15339_v7  ;;  %2708 = vst [vmem:[#allocation3 + $0x100] sm:$0x11] %v2692_v28  ;;  %v19778_v1 = vrot.slane %v15339_v7, 4  ;;  %v3119_v13 = vrot.slane %v3108_v48, 4  ;;  %v7332_v10 = vcombine.high %v15300_v31, %v15300_v31 }
 0x2ed   :  { %3001 = vst [vmem:[#allocation3 + $0xf8] sm:$0x44] %v2984_v26  ;;  %7078 = vrot.lane.b32.xlu1 %v7053_v11, %s20071_s5  ;;  %7370 = vrot.lane.b32.xlu0 %v7340_v46, %s20079_s3  ;;  %v7618_v59 = vrot.slane %v7611_v32, %v13131_v62  ;;  %vm20254_vm15 = vcmask 908288   ;;  %vm20255_vm4 = vcmask 891904   ;;  %v7487_v26 = vrot.slane %v7479_v53, %v13131_v62 }
 0x2ee   :  { %v2838_v43 = vsel %vm476_vm1, %v2825_v14, %v19778_v1  ;;  %v3130_v3 = vsel %vm476_vm1, %v20253_v42, %v3119_v13  ;;  %v15365_v1 = vrot.slane %v407_v39, %v13131_v62  ;;  %v20258_v53 = vrot.slane %v14337_v8, 4 }
 0x2ef   :  { %v2839_v22 = vsel %vm20254_vm15, %v2814_v12, %v2838_v43  ;;  %v3131_v46 = vsel %vm20255_vm4, %v14316_v35, %v3130_v3  ;;  %v15361_v28 = vpop.permute.xlu1 %2962  ;;  %v3255_v31 = vpop.permute.xlu0 %3254  ;;  %v15370_v35 = vld.sshfl [vmem:[#allocation2 + $0x8] sm:$0x7f pattern:$0x73625140]  ;;  %v7347_v43 = vrot.slane %v7332_v10, %v13131_v62  ;;  %v7634_v42 = vrot.slane %v7618_v59, %v13131_v62 }
 0x2f0   :  { %20256 = vst [vmem:[#allocation27_spill] sm:$0xff] %v15361_v28  ;;  %v12475_v14 = vld [vmem:[#allocation3 + $0x90] ss:$56 sps:$4 sm:$0xff]   ;;  %v12477_v11 = vld [vmem:[#allocation3 + $0x94] ss:$56 sps:$4 sm:$0xff]   ;;  %v19779_v2 = vrot.slane %v15361_v28, 4 }
 0x2f1   :  { %2855 = vst [vmem:[#allocation3 + $0x100] sm:$0x22] %v2839_v22  ;;  %3148 = vst [vmem:[#allocation3 + $0xf8] sm:$0x88] %v3131_v46  ;;  %v3266_v32 = vrot.slane %v3255_v31, 4  ;;  %7225 = vrot.lane.b32.xlu1 %v7200_v17, %s20248_s18  ;;  %7517 = vrot.lane.b32.xlu0 %v7487_v26, %s20257_s2  ;;  %vm20259_vm15 = vcmask 900096  }
 0x2f2   :  { %v2985_v12 = vsel %vm476_vm1, %v2972_v38, %v19779_v2  ;;  %8557 = vmatprep.subr.bf16.mxu0 %v12477_v11  ;;  %vm20260_vm4 = vcmask 883712   ;;  %v423_v38 = vcombine.low %v15365_v1, %v15365_v1  ;;  %v12883_v26 = vld [vmem:[#allocation2 + $0x8] sm:$0x7f] }
 0x2f3   :  { %v3277_v39 = vsel %vm476_vm1, %v20258_v53, %v3266_v32  ;;  %v2986_v3 = vsel %vm20259_vm15, %v2961_v37, %v2985_v12  ;;  %v15383_v22 = vpop.permute.xlu1 %3109  ;;  %v3402_v46 = vpop.permute.xlu0 %3401  ;;  %8558 = vmatpush1.bf16.msra.mxu0 %v12475_v14  ;;  %v996_v2 = vcombine.high %v12883_v26, %v12883_v26  ;;  %v20263_v14 = vrot.slane %v14356_v21, 4 }
 0x2f4   :  { %v3278_v17 = vsel %vm20260_vm4, %v14337_v8, %v3277_v39  ;;  %20261 = vst [vmem:[#allocation28_spill] sm:$0xff] %v15383_v22  ;;  %3002 = vst [vmem:[#allocation3 + $0x100] sm:$0x44] %v2986_v3  ;;  %v19782_v10 = vrot.slane %v15383_v22, 4  ;;  %v3413_v11 = vrot.slane %v3402_v46, 4  ;;  %v718_v8 = vcombine.low %v15370_v35, %v15370_v35 }
 0x2f5   :  { %3295 = vst [vmem:[#allocation3 + $0x130] sm:$0x11] %v3278_v17  ;;  %7372 = vrot.lane.b32.xlu1 %v7347_v43, %s20079_s3  ;;  %7664 = vrot.lane.b32.xlu0 %v7634_v42, %s20262_s1  ;;  %v7494_v53 = vrot.slane %v15317_v60, %v13131_v62  ;;  %v7626_v39 = vcombine.high %v7618_v59, %v7618_v59  ;;  %vm20264_vm15 = vcmask 891904   ;;  %vm20265_vm4 = vcmask 875520  }
 0x2f6   :  { %v3132_v37 = vsel %vm476_vm1, %v3119_v13, %v19782_v10  ;;  %v3424_v12 = vsel %vm476_vm1, %v20263_v14, %v3413_v11  ;;  %v444_v26 = vrot.slane %v423_v38, %v13131_v62  ;;  %v15407_v13 = vrot.slane %v996_v2, %v13131_v62 }
 0x2f7   :  { %v3133_v3 = vsel %vm20264_vm15, %v3108_v48, %v3132_v37  ;;  %v3425_v43 = vsel %vm20265_vm4, %v14356_v21, %v3424_v12  ;;  %v15403_v42 = vpop.permute.xlu1 %3256  ;;  %v3549_v17 = vpop.permute.xlu0 %3548  ;;  %v739_v60 = vrot.slane %v718_v8, %v13131_v62  ;;  %v15413_v21 = vld.sshfl [vmem:[#allocation2 + $0x8] sm:$0x7f pattern:$0x73625140]  ;;  %v20267_v38 = vrot.slane %v14379_v20, 4 }
 0x2f8   :  { %20266 = vst [vmem:[#allocation29_spill] sm:$0xff] %v15403_v42  ;;  %3149 = vst [vmem:[#allocation3 + $0x100] sm:$0x88] %v3133_v3  ;;  %v19783_v14 = vrot.slane %v15403_v42, 4  ;;  %v3560_v10 = vrot.slane %v3549_v17, 4  ;;  %v7641_v12 = vrot.slane %v7626_v39, %v13131_v62  ;;  %vm20268_vm15 = vcmask 883712  }
 0x2f9   :  { %3442 = vst [vmem:[#allocation3 + $0x130] sm:$0x22] %v3425_v43  ;;  %7519 = vrot.lane.b32.xlu1 %v7494_v53, %s20257_s2  ;;  %464 = vrot.lane.b32.xlu0 %v444_v26, %s20008_s30  ;;  %v12885_v48 = vld [vmem:[#allocation2 + $0x8] sm:$0x7f]  ;;  %vm20269_vm4 = vcmask 867328  }
 0x2fa   :  { %v849_v59 = vcombine.high %v12885_v48, %v12885_v48  ;;  %v3279_v2 = vsel %vm476_vm1, %v3266_v32, %v19783_v14  ;;  %v3571_v37 = vsel %vm476_vm1, %v20267_v38, %v3560_v10  ;;  %v15422_v3 = vld.sshfl [vmem:[#allocation2 + $0x8] sm:$0x7f pattern:$0x73625140]  ;;  %v1012_v48 = vcombine.low %v15407_v13, %v15407_v13 }
 0x2fb   :  { %v3280_v53 = vsel %vm20268_vm15, %v3255_v31, %v3279_v2  ;;  %v3572_v8 = vsel %vm20269_vm4, %v14379_v20, %v3571_v37  ;;  %v15427_v43 = vpop.permute.xlu1 %3403  ;;  %v3696_v26 = vpop.permute.xlu0 %3695  ;;  %v12887_v32 = vld [vmem:[#allocation2 + $0x8] sm:$0x7f]  ;;  %v20271_v2 = vrot.slane %v14395_v51, 4  ;;  %vm20272_vm15 = vcmask 875520  }
 0x2fc   :  { %20270 = vst [vmem:[#allocation30_spill] sm:$0xff] %v15427_v43  ;;  %v1584_v14 = vcombine.high %v12887_v32, %v12887_v32  ;;  %3296 = vst [vmem:[#allocation3 + $0x138] sm:$0x11] %v3280_v53  ;;  %v19784_v38 = vrot.slane %v15427_v43, 4  ;;  %v3707_v39 = vrot.slane %v3696_v26, 4  ;;  %v15435_v31 = vrot.slane %v849_v59, %v13131_v62 }
 0x2fd   :  { %3589 = vst [vmem:[#allocation3 + $0x130] sm:$0x44] %v3572_v8  ;;  %7666 = vrot.lane.b32.xlu1 %v7641_v12, %s20262_s1  ;;  %759 = vrot.lane.b32.xlu0 %v739_v60, %s20098_s4  ;;  %v592_v53 = vrot.slane %v15413_v21, %v13131_v62  ;;  %v1306_v8 = vcombine.low %v15422_v3, %v15422_v3  ;;  %vm20273_vm4 = vcmask 859136   ;;  %s20275_s4 = smov 126   ;;  %s20276_s1 = smov 123  }
 0x2fe   :  { %v3426_v20 = vsel %vm476_vm1, %v3413_v11, %v19784_v38  ;;  %v3718_v37 = vsel %vm476_vm1, %v20271_v2, %v3707_v39  ;;  %v1033_v11 = vrot.slane %v1012_v48, %v13131_v62  ;;  %v15454_v38 = vrot.slane %v1584_v14, %v13131_v62 }
 0x2ff   :  { %v3427_v12 = vsel %vm20272_vm15, %v3402_v46, %v3426_v20  ;;  %v3719_v60 = vsel %vm20273_vm4, %v14395_v51, %v3718_v37  ;;  %v15450_v59 = vpop.permute.xlu1 %3550  ;;  %v3843_v32 = vpop.permute.xlu0 %3842  ;;  %v886_v51 = vrot.slane %v15435_v31, %v13131_v62  ;;  %v15461_v46 = vld.sshfl [vmem:[#allocation2 + $0x8] sm:$0x7f pattern:$0x73625140]  ;;  %v20277_v48 = vrot.slane %v14420_v5, 4 }
 0x300   :  { %20274 = vst [vmem:[#allocation31_spill] sm:$0xff] %v15450_v59  ;;  %3443 = vst [vmem:[#allocation3 + $0x138] sm:$0x22] %v3427_v12  ;;  %v19795_v2 = vrot.slane %v15450_v59, 4  ;;  %v3854_v42 = vrot.slane %v3843_v32, 4  ;;  %vm20278_vm15 = vcmask 867328   ;;  %v1600_v59 = vcombine.low %v15454_v38, %v15454_v38 }
 0x301   :  { %3736 = vst [vmem:[#allocation3 + $0x130] sm:$0x88] %v3719_v60  ;;  %612 = vrot.lane.b32.xlu1 %v592_v53, %s20275_s4  ;;  %1053 = vrot.lane.b32.xlu0 %v1033_v11, %s20276_s1  ;;  %v12889_v20 = vld [vmem:[#allocation2 + $0x8] sm:$0x7f]  ;;  %v1327_v60 = vrot.slane %v1306_v8, %v13131_v62  ;;  %vm20279_vm4 = vcmask 850944   ;;  %s20281_s1 = smov 124  }
 0x302   :  { %v1437_v37 = vcombine.high %v12889_v20, %v12889_v20  ;;  %v3573_v14 = vsel %vm476_vm1, %v3560_v10, %v19795_v2  ;;  %v3865_v12 = vsel %vm476_vm1, %v20277_v48, %v3854_v42  ;;  %v15470_v53 = vld.sshfl [vmem:[#allocation2 + $0x8] sm:$0x7f pattern:$0x73625140] }
 0x303   :  { %v3574_v11 = vsel %vm20278_vm15, %v3549_v17, %v3573_v14  ;;  %v3866_v43 = vsel %vm20279_vm4, %v14420_v5, %v3865_v12  ;;  %v15475_v28 = vpop.permute.xlu1 %3697  ;;  %v3990_v20 = vpop.permute.xlu0 %3989  ;;  %v12891_v10 = vld [vmem:[#allocation2 + $0x8] sm:$0x7f]  ;;  %v1180_v5 = vrot.slane %v15461_v46, %v13131_v62  ;;  %v20282_v14 = vrot.slane %v14441_v57, 4 }
 0x304   :  { %20280 = vst [vmem:[#allocation32_spill] sm:$0xff] %v15475_v28  ;;  %v2172_v2 = vcombine.high %v12891_v10, %v12891_v10  ;;  %3590 = vst [vmem:[#allocation3 + $0x138] sm:$0x44] %v3574_v11  ;;  %v19798_v48 = vrot.slane %v15475_v28, 4  ;;  %v4001_v8 = vrot.slane %v3990_v20, 4  ;;  %v1894_v11 = vcombine.low %v15470_v53, %v15470_v53 }
 0x305   :  { %3883 = vst [vmem:[#allocation3 + $0x168] sm:$0x11] %v3866_v43  ;;  %906 = vrot.lane.b32.xlu1 %v886_v51, %s20281_s1  ;;  %1347 = vrot.lane.b32.xlu0 %v1327_v60, %s20110_s9  ;;  %v15491_v43 = vrot.slane %v1437_v37, %v13131_v62  ;;  %vm20283_vm15 = vcmask 859136   ;;  %vm20284_vm4 = vcmask 842752   ;;  %s20286_s9 = smov 122  }
 0x306   :  { %v3720_v17 = vsel %vm476_vm1, %v3707_v39, %v19798_v48  ;;  %v4012_v12 = vsel %vm476_vm1, %v20282_v14, %v4001_v8  ;;  %v1621_v39 = vrot.slane %v1600_v59, %v13131_v62  ;;  %v15504_v14 = vrot.slane %v2172_v2, %v13131_v62  ;;  %v15512_v59 = vld.sshfl [vmem:[#allocation2 + $0x8] sm:$0x7f pattern:$0x73625140] }
 0x307   :  { %v3721_v51 = vsel %vm20283_vm15, %v3696_v26, %v3720_v17  ;;  %v4013_v60 = vsel %vm20284_vm4, %v14441_v57, %v4012_v12  ;;  %v15498_v10 = vpop.permute.xlu1 %3844  ;;  %v15500_v28 = vpop.permute.xlu0 %4136  ;;  %v15510_v57 = vld.sshfl [vmem:[#allocation2 + $0x8] sm:$0x7f pattern:$0x73625140]  ;;  %vm20288_vm15 = vcmask 850944  }
 0x308   :  { %20285 = vst [vmem:[#allocation33_spill] sm:$0xff] %v15498_v10  ;;  %v12479_v48 = vld [vmem:[#allocation3 + $0xf8] ss:$56 sps:$4 sm:$0xff]   ;;  %v12481_v22 = vld [vmem:[#allocation3 + $0xfc] ss:$56 sps:$4 sm:$0xff]   ;;  %v19808_v37 = vrot.slane %v15498_v10, 4 }
 0x309   :  { %3737 = vst [vmem:[#allocation3 + $0x138] sm:$0x88] %v3721_v51  ;;  %4030 = vst [vmem:[#allocation3 + $0x168] sm:$0x22] %v4013_v60  ;;  %v4148_v26 = vrot.slane %v15500_v28, 4  ;;  %1200 = vrot.lane.b32.xlu1 %v1180_v5, %s20286_s9  ;;  %1641 = vrot.lane.b32.xlu0 %v1621_v39, %s20012_s11  ;;  %v20287_v51 = vrot.slane %v14463_v18, 4  ;;  %v1474_v5 = vrot.slane %v15491_v43, %v13131_v62 }
 0x30a   :  { %v12893_v17 = vld [vmem:[#allocation2 + $0x8] sm:$0x7f]  ;;  %v3867_v2 = vsel %vm476_vm1, %v3854_v42, %v19808_v37  ;;  %8506 = vmatprep.subr.bf16.mxu1 %v12481_v22  ;;  %v1915_v39 = vrot.slane %v1894_v11, %v13131_v62  ;;  %v2188_v42 = vcombine.low %v15504_v14, %v15504_v14 }
 0x30b   :  { %v2025_v12 = vcombine.high %v12893_v17, %v12893_v17  ;;  %v4159_v60 = vsel %vm476_vm1, %v20287_v51, %v4148_v26  ;;  %v3868_v30 = vsel %vm20288_vm15, %v3843_v32, %v3867_v2  ;;  %v15526_v7 = vpop.permute.xlu1 %3991  ;;  %v4284_v10 = vpop.permute.xlu0 %4283  ;;  %8507 = vmatpush1.bf16.msra.mxu1 %v12479_v48  ;;  %v12895_v37 = vld [vmem:[#allocation2 + $0x8] sm:$0x7f]  ;;  %v20290_v48 = vrot.slane %v14484_v63, 4 }
 0x30c   :  { %v4160_v17 = vsel %vm4153_vm9, %v14463_v18, %v4159_v60  ;;  %20289 = vst [vmem:[#allocation34_spill] sm:$0xff] %v15526_v7  ;;  %v2760_v51 = vcombine.high %v12895_v37, %v12895_v37  ;;  %3884 = vst [vmem:[#allocation3 + $0x170] sm:$0x11] %v3868_v30  ;;  %v19811_v22 = vrot.slane %v15526_v7, 4  ;;  %v4295_v45 = vrot.slane %v4284_v10, 4 }
 0x30d   :  { %4177 = vst [vmem:[#allocation3 + $0x168] sm:$0x44] %v4160_v17  ;;  %1494 = vrot.lane.b32.xlu1 %v1474_v5, %s20011_s0  ;;  %1935 = vrot.lane.b32.xlu0 %v1915_v39, %s20120_s10  ;;  %v1768_v18 = vrot.slane %v15510_v57, %v13131_v62  ;;  %v15542_v30 = vrot.slane %v2025_v12, %v13131_v62  ;;  %vm20291_vm15 = vcmask 826368   ;;  %s20293_s10 = smov 118  }
 0x30e   :  { %v4014_v32 = vsel %vm476_vm1, %v4001_v8, %v19811_v22  ;;  %v4306_v11 = vsel %vm476_vm1, %v20290_v48, %v4295_v45  ;;  %v2482_v37 = vcombine.low %v15512_v59, %v15512_v59  ;;  %v2209_v8 = vrot.slane %v2188_v42, %v13131_v62 }
 0x30f   :  { %v4015_v2 = vsel %vm20284_vm4, %v3990_v20, %v4014_v32  ;;  %v4307_v60 = vsel %vm20291_vm15, %v14484_v63, %v4306_v11  ;;  %v15549_v5 = vpop.permute.xlu1 %4138  ;;  %v4431_v39 = vpop.permute.xlu0 %4430  ;;  %v15553_v48 = vrot.slane %v2760_v51, %v13131_v62  ;;  %v15558_v63 = vld.sshfl [vmem:[#allocation2 + $0x8] sm:$0x7f pattern:$0x73625140]  ;;  %v20294_v51 = vrot.slane %v14504_v0, 4 }
 0x310   :  { %20292 = vst [vmem:[#allocation35_spill] sm:$0xff] %v15549_v5  ;;  %v12482_v17 = vld [vmem:[#allocation3 + $0x100] ss:$56 sps:$4 sm:$0xff]   ;;  %v12484_v22 = vld [vmem:[#allocation3 + $0x104] ss:$56 sps:$4 sm:$0xff]   ;;  %v19819_v12 = vrot.slane %v15549_v5, 4 }
 0x311   :  { %4031 = vst [vmem:[#allocation3 + $0x170] sm:$0x22] %v4015_v2  ;;  %4324 = vst [vmem:[#allocation3 + $0x168] sm:$0x88] %v4307_v60  ;;  %v4442_v7 = vrot.slane %v4431_v39, 4  ;;  %1788 = vrot.lane.b32.xlu1 %v1768_v18, %s20293_s10  ;;  %2229 = vrot.lane.b32.xlu0 %v2209_v8, %s20014_s13  ;;  %v2062_v18 = vrot.slane %v15542_v30, %v13131_v62  ;;  %v2503_v60 = vrot.slane %v2482_v37, %v13131_v62  ;;  %vm20295_vm4 = vcmask 818176  }
 0x312   :  { %v12897_v20 = vld [vmem:[#allocation2 + $0x8] sm:$0x7f]  ;;  %v4161_v42 = vsel %vm476_vm1, %v4148_v26, %v19819_v12  ;;  %8559 = vmatprep.subr.bf16.mxu0 %v12484_v22  ;;  %v2776_v26 = vcombine.low %v15553_v48, %v15553_v48  ;;  %s20297_s13 = smov 116  }
 0x313   :  { %v2613_v32 = vcombine.high %v12897_v20, %v12897_v20  ;;  %v15560_v11 = vld.sshfl [vmem:[#allocation2 + $0x8] sm:$0x7f pattern:$0x73625140]  ;;  %v4453_v2 = vsel %vm476_vm1, %v20294_v51, %v4442_v7  ;;  %v4162_v8 = vsel %vm4153_vm9, %v15500_v28, %v4161_v42  ;;  %v15575_v40 = vpop.permute.xlu1 %4285  ;;  %v4578_v5 = vpop.permute.xlu0 %4577  ;;  %8560 = vmatpush1.bf16.msra.mxu0 %v12482_v17  ;;  %v20298_v17 = vrot.slane %v14529_v52, 4 }
 0x314   :  { %v4454_v20 = vsel %vm20295_vm4, %v14504_v0, %v4453_v2  ;;  %20296 = vst [vmem:[#allocation36_spill] sm:$0xff] %v15575_v40  ;;  %v12899_v51 = vld [vmem:[#allocation2 + $0x8] sm:$0x7f]  ;;  %4178 = vst [vmem:[#allocation3 + $0x170] sm:$0x44] %v4162_v8  ;;  %v19821_v12 = vrot.slane %v15575_v40, 4  ;;  %v2356_v0 = vrot.slane %v15558_v63, %v13131_v62  ;;  %v3070_v8 = vcombine.low %v15560_v11, %v15560_v11 }
 0x315   :  { %v3348_v22 = vcombine.high %v12899_v51, %v12899_v51  ;;  %4471 = vst [vmem:[#allocation3 + $0x1a0] sm:$0x11] %v4454_v20  ;;  %v4589_v37 = vrot.slane %v4578_v5, 4  ;;  %2082 = vrot.lane.b32.xlu1 %v2062_v18, %s20297_s13  ;;  %2523 = vrot.lane.b32.xlu0 %v2503_v60, %s20132_s17  ;;  %v15591_v2 = vrot.slane %v2613_v32, %v13131_v62  ;;  %vm20299_vm4 = vcmask 809984   ;;  %s20301_s17 = smov 114   ;;  %s20302_s13 = smov 111  }
 0x316   :  { %v4308_v28 = vsel %vm476_vm1, %v4295_v45, %v19821_v12  ;;  %v2797_v45 = vrot.slane %v2776_v26, %v13131_v62 }
 0x317   :  { %v4600_v42 = vsel %vm476_vm1, %v20298_v17, %v4589_v37  ;;  %v4309_v18 = vsel %vm20291_vm15, %v4284_v10, %v4308_v28  ;;  %v15598_v20 = vpop.permute.xlu1 %4432  ;;  %v4725_v51 = vpop.permute.xlu0 %4724  ;;  %v15602_v12 = vrot.slane %v3348_v22, %v13131_v62  ;;  %v15607_v10 = vld.sshfl [vmem:[#allocation2 + $0x8] sm:$0x7f pattern:$0x73625140]  ;;  %v20304_v22 = vrot.slane %v14551_v23, 4 }
 0x318   :  { %v4601_v60 = vsel %vm20299_vm4, %v14529_v52, %v4600_v42  ;;  %20300 = vst [vmem:[#allocation37_spill] sm:$0xff] %v15598_v20  ;;  %4325 = vst [vmem:[#allocation3 + $0x170] sm:$0x88] %v4309_v18  ;;  %v19827_v32 = vrot.slane %v15598_v20, 4  ;;  %v4736_v17 = vrot.slane %v4725_v51, 4  ;;  %vm20305_vm15 = vcmask 818176  }
 0x319   :  { %4618 = vst [vmem:[#allocation3 + $0x1a0] sm:$0x22] %v4601_v60  ;;  %2376 = vrot.lane.b32.xlu1 %v2356_v0, %s20301_s17  ;;  %2817 = vrot.lane.b32.xlu0 %v2797_v45, %s20302_s13  ;;  %v12901_v52 = vld [vmem:[#allocation2 + $0x8] sm:$0x7f]  ;;  %v2650_v60 = vrot.slane %v15591_v2, %v13131_v62  ;;  %v3091_v0 = vrot.slane %v3070_v8, %v13131_v62  ;;  %s20307_s13 = smov 112   ;;  %v20308_v8 = vrot.slane %v14570_v36, 4 }
 0x31a   :  { %v3201_v28 = vcombine.high %v12901_v52, %v12901_v52  ;;  %v15609_v42 = vld.sshfl [vmem:[#allocation2 + $0x8] sm:$0x7f pattern:$0x73625140]  ;;  %v4455_v26 = vsel %vm476_vm1, %v4442_v7, %v19827_v32  ;;  %v4747_v18 = vsel %vm476_vm1, %v20304_v22, %v4736_v17  ;;  %v3364_v7 = vcombine.low %v15602_v12, %v15602_v12 }
 0x31b   :  { %20303 = vst [vmem:[#allocation38_spill] sm:$0xff] %v15609_v42  ;;  %v4456_v45 = vsel %vm20305_vm15, %v4431_v39, %v4455_v26  ;;  %v4748_v52 = vsel %vm4741_vm6, %v14551_v23, %v4747_v18  ;;  %v15623_v40 = vpop.permute.xlu1 %4579  ;;  %v4872_v41 = vpop.permute.xlu0 %4871  ;;  %v12903_v32 = vld [vmem:[#allocation2 + $0x8] sm:$0x7f]  ;;  %v2944_v23 = vrot.slane %v15607_v10, %v13131_v62  ;;  %v3658_v18 = vcombine.low %v15609_v42, %v15609_v42 }
 0x31c   :  { %20306 = vst [vmem:[#allocation39_spill] sm:$0xff] %v15623_v40  ;;  %v3936_v20 = vcombine.high %v12903_v32, %v12903_v32  ;;  %4472 = vst [vmem:[#allocation3 + $0x1a8] sm:$0x11] %v4456_v45  ;;  %v19832_v22 = vrot.slane %v15623_v40, 4  ;;  %v4883_v44 = vrot.slane %v4872_v41, 4  ;;  %v15639_v26 = vrot.slane %v3201_v28, %v13131_v62 }
 0x31d   :  { %4765 = vst [vmem:[#allocation3 + $0x1a0] sm:$0x44] %v4748_v52  ;;  %2670 = vrot.lane.b32.xlu1 %v2650_v60, %s20307_s13  ;;  %3111 = vrot.lane.b32.xlu0 %v3091_v0, %s20147_s19  ;;  %vm20309_vm15 = vcmask 793600   ;;  %s20312_s19 = smov 110  }
 0x31e   :  { %v4602_v39 = vsel %vm476_vm1, %v4589_v37, %v19832_v22  ;;  %v4894_v32 = vsel %vm476_vm1, %v20308_v8, %v4883_v44  ;;  %v3385_v37 = vrot.slane %v3364_v7, %v13131_v62  ;;  %v15650_v22 = vrot.slane %v3936_v20, %v13131_v62 }
 0x31f   :  { %v4603_v60 = vsel %vm20299_vm4, %v4578_v5, %v4602_v39  ;;  %v4895_v0 = vsel %vm20309_vm15, %v14570_v36, %v4894_v32  ;;  %v15646_v45 = vpop.permute.xlu1 %4726  ;;  %v5019_v52 = vpop.permute.xlu0 %5018  ;;  %v15655_v5 = vld.sshfl [vmem:[#allocation2 + $0x8] sm:$0x7f pattern:$0x73625140]  ;;  %v20314_v7 = vrot.slane %v14590_v24, 4  ;;  %vm20315_vm4 = vcmask 785408  }
 0x320   :  { %20310 = vst [vmem:[#allocation40_spill] sm:$0xff] %v15646_v45  ;;  %20311 = vst [vmem:[#allocation41_spill] sm:$0xff] %v15650_v22  ;;  %v19837_v28 = vrot.slane %v15646_v45, 4  ;;  %v5030_v8 = vrot.slane %v5019_v52, 4  ;;  %v12905_v36 = vld [vmem:[#allocation2 + $0x8] sm:$0x7f] }
 0x321   :  { %4619 = vst [vmem:[#allocation3 + $0x1a8] sm:$0x22] %v4603_v60  ;;  %4912 = vst [vmem:[#allocation3 + $0x1a0] sm:$0x88] %v4895_v0  ;;  %2964 = vrot.lane.b32.xlu1 %v2944_v23, %s20312_s19  ;;  %3405 = vrot.lane.b32.xlu0 %v3385_v37, %s20019_s14  ;;  %v3789_v39 = vcombine.high %v12905_v36, %v12905_v36  ;;  %v3238_v0 = vrot.slane %v15639_v26, %v13131_v62  ;;  %s20317_s14 = smov 108  }
 0x322   :  { %v15657_v32 = vld.sshfl [vmem:[#allocation2 + $0x8] sm:$0x7f pattern:$0x73625140]  ;;  %v4749_v20 = vsel %vm476_vm1, %v4736_v17, %v19837_v28  ;;  %v5041_v60 = vsel %vm476_vm1, %v20314_v7, %v5030_v8  ;;  %v3679_v23 = vrot.slane %v3658_v18, %v13131_v62  ;;  %v3952_v17 = vcombine.low %v15650_v22, %v15650_v22 }
 0x323   :  { %20313 = vst [vmem:[#allocation42_spill] sm:$0xff] %v15657_v32  ;;  %v4750_v37 = vsel %vm4741_vm6, %v4725_v51, %v4749_v20  ;;  %v5042_v36 = vsel %vm20315_vm4, %v14590_v24, %v5041_v60  ;;  %v15671_v40 = vpop.permute.xlu1 %4873  ;;  %v5166_v42 = vpop.permute.xlu0 %5165  ;;  %v12907_v28 = vld [vmem:[#allocation2 + $0x8] sm:$0x7f]  ;;  %v3532_v24 = vrot.slane %v15655_v5, %v13131_v62  ;;  %v20318_v18 = vrot.slane %v14609_v47, 4 }
 0x324   :  { %20316 = vst [vmem:[#allocation43_spill] sm:$0xff] %v15671_v40  ;;  %v4524_v45 = vcombine.high %v12907_v28, %v12907_v28  ;;  %4766 = vst [vmem:[#allocation3 + $0x1a8] sm:$0x44] %v4750_v37  ;;  %v19843_v7 = vrot.slane %v15671_v40, 4  ;;  %v5177_v55 = vrot.slane %v5166_v42, 4  ;;  %v15687_v20 = vrot.slane %v3789_v39, %v13131_v62 }
 0x325   :  { %5059 = vst [vmem:[#allocation3 + $0x1d8] sm:$0x11] %v5042_v36  ;;  %3258 = vrot.lane.b32.xlu1 %v3238_v0, %s20317_s14  ;;  %3699 = vrot.lane.b32.xlu0 %v3679_v23, %s20169_s15  ;;  %v4246_v60 = vcombine.low %v15657_v32, %v15657_v32  ;;  %vm20320_vm4 = vcmask 777216   ;;  %s20322_s15 = smov 106  }
 0x326   :  { %v4896_v51 = vsel %vm476_vm1, %v4883_v44, %v19843_v7  ;;  %v5188_v28 = vsel %vm476_vm1, %v20318_v18, %v5177_v55  ;;  %20319 = vst [vmem:[#allocation44_spill] sm:$0xff] %v15687_v20  ;;  %v3973_v44 = vrot.slane %v3952_v17, %v13131_v62  ;;  %v15700_v18 = vrot.slane %v4524_v45, %v13131_v62  ;;  %v15708_v17 = vld.sshfl [vmem:[#allocation2 + $0x8] sm:$0x7f pattern:$0x73625140] }
 0x327   :  { %v4897_v0 = vsel %vm20309_vm15, %v4872_v41, %v4896_v51  ;;  %v5189_v23 = vsel %vm20320_vm4, %v14609_v47, %v5188_v28  ;;  %v15694_v37 = vpop.permute.xlu1 %5020  ;;  %v15696_v36 = vpop.permute.xlu0 %5312  ;;  %v15706_v47 = vld.sshfl [vmem:[#allocation2 + $0x8] sm:$0x7f pattern:$0x73625140]  ;;  %20323 = vst [vmem:[#allocation46_spill] sm:$0xff] %v15708_v17  ;;  %vm20325_vm15 = vcmask 785408  }
 0x328   :  { %20321 = vst [vmem:[#allocation45_spill] sm:$0xff] %v15694_v37  ;;  %v12485_v7 = vld [vmem:[#allocation3 + $0x168] ss:$56 sps:$4 sm:$0xff]   ;;  %v12487_v40 = vld [vmem:[#allocation3 + $0x16c] ss:$56 sps:$4 sm:$0xff]   ;;  %v19851_v39 = vrot.slane %v15694_v37, 4 }
 0x329   :  { %4913 = vst [vmem:[#allocation3 + $0x1a8] sm:$0x88] %v4897_v0  ;;  %5206 = vst [vmem:[#allocation3 + $0x1d8] sm:$0x22] %v5189_v23  ;;  %v5324_v41 = vrot.slane %v15696_v36, 4  ;;  %3552 = vrot.lane.b32.xlu1 %v3532_v24, %s20322_s15  ;;  %3993 = vrot.lane.b32.xlu0 %v3973_v44, %s20025_s16  ;;  %v20324_v0 = vrot.slane %v14632_v25, 4  ;;  %v3826_v24 = vrot.slane %v15687_v20, %v13131_v62 }
 0x32a   :  { %v12909_v51 = vld [vmem:[#allocation2 + $0x8] sm:$0x7f]  ;;  %v5043_v45 = vsel %vm476_vm1, %v5030_v8, %v19851_v39  ;;  %8508 = vmatprep.subr.bf16.mxu1 %v12487_v40  ;;  %v4267_v44 = vrot.slane %v4246_v60, %v13131_v62  ;;  %vm20326_vm4 = vcmask 769024   ;;  %v4540_v8 = vcombine.low %v15700_v18, %v15700_v18  ;;  %s20328_s16 = smov 104   ;;  %s20329_s15 = smov 101  }
 0x32b   :  { %v4377_v28 = vcombine.high %v12909_v51, %v12909_v51  ;;  %v5335_v23 = vsel %vm476_vm1, %v20324_v0, %v5324_v41  ;;  %v5044_v32 = vsel %vm20325_vm15, %v5019_v52, %v5043_v45  ;;  %v15722_v22 = vpop.permute.xlu1 %5167  ;;  %v5460_v37 = vpop.permute.xlu0 %5459  ;;  %8509 = vmatpush1.bf16.msra.mxu1 %v12485_v7  ;;  %v12911_v39 = vld [vmem:[#allocation2 + $0x8] sm:$0x7f]  ;;  %v20330_v7 = vrot.slane %v14649_v56, 4 }
 0x32c   :  { %v5336_v51 = vsel %vm20326_vm4, %v14632_v25, %v5335_v23  ;;  %20327 = vst [vmem:[#allocation47_spill] sm:$0xff] %v15722_v22  ;;  %v5112_v0 = vcombine.high %v12911_v39, %v12911_v39  ;;  %5060 = vst [vmem:[#allocation3 + $0x1e0] sm:$0x11] %v5044_v32  ;;  %v19854_v40 = vrot.slane %v15722_v22, 4  ;;  %v5471_v20 = vrot.slane %v5460_v37, 4 }
 0x32d   :  { %5353 = vst [vmem:[#allocation3 + $0x1d8] sm:$0x44] %v5336_v51  ;;  %3846 = vrot.lane.b32.xlu1 %v3826_v24, %s20328_s16  ;;  %4287 = vrot.lane.b32.xlu0 %v4267_v44, %s20329_s15  ;;  %v4120_v25 = vrot.slane %v15706_v47, %v13131_v62  ;;  %v15738_v32 = vrot.slane %v4377_v28, %v13131_v62  ;;  %vm20331_vm15 = vcmask 777216   ;;  %vm20332_vm4 = vcmask 760832   ;;  %s20334_s15 = smov 102   ;;  %s20335_s16 = smov 99  }
 0x32e   :  { %v5190_v52 = vsel %vm476_vm1, %v5177_v55, %v19854_v40  ;;  %v5482_v60 = vsel %vm476_vm1, %v20330_v7, %v5471_v20  ;;  %v4834_v39 = vcombine.low %v15708_v17, %v15708_v17  ;;  %v4561_v55 = vrot.slane %v4540_v8, %v13131_v62 }
 0x32f   :  { %v5191_v45 = vsel %vm20331_vm15, %v5166_v42, %v5190_v52  ;;  %v5483_v23 = vsel %vm20332_vm4, %v14649_v56, %v5482_v60  ;;  %v15745_v24 = vpop.permute.xlu1 %5314  ;;  %v5607_v44 = vpop.permute.xlu0 %5606  ;;  %v15749_v7 = vrot.slane %v5112_v0, %v13131_v62  ;;  %v15754_v56 = vld.sshfl [vmem:[#allocation2 + $0x8] sm:$0x7f pattern:$0x73625140]  ;;  %v20337_v0 = vrot.slane %v14671_v58, 4 }
 0x330   :  { %20333 = vst [vmem:[#allocation48_spill] sm:$0xff] %v15745_v24  ;;  %v12488_v51 = vld [vmem:[#allocation3 + $0x170] ss:$56 sps:$4 sm:$0xff]   ;;  %v12490_v40 = vld [vmem:[#allocation3 + $0x174] ss:$56 sps:$4 sm:$0xff]   ;;  %v19860_v28 = vrot.slane %v15745_v24, 4 }
 0x331   :  { %5207 = vst [vmem:[#allocation3 + $0x1e0] sm:$0x22] %v5191_v45  ;;  %5500 = vst [vmem:[#allocation3 + $0x1d8] sm:$0x88] %v5483_v23  ;;  %v5618_v22 = vrot.slane %v5607_v44, 4  ;;  %4140 = vrot.lane.b32.xlu1 %v4120_v25, %s20334_s15  ;;  %4581 = vrot.lane.b32.xlu0 %v4561_v55, %s20335_s16  ;;  %v4414_v25 = vrot.slane %v15738_v32, %v13131_v62  ;;  %v4855_v23 = vrot.slane %v4834_v39, %v13131_v62  ;;  %vm20338_vm15 = vcmask 769024  }
 0x332   :  { %v12913_v42 = vld [vmem:[#allocation2 + $0x8] sm:$0x7f]  ;;  %v5337_v8 = vsel %vm476_vm1, %v5324_v41, %v19860_v28  ;;  %8561 = vmatprep.subr.bf16.mxu0 %v12490_v40  ;;  %vm20339_vm4 = vcmask 752640   ;;  %v5128_v41 = vcombine.low %v15749_v7, %v15749_v7  ;;  %s20341_s16 = smov 100  }
 0x333   :  { %v4965_v52 = vcombine.high %v12913_v42, %v12913_v42  ;;  %v15756_v60 = vld.sshfl [vmem:[#allocation2 + $0x8] sm:$0x7f pattern:$0x73625140]  ;;  %v5629_v45 = vsel %vm476_vm1, %v20337_v0, %v5618_v22  ;;  %v5338_v55 = vsel %vm20338_vm15, %v15696_v36, %v5337_v8  ;;  %v15771_v17 = vpop.permute.xlu1 %5461  ;;  %v5754_v24 = vpop.permute.xlu0 %5753  ;;  %8562 = vmatpush1.bf16.msra.mxu0 %v12488_v51  ;;  %v20342_v51 = vrot.slane %v14690_v27, 4 }
 0x334   :  { %20336 = vst [vmem:[#allocation49_spill] sm:$0xff] %v15756_v60  ;;  %v5630_v42 = vsel %vm20339_vm4, %v14671_v58, %v5629_v45  ;;  %20340 = vst [vmem:[#allocation50_spill] sm:$0xff] %v15771_v17  ;;  %v12915_v0 = vld [vmem:[#allocation2 + $0x8] sm:$0x7f]  ;;  %v19861_v28 = vrot.slane %v15771_v17, 4  ;;  %v5765_v39 = vrot.slane %v5754_v24, 4  ;;  %v4708_v58 = vrot.slane %v15754_v56, %v13131_v62 }
 0x335   :  { %v5700_v40 = vcombine.high %v12915_v0, %v12915_v0  ;;  %5354 = vst [vmem:[#allocation3 + $0x1e0] sm:$0x44] %v5338_v55  ;;  %5647 = vst [vmem:[#allocation3 + $0x210] sm:$0x11] %v5630_v42  ;;  %4434 = vrot.lane.b32.xlu1 %v4414_v25, %s20341_s16  ;;  %4875 = vrot.lane.b32.xlu0 %v4855_v23, %s20208_s25  ;;  %v15787_v45 = vrot.slane %v4965_v52, %v13131_v62  ;;  %vm20344_vm15 = vcmask 760832   ;;  %vm20345_vm4 = vcmask 744448  }
 0x336   :  { %v5484_v36 = vsel %vm476_vm1, %v5471_v20, %v19861_v28  ;;  %v5776_v8 = vsel %vm476_vm1, %v20342_v51, %v5765_v39  ;;  %v5422_v55 = vcombine.low %v15756_v60, %v15756_v60  ;;  %v5149_v20 = vrot.slane %v5128_v41, %v13131_v62  ;;  %s20348_s25 = smov 98  }
 0x337   :  { %20343 = vst [vmem:[#allocation51_spill] sm:$0xff] %v15787_v45  ;;  %v5485_v25 = vsel %vm20344_vm15, %v5460_v37, %v5484_v36  ;;  %v5777_v23 = vsel %vm20345_vm4, %v14690_v27, %v5776_v8  ;;  %v15794_v42 = vpop.permute.xlu1 %5608  ;;  %v5901_v0 = vpop.permute.xlu0 %5900  ;;  %v15798_v28 = vrot.slane %v5700_v40, %v13131_v62  ;;  %v15803_v37 = vld.sshfl [vmem:[#allocation2 + $0x8] sm:$0x7f pattern:$0x73625140]  ;;  %v20351_v40 = vrot.slane %v14713_v19, 4 }
 0x338   :  { %20346 = vst [vmem:[#allocation52_spill] sm:$0xff] %v15794_v42  ;;  %5501 = vst [vmem:[#allocation3 + $0x1e0] sm:$0x88] %v5485_v25  ;;  %v19866_v52 = vrot.slane %v15794_v42, 4  ;;  %v5912_v51 = vrot.slane %v5901_v0, 4  ;;  %vm20352_vm15 = vcmask 752640  }
 0x339   :  { %20347 = vst [vmem:[#allocation53_spill] sm:$0xff] %v15798_v28  ;;  %5794 = vst [vmem:[#allocation3 + $0x210] sm:$0x22] %v5777_v23  ;;  %4728 = vrot.lane.b32.xlu1 %v4708_v58, %s20348_s25  ;;  %5169 = vrot.lane.b32.xlu0 %v5149_v20, %s20037_s20  ;;  %v12917_v27 = vld [vmem:[#allocation2 + $0x8] sm:$0x7f]  ;;  %v5002_v23 = vrot.slane %v15787_v45, %v13131_v62  ;;  %v5443_v58 = vrot.slane %v5422_v55, %v13131_v62  ;;  %vm20353_vm4 = vcmask 736256  }
 0x33a   :  { %20349 = vst [vmem:[#allocation54_spill] sm:$0xff] %v15803_v37  ;;  %v5553_v36 = vcombine.high %v12917_v27, %v12917_v27  ;;  %v15805_v8 = vld.sshfl [vmem:[#allocation2 + $0x8] sm:$0x7f pattern:$0x73625140]  ;;  %v5631_v41 = vsel %vm476_vm1, %v5618_v22, %v19866_v52  ;;  %v5923_v25 = vsel %vm476_vm1, %v20351_v40, %v5912_v51  ;;  %v5716_v22 = vcombine.low %v15798_v28, %v15798_v28  ;;  %s20355_s20 = smov 96  }
 0x33b   :  { %20350 = vst [vmem:[#allocation55_spill] sm:$0xff] %v15805_v8  ;;  %v5632_v20 = vsel %vm20352_vm15, %v5607_v44, %v5631_v41  ;;  %v5924_v27 = vsel %vm20353_vm4, %v14713_v19, %v5923_v25  ;;  %v15819_v17 = vpop.permute.xlu1 %5755  ;;  %v6048_v60 = vpop.permute.xlu0 %6047  ;;  %v12919_v52 = vld [vmem:[#allocation2 + $0x8] sm:$0x7f]  ;;  %v5296_v19 = vrot.slane %v15803_v37, %v13131_v62  ;;  %v20356_v55 = vld [vmem:[#allocation9_spill] sm:$0xff]  ;;  %vm20359_vm15 = vcmask 744448  }
 0x33c   :  { %20354 = vst [vmem:[#allocation56_spill] sm:$0xff] %v15819_v17  ;;  %v6288_v42 = vcombine.high %v12919_v52, %v12919_v52  ;;  %5648 = vst [vmem:[#allocation3 + $0x218] sm:$0x11] %v5632_v20  ;;  %v19873_v40 = vrot.slane %v15819_v17, 4  ;;  %v6059_v45 = vrot.slane %v6048_v60, 4  ;;  %v20357_v41 = vrot.slane %v20356_v55, 4 }
 0x33d   :  { %5941 = vst [vmem:[#allocation3 + $0x210] sm:$0x44] %v5924_v27  ;;  %5022 = vrot.lane.b32.xlu1 %v5002_v23, %s20355_s20  ;;  %5463 = vrot.lane.b32.xlu0 %v5443_v58, %s20040_s27  ;;  %v15835_v25 = vrot.slane %v5553_v36, %v13131_v62  ;;  %v6010_v20 = vcombine.low %v15805_v8, %v15805_v8  ;;  %vm20360_vm4 = vcmask 728064  }
 0x33e   :  { %v5778_v44 = vsel %vm476_vm1, %v5765_v39, %v19873_v40  ;;  %v6070_v52 = vsel %vm476_vm1, %v20357_v41, %v6059_v45  ;;  %v5737_v39 = vrot.slane %v5716_v22, %v13131_v62  ;;  %v15846_v40 = vrot.slane %v6288_v42, %v13131_v62  ;;  %v20365_v22 = vld [vmem:[#allocation10_spill] sm:$0xff] }
 0x33f   :  { %20358 = vst [vmem:[#allocation9_spill] sm:$0xff] %v15835_v25  ;;  %v5779_v23 = vsel %vm20359_vm15, %v5754_v24, %v5778_v44  ;;  %v6071_v58 = vsel %vm20360_vm4, %v20356_v55, %v6070_v52  ;;  %v15842_v27 = vpop.permute.xlu1 %5902  ;;  %v6195_v17 = vpop.permute.xlu0 %6194  ;;  %v15851_v24 = vld.sshfl [vmem:[#allocation2 + $0x8] sm:$0x7f pattern:$0x73625140]  ;;  %v5590_v8 = vrot.slane %v15835_v25, %v13131_v62  ;;  %vm20367_vm15 = vcmask 736256  }
 0x340   :  { %20361 = vst [vmem:[#allocation57_spill] sm:$0xff] %v15842_v27  ;;  %20362 = vst [vmem:[#allocation58_spill] sm:$0xff] %v15846_v40  ;;  %v19877_v36 = vrot.slane %v15842_v27, 4  ;;  %v6206_v41 = vrot.slane %v6195_v17, 4  ;;  %v12921_v44 = vld [vmem:[#allocation2 + $0x8] sm:$0x7f] }
 0x341   :  { %5795 = vst [vmem:[#allocation3 + $0x218] sm:$0x22] %v5779_v23  ;;  %6088 = vst [vmem:[#allocation3 + $0x210] sm:$0x88] %v6071_v58  ;;  %5316 = vrot.lane.b32.xlu1 %v5296_v19, %s20214_s22  ;;  %5757 = vrot.lane.b32.xlu0 %v5737_v39, %s20044_s28  ;;  %v6141_v55 = vcombine.high %v12921_v44, %v12921_v44  ;;  %v20366_v23 = vrot.slane %v20365_v22, 4  ;;  %v6031_v19 = vrot.slane %v6010_v20, %v13131_v62  ;;  %vm20368_vm4 = vcmask 719872  }
 0x342   :  { %20363 = vst [vmem:[#allocation59_spill] sm:$0xff] %v15851_v24  ;;  %v15853_v52 = vld.sshfl [vmem:[#allocation2 + $0x8] sm:$0x7f pattern:$0x73625140]  ;;  %v5925_v42 = vsel %vm476_vm1, %v5912_v51, %v19877_v36  ;;  %v6304_v51 = vcombine.low %v15846_v40, %v15846_v40 }
 0x343   :  { %20364 = vst [vmem:[#allocation60_spill] sm:$0xff] %v15853_v52  ;;  %v6217_v58 = vsel %vm476_vm1, %v20366_v23, %v6206_v41  ;;  %v5926_v39 = vsel %vm20367_vm15, %v5901_v0, %v5925_v42  ;;  %v15867_v28 = vpop.permute.xlu1 %6049  ;;  %v6342_v37 = vpop.permute.xlu0 %6341  ;;  %v12923_v36 = vld [vmem:[#allocation2 + $0x8] sm:$0x7f]  ;;  %v5884_v0 = vrot.slane %v15851_v24, %v13131_v62  ;;  %vm20372_vm15 = vcmask 728064  }
 0x344   :  { %v6218_v44 = vsel %vm20368_vm4, %v20365_v22, %v6217_v58  ;;  %20369 = vst [vmem:[#allocation10_spill] sm:$0xff] %v15867_v28  ;;  %v6876_v27 = vcombine.high %v12923_v36, %v12923_v36  ;;  %5942 = vst [vmem:[#allocation3 + $0x218] sm:$0x44] %v5926_v39  ;;  %v19883_v23 = vrot.slane %v15867_v28, 4  ;;  %v6353_v25 = vrot.slane %v6342_v37, 4  ;;  %v20370_v42 = vld [vmem:[#allocation11_spill] sm:$0xff] }
 0x345   :  { %6235 = vst [vmem:[#allocation3 + $0x248] sm:$0x11] %v6218_v44  ;;  %5610 = vrot.lane.b32.xlu1 %v5590_v8, %s20042_s24  ;;  %6051 = vrot.lane.b32.xlu0 %v6031_v19, %s20049_s23  ;;  %v20371_v22 = vrot.slane %v20370_v42, 4  ;;  %v15883_v58 = vrot.slane %v6141_v55, %v13131_v62  ;;  %v6598_v39 = vcombine.low %v15853_v52, %v15853_v52  ;;  %vm20373_vm4 = vcmask 711680  }
 0x346   :  { %v6072_v20 = vsel %vm476_vm1, %v6059_v45, %v19883_v23  ;;  %v6325_v45 = vrot.slane %v6304_v51, %v13131_v62  ;;  %v20376_v51 = vrot.slane %v14797_v34, 4 }
 0x347   :  { %v6364_v36 = vsel %vm476_vm1, %v20371_v22, %v6353_v25  ;;  %v6073_v8 = vsel %vm20372_vm15, %v6048_v60, %v6072_v20  ;;  %v15890_v44 = vpop.permute.xlu1 %6196  ;;  %v6489_v28 = vpop.permute.xlu0 %6488  ;;  %v15894_v22 = vrot.slane %v6876_v27, %v13131_v62  ;;  %v15899_v60 = vld.sshfl [vmem:[#allocation2 + $0x8] sm:$0x7f pattern:$0x73625140]  ;;  %vm20377_vm15 = vcmask 719872  }
 0x348   :  { %v6365_v19 = vsel %vm20373_vm4, %v20370_v42, %v6364_v36  ;;  %20374 = vst [vmem:[#allocation11_spill] sm:$0xff] %v15890_v44  ;;  %v12491_v23 = vld [vmem:[#allocation3 + $0x1d8] ss:$56 sps:$4 sm:$0xff]   ;;  %v12493_v40 = vld [vmem:[#allocation3 + $0x1dc] ss:$56 sps:$4 sm:$0xff]   ;;  %v19889_v55 = vrot.slane %v15890_v44, 4 }
 0x349   :  { %6089 = vst [vmem:[#allocation3 + $0x218] sm:$0x88] %v6073_v8  ;;  %6382 = vst [vmem:[#allocation3 + $0x248] sm:$0x22] %v6365_v19  ;;  %v6500_v52 = vrot.slane %v6489_v28, 4  ;;  %5904 = vrot.lane.b32.xlu1 %v5884_v0, %s20046_s29  ;;  %6345 = vrot.lane.b32.xlu0 %v6325_v45, %s20053_s12  ;;  %v6178_v0 = vrot.slane %v15883_v58, %v13131_v62  ;;  %v6619_v19 = vrot.slane %v6598_v39, %v13131_v62  ;;  %vm20378_vm4 = vcmask 703488  }
 0x34a   :  { %v12925_v20 = vld [vmem:[#allocation2 + $0x8] sm:$0x7f]  ;;  %v6219_v27 = vsel %vm476_vm1, %v6206_v41, %v19889_v55  ;;  %8510 = vmatprep.subr.bf16.mxu1 %v12493_v40  ;;  %v6892_v41 = vcombine.low %v15894_v22, %v15894_v22  ;;  %v7464_v40 = vcombine.high %v15302_v4, %v15302_v4 }
 0x34b   :  { %v6729_v42 = vcombine.high %v12925_v20, %v12925_v20  ;;  %v15901_v36 = vld.sshfl [vmem:[#allocation2 + $0x8] sm:$0x7f pattern:$0x73625140]  ;;  %v6511_v8 = vsel %vm476_vm1, %v20376_v51, %v6500_v52  ;;  %v6220_v45 = vsel %vm20377_vm15, %v6195_v17, %v6219_v27  ;;  %v15915_v24 = vpop.permute.xlu1 %6343  ;;  %v6636_v44 = vpop.permute.xlu0 %6635  ;;  %8511 = vmatpush1.bf16.msra.mxu1 %v12491_v23  ;;  %v20381_v23 = vld [vmem:[#allocation12_spill] sm:$0xff]  ;;  %vm20383_vm15 = vcmask 711680  }
 0x34c   :  { %20375 = vst [vmem:[#allocation61_spill] sm:$0xff] %v15901_v36  ;;  %v6512_v20 = vsel %vm20378_vm4, %v14797_v34, %v6511_v8  ;;  %20379 = vst [vmem:[#allocation62_spill] sm:$0xff] %v15915_v24  ;;  %v19890_v51 = vrot.slane %v15915_v24, 4  ;;  %v6647_v39 = vrot.slane %v6636_v44, 4  ;;  %v20382_v27 = vrot.slane %v20381_v23, 4 }
 0x34d   :  { %6236 = vst [vmem:[#allocation3 + $0x250] sm:$0x11] %v6220_v45  ;;  %6529 = vst [vmem:[#allocation3 + $0x248] sm:$0x44] %v6512_v20  ;;  %6198 = vrot.lane.b32.xlu1 %v6178_v0, %s20051_s21  ;;  %6639 = vrot.lane.b32.xlu0 %v6619_v19, %s20059_s8  ;;  %v15925_v34 = vrot.slane %v6729_v42, %v13131_v62  ;;  %v6472_v8 = vrot.slane %v15899_v60, %v13131_v62  ;;  %vm20384_vm4 = vcmask 695296  }
 0x34e   :  { %v6366_v17 = vsel %vm476_vm1, %v6353_v25, %v19890_v51  ;;  %v6658_v4 = vsel %vm476_vm1, %v20382_v27, %v6647_v39  ;;  %v7186_v45 = vcombine.low %v15901_v36, %v15901_v36  ;;  %v6913_v25 = vrot.slane %v6892_v41, %v13131_v62 }
 0x34f   :  { %20380 = vst [vmem:[#allocation63_spill] sm:$0xff] %v15925_v34  ;;  %v6367_v0 = vsel %vm20383_vm15, %v6342_v37, %v6366_v17  ;;  %v6659_v42 = vsel %vm20384_vm4, %v20381_v23, %v6658_v4  ;;  %v15940_v19 = vpop.permute.xlu1 %6490  ;;  %v6783_v20 = vpop.permute.xlu0 %6782  ;;  %v15944_v27 = vrot.slane %v7464_v40, %v13131_v62  ;;  %v6766_v37 = vrot.slane %v15925_v34, %v13131_v62  ;;  %v20386_v17 = vld [vmem:[#allocation13_spill] sm:$0xff] }
 0x350   :  { %20385 = vst [vmem:[#allocation12_spill] sm:$0xff] %v15940_v19  ;;  %v12495_v55 = vld [vmem:[#allocation3 + $0x1e0] ss:$56 sps:$4 sm:$0xff]   ;;  %v12497_v51 = vld [vmem:[#allocation3 + $0x1e4] ss:$56 sps:$4 sm:$0xff]   ;;  %v19895_v24 = vrot.slane %v15940_v19, 4  ;;  %v7207_v4 = vrot.slane %v7186_v45, %v13131_v62 }
 0x351   :  { %6383 = vst [vmem:[#allocation3 + $0x250] sm:$0x22] %v6367_v0  ;;  %6676 = vst [vmem:[#allocation3 + $0x248] sm:$0x88] %v6659_v42  ;;  %v6794_v36 = vrot.slane %v6783_v20, 4  ;;  %6492 = vrot.lane.b32.xlu1 %v6472_v8, %s20056_s26  ;;  %6933 = vrot.lane.b32.xlu0 %v6913_v25, %s20067_s6  ;;  %v20387_v23 = vrot.slane %v20386_v17, 4 }
 0x352   :  { %v6513_v41 = vsel %vm476_vm1, %v6500_v52, %v19895_v24  ;;  %8563 = vmatprep.subr.bf16.mxu0 %v12497_v51  ;;  %v15958_v0 = vld.sshfl [vmem:[#allocation2 + $0x8] sm:$0x7f pattern:$0x73625140]  ;;  %vm20388_vm15 = vcmask 703488   ;;  %vm20389_vm4 = vcmask 687104   ;;  %v7480_v52 = vcombine.low %v15944_v27, %v15944_v27 }
 0x353   :  { %v6805_v40 = vsel %vm476_vm1, %v20387_v23, %v6794_v36  ;;  %v6514_v8 = vsel %vm20388_vm15, %v6489_v28, %v6513_v41  ;;  %v15963_v25 = vpop.permute.xlu1 %6637  ;;  %v6930_v34 = vpop.permute.xlu0 %6929  ;;  %8564 = vmatpush1.bf16.msra.mxu0 %v12495_v55  ;;  %v12928_v24 = vld [vmem:[#allocation2 + $0x8] sm:$0x7f]  ;;  %vm20392_vm15 = vcmask 695296  }
 0x354   :  { %v6806_v42 = vsel %vm20389_vm4, %v20386_v17, %v6805_v40  ;;  %v7317_v19 = vcombine.high %v12928_v24, %v12928_v24  ;;  %6530 = vst [vmem:[#allocation3 + $0x250] sm:$0x44] %v6514_v8  ;;  %v19898_v51 = vrot.slane %v15963_v25, 4  ;;  %v6941_v45 = vrot.slane %v6930_v34, 4  ;;  %v20390_v41 = vld [vmem:[#allocation14_spill] sm:$0xff] }
 0x355   :  { %6823 = vst [vmem:[#allocation3 + $0x280] sm:$0x11] %v6806_v42  ;;  %6786 = vrot.lane.b32.xlu1 %v6766_v37, %s20063_s7  ;;  %7227 = vrot.lane.b32.xlu0 %v7207_v4, %s20248_s18  ;;  %v20391_v55 = vrot.slane %v20390_v41, 4  ;;  %v7060_v24 = vrot.slane %v15958_v0, %v13131_v62  ;;  %vm20393_vm4 = vcmask 678912   ;;  %v7501_v4 = vrot.slane %v7480_v52, %v13131_v62 }
 0x356   :  { %v6660_v28 = vsel %vm476_vm1, %v6647_v39, %v19898_v51  ;;  %v15985_v42 = vrot.slane %v7317_v19, %v13131_v62  ;;  %v451_v19 = vrot.slane %v15365_v1, %v13131_v62  ;;  %v16005_v51 = vld.sshfl [vmem:[#allocation2 + $0x8] sm:$0x7f pattern:$0x73625140] }
 0x357   :  { %v6952_v17 = vsel %vm476_vm1, %v20391_v55, %v6941_v45  ;;  %v6661_v23 = vsel %vm20392_vm15, %v6636_v44, %v6660_v28  ;;  %v15981_v8 = vpop.permute.xlu1 %6784  ;;  %v7077_v37 = vpop.permute.xlu0 %7076  ;;  %v20394_v28 = vld [vmem:[#allocation15_spill] sm:$0xff]  ;;  %vm20396_vm15 = vcmask 687104  }
 0x358   :  { %v6953_v40 = vsel %vm20393_vm4, %v20390_v41, %v6952_v17  ;;  %6677 = vst [vmem:[#allocation3 + $0x250] sm:$0x88] %v6661_v23  ;;  %v19899_v39 = vrot.slane %v15981_v8, 4  ;;  %v7088_v55 = vrot.slane %v7077_v37, 4  ;;  %v20395_v41 = vrot.slane %v20394_v28, 4 }
 0x359   :  { %6970 = vst [vmem:[#allocation3 + $0x280] sm:$0x22] %v6953_v40  ;;  %7080 = vrot.lane.b32.xlu1 %v7060_v24, %s20071_s5  ;;  %7521 = vrot.lane.b32.xlu0 %v7501_v4, %s20257_s2  ;;  %vm20397_vm4 = vcmask 670720   ;;  %v7354_v4 = vrot.slane %v15985_v42, %v13131_v62 }
 0x35a   :  { %v6807_v44 = vsel %vm476_vm1, %v6794_v36, %v19899_v39  ;;  %v7099_v52 = vsel %vm476_vm1, %v20395_v41, %v7088_v55 }
 0x35b   :  { %v6808_v17 = vsel %vm20396_vm15, %v6783_v20, %v6807_v44  ;;  %v7100_v23 = vsel %vm20397_vm4, %v20394_v28, %v7099_v52  ;;  %v16001_v40 = vpop.permute.xlu1 %6931  ;;  %v7224_v24 = vpop.permute.xlu0 %7223  ;;  %v20398_v20 = vld [vmem:[#allocation16_spill] sm:$0xff]  ;;  %v746_v52 = vrot.slane %v15370_v35, %v13131_v62  ;;  %vm20400_vm15 = vcmask 678912  }
 0x35c   :  { %6824 = vst [vmem:[#allocation3 + $0x288] sm:$0x11] %v6808_v17  ;;  %7117 = vst [vmem:[#allocation3 + $0x280] sm:$0x44] %v7100_v23  ;;  %v19900_v36 = vrot.slane %v16001_v40, 4  ;;  %v7235_v41 = vrot.slane %v7224_v24, 4 }
 0x35d   :  { %7374 = vrot.lane.b32.xlu1 %v7354_v4, %s20079_s3  ;;  %466 = vrot.lane.b32.xlu0 %v451_v19, %s20008_s30  ;;  %v20399_v44 = vrot.slane %v20398_v20, 4  ;;  %vm20401_vm4 = vcmask 662528   ;;  %v7648_v19 = vrot.slane %v16005_v51, %v13131_v62  ;;  %s20403_s30 = smov 78   ;;  %s20404_s3 = smov 125  }
 0x35e   :  { %v6954_v1 = vsel %vm476_vm1, %v6941_v45, %v19900_v36  ;;  %v571_v45 = vcombine.high %v15413_v21, %v15413_v21  ;;  %v865_v21 = vcombine.high %v15435_v31, %v15435_v31 }
 0x35f   :  { %v7246_v28 = vsel %vm476_vm1, %v20399_v44, %v7235_v41  ;;  %v6955_v17 = vsel %vm20400_vm15, %v6930_v34, %v6954_v1  ;;  %v16021_v39 = vpop.permute.xlu1 %7078  ;;  %v7371_v4 = vpop.permute.xlu0 %7370  ;;  %v20405_v34 = vld [vmem:[#allocation17_spill] sm:$0xff]  ;;  %vm20407_vm15 = vcmask 670720  }
 0x360   :  { %v7247_v23 = vsel %vm20401_vm4, %v20398_v20, %v7246_v28  ;;  %20402 = vst [vmem:[#allocation13_spill] sm:$0xff] %v16021_v39  ;;  %6971 = vst [vmem:[#allocation3 + $0x288] sm:$0x22] %v6955_v17  ;;  %v19903_v44 = vrot.slane %v16021_v39, 4  ;;  %v7382_v36 = vrot.slane %v7371_v4, 4  ;;  %v20406_v1 = vrot.slane %v20405_v34, 4 }
 0x361   :  { %7264 = vst [vmem:[#allocation3 + $0x280] sm:$0x88] %v7247_v23  ;;  %7668 = vrot.lane.b32.xlu1 %v7648_v19, %s20403_s30  ;;  %761 = vrot.lane.b32.xlu0 %v746_v52, %s20404_s3  ;;  %vm20408_vm4 = vcmask 654336   ;;  %v599_v52 = vrot.slane %v571_v45, %v13131_v62  ;;  %s20409_s3 = smov 123  }
 0x362   :  { %v7101_v35 = vsel %vm476_vm1, %v7088_v55, %v19903_v44  ;;  %v7393_v20 = vsel %vm476_vm1, %v20406_v1, %v7382_v36  ;;  %v1040_v55 = vrot.slane %v15407_v13, %v13131_v62 }
 0x363   :  { %v7102_v28 = vsel %vm20407_vm15, %v7077_v37, %v7101_v35  ;;  %v7394_v17 = vsel %vm20408_vm4, %v20405_v34, %v7393_v20  ;;  %v16041_v23 = vpop.permute.xlu1 %7225  ;;  %v7518_v19 = vpop.permute.xlu0 %7517  ;;  %v20410_v37 = vld [vmem:[#allocation18_spill] sm:$0xff]  ;;  %v893_v34 = vrot.slane %v865_v21, %v13131_v62  ;;  %vm20412_vm15 = vcmask 662528  }
 0x364   :  { %7118 = vst [vmem:[#allocation3 + $0x288] sm:$0x44] %v7102_v28  ;;  %7411 = vst [vmem:[#allocation3 + $0x2b8] sm:$0x11] %v7394_v17  ;;  %v19941_v1 = vrot.slane %v16041_v23, 4  ;;  %v7529_v44 = vrot.slane %v7518_v19, 4 }
 0x365   :  { %614 = vrot.lane.b32.xlu1 %v599_v52, %s20275_s4  ;;  %1055 = vrot.lane.b32.xlu0 %v1040_v55, %s20409_s3  ;;  %v20411_v35 = vrot.slane %v20410_v37, 4  ;;  %v1334_v52 = vrot.slane %v15422_v3, %v13131_v62  ;;  %s20413_s3 = smov 121  }
 0x366   :  { %v7248_v31 = vsel %vm476_vm1, %v7235_v41, %v19941_v1  ;;  %v1159_v41 = vcombine.high %v15461_v46, %v15461_v46  ;;  %v1628_v46 = vrot.slane %v15454_v38, %v13131_v62 }
 0x367   :  { %v7540_v45 = vsel %vm476_vm1, %v20411_v35, %v7529_v44  ;;  %v7249_v13 = vsel %vm20412_vm15, %v7224_v24, %v7248_v31  ;;  %v16059_v28 = vpop.permute.xlu1 %7372  ;;  %v7665_v17 = vpop.permute.xlu0 %7664  ;;  %v20414_v31 = vld [vmem:[#allocation19_spill] sm:$0xff]  ;;  %vm20417_vm15 = vcmask 1039360  }
 0x368   :  { %v7541_v20 = vsel %vm7534_vm13, %v20410_v37, %v7540_v45  ;;  %v12501_v55 = vld [vmem:[#allocation3 + $0x248] ss:$56 sps:$4 sm:$0xff]   ;;  %v12503_v39 = vld [vmem:[#allocation3 + $0x24c] ss:$56 sps:$4 sm:$0xff]   ;;  %7265 = vst [vmem:[#allocation3 + $0x288] sm:$0x88] %v7249_v13 }
 0x369   :  { %7558 = vst [vmem:[#allocation3 + $0x2b8] sm:$0x22] %v7541_v20  ;;  %v19938_v21 = vrot.slane %v16059_v28, 4  ;;  %v7676_v35 = vrot.slane %v7665_v17, 4  ;;  %908 = vrot.lane.b32.xlu1 %v893_v34, %s20281_s1  ;;  %1349 = vrot.lane.b32.xlu0 %v1334_v52, %s20413_s3  ;;  %v20415_v3 = vrot.slane %v20414_v31, 4  ;;  %v1453_v52 = vcombine.high %v15491_v43, %v15491_v43  ;;  %s20428_s3 = smov 111  }
 0x36a   :  { %8512 = vmatprep.subr.bf16.mxu1 %v12503_v39 }
 0x36b   :  { %v7395_v24 = vsel %vm476_vm1, %v7382_v36, %v19938_v21  ;;  %v7687_v37 = vsel %vm476_vm1, %v20415_v3, %v7676_v35  ;;  %v16079_v34 = vpop.permute.xlu1 %7519  ;;  %v16081_v20 = vpop.permute.xlu0 %464  ;;  %8513 = vmatpush1.bf16.msra.mxu1 %v12501_v55  ;;  %v1187_v36 = vrot.slane %v1159_v41, %v13131_v62  ;;  %v20416_v55 = vrot.slane %v14979_v49, 4 }
 0x36c   :  { %v7396_v45 = vsel %vm20408_vm4, %v7371_v4, %v7395_v24  ;;  %v7688_v13 = vsel %vm7681_vm11, %v20414_v31, %v7687_v37  ;;  %v19939_v39 = vrot.slane %v16079_v34, 4  ;;  %v19936_v38 = vrot.slane %v16081_v20, 4 }
 0x36d   :  { %7412 = vst [vmem:[#allocation3 + $0x2c0] sm:$0x11] %v7396_v45  ;;  %7705 = vst [vmem:[#allocation3 + $0x2b8] sm:$0x44] %v7688_v13  ;;  %1202 = vrot.lane.b32.xlu1 %v1187_v36, %s20286_s9  ;;  %1643 = vrot.lane.b32.xlu0 %v1628_v46, %s20012_s11  ;;  %v1922_v41 = vrot.slane %v15470_v53, %v13131_v62  ;;  %v1747_v13 = vcombine.high %v15510_v57, %v15510_v57  ;;  %s20418_s11 = smov 117   ;;  %v20419_v36 = vrot.slane %v15037_v15, 4 }
 0x36e   :  { %v7542_v4 = vsel %vm476_vm1, %v7529_v44, %v19939_v39  ;;  %v488_v43 = vsel %vm476_vm1, %v20416_v55, %v19936_v38  ;;  %v1481_v44 = vrot.slane %v1453_v52, %v13131_v62  ;;  %v2216_v52 = vrot.slane %v15504_v14, %v13131_v62  ;;  %s20427_s9 = sld [smem:[#allocation64_spill]]  ;;  %v20509_v39 = vld [vmem:[#allocation59_spill] sm:$0xff] }
 0x36f   :  { %v7543_v24 = vsel %vm7534_vm13, %v7518_v19, %v7542_v4  ;;  %v489_v31 = vsel %vm20417_vm15, %v14979_v49, %v488_v43  ;;  %v16103_v3 = vpop.permute.xlu1 %7666  ;;  %v16105_v37 = vpop.permute.xlu0 %759  ;;  %v12504_v46 = vld [vmem:[#allocation3 + $0x250] ss:$56 sps:$4 sm:$0xff]   ;;  %v12506_v45 = vld [vmem:[#allocation3 + $0x254] ss:$56 sps:$4 sm:$0xff]   ;;  %vm20431_vm4 = vcmask 973824   ;;  %vm20435_vm15 = vcmask 957440  }
 0x370   :  { %7559 = vst [vmem:[#allocation3 + $0x2c0] sm:$0x22] %v7543_v24  ;;  %504 = vst [vmem:[#allocation3 + $0x28] sm:$0x22] %v489_v31  ;;  %v19934_v53 = vrot.slane %v16103_v3, 4  ;;  %v19932_v19 = vrot.slane %v16105_v37, 4  ;;  %8565 = vmatprep.subr.bf16.mxu0 %v12506_v45  ;;  %v2041_v31 = vcombine.high %v15542_v30, %v15542_v30 }
 0x371   :  { %1496 = vrot.lane.b32.xlu1 %v1481_v44, %s20011_s0  ;;  %1937 = vrot.lane.b32.xlu0 %v1922_v41, %s20418_s11  ;;  %s20420_s11 = smov 115   ;;  %v20422_v30 = vrot.slane %v15091_v9, 4  ;;  %s20432_s0 = smov 109  }
 0x372   :  { %v7689_v49 = vsel %vm476_vm1, %v7676_v35, %v19934_v53  ;;  %v782_v57 = vsel %vm476_vm1, %v20419_v36, %v19932_v19  ;;  %8566 = vmatpush1.bf16.msra.mxu0 %v12504_v46  ;;  %v1775_v35 = vrot.slane %v1747_v13, %v13131_v62  ;;  %v2510_v36 = vrot.slane %v15512_v59, %v13131_v62 }
 0x373   :  { %v7690_v4 = vsel %vm7681_vm11, %v7665_v17, %v7689_v49  ;;  %v783_v55 = vsel %vm772_vm12, %v15037_v15, %v782_v57  ;;  %v16127_v43 = vpop.permute.xlu1 %612  ;;  %v16129_v41 = vpop.permute.xlu0 %1053  ;;  %v20421_v15 = vrot.slane %v15007_v33, 4 }
 0x374   :  { %v7800_v24 = vld [vmem:[#allocation3 + $0x2b8] sm:$0x77]  ;;  %7706 = vst [vmem:[#allocation3 + $0x2c0] sm:$0x44] %v7690_v4  ;;  %798 = vst [vmem:[#allocation3 + $0x28] sm:$0x88] %v783_v55 }
 0x375   :  { %v19930_v14 = vrot.slane %v16127_v43, 4  ;;  %v19926_v17 = vrot.slane %v16129_v41, 4  ;;  %v11930_v44 = vcombine.high %v7800_v24, %v7800_v24  ;;  %v11929_v45 = vcombine.low %v7800_v24, %v7800_v24  ;;  %1790 = vrot.lane.b32.xlu1 %v1775_v35, %s20293_s10  ;;  %2231 = vrot.lane.b32.xlu0 %v2216_v52, %s20420_s11  ;;  %s20423_s11 = smov 116   ;;  %s20424_s10 = smov 113  }
 0x376   :  { %v2069_v35 = vrot.slane %v2041_v31, %v13131_v62  ;;  %v2335_v24 = vcombine.high %v15558_v63, %v15558_v63  ;;  %v20426_v63 = vrot.slane %v15132_v54, 4 }
 0x377   :  { %v635_v46 = vsel %vm476_vm1, %v20421_v15, %v19930_v14  ;;  %v1076_v13 = vsel %vm476_vm1, %v20422_v30, %v19926_v17  ;;  %11946 = vmatprep.subr.msk.bf16.mxu1 %vm8300_vm3, %v11930_v44  ;;  %v8320_v49 = vsel %vm8300_vm3, %v11929_v45, 0  ;;  %v16156_v4 = vpop.permute.xlu1 %906  ;;  %v16158_v55 = vpop.permute.xlu0 %1347  ;;  %v16180_v45 = vld [vmem:[%s20427_s9] sm:$0xff]   ;;  %v2804_v15 = vrot.slane %v15553_v48, %v13131_v62 }
 0x378   :  { %v636_v57 = vsel %vm625_vm0, %v15007_v33, %v635_v46  ;;  %v1077_v52 = vsel %vm19992_vm2, %v15091_v9, %v1076_v13  ;;  %8515 = vmatpush1.bf16.msra.mxu1 %v8320_v49  ;;  %v19924_v59 = vrot.slane %v16156_v4, 4  ;;  %v19923_v44 = vrot.slane %v16158_v55, 4 }
 0x379   :  { %651 = vst [vmem:[#allocation3 + $0x28] sm:$0x44] %v636_v57  ;;  %1092 = vst [vmem:[#allocation3 + $0x60] sm:$0x22] %v1077_v52  ;;  %2084 = vrot.lane.b32.xlu1 %v2069_v35, %s20423_s11  ;;  %2525 = vrot.lane.b32.xlu0 %v2510_v36, %s20424_s10  ;;  %v20425_v33 = vrot.slane %v15063_v16, 4  ;;  %v2363_v36 = vrot.slane %v2335_v24, %v13131_v62  ;;  %v2629_v52 = vcombine.high %v15591_v2, %v15591_v2  ;;  %v16197_v35 = vld [vmem:[#allocation4 + $0x20] sm:$0xff] }
 0x37a   :  { %v1370_v31 = vsel %vm476_vm1, %v20426_v63, %v19923_v44  ;;  %v20429_v2 = vrot.slane %v15112_v29, 4  ;;  %s20461_s10 = smov 104  }
 0x37b   :  { %v929_v9 = vsel %vm476_vm1, %v20425_v33, %v19924_v59  ;;  %11947 = vmatmul.mubr.msk.bf16.vlgmr.msra.gmra.mrb[8].mxu1 %vm4153_vm9, %v16180_v45  ;;  %v1371_v30 = vsel %vm1360_vm14, %v15132_v54, %v1370_v31  ;;  %v16190_v13 = vpop.permute.xlu1 %1200  ;;  %v16192_v49 = vpop.permute.xlu0 %1641  ;;  %v7801_v57 = vld [vmem:[#allocation3 + $0x2c0] sm:$0x77] }
 0x37c   :  { %v930_v46 = vsel %vm19993_vm5, %v15063_v16, %v929_v9  ;;  %8544 = vmatprep.mubr.bf16.mxu1 %v16197_v35  ;;  %1386 = vst [vmem:[#allocation3 + $0x60] sm:$0x88] %v1371_v30  ;;  %v19917_v16 = vrot.slane %v16190_v13, 4  ;;  %v19914_v54 = vrot.slane %v16192_v49, 4  ;;  %v11932_v48 = vcombine.high %v7801_v57, %v7801_v57 }
 0x37d   :  { %945 = vst [vmem:[#allocation3 + $0x60] sm:$0x11] %v930_v46  ;;  %v11931_v33 = vcombine.low %v7801_v57, %v7801_v57  ;;  %2378 = vrot.lane.b32.xlu1 %v2363_v36, %s20301_s17  ;;  %2819 = vrot.lane.b32.xlu0 %v2804_v15, %s20428_s3  ;;  %v20430_v9 = vrot.slane %v15174_v50, 4  ;;  %v3098_v46 = vrot.slane %v15560_v11, %v13131_v62  ;;  %s20462_s3 = smov 101  }
 0x37e   :  { %v1223_v24 = vsel %vm476_vm1, %v20429_v2, %v19917_v16  ;;  %11949 = vmatprep.subr.msk.bf16.mxu0 %vm8300_vm3, %v11932_v48  ;;  %v2657_v2 = vrot.slane %v2629_v52, %v13131_v62  ;;  %v2923_v48 = vcombine.high %v15607_v10, %v15607_v10  ;;  %v20434_v10 = vrot.slane %v15216_v61, 4 }
 0x37f   :  { %v1664_v63 = vsel %vm476_vm1, %v20430_v9, %v19914_v54  ;;  %v8326_v31 = vsel %vm8300_vm3, %v11931_v33, 0  ;;  %v1224_v15 = vsel %vm1213_vm10, %v15112_v29, %v1223_v24  ;;  %v16222_v36 = vpop.permute.xlu1 %1494  ;;  %v16224_v57 = vpop.permute.xlu0 %1935  ;;  %v3392_v29 = vrot.slane %v15602_v12, %v13131_v62  ;;  %v16248_v9 = vld [vmem:[%s20427_s9 + $0x8] sm:$0xff]  }
 0x380   :  { %v1665_v30 = vsel %vm20431_vm4, %v15174_v50, %v1664_v63  ;;  %8568 = vmatpush1.bf16.msra.mxu0 %v8326_v31  ;;  %1239 = vst [vmem:[#allocation3 + $0x60] sm:$0x44] %v1224_v15  ;;  %v19912_v11 = vrot.slane %v16222_v36, 4  ;;  %v19910_v33 = vrot.slane %v16224_v57, 4  ;;  %v20433_v50 = vrot.slane %v15156_v6, 4 }
 0x381   :  { %1680 = vst [vmem:[#allocation3 + $0x98] sm:$0x22] %v1665_v30  ;;  %2672 = vrot.lane.b32.xlu1 %v2657_v2, %s20307_s13  ;;  %3113 = vrot.lane.b32.xlu0 %v3098_v46, %s20432_s0  ;;  %v3217_v12 = vcombine.high %v15639_v26, %v15639_v26  ;;  %v2951_v30 = vrot.slane %v2923_v48, %v13131_v62  ;;  %s20436_s13 = smov 107   ;;  %vm20442_vm4 = vcmask 941056   ;;  %s20453_s0 = smov 103  }
 0x382   :  { %v1517_v52 = vsel %vm476_vm1, %v20433_v50, %v19912_v11  ;;  %v1958_v24 = vsel %vm476_vm1, %v20434_v10, %v19910_v33  ;;  %v20439_v50 = vld [vmem:[#allocation22_spill] sm:$0xff] }
 0x383   :  { %11948 = vmatmul.mubr.msk.bf16.gmra.mrb[12].mxu1 %vm4153_vm9, %v16248_v9  ;;  %11950 = vmatmul.mubr.msk.bf16.vlgmr.msra.gmra.mrb[16].mxu0 %vm4153_vm9, %v16180_v45  ;;  %v1518_v63 = vsel %vm1507_vm7, %v15156_v6, %v1517_v52  ;;  %v1959_v31 = vsel %vm20435_vm15, %v15216_v61, %v1958_v24  ;;  %v16260_v46 = vpop.permute.xlu1 %1788  ;;  %v16262_v15 = vpop.permute.xlu0 %2229  ;;  %v20437_v6 = vld [vmem:[#allocation20_spill] sm:$0xff]  ;;  %v20440_v52 = vrot.slane %v20439_v50, 4  ;;  %v20441_v24 = vld [vmem:[#allocation38_spill] sm:$0xff]  ;;  %vm20450_vm15 = vcmask 949248  }
 0x384   :  { %8597 = vmatprep.mubr.bf16.mxu0 %v16197_v35  ;;  %8640 = vmatprep.mubr.bf16.mxu1 %v16197_v35  ;;  %1533 = vst [vmem:[#allocation3 + $0x98] sm:$0x11] %v1518_v63  ;;  %1974 = vst [vmem:[#allocation3 + $0x98] sm:$0x88] %v1959_v31  ;;  %v19911_v26 = vrot.slane %v16260_v46, 4  ;;  %v19913_v2 = vrot.slane %v16262_v15, 4  ;;  %v3686_v63 = vrot.slane %v20441_v24, %v13131_v62 }
 0x385   :  { %2966 = vrot.lane.b32.xlu1 %v2951_v30, %s20312_s19  ;;  %3407 = vrot.lane.b32.xlu0 %v3392_v29, %s20436_s13  ;;  %v20438_v61 = vrot.slane %v20437_v6, 4  ;;  %s20443_s19 = smov 105   ;;  %s20469_s13 = smov 99  }
 0x386   :  { %v2252_v10 = vsel %vm476_vm1, %v20440_v52, %v19913_v2  ;;  %v3511_v52 = vcombine.high %v15655_v5, %v15655_v5  ;;  %v20447_v5 = vld [vmem:[#allocation24_spill] sm:$0xff] }
 0x387   :  { %v1811_v48 = vsel %vm476_vm1, %v20438_v61, %v19911_v26  ;;  %v2253_v29 = vsel %vm20442_vm4, %v20439_v50, %v2252_v10  ;;  %v16287_v30 = vpop.permute.xlu1 %2082  ;;  %v16289_v33 = vpop.permute.xlu0 %2523  ;;  %v3245_v61 = vrot.slane %v3217_v12, %v13131_v62  ;;  %v12511_v26 = vld [vmem:[#allocation3 + $0x28] ss:$56 sps:$4 sm:$0xff]   ;;  %v12513_v11 = vld [vmem:[#allocation3 + $0x2c] ss:$56 sps:$4 sm:$0xff]   ;;  %vm20451_vm4 = vcmask 924672  }
 0x388   :  { %v1812_v31 = vsel %vm19991_vm8, %v20437_v6, %v1811_v48  ;;  %2268 = vst [vmem:[#allocation3 + $0xd0] sm:$0x22] %v2253_v29  ;;  %v19915_v24 = vrot.slane %v16287_v30, 4  ;;  %v19916_v6 = vrot.slane %v16289_v33, 4  ;;  %v20444_v48 = vld [vmem:[#allocation41_spill] sm:$0xff]  ;;  %8608 = vmatprep.subr.bf16.mxu1 %v12513_v11 }
 0x389   :  { %1827 = vst [vmem:[#allocation3 + $0x98] sm:$0x44] %v1812_v31  ;;  %3260 = vrot.lane.b32.xlu1 %v3245_v61, %s20317_s14  ;;  %3701 = vrot.lane.b32.xlu0 %v3686_v63, %s20443_s19  ;;  %v3980_v50 = vrot.slane %v20444_v48, %v13131_v62  ;;  %v20445_v12 = vld [vmem:[#allocation21_spill] sm:$0xff]  ;;  %v20448_v31 = vrot.slane %v20447_v5, 4  ;;  %v20449_v63 = vld [vmem:[#allocation44_spill] sm:$0xff]  ;;  %s20452_s14 = smov 106  }
 0x38a   :  { %v20446_v10 = vrot.slane %v20445_v12, 4  ;;  %v3805_v61 = vcombine.high %v20449_v63, %v20449_v63  ;;  %8609 = vmatpush1.bf16.msra.mxu1 %v12511_v26 }
 0x38b   :  { %v2546_v29 = vsel %vm476_vm1, %v20448_v31, %v19916_v6  ;;  %11951 = vmatmul.mubr.msk.bf16.gmra.mrb[20].mxu0 %vm4153_vm9, %v16248_v9  ;;  %v3539_v31 = vrot.slane %v3511_v52, %v13131_v62  ;;  %v20456_v52 = vld [vmem:[#allocation26_spill] sm:$0xff] }
 0x38c   :  { %v2105_v2 = vsel %vm476_vm1, %v20446_v10, %v19915_v24  ;;  %v2547_v54 = vsel %vm20451_vm4, %v20447_v5, %v2546_v29  ;;  %v16318_v10 = vpop.permute.xlu1 %2376  ;;  %v16320_v24 = vpop.permute.xlu0 %2817  ;;  %8693 = vmatprep.mubr.bf16.mxu0 %v16197_v35  ;;  %v20457_v5 = vrot.slane %v20456_v52, 4  ;;  %v20458_v29 = vld [vmem:[#allocation42_spill] sm:$0xff]  ;;  %vm20460_vm4 = vcmask 908288  }
 0x38d   :  { %v2106_v48 = vsel %vm20450_vm15, %v20445_v12, %v2105_v2  ;;  %2562 = vst [vmem:[#allocation3 + $0xd0] sm:$0x88] %v2547_v54  ;;  %v19918_v11 = vrot.slane %v16318_v10, 4  ;;  %v19919_v63 = vrot.slane %v16320_v24, 4  ;;  %3554 = vrot.lane.b32.xlu1 %v3539_v31, %s20452_s14  ;;  %3995 = vrot.lane.b32.xlu0 %v3980_v50, %s20453_s0  ;;  %v20454_v2 = vld [vmem:[#allocation23_spill] sm:$0xff]  ;;  %vm20459_vm15 = vcmask 932864  }
 0x38e   :  { %2121 = vst [vmem:[#allocation3 + $0xd0] sm:$0x11] %v2106_v48  ;;  %v20455_v12 = vrot.slane %v20454_v2, 4  ;;  %v4274_v48 = vrot.slane %v20458_v29, %v13131_v62  ;;  %s20759_s0 = smov 118  }
 0x38f   :  { %v2840_v54 = vsel %vm476_vm1, %v20457_v5, %v19919_v63 }
 0x390   :  { %v2399_v26 = vsel %vm476_vm1, %v20455_v12, %v19918_v11  ;;  %v2841_v50 = vsel %vm20460_vm4, %v20456_v52, %v2840_v54  ;;  %v16344_v6 = vpop.permute.xlu1 %2670  ;;  %v16346_v16 = vpop.permute.xlu0 %3111  ;;  %v3833_v12 = vrot.slane %v3805_v61, %v13131_v62  ;;  %v4099_v11 = vcombine.high %v15706_v47, %v15706_v47  ;;  %v20465_v61 = vld [vmem:[#allocation28_spill] sm:$0xff] }
 0x391   :  { %v2400_v31 = vsel %vm20459_vm15, %v20454_v2, %v2399_v26  ;;  %2856 = vst [vmem:[#allocation3 + $0x108] sm:$0x22] %v2841_v50  ;;  %v19920_v5 = vrot.slane %v16344_v6, 4  ;;  %v19921_v29 = vrot.slane %v16346_v16, 4  ;;  %4289 = vrot.lane.b32.xlu0 %v4274_v48, %s20462_s3  ;;  %v20463_v2 = vld [vmem:[#allocation25_spill] sm:$0xff]  ;;  %v20466_v47 = vrot.slane %v20465_v61, 4 }
 0x392   :  { %2415 = vst [vmem:[#allocation3 + $0xd0] sm:$0x44] %v2400_v31  ;;  %3848 = vrot.lane.b32.xlu1 %v3833_v12, %s20461_s10  ;;  %v20464_v26 = vrot.slane %v20463_v2, 4  ;;  %v4568_v31 = vrot.slane %v15700_v18, %v13131_v62  ;;  %vm20467_vm15 = vcmask 916480   ;;  %vm20468_vm4 = vcmask 891904   ;;  %s20755_s10 = smov 119  }
 0x393   :  { %v3134_v54 = vsel %vm476_vm1, %v20466_v47, %v19921_v29  ;;  %s20763_s3 = sld [smem:[#allocation67_spill]] }
 0x394   :  { %v2693_v52 = vsel %vm476_vm1, %v20464_v26, %v19920_v5  ;;  %v3135_v48 = vsel %vm20468_vm4, %v20465_v61, %v3134_v54  ;;  %v16371_v12 = vpop.permute.xlu1 %2964  ;;  %v16373_v63 = vpop.permute.xlu0 %3405  ;;  %v4127_v26 = vrot.slane %v4099_v11, %v13131_v62  ;;  %v4393_v5 = vcombine.high %v15738_v32, %v15738_v32  ;;  %v20472_v11 = vld [vmem:[#allocation30_spill] sm:$0xff] }
 0x395   :  { %v2694_v50 = vsel %vm20467_vm15, %v20463_v2, %v2693_v52  ;;  %3150 = vst [vmem:[#allocation3 + $0x108] sm:$0x88] %v3135_v48  ;;  %v19922_v47 = vrot.slane %v16371_v12, 4  ;;  %v19925_v18 = vrot.slane %v16373_v63, 4  ;;  %4583 = vrot.lane.b32.xlu0 %v4568_v31, %s20469_s13  ;;  %v20470_v2 = vld [vmem:[#allocation27_spill] sm:$0xff]  ;;  %v20473_v32 = vrot.slane %v20472_v11, 4 }
 0x396   :  { %2709 = vst [vmem:[#allocation3 + $0x108] sm:$0x11] %v2694_v50  ;;  %4142 = vrot.lane.b32.xlu1 %v4127_v26, %s20334_s15  ;;  %v20471_v52 = vrot.slane %v20470_v2, 4  ;;  %v4687_v50 = vcombine.high %v15754_v56, %v15754_v56  ;;  %vm20474_vm15 = vcmask 900096   ;;  %vm20475_vm4 = vcmask 875520   ;;  %s20477_s15 = smov 97  }
 0x397   :  { %v3428_v54 = vsel %vm476_vm1, %v20473_v32, %v19925_v18 }
 0x398   :  { %v2987_v61 = vsel %vm476_vm1, %v20471_v52, %v19922_v47  ;;  %v3429_v31 = vsel %vm20475_vm4, %v20472_v11, %v3428_v54  ;;  %v16398_v26 = vpop.permute.xlu1 %3258  ;;  %v16400_v29 = vpop.permute.xlu0 %3699  ;;  %v4421_v52 = vrot.slane %v4393_v5, %v13131_v62  ;;  %v20476_v47 = vld [vmem:[#allocation46_spill] sm:$0xff]  ;;  %vm20483_vm4 = vcmask 859136  }
 0x399   :  { %v2988_v48 = vsel %vm20474_vm15, %v20470_v2, %v2987_v61  ;;  %v4862_v44 = vrot.slane %v20476_v47, %v13131_v62  ;;  %v12514_v59 = vld [vmem:[#allocation3 + $0x98] ss:$56 sps:$4 sm:$0xff]   ;;  %v12516_v32 = vld [vmem:[#allocation3 + $0x9c] ss:$56 sps:$4 sm:$0xff]   ;;  %3444 = vst [vmem:[#allocation3 + $0x140] sm:$0x22] %v3429_v31  ;;  %v4715_v31 = vrot.slane %v4687_v50, %v13131_v62 }
 0x39a   :  { %3003 = vst [vmem:[#allocation3 + $0x108] sm:$0x44] %v2988_v48  ;;  %v19927_v56 = vrot.slane %v16398_v26, 4  ;;  %v19928_v2 = vrot.slane %v16400_v29, 4  ;;  %4436 = vrot.lane.b32.xlu1 %v4421_v52, %s20341_s16  ;;  %v20478_v61 = vld [vmem:[#allocation29_spill] sm:$0xff]  ;;  %v20480_v47 = vld [vmem:[#allocation32_spill] sm:$0xff]  ;;  %8610 = vmatprep.subr.bf16.mxu1 %v12516_v32 }
 0x39b   :  { %4877 = vrot.lane.b32.xlu0 %v4862_v44, %s20477_s15  ;;  %v20479_v11 = vrot.slane %v20478_v61, 4  ;;  %v20481_v54 = vrot.slane %v20480_v47, 4  ;;  %vm20482_vm15 = vcmask 883712   ;;  %8611 = vmatpush1.bf16.msra.mxu1 %v12514_v59  ;;  %s20485_s16 = smov 95  }
 0x39c   :  { %v16424_v18 = vpop.permute.xlu1 %3552  ;;  %v16426_v17 = vpop.permute.xlu0 %3993 }
 0x39d   :  { %v3281_v5 = vsel %vm476_vm1, %v20479_v11, %v19927_v56  ;;  %v3722_v48 = vsel %vm476_vm1, %v20481_v54, %v19928_v2  ;;  %v5156_v11 = vrot.slane %v15749_v7, %v13131_v62  ;;  %v20484_v56 = vld [vmem:[#allocation51_spill] sm:$0xff]  ;;  %v19929_v50 = vrot.slane %v16424_v18, 4  ;;  %v20488_v7 = vld [vmem:[#allocation34_spill] sm:$0xff] }
 0x39e   :  { %v3282_v52 = vsel %vm20482_vm15, %v20478_v61, %v3281_v5  ;;  %v3723_v44 = vsel %vm20483_vm4, %v20480_v47, %v3722_v48  ;;  %v4981_v54 = vcombine.high %v20484_v56, %v20484_v56  ;;  %v19931_v32 = vrot.slane %v16426_v17, 4  ;;  %4730 = vrot.lane.b32.xlu1 %v4715_v31, %s20348_s25  ;;  %v20486_v61 = vld [vmem:[#allocation31_spill] sm:$0xff]  ;;  %v20490_v48 = vld [vmem:[#allocation49_spill] sm:$0xff] }
 0x39f   :  { %3297 = vst [vmem:[#allocation3 + $0x140] sm:$0x11] %v3282_v52  ;;  %3738 = vst [vmem:[#allocation3 + $0x140] sm:$0x88] %v3723_v44  ;;  %5171 = vrot.lane.b32.xlu0 %v5156_v11, %s20485_s16  ;;  %v20487_v59 = vrot.slane %v20486_v61, 4  ;;  %v20489_v56 = vrot.slane %v20488_v7, 4  ;;  %v5450_v52 = vrot.slane %v20490_v48, %v13131_v62 }
 0x3a0   :  { %vm20491_vm15 = vcmask 867328   ;;  %vm20492_vm4 = vcmask 842752   ;;  %v16452_v11 = vpop.permute.xlu1 %3846  ;;  %v16454_v2 = vpop.permute.xlu0 %4287  ;;  %s20749_s16 = smov 127  }
 0x3a1   :  { %v3575_v5 = vsel %vm476_vm1, %v20487_v59, %v19929_v50  ;;  %v4016_v47 = vsel %vm476_vm1, %v20489_v56, %v19931_v32  ;;  %v5009_v59 = vrot.slane %v4981_v54, %v13131_v62  ;;  %v20493_v50 = vld [vmem:[#allocation54_spill] sm:$0xff]  ;;  %v19933_v56 = vrot.slane %v16452_v11, 4  ;;  %v20496_v54 = vld [vmem:[#allocation36_spill] sm:$0xff] }
 0x3a2   :  { %v3576_v31 = vsel %vm20491_vm15, %v20486_v61, %v3575_v5  ;;  %v4017_v44 = vsel %vm20492_vm4, %v20488_v7, %v4016_v47  ;;  %v5275_v14 = vcombine.high %v20493_v50, %v20493_v50  ;;  %v19935_v48 = vrot.slane %v16454_v2, 4  ;;  %v20494_v61 = vld [vmem:[#allocation33_spill] sm:$0xff] }
 0x3a3   :  { %3591 = vst [vmem:[#allocation3 + $0x140] sm:$0x44] %v3576_v31  ;;  %4032 = vst [vmem:[#allocation3 + $0x178] sm:$0x22] %v4017_v44  ;;  %5024 = vrot.lane.b32.xlu1 %v5009_v59, %s20355_s20  ;;  %5465 = vrot.lane.b32.xlu0 %v5450_v52, %s20040_s27  ;;  %v20495_v5 = vrot.slane %v20494_v61, 4  ;;  %v20497_v50 = vrot.slane %v20496_v54, 4 }
 0x3a4   :  { %v20498_v31 = vld [vmem:[#allocation53_spill] sm:$0xff]  ;;  %vm20499_vm15 = vcmask 850944   ;;  %vm20500_vm4 = vcmask 826368   ;;  %v16479_v32 = vpop.permute.xlu1 %4140  ;;  %v16481_v19 = vpop.permute.xlu0 %4581  ;;  %s20750_s20 = smov 125   ;;  %s20752_s27 = smov 122  }
 0x3a5   :  { %v3869_v7 = vsel %vm476_vm1, %v20495_v5, %v19933_v56  ;;  %v4310_v47 = vsel %vm476_vm1, %v20497_v50, %v19935_v48  ;;  %v5744_v44 = vrot.slane %v20498_v31, %v13131_v62  ;;  %v5303_v5 = vrot.slane %v5275_v14, %v13131_v62  ;;  %v20501_v56 = vld [vmem:[#allocation9_spill] sm:$0xff]  ;;  %v20504_v14 = vld [vmem:[#allocation39_spill] sm:$0xff] }
 0x3a6   :  { %v3870_v59 = vsel %vm20499_vm15, %v20494_v61, %v3869_v7  ;;  %v4311_v52 = vsel %vm20500_vm4, %v20496_v54, %v4310_v47  ;;  %v5569_v53 = vcombine.high %v20501_v56, %v20501_v56  ;;  %v19937_v50 = vrot.slane %v16479_v32, 4  ;;  %v20502_v61 = vld [vmem:[#allocation35_spill] sm:$0xff] }
 0x3a7   :  { %3885 = vst [vmem:[#allocation3 + $0x178] sm:$0x11] %v3870_v59  ;;  %4326 = vst [vmem:[#allocation3 + $0x178] sm:$0x88] %v4311_v52  ;;  %v19940_v31 = vrot.slane %v16481_v19, 4  ;;  %5318 = vrot.lane.b32.xlu1 %v5303_v5, %s20214_s22  ;;  %5759 = vrot.lane.b32.xlu0 %v5744_v44, %s20044_s28  ;;  %v20503_v7 = vrot.slane %v20502_v61, 4 }
 0x3a8   :  { %v20505_v56 = vrot.slane %v20504_v14, 4  ;;  %v20506_v59 = vld [vmem:[#allocation55_spill] sm:$0xff]  ;;  %vm20507_vm15 = vcmask 809984   ;;  %v16506_v48 = vpop.permute.xlu1 %4434  ;;  %v16508_v38 = vpop.permute.xlu0 %4875  ;;  %vm20515_vm4 = vcmask 818176   ;;  %s20753_s22 = smov 121  }
 0x3a9   :  { %v4163_v54 = vsel %vm476_vm1, %v20503_v7, %v19937_v50  ;;  %v6038_v52 = vrot.slane %v20506_v59, %v13131_v62  ;;  %20508 = vst [vmem:[#allocation14_spill] sm:$0xff] %v16506_v48  ;;  %v5597_v7 = vrot.slane %v5569_v53, %v13131_v62  ;;  %v19948_v59 = vrot.slane %v16506_v48, 4 }
 0x3aa   :  { %v4604_v47 = vsel %vm476_vm1, %v20505_v56, %v19940_v31  ;;  %v4164_v5 = vsel %vm4153_vm9, %v20502_v61, %v4163_v54  ;;  %v12517_v50 = vld [vmem:[#allocation3 + $0x108] ss:$56 sps:$4 sm:$0xff]   ;;  %v12519_v21 = vld [vmem:[#allocation3 + $0x10c] ss:$56 sps:$4 sm:$0xff]   ;;  %v5863_v56 = vcombine.high %v20509_v39, %v20509_v39  ;;  %v19944_v61 = vrot.slane %v16508_v38, 4 }
 0x3ab   :  { %v4605_v44 = vsel %vm20507_vm15, %v20504_v14, %v4604_v47  ;;  %4179 = vst [vmem:[#allocation3 + $0x178] sm:$0x44] %v4164_v5  ;;  %5612 = vrot.lane.b32.xlu1 %v5597_v7, %s20042_s24  ;;  %6053 = vrot.lane.b32.xlu0 %v6038_v52, %s20049_s23  ;;  %v20510_v54 = vld [vmem:[#allocation37_spill] sm:$0xff]  ;;  %v20512_v47 = vld [vmem:[#allocation43_spill] sm:$0xff]  ;;  %vm20516_vm15 = vcmask 793600  }
 0x3ac   :  { %4620 = vst [vmem:[#allocation3 + $0x1b0] sm:$0x22] %v4605_v44  ;;  %v20511_v14 = vrot.slane %v20510_v54, 4  ;;  %v20513_v39 = vrot.slane %v20512_v47, 4  ;;  %8612 = vmatprep.subr.bf16.mxu1 %v12519_v21  ;;  %v20514_v44 = vld [vmem:[#allocation58_spill] sm:$0xff]  ;;  %v16533_v1 = vpop.permute.xlu1 %4728  ;;  %v16535_v48 = vpop.permute.xlu0 %5169 }
 0x3ad   :  { %v6332_v31 = vrot.slane %v20514_v44, %v13131_v62  ;;  %8613 = vmatpush1.bf16.msra.mxu1 %v12517_v50  ;;  %v19945_v21 = vrot.slane %v16533_v1, 4  ;;  %v19946_v44 = vrot.slane %v16535_v48, 4 }
 0x3ae   :  { %v4457_v53 = vsel %vm476_vm1, %v20511_v14, %v19948_v59  ;;  %v4898_v5 = vsel %vm476_vm1, %v20513_v39, %v19944_v61  ;;  %v5891_v14 = vrot.slane %v5863_v56, %v13131_v62  ;;  %v6157_v39 = vcombine.high %v15883_v58, %v15883_v58  ;;  %v20519_v56 = vld [vmem:[#allocation47_spill] sm:$0xff] }
 0x3af   :  { %v4458_v7 = vsel %vm20515_vm4, %v20510_v54, %v4457_v53  ;;  %v4899_v52 = vsel %vm20516_vm15, %v20512_v47, %v4898_v5  ;;  %6347 = vrot.lane.b32.xlu0 %v6332_v31, %s20053_s12  ;;  %v20517_v54 = vld [vmem:[#allocation40_spill] sm:$0xff]  ;;  %v20520_v58 = vrot.slane %v20519_v56, 4  ;;  %vm20522_vm4 = vcmask 777216   ;;  %s20604_s12 = sld [smem:[#allocation66_spill]] }
 0x3b0   :  { %4473 = vst [vmem:[#allocation3 + $0x1b0] sm:$0x11] %v4458_v7  ;;  %4914 = vst [vmem:[#allocation3 + $0x1b0] sm:$0x88] %v4899_v52  ;;  %5906 = vrot.lane.b32.xlu1 %v5891_v14, %s20046_s29  ;;  %v20518_v53 = vrot.slane %v20517_v54, 4  ;;  %v20521_v5 = vld [vmem:[#allocation60_spill] sm:$0xff]  ;;  %v16560_v14 = vpop.permute.xlu1 %5022  ;;  %v16562_v61 = vpop.permute.xlu0 %5463 }
 0x3b1   :  { %v5192_v47 = vsel %vm476_vm1, %v20520_v58, %v19946_v44  ;;  %v6626_v7 = vrot.slane %v20521_v5, %v13131_v62  ;;  %v19947_v58 = vrot.slane %v16560_v14, 4  ;;  %v19949_v5 = vrot.slane %v16562_v61, 4 }
 0x3b2   :  { %v4751_v50 = vsel %vm476_vm1, %v20518_v53, %v19945_v21  ;;  %v5193_v31 = vsel %vm20522_vm4, %v20519_v56, %v5192_v47  ;;  %v6185_v53 = vrot.slane %v6157_v39, %v13131_v62  ;;  %v6451_v21 = vcombine.high %v15899_v60, %v15899_v60  ;;  %v20525_v39 = vld [vmem:[#allocation50_spill] sm:$0xff] }
 0x3b3   :  { %v4752_v52 = vsel %vm4741_vm6, %v20517_v54, %v4751_v50  ;;  %5208 = vst [vmem:[#allocation3 + $0x1e8] sm:$0x22] %v5193_v31  ;;  %6641 = vrot.lane.b32.xlu0 %v6626_v7, %s20059_s8  ;;  %v20523_v54 = vld [vmem:[#allocation45_spill] sm:$0xff]  ;;  %v20526_v60 = vrot.slane %v20525_v39, 4  ;;  %vm20527_vm15 = vcmask 785408   ;;  %vm20528_vm4 = vcmask 760832  }
 0x3b4   :  { %4767 = vst [vmem:[#allocation3 + $0x1b0] sm:$0x44] %v4752_v52  ;;  %6200 = vrot.lane.b32.xlu1 %v6185_v53, %s20051_s21  ;;  %v20524_v50 = vrot.slane %v20523_v54, 4  ;;  %v6920_v52 = vrot.slane %v15894_v22, %v13131_v62  ;;  %v16587_v53 = vpop.permute.xlu1 %5316  ;;  %v16589_v44 = vpop.permute.xlu0 %5757  ;;  %s20559_s8 = smov 80  }
 0x3b5   :  { %v5486_v47 = vsel %vm476_vm1, %v20526_v60, %v19949_v5  ;;  %20529 = vst [vmem:[#allocation15_spill] sm:$0xff] %v16587_v53  ;;  %20530 = vst [vmem:[#allocation16_spill] sm:$0xff] %v16589_v44  ;;  %v19952_v60 = vrot.slane %v16587_v53, 4  ;;  %v19955_v22 = vrot.slane %v16589_v44, 4 }
 0x3b6   :  { %v5045_v56 = vsel %vm476_vm1, %v20524_v50, %v19947_v58  ;;  %v5487_v7 = vsel %vm20528_vm4, %v20525_v39, %v5486_v47  ;;  %v6479_v50 = vrot.slane %v6451_v21, %v13131_v62  ;;  %v20531_v58 = vld [vmem:[#allocation63_spill] sm:$0xff]  ;;  %v20534_v21 = vld [vmem:[#allocation56_spill] sm:$0xff]  ;;  %vm20538_vm4 = vcmask 744448  }
 0x3b7   :  { %v5046_v31 = vsel %vm20527_vm15, %v20523_v54, %v5045_v56  ;;  %v6745_v59 = vcombine.high %v20531_v58, %v20531_v58  ;;  %5502 = vst [vmem:[#allocation3 + $0x1e8] sm:$0x88] %v5487_v7  ;;  %6935 = vrot.lane.b32.xlu0 %v6920_v52, %s20067_s6  ;;  %v20532_v54 = vld [vmem:[#allocation48_spill] sm:$0xff]  ;;  %v20535_v58 = vrot.slane %v20534_v21, 4  ;;  %vm20537_vm15 = vcmask 769024  }
 0x3b8   :  { %5061 = vst [vmem:[#allocation3 + $0x1e8] sm:$0x11] %v5046_v31  ;;  %6494 = vrot.lane.b32.xlu1 %v6479_v50, %s20056_s26  ;;  %v20533_v56 = vrot.slane %v20532_v54, 4  ;;  %v20536_v31 = vld [vmem:[#allocation61_spill] sm:$0xff]  ;;  %v16614_v5 = vpop.permute.xlu1 %5610  ;;  %v16616_v53 = vpop.permute.xlu0 %6051  ;;  %s20751_s26 = smov 123  }
 0x3b9   :  { %v5780_v47 = vsel %vm476_vm1, %v20535_v58, %v19955_v22  ;;  %v7214_v7 = vrot.slane %v20536_v31, %v13131_v62  ;;  %20539 = vst [vmem:[#allocation17_spill] sm:$0xff] %v16614_v5  ;;  %v7039_v58 = vcombine.high %v15958_v0, %v15958_v0  ;;  %v19959_v31 = vrot.slane %v16614_v5, 4 }
 0x3ba   :  { %v5339_v39 = vsel %vm476_vm1, %v20533_v56, %v19952_v60  ;;  %v5781_v52 = vsel %vm20538_vm4, %v20534_v21, %v5780_v47  ;;  %v6773_v56 = vrot.slane %v6745_v59, %v13131_v62  ;;  %v20542_v47 = vld [vmem:[#allocation10_spill] sm:$0xff]  ;;  %vm20545_vm4 = vcmask 728064  }
 0x3bb   :  { %v5340_v50 = vsel %vm20537_vm15, %v20532_v54, %v5339_v39  ;;  %v12520_v60 = vld [vmem:[#allocation3 + $0x178] ss:$56 sps:$4 sm:$0xff]   ;;  %v12522_v44 = vld [vmem:[#allocation3 + $0x17c] ss:$56 sps:$4 sm:$0xff]   ;;  %5796 = vst [vmem:[#allocation3 + $0x220] sm:$0x22] %v5781_v52  ;;  %7229 = vrot.lane.b32.xlu0 %v7214_v7, %s20248_s18  ;;  %v7508_v52 = vrot.slane %v15944_v27, %v13131_v62 }
 0x3bc   :  { %5355 = vst [vmem:[#allocation3 + $0x1e8] sm:$0x44] %v5340_v50  ;;  %v19958_v54 = vrot.slane %v16616_v53, 4  ;;  %6788 = vrot.lane.b32.xlu1 %v6773_v56, %s20063_s7  ;;  %v20540_v39 = vld [vmem:[#allocation52_spill] sm:$0xff]  ;;  %v20543_v0 = vrot.slane %v20542_v47, 4  ;;  %8614 = vmatprep.subr.bf16.mxu1 %v12522_v44  ;;  %vm20544_vm15 = vcmask 752640   ;;  %v16641_v22 = vpop.permute.xlu1 %5904  ;;  %v16643_v5 = vpop.permute.xlu0 %6345 }
 0x3bd   :  { %v20541_v21 = vrot.slane %v20540_v39, 4  ;;  %8615 = vmatpush1.bf16.msra.mxu1 %v12520_v60  ;;  %v19960_v27 = vrot.slane %v16641_v22, 4  ;;  %v19961_v44 = vrot.slane %v16643_v5, 4  ;;  %v16656_v60 = vpop.f32.mrb[0].mxu1  ;;  %s20552_s7 = sld [smem:[#allocation65_spill]]  ;;  %s20754_s18 = smov 120  }
 0x3be   :  { %v6074_v50 = vsel %vm476_vm1, %v20543_v0, %v19958_v54  ;;  %v7333_v0 = vcombine.high %v15985_v42, %v15985_v42  ;;  %20547 = vst [vmem:[#allocation19_spill] sm:$0xff] %v16656_v60  ;;  %v16673_v54 = vpop.f32.mrb[1].mxu1 }
 0x3bf   :  { %v5633_v59 = vsel %vm476_vm1, %v20541_v21, %v19959_v31  ;;  %v6075_v7 = vsel %vm20545_vm4, %v20542_v47, %v6074_v50  ;;  %v7067_v21 = vrot.slane %v7039_v58, %v13131_v62  ;;  %7523 = vrot.lane.b32.xlu0 %v7508_v52, %s20257_s2  ;;  %v20548_v58 = vld [vmem:[#allocation57_spill] sm:$0xff]  ;;  %v20550_v50 = vld [vmem:[#allocation62_spill] sm:$0xff]  ;;  %20554 = vst [vmem:[#allocation22_spill] sm:$0xff] %v16673_v54  ;;  %vm20556_vm4 = vcmask 711680  }
 0x3c0   :  { %v5634_v56 = vsel %vm20544_vm15, %v20540_v39, %v5633_v59  ;;  %6090 = vst [vmem:[#allocation3 + $0x220] sm:$0x88] %v6075_v7  ;;  %v16650_v39 = vpop.f32.mrb[0].mxu0  ;;  %v20549_v42 = vrot.slane %v20548_v58, 4  ;;  %vm20555_vm15 = vcmask 736256   ;;  %v16681_v60 = vpop.permute.xlu0 %6639 }
 0x3c1   :  { %5649 = vst [vmem:[#allocation3 + $0x220] sm:$0x11] %v5634_v56  ;;  %20546 = vst [vmem:[#allocation18_spill] sm:$0xff] %v16650_v39  ;;  %7082 = vrot.lane.b32.xlu1 %v7067_v21, %s20071_s5  ;;  %v16654_v59 = vpop.f32.mrb[1].mxu0  ;;  %v20551_v56 = vrot.slane %v20550_v50, 4  ;;  %v19963_v54 = vrot.slane %v16681_v60, 4 }
 0x3c2   :  { %v5927_v47 = vsel %vm476_vm1, %v20549_v42, %v19960_v27  ;;  %v16671_v21 = vpop.f32.mrb[2].mxu0  ;;  %v16679_v27 = vpop.permute.xlu1 %6198 }
 0x3c3   :  { %v6368_v7 = vsel %vm476_vm1, %v20551_v56, %v19961_v44  ;;  %v7804_v52 = vld [vmem:[%s20552_s7] sm:$0xff]  ;;  %20553 = vst [vmem:[#allocation20_spill] sm:$0xff] %v16671_v21  ;;  %v5928_v31 = vsel %vm20555_vm15, %v20548_v58, %v5927_v47  ;;  %v7361_v56 = vrot.slane %v7333_v0, %v13131_v62  ;;  %v7627_v44 = vcombine.high %v16005_v51, %v16005_v51  ;;  %v16688_v39 = vpop.f32.mrb[3].mxu0  ;;  %v16690_v58 = vpop.f32.mrb[2].mxu1  ;;  %v20562_v51 = vld [vmem:[#allocation11_spill] sm:$0xff] }
 0x3c4   :  { %v6369_v42 = vsel %vm20556_vm4, %v20550_v50, %v6368_v7  ;;  %5943 = vst [vmem:[#allocation3 + $0x220] sm:$0x44] %v5928_v31  ;;  %v19962_v21 = vrot.slane %v16679_v27, 4  ;;  %20557 = vst [vmem:[#allocation38_spill] sm:$0xff] %v16688_v39  ;;  %7810 = vperm.xlu0 %12301, %v7804_v52   ;;  %v16693_v47 = vpop.f32.mrb[4].mxu0  ;;  %v16695_v50 = vpop.f32.mrb[3].mxu1 }
 0x3c5   :  { %6384 = vst [vmem:[#allocation3 + $0x258] sm:$0x22] %v6369_v42  ;;  %20558 = vst [vmem:[#allocation41_spill] sm:$0xff] %v16690_v58  ;;  %7376 = vrot.lane.b32.xlu1 %v7361_v56, %s20559_s8  ;;  %v20563_v31 = vrot.slane %v20562_v51, 4  ;;  %v20564_v7 = vrot.slane %v15963_v25, 4  ;;  %v7807_v52 = vld [vmem:[%s20552_s7 + $0x18] sm:$0xff] }
 0x3c6   :  { %20560 = vst [vmem:[#allocation21_spill] sm:$0xff] %v16693_v47  ;;  %20561 = vst [vmem:[#allocation24_spill] sm:$0xff] %v16695_v50  ;;  %v16710_v56 = vpop.f32.mrb[5].mxu0  ;;  %v16712_v58 = vpop.f32.mrb[4].mxu1  ;;  %vm20567_vm15 = vcmask 719872   ;;  %vm20568_vm4 = vcmask 695296  }
 0x3c7   :  { %v6221_v0 = vsel %vm476_vm1, %v20563_v31, %v19962_v21  ;;  %v6662_v42 = vsel %vm476_vm1, %v20564_v7, %v19963_v54  ;;  %20565 = vst [vmem:[#allocation44_spill] sm:$0xff] %v16710_v56  ;;  %20566 = vst [vmem:[#allocation23_spill] sm:$0xff] %v16712_v58  ;;  %v16718_v21 = vpop.permute.xlu1 %6492  ;;  %v16720_v50 = vpop.permute.xlu0 %6933  ;;  %v7655_v7 = vrot.slane %v7627_v44, %v13131_v62  ;;  %v20573_v62 = vld [vmem:[#allocation12_spill] sm:$0xff] }
 0x3c8   :  { %v6222_v47 = vsel %vm20567_vm15, %v20562_v51, %v6221_v0  ;;  %v6663_v31 = vsel %vm20568_vm4, %v15963_v25, %v6662_v42  ;;  %v19964_v54 = vrot.slane %v16718_v21, 4  ;;  %v19965_v56 = vrot.slane %v16720_v50, 4  ;;  %v16725_v39 = vpop.f32.mrb[6].mxu0  ;;  %v16727_v58 = vpop.f32.mrb[5].mxu1  ;;  %7825 = vperm.xlu0 %12301, %v7807_v52   ;;  %v7805_v52 = vld [vmem:[%s20552_s7 + $0x8] sm:$0xff] }
 0x3c9   :  { %6237 = vst [vmem:[#allocation3 + $0x258] sm:$0x11] %v6222_v47  ;;  %6678 = vst [vmem:[#allocation3 + $0x258] sm:$0x88] %v6663_v31  ;;  %7670 = vrot.lane.b32.xlu1 %v7655_v7, %s20403_s30  ;;  %v16730_v25 = vpop.f32.mrb[7].mxu0  ;;  %v16732_v51 = vpop.f32.mrb[6].mxu1 }
 0x3ca   :  { %20569 = vst [vmem:[#allocation26_spill] sm:$0xff] %v16725_v39  ;;  %20570 = vst [vmem:[#allocation42_spill] sm:$0xff] %v16727_v58  ;;  %v20574_v44 = vrot.slane %v20573_v62, 4  ;;  %v20575_v0 = vrot.slane %v16001_v40, 4  ;;  %v16747_v31 = vpop.f32.mrb[8].mxu0  ;;  %v16749_v7 = vpop.f32.mrb[7].mxu1 }
 0x3cb   :  { %20571 = vst [vmem:[#allocation25_spill] sm:$0xff] %v16730_v25  ;;  %20572 = vst [vmem:[#allocation28_spill] sm:$0xff] %v16732_v51  ;;  %vm20578_vm15 = vcmask 703488   ;;  %vm20579_vm4 = vcmask 678912   ;;  %v16757_v58 = vpop.permute.xlu0 %7227  ;;  %v12523_v39 = vld [vmem:[#allocation3 + $0x1e8] ss:$56 sps:$4 sm:$0xff]  }
 0x3cc   :  { %v6515_v47 = vsel %vm476_vm1, %v20574_v44, %v19964_v54  ;;  %v6956_v42 = vsel %vm476_vm1, %v20575_v0, %v19965_v56  ;;  %20576 = vst [vmem:[#allocation27_spill] sm:$0xff] %v16747_v31  ;;  %20577 = vst [vmem:[#allocation30_spill] sm:$0xff] %v16749_v7  ;;  %v16755_v54 = vpop.permute.xlu1 %6786  ;;  %v12525_v0 = vld [vmem:[#allocation3 + $0x1ec] ss:$56 sps:$4 sm:$0xff]   ;;  %v19967_v31 = vrot.slane %v16757_v58, 4  ;;  %v16761_v25 = vpop.f32.mrb[9].mxu0 }
 0x3cd   :  { %v6516_v51 = vsel %vm20578_vm15, %v20573_v62, %v6515_v47  ;;  %v6957_v44 = vsel %vm20579_vm4, %v16001_v40, %v6956_v42  ;;  %v19966_v56 = vrot.slane %v16755_v54, 4  ;;  %20580 = vst [vmem:[#allocation46_spill] sm:$0xff] %v16761_v25  ;;  %7815 = vperm.xlu1 %12302, %v7805_v52   ;;  %8616 = vmatprep.subr.bf16.mxu1 %v12525_v0  ;;  %v16763_v62 = vpop.f32.mrb[10].mxu0  ;;  %v20582_v40 = vrot.slane %v15981_v8, 4  ;;  %v7806_v52 = vld [vmem:[%s20552_s7 + $0x10] sm:$0xff] }
 0x3ce   :  { %6531 = vst [vmem:[#allocation3 + $0x258] sm:$0x44] %v6516_v51  ;;  %6972 = vst [vmem:[#allocation3 + $0x290] sm:$0x22] %v6957_v44  ;;  %v20583_v51 = vrot.slane %v16041_v23, 4  ;;  %8617 = vmatpush1.bf16.msra.mxu1 %v12523_v39  ;;  %v16778_v44 = vpop.f32.mrb[11].mxu0 }
 0x3cf   :  { %20581 = vst [vmem:[#allocation29_spill] sm:$0xff] %v16763_v62  ;;  %v6809_v47 = vsel %vm476_vm1, %v20582_v40, %v19966_v56  ;;  %20584 = vst [vmem:[#allocation32_spill] sm:$0xff] %v16778_v44  ;;  %vm20585_vm15 = vcmask 687104   ;;  %vm20586_vm4 = vcmask 662528   ;;  %v16786_v56 = vpop.permute.xlu0 %7521 }
 0x3d0   :  { %v7250_v42 = vsel %vm476_vm1, %v20583_v51, %v19967_v31  ;;  %v6810_v0 = vsel %vm20585_vm15, %v15981_v8, %v6809_v47  ;;  %v16784_v40 = vpop.permute.xlu1 %7080  ;;  %v19969_v51 = vrot.slane %v16786_v56, 4  ;;  %v16790_v31 = vpop.f32.mrb[12].mxu0  ;;  %v20589_v8 = vld [vmem:[#allocation13_spill] sm:$0xff]  ;;  %vm20593_vm15 = vcmask 670720  }
 0x3d1   :  { %v7251_v62 = vsel %vm20586_vm4, %v16041_v23, %v7250_v42  ;;  %6825 = vst [vmem:[#allocation3 + $0x290] sm:$0x11] %v6810_v0  ;;  %v19968_v39 = vrot.slane %v16784_v40, 4  ;;  %20587 = vst [vmem:[#allocation51_spill] sm:$0xff] %v16790_v31  ;;  %7820 = vperm.xlu1 %12302, %v7806_v52   ;;  %v16792_v44 = vpop.f32.mrb[13].mxu0  ;;  %v20590_v47 = vrot.slane %v20589_v8, 4 }
 0x3d2   :  { %7266 = vst [vmem:[#allocation3 + $0x290] sm:$0x88] %v7251_v62  ;;  %20588 = vst [vmem:[#allocation31_spill] sm:$0xff] %v16792_v44  ;;  %v20591_v42 = vrot.slane %v16079_v34, 4  ;;  %v16804_v0 = vpop.f32.mrb[14].mxu0  ;;  %vm20596_vm4 = vcmask 654336  }
 0x3d3   :  { %v7103_v23 = vsel %vm476_vm1, %v20590_v47, %v19968_v39  ;;  %20592 = vst [vmem:[#allocation34_spill] sm:$0xff] %v16804_v0  ;;  %v467_v25 = vpop.permute.xlu0 %466  ;;  %v20595_v0 = vrot.slane %v16081_v20, 4 }
 0x3d4   :  { %v7544_v62 = vsel %vm476_vm1, %v20591_v42, %v19969_v51  ;;  %v7104_v31 = vsel %vm20593_vm15, %v20589_v8, %v7103_v23  ;;  %v16810_v44 = vpop.permute.xlu1 %7374  ;;  %v475_v39 = vrot.slane %v467_v25, 4  ;;  %v20594_v42 = vrot.slane %v16059_v28, 4 }
 0x3d5   :  { %v7545_v52 = vsel %vm7534_vm13, %v16079_v34, %v7544_v62  ;;  %7119 = vst [vmem:[#allocation3 + $0x290] sm:$0x44] %v7104_v31  ;;  %v19970_v47 = vrot.slane %v16810_v44, 4  ;;  %vm20597_vm15 = vcmask 1039360  }
 0x3d6   :  { %7560 = vst [vmem:[#allocation3 + $0x2c8] sm:$0x22] %v7545_v52  ;;  %v490_v8 = vsel %vm476_vm1, %v20595_v0, %v475_v39  ;;  %v20599_v0 = vrot.slane %v16105_v37, 4 }
 0x3d7   :  { %v7397_v51 = vsel %vm476_vm1, %v20594_v42, %v19970_v47  ;;  %v491_v31 = vsel %vm20597_vm15, %v16081_v20, %v490_v8  ;;  %v762_v62 = vpop.permute.xlu0 %761  ;;  %v20598_v42 = vrot.slane %v16103_v3, 4  ;;  %vm20610_vm15 = vcmask 957440  }
 0x3d8   :  { %v7398_v34 = vsel %vm20596_vm4, %v16059_v28, %v7397_v51  ;;  %v16825_v23 = vpop.permute.xlu1 %7668  ;;  %505 = vst [vmem:[#allocation3 + $0x30] sm:$0x22] %v491_v31  ;;  %v770_v52 = vrot.slane %v762_v62, 4  ;;  %v16836_v51 = vpop.f32.mrb[15].mxu0  ;;  %vm20607_vm4 = vcmask 973824  }
 0x3d9   :  { %7413 = vst [vmem:[#allocation3 + $0x2c8] sm:$0x11] %v7398_v34  ;;  %v19971_v25 = vrot.slane %v16825_v23, 4 }
 0x3da   :  { %v784_v28 = vsel %vm476_vm1, %v20599_v0, %v770_v52  ;;  %v20601_v0 = vrot.slane %v16129_v41, 4 }
 0x3db   :  { %v7691_v39 = vsel %vm476_vm1, %v20598_v42, %v19971_v25  ;;  %v785_v8 = vsel %vm772_vm12, %v16105_v37, %v784_v28  ;;  %v1056_v31 = vpop.permute.xlu0 %1055  ;;  %v20600_v25 = vrot.slane %v16127_v43, 4 }
 0x3dc   :  { %v7692_v20 = vsel %vm7681_vm11, %v16103_v3, %v7691_v39  ;;  %v615_v34 = vpop.permute.xlu1 %614  ;;  %v12526_v62 = vld [vmem:[#allocation3 + $0x258] ss:$56 sps:$4 sm:$0xff]   ;;  %v12528_v47 = vld [vmem:[#allocation3 + $0x25c] ss:$56 sps:$4 sm:$0xff]   ;;  %799 = vst [vmem:[#allocation3 + $0x30] sm:$0x88] %v785_v8 }
 0x3dd   :  { %7707 = vst [vmem:[#allocation3 + $0x2c8] sm:$0x44] %v7692_v20  ;;  %v623_v7 = vrot.slane %v615_v34, 4  ;;  %v1064_v42 = vrot.slane %v1056_v31, 4  ;;  %8618 = vmatprep.subr.bf16.mxu1 %v12528_v47  ;;  %v20602_v34 = vrot.slane %v16156_v4, 4 }
 0x3de   :  { %8619 = vmatpush1.bf16.msra.mxu1 %v12526_v62 }
 0x3df   :  { %v637_v52 = vsel %vm476_vm1, %v20600_v25, %v623_v7  ;;  %v1078_v3 = vsel %vm476_vm1, %v20601_v0, %v1064_v42  ;;  %v1350_v20 = vpop.permute.xlu0 %1349  ;;  %v20603_v25 = vrot.slane %v16158_v55, 4 }
 0x3e0   :  { %v638_v37 = vsel %vm625_vm0, %v16127_v43, %v637_v52  ;;  %v1079_v39 = vsel %vm19992_vm2, %v16129_v41, %v1078_v3  ;;  %v909_v28 = vpop.permute.xlu1 %908  ;;  %v1358_v8 = vrot.slane %v1350_v20, 4  ;;  %v20605_v20 = vrot.slane %v16190_v13, 4 }
 0x3e1   :  { %652 = vst [vmem:[#allocation3 + $0x30] sm:$0x44] %v638_v37  ;;  %1093 = vst [vmem:[#allocation3 + $0x68] sm:$0x22] %v1079_v39  ;;  %v917_v47 = vrot.slane %v909_v28, 4 }
 0x3e2   :  { %v1372_v31 = vsel %vm476_vm1, %v20603_v25, %v1358_v8  ;;  %v16865_v28 = vld [vmem:[%s20604_s12 + $0x4] ss:$8 sps:$4 sm:$0xff]  }
 0x3e3   :  { %v931_v7 = vsel %vm476_vm1, %v20602_v34, %v917_v47  ;;  %v1373_v41 = vsel %vm1360_vm14, %v16158_v55, %v1372_v31  ;;  %v1644_v42 = vpop.permute.xlu0 %1643  ;;  %v20606_v55 = vrot.slane %v16192_v49, 4 }
 0x3e4   :  { %v932_v43 = vsel %vm19993_vm5, %v16156_v4, %v931_v7  ;;  %v1203_v62 = vpop.permute.xlu1 %1202  ;;  %v7802_v52 = vld [vmem:[#allocation3 + $0x2c8] sm:$0x77]  ;;  %1387 = vst [vmem:[#allocation3 + $0x68] sm:$0x88] %v1373_v41  ;;  %v1652_v3 = vrot.slane %v1644_v42, 4 }
 0x3e5   :  { %946 = vst [vmem:[#allocation3 + $0x68] sm:$0x11] %v932_v43  ;;  %v1211_v0 = vrot.slane %v1203_v62, 4  ;;  %v11934_v37 = vcombine.high %v7802_v52, %v7802_v52  ;;  %v11933_v39 = vcombine.low %v7802_v52, %v7802_v52  ;;  %v16882_v43 = vld [vmem:[%s20604_s12] ss:$8 sps:$4 sm:$0xff]   ;;  %v20609_v52 = vrot.slane %v16224_v57, 4 }
 0x3e6   :  { %v1666_v47 = vsel %vm476_vm1, %v20606_v55, %v1652_v3 }
 0x3e7   :  { %v1225_v4 = vsel %vm476_vm1, %v20605_v20, %v1211_v0  ;;  %11952 = vmatprep.subr.msk.bf16.mxu1 %vm8300_vm3, %v11934_v37  ;;  %v8332_v8 = vsel %vm8300_vm3, %v11933_v39, 0  ;;  %v1667_v7 = vsel %vm20607_vm4, %v16192_v49, %v1666_v47  ;;  %v1938_v31 = vpop.permute.xlu0 %1937  ;;  %v20608_v49 = vrot.slane %v16222_v36, 4 }
 0x3e8   :  { %v1226_v34 = vsel %vm1213_vm10, %v16190_v13, %v1225_v4  ;;  %v1497_v25 = vpop.permute.xlu1 %1496  ;;  %8621 = vmatpush1.bf16.msra.mxu1 %v8332_v8  ;;  %1681 = vst [vmem:[#allocation3 + $0xa0] sm:$0x22] %v1667_v7  ;;  %v1946_v62 = vrot.slane %v1938_v31, 4  ;;  %v16888_v13 = vld [vmem:[%s20604_s12 + $0x14] ss:$8 sps:$4 sm:$0xff]   ;;  %v20612_v47 = vrot.slane %v16262_v15, 4 }
 0x3e9   :  { %1240 = vst [vmem:[#allocation3 + $0x68] sm:$0x44] %v1226_v34  ;;  %v1505_v41 = vrot.slane %v1497_v25, 4  ;;  %9750 = vmatprep.subr.bf16.mxu1 %v16865_v28  ;;  %v16907_v4 = vld [vmem:[%s20604_s12 + $0x10] ss:$8 sps:$4 sm:$0xff]   ;;  %vm20613_vm4 = vcmask 941056  }
 0x3ea   :  { %v1960_v0 = vsel %vm476_vm1, %v20609_v52, %v1946_v62  ;;  %v16924_v34 = vld [vmem:[%s20604_s12 + $0x20] ss:$8 sps:$4 sm:$0xff]  }
 0x3eb   :  { %v1519_v42 = vsel %vm476_vm1, %v20608_v49, %v1505_v41  ;;  %11953 = vmatmul.mubr.msk.bf16.vlgmr.msra.gmra.mrb[16].mxu1 %vm4153_vm9, %v16180_v45  ;;  %v1961_v37 = vsel %vm20610_vm15, %v16224_v57, %v1960_v0  ;;  %v2232_v20 = vpop.permute.xlu0 %2231  ;;  %v16935_v0 = vld [vmem:[%s20604_s12 + $0x34] ss:$8 sps:$4 sm:$0xff]   ;;  %vm20616_vm15 = vcmask 949248  }
 0x3ec   :  { %v1520_v3 = vsel %vm1507_vm7, %v16222_v36, %v1519_v42  ;;  %v1791_v39 = vpop.permute.xlu1 %1790  ;;  %8650 = vmatprep.mubr.bf16.mxu1 %v16197_v35  ;;  %9751 = vmatpush1.bf16.msra.mxu1 %v16882_v43  ;;  %1975 = vst [vmem:[#allocation3 + $0xa0] sm:$0x88] %v1961_v37  ;;  %v2240_v55 = vrot.slane %v2232_v20, 4  ;;  %v16913_v36 = vld [vmem:[%s20604_s12 + $0x24] ss:$8 sps:$4 sm:$0xff]   ;;  %v20611_v35 = vrot.slane %v16260_v46, 4 }
 0x3ed   :  { %1534 = vst [vmem:[#allocation3 + $0xa0] sm:$0x11] %v1520_v3  ;;  %v1799_v45 = vrot.slane %v1791_v39, 4  ;;  %9752 = vmatprep.subr.bf16.mxu1 %v16888_v13  ;;  %v20615_v3 = vrot.slane %v16289_v33, 4 }
 0x3ee   :  { %v2254_v8 = vsel %vm476_vm1, %v20612_v47, %v2240_v55 }
 0x3ef   :  { %v1813_v57 = vsel %vm476_vm1, %v20611_v35, %v1799_v45  ;;  %v2255_v25 = vsel %vm20613_vm4, %v16262_v15, %v2254_v8  ;;  %v2526_v41 = vpop.permute.xlu0 %2525  ;;  %vm20617_vm4 = vcmask 924672   ;;  %v16953_v35 = vld [vmem:[%s20604_s12 + $0x30] ss:$8 sps:$4 sm:$0xff]   ;;  %v20619_v8 = vrot.slane %v16320_v24, 4 }
 0x3f0   :  { %v1814_v7 = vsel %vm19991_vm8, %v16260_v46, %v1813_v57  ;;  %v2085_v31 = vpop.permute.xlu1 %2084  ;;  %v12531_v62 = vld [vmem:[#allocation3 + $0x30] ss:$56 sps:$4 sm:$0xff]   ;;  %v12533_v49 = vld [vmem:[#allocation3 + $0x34] ss:$56 sps:$4 sm:$0xff]   ;;  %9753 = vmatpush1.bf16.msra.mxu1 %v16907_v4  ;;  %2269 = vst [vmem:[#allocation3 + $0xd8] sm:$0x22] %v2255_v25 }
 0x3f1   :  { %1828 = vst [vmem:[#allocation3 + $0xa0] sm:$0x44] %v1814_v7  ;;  %v2093_v42 = vrot.slane %v2085_v31, 4  ;;  %v2534_v52 = vrot.slane %v2526_v41, 4  ;;  %9754 = vmatprep.subr.bf16.mxu1 %v16913_v36  ;;  %8661 = vmatprep.subr.bf16.mxu0 %v12533_v49  ;;  %v20614_v46 = vrot.slane %v16287_v30, 4 }
 0x3f2   :  { %8662 = vmatpush1.bf16.msra.mxu0 %v12531_v62  ;;  %v16975_v49 = vld [vmem:[%s20604_s12 + $0x40] ss:$8 sps:$4 sm:$0xff]  }
 0x3f3   :  { %v2107_v15 = vsel %vm476_vm1, %v20614_v46, %v2093_v42  ;;  %v2548_v37 = vsel %vm476_vm1, %v20615_v3, %v2534_v52  ;;  %11954 = vmatmul.mubr.msk.bf16.gmra.mrb[20].mxu1 %vm4153_vm9, %v16248_v9  ;;  %v2820_v55 = vpop.permute.xlu0 %2819 }
 0x3f4   :  { %v2108_v39 = vsel %vm20616_vm15, %v16287_v30, %v2107_v15  ;;  %v2549_v20 = vsel %vm20617_vm4, %v16289_v33, %v2548_v37  ;;  %v2379_v45 = vpop.permute.xlu1 %2378  ;;  %9755 = vmatpush1.bf16.msra.mxu1 %v16924_v34  ;;  %v2828_v9 = vrot.slane %v2820_v55, 4  ;;  %v16959_v30 = vld [vmem:[%s20604_s12 + $0x44] ss:$8 sps:$4 sm:$0xff]   ;;  %v20618_v33 = vrot.slane %v16318_v10, 4  ;;  %v16997_v55 = vld [vmem:[%s20604_s12 + $0x50] ss:$8 sps:$4 sm:$0xff]  }
 0x3f5   :  { %2122 = vst [vmem:[#allocation3 + $0xd8] sm:$0x11] %v2108_v39  ;;  %2563 = vst [vmem:[#allocation3 + $0xd8] sm:$0x88] %v2549_v20  ;;  %v2387_v57 = vrot.slane %v2379_v45, 4  ;;  %9756 = vmatprep.subr.bf16.mxu1 %v16935_v0  ;;  %vm20620_vm15 = vcmask 932864  }
 0x3f6   :  { %v2842_v7 = vsel %vm476_vm1, %v20619_v8, %v2828_v9  ;;  %vm20621_vm4 = vcmask 908288   ;;  %v20623_v15 = vrot.slane %v16346_v16, 4 }
 0x3f7   :  { %v2401_v47 = vsel %vm476_vm1, %v20618_v33, %v2387_v57  ;;  %v2843_v31 = vsel %vm20621_vm4, %v16320_v24, %v2842_v7  ;;  %v3114_v62 = vpop.permute.xlu0 %3113  ;;  %v20622_v24 = vrot.slane %v16344_v6, 4  ;;  %vm20625_vm4 = vcmask 891904   ;;  %v17014_v7 = vld [vmem:[%s20604_s12 + $0x60] ss:$8 sps:$4 sm:$0xff]  }
 0x3f8   :  { %v2402_v25 = vsel %vm20620_vm15, %v16318_v10, %v2401_v47  ;;  %v2673_v41 = vpop.permute.xlu1 %2672  ;;  %9757 = vmatpush1.bf16.msra.mxu1 %v16953_v35  ;;  %2857 = vst [vmem:[#allocation3 + $0x110] sm:$0x22] %v2843_v31  ;;  %v3122_v52 = vrot.slane %v3114_v62, 4  ;;  %v16981_v10 = vld [vmem:[%s20604_s12 + $0x54] ss:$8 sps:$4 sm:$0xff]   ;;  %vm20624_vm15 = vcmask 916480  }
 0x3f9   :  { %2416 = vst [vmem:[#allocation3 + $0xd8] sm:$0x44] %v2402_v25  ;;  %v2681_v42 = vrot.slane %v2673_v41, 4  ;;  %9758 = vmatprep.subr.bf16.mxu1 %v16959_v30  ;;  %v20627_v47 = vrot.slane %v16373_v63, 4 }
 0x3fa   :  { %v3136_v3 = vsel %vm476_vm1, %v20623_v15, %v3122_v52  ;;  %v17025_v15 = vld [vmem:[%s20604_s12 + $0x74] ss:$8 sps:$4 sm:$0xff]  }
 0x3fb   :  { %v2695_v46 = vsel %vm476_vm1, %v20622_v24, %v2681_v42  ;;  %v3137_v39 = vsel %vm20625_vm4, %v16346_v16, %v3136_v3  ;;  %v3408_v45 = vpop.permute.xlu0 %3407  ;;  %v20626_v16 = vrot.slane %v16371_v12, 4  ;;  %vm20629_vm4 = vcmask 875520  }
 0x3fc   :  { %v2696_v37 = vsel %vm20624_vm15, %v16344_v6, %v2695_v46  ;;  %v2967_v20 = vpop.permute.xlu1 %2966  ;;  %9759 = vmatpush1.bf16.msra.mxu1 %v16975_v49  ;;  %3151 = vst [vmem:[#allocation3 + $0x110] sm:$0x88] %v3137_v39  ;;  %v3416_v9 = vrot.slane %v3408_v45, 4  ;;  %v17003_v6 = vld [vmem:[%s20604_s12 + $0x64] ss:$8 sps:$4 sm:$0xff]   ;;  %vm20628_vm15 = vcmask 900096  }
 0x3fd   :  { %2710 = vst [vmem:[#allocation3 + $0x110] sm:$0x11] %v2696_v37  ;;  %v2975_v57 = vrot.slane %v2967_v20, 4  ;;  %9760 = vmatprep.subr.bf16.mxu1 %v16981_v10  ;;  %v20631_v3 = vrot.slane %v16400_v29, 4 }
 0x3fe   :  { %v3430_v8 = vsel %vm476_vm1, %v20627_v47, %v3416_v9  ;;  %v17041_v9 = vld [vmem:[%s20604_s12 + $0x70] ss:$8 sps:$4 sm:$0xff]  }
 0x3ff   :  { %v2989_v33 = vsel %vm476_vm1, %v20626_v16, %v2975_v57  ;;  %v3431_v31 = vsel %vm20629_vm4, %v16373_v63, %v3430_v8  ;;  %v3702_v62 = vpop.permute.xlu0 %3701  ;;  %v20630_v63 = vrot.slane %v16398_v26, 4  ;;  %vm20633_vm4 = vcmask 859136  }
 0x400   :  { %v2990_v25 = vsel %vm20628_vm15, %v16371_v12, %v2989_v33  ;;  %v3261_v41 = vpop.permute.xlu1 %3260  ;;  %v12534_v42 = vld [vmem:[#allocation3 + $0xa0] ss:$56 sps:$4 sm:$0xff]   ;;  %v12536_v52 = vld [vmem:[#allocation3 + $0xa4] ss:$56 sps:$4 sm:$0xff]   ;;  %9761 = vmatpush1.bf16.msra.mxu1 %v16997_v55  ;;  %3445 = vst [vmem:[#allocation3 + $0x148] sm:$0x22] %v3431_v31 }
 0x401   :  { %3004 = vst [vmem:[#allocation3 + $0x110] sm:$0x44] %v2990_v25  ;;  %v3269_v24 = vrot.slane %v3261_v41, 4  ;;  %v3710_v46 = vrot.slane %v3702_v62, 4  ;;  %9762 = vmatprep.subr.bf16.mxu1 %v17003_v6  ;;  %8663 = vmatprep.subr.bf16.mxu0 %v12536_v52  ;;  %vm20632_vm15 = vcmask 883712   ;;  %v20635_v8 = vrot.slane %v16426_v17, 4 }
 0x402   :  { %8664 = vmatpush1.bf16.msra.mxu0 %v12534_v42  ;;  %v17063_v52 = vld [vmem:[%s20604_s12 + $0x80] ss:$8 sps:$4 sm:$0xff]  }
 0x403   :  { %v3283_v12 = vsel %vm476_vm1, %v20630_v63, %v3269_v24  ;;  %v3724_v37 = vsel %vm476_vm1, %v20631_v3, %v3710_v46  ;;  %v3996_v57 = vpop.permute.xlu0 %3995 }
 0x404   :  { %v3284_v39 = vsel %vm20632_vm15, %v16398_v26, %v3283_v12  ;;  %v3725_v20 = vsel %vm20633_vm4, %v16400_v29, %v3724_v37  ;;  %v3555_v45 = vpop.permute.xlu1 %3554  ;;  %9763 = vmatpush1.bf16.msra.mxu1 %v17014_v7  ;;  %v4004_v33 = vrot.slane %v3996_v57, 4  ;;  %v17047_v26 = vld [vmem:[%s20604_s12 + $0x84] ss:$8 sps:$4 sm:$0xff]   ;;  %v20634_v29 = vrot.slane %v16424_v18, 4  ;;  %v17085_v57 = vld [vmem:[%s20604_s12 + $0x90] ss:$8 sps:$4 sm:$0xff]  }
 0x405   :  { %3298 = vst [vmem:[#allocation3 + $0x148] sm:$0x11] %v3284_v39  ;;  %3739 = vst [vmem:[#allocation3 + $0x148] sm:$0x88] %v3725_v20  ;;  %v3563_v16 = vrot.slane %v3555_v45, 4  ;;  %9764 = vmatprep.subr.bf16.mxu1 %v17025_v15  ;;  %vm20636_vm15 = vcmask 867328  }
 0x406   :  { %v4018_v25 = vsel %vm476_vm1, %v20635_v8, %v4004_v33  ;;  %vm20637_vm4 = vcmask 842752   ;;  %v20639_v12 = vrot.slane %v16454_v2, 4 }
 0x407   :  { %v3577_v47 = vsel %vm476_vm1, %v20634_v29, %v3563_v16  ;;  %v4019_v41 = vsel %vm20637_vm4, %v16426_v17, %v4018_v25  ;;  %v4290_v42 = vpop.permute.xlu0 %4289  ;;  %v20638_v17 = vrot.slane %v16452_v11, 4  ;;  %vm20641_vm4 = vcmask 826368   ;;  %v17102_v25 = vld [vmem:[%s20604_s12 + $0xa0] ss:$8 sps:$4 sm:$0xff]  }
 0x408   :  { %v3578_v31 = vsel %vm20636_vm15, %v16424_v18, %v3577_v47  ;;  %v3849_v62 = vpop.permute.xlu1 %3848  ;;  %9765 = vmatpush1.bf16.msra.mxu1 %v17041_v9  ;;  %4033 = vst [vmem:[#allocation3 + $0x180] sm:$0x22] %v4019_v41  ;;  %v4298_v46 = vrot.slane %v4290_v42, 4  ;;  %v17069_v18 = vld [vmem:[%s20604_s12 + $0x94] ss:$8 sps:$4 sm:$0xff]   ;;  %vm20640_vm15 = vcmask 850944  }
 0x409   :  { %3592 = vst [vmem:[#allocation3 + $0x148] sm:$0x44] %v3578_v31  ;;  %v3857_v24 = vrot.slane %v3849_v62, 4  ;;  %9766 = vmatprep.subr.bf16.mxu1 %v17047_v26  ;;  %v20643_v47 = vrot.slane %v16481_v19, 4 }
 0x40a   :  { %v4312_v3 = vsel %vm476_vm1, %v20639_v12, %v4298_v46  ;;  %v17113_v12 = vld [vmem:[%s20604_s12 + $0xb4] ss:$8 sps:$4 sm:$0xff]  }
 0x40b   :  { %v3871_v63 = vsel %vm476_vm1, %v20638_v17, %v3857_v24  ;;  %v4313_v39 = vsel %vm20641_vm4, %v16454_v2, %v4312_v3  ;;  %v4584_v45 = vpop.permute.xlu0 %4583  ;;  %v20642_v2 = vrot.slane %v16479_v32, 4  ;;  %vm20648_vm4 = vcmask 818176  }
 0x40c   :  { %v3872_v37 = vsel %vm20640_vm15, %v16452_v11, %v3871_v63  ;;  %v4143_v20 = vpop.permute.xlu1 %4142  ;;  %9767 = vmatpush1.bf16.msra.mxu1 %v17063_v52  ;;  %4327 = vst [vmem:[#allocation3 + $0x180] sm:$0x88] %v4313_v39  ;;  %v4592_v33 = vrot.slane %v4584_v45, 4  ;;  %v17091_v11 = vld [vmem:[%s20604_s12 + $0xa4] ss:$8 sps:$4 sm:$0xff]   ;;  %vm20644_vm15 = vcmask 809984  }
 0x40d   :  { %3886 = vst [vmem:[#allocation3 + $0x180] sm:$0x11] %v3872_v37  ;;  %v4151_v16 = vrot.slane %v4143_v20, 4  ;;  %9768 = vmatprep.subr.bf16.mxu1 %v17069_v18  ;;  %v20647_v37 = vrot.slane %v16508_v38, 4 }
 0x40e   :  { %v4606_v8 = vsel %vm476_vm1, %v20643_v47, %v4592_v33 }
 0x40f   :  { %v4165_v29 = vsel %vm476_vm1, %v20642_v2, %v4151_v16  ;;  %v4607_v41 = vsel %vm20644_vm15, %v16481_v19, %v4606_v8  ;;  %v4878_v42 = vpop.permute.xlu0 %4877  ;;  %vm20649_vm15 = vcmask 793600   ;;  %v17129_v2 = vld [vmem:[%s20604_s12 + $0xb0] ss:$8 sps:$4 sm:$0xff]   ;;  %v17135_v8 = vld [vmem:[%s20604_s12 + $0xc4] ss:$8 sps:$4 sm:$0xff]  }
 0x410   :  { %v4166_v31 = vsel %vm4153_vm9, %v16479_v32, %v4165_v29  ;;  %v4437_v62 = vpop.permute.xlu1 %4436  ;;  %v12537_v24 = vld [vmem:[#allocation3 + $0x110] ss:$56 sps:$4 sm:$0xff]   ;;  %v12539_v46 = vld [vmem:[#allocation3 + $0x114] ss:$56 sps:$4 sm:$0xff]   ;;  %9769 = vmatpush1.bf16.msra.mxu1 %v17085_v57  ;;  %4621 = vst [vmem:[#allocation3 + $0x1b8] sm:$0x22] %v4607_v41 }
 0x411   :  { %4180 = vst [vmem:[#allocation3 + $0x180] sm:$0x44] %v4166_v31  ;;  %v4445_v17 = vrot.slane %v4437_v62, 4  ;;  %v4886_v63 = vrot.slane %v4878_v42, 4  ;;  %9770 = vmatprep.subr.bf16.mxu1 %v17091_v11  ;;  %8665 = vmatprep.subr.bf16.mxu0 %v12539_v46  ;;  %v20645_v32 = vld [vmem:[#allocation14_spill] sm:$0xff]  ;;  %20650 = vst [vmem:[#allocation49_spill] sm:$0xff] %v17129_v2 }
 0x412   :  { %v20646_v19 = vrot.slane %v20645_v32, 4  ;;  %8666 = vmatpush1.bf16.msra.mxu0 %v12537_v24  ;;  %20651 = vst [vmem:[#allocation54_spill] sm:$0xff] %v17135_v8  ;;  %v20653_v41 = vrot.slane %v16535_v48, 4 }
 0x413   :  { %v4900_v39 = vsel %vm476_vm1, %v20647_v37, %v4886_v63  ;;  %v5172_v33 = vpop.permute.xlu0 %5171  ;;  %v17151_v63 = vld [vmem:[%s20604_s12 + $0xc0] ss:$8 sps:$4 sm:$0xff]   ;;  %v20658_v37 = vrot.slane %v16562_v61, 4 }
 0x414   :  { %v4459_v3 = vsel %vm476_vm1, %v20646_v19, %v4445_v17  ;;  %v4901_v45 = vsel %vm20649_vm15, %v16508_v38, %v4900_v39  ;;  %v4731_v16 = vpop.permute.xlu1 %4730  ;;  %9771 = vmatpush1.bf16.msra.mxu1 %v17102_v25  ;;  %v5180_v47 = vrot.slane %v5172_v33, 4  ;;  %v20652_v38 = vrot.slane %v16533_v1, 4  ;;  %20655 = vst [vmem:[#allocation33_spill] sm:$0xff] %v17151_v63 }
 0x415   :  { %v4460_v20 = vsel %vm20648_vm4, %v20645_v32, %v4459_v3  ;;  %4915 = vst [vmem:[#allocation3 + $0x1b8] sm:$0x88] %v4901_v45  ;;  %v4739_v29 = vrot.slane %v4731_v16, 4  ;;  %9772 = vmatprep.subr.bf16.mxu1 %v17113_v12  ;;  %vm20654_vm4 = vcmask 777216   ;;  %vm20660_vm15 = vcmask 760832  }
 0x416   :  { %4474 = vst [vmem:[#allocation3 + $0x1b8] sm:$0x11] %v4460_v20  ;;  %v5194_v62 = vsel %vm476_vm1, %v20653_v41, %v5180_v47 }
 0x417   :  { %v4753_v31 = vsel %vm476_vm1, %v20652_v38, %v4739_v29  ;;  %v5195_v24 = vsel %vm20654_vm4, %v16535_v48, %v5194_v62  ;;  %v5466_v17 = vpop.permute.xlu0 %5465  ;;  %v20657_v48 = vrot.slane %v16560_v14, 4  ;;  %v17173_v29 = vld [vmem:[%s20604_s12 + $0xd0] ss:$8 sps:$4 sm:$0xff]   ;;  %vm20668_vm4 = vcmask 769024  }
 0x418   :  { %v4754_v42 = vsel %vm4741_vm6, %v16533_v1, %v4753_v31  ;;  %v5025_v46 = vpop.permute.xlu1 %5024  ;;  %9773 = vmatpush1.bf16.msra.mxu1 %v17129_v2  ;;  %5209 = vst [vmem:[#allocation3 + $0x1f0] sm:$0x22] %v5195_v24  ;;  %v5474_v19 = vrot.slane %v5466_v17, 4  ;;  %v17157_v1 = vld [vmem:[%s20604_s12 + $0xd4] ss:$8 sps:$4 sm:$0xff]   ;;  %vm20659_vm6 = vcmask 785408  }
 0x419   :  { %4768 = vst [vmem:[#allocation3 + $0x1b8] sm:$0x44] %v4754_v42  ;;  %v5033_v32 = vrot.slane %v5025_v46, 4  ;;  %9774 = vmatprep.subr.bf16.mxu1 %v17135_v8  ;;  %20656 = vst [vmem:[#allocation36_spill] sm:$0xff] %v17157_v1  ;;  %v20665_v62 = vld [vmem:[#allocation16_spill] sm:$0xff] }
 0x41a   :  { %v5488_v39 = vsel %vm476_vm1, %v20658_v37, %v5474_v19  ;;  %20661 = vst [vmem:[#allocation53_spill] sm:$0xff] %v17173_v29  ;;  %v20666_v42 = vrot.slane %v20665_v62, 4  ;;  %v17190_v46 = vld [vmem:[%s20604_s12 + $0xe0] ss:$8 sps:$4 sm:$0xff]  }
 0x41b   :  { %v5047_v3 = vsel %vm476_vm1, %v20657_v48, %v5033_v32  ;;  %v5489_v45 = vsel %vm20660_vm15, %v16562_v61, %v5488_v39  ;;  %v5760_v33 = vpop.permute.xlu0 %5759  ;;  %v20663_v61 = vld [vmem:[#allocation15_spill] sm:$0xff]  ;;  %20667 = vst [vmem:[#allocation35_spill] sm:$0xff] %v17190_v46  ;;  %vm20674_vm15 = vcmask 752640  }
 0x41c   :  { %v5048_v20 = vsel %vm20659_vm6, %v16560_v14, %v5047_v3  ;;  %v5319_v16 = vpop.permute.xlu1 %5318  ;;  %9775 = vmatpush1.bf16.msra.mxu1 %v17151_v63  ;;  %5503 = vst [vmem:[#allocation3 + $0x1f0] sm:$0x88] %v5489_v45  ;;  %v5768_v38 = vrot.slane %v5760_v33, 4  ;;  %v17179_v14 = vld [vmem:[%s20604_s12 + $0xe4] ss:$8 sps:$4 sm:$0xff]   ;;  %v20664_v31 = vrot.slane %v20663_v61, 4 }
 0x41d   :  { %5062 = vst [vmem:[#allocation3 + $0x1f0] sm:$0x11] %v5048_v20  ;;  %v5327_v47 = vrot.slane %v5319_v16, 4  ;;  %9776 = vmatprep.subr.bf16.mxu1 %v17157_v1  ;;  %20662 = vst [vmem:[#allocation9_spill] sm:$0xff] %v17179_v14  ;;  %vm20669_vm6 = vcmask 744448   ;;  %v20671_v16 = vld [vmem:[#allocation17_spill] sm:$0xff] }
 0x41e   :  { %v5782_v24 = vsel %vm476_vm1, %v20666_v42, %v5768_v38  ;;  %v17201_v45 = vld [vmem:[%s20604_s12 + $0xf4] ss:$8 sps:$4 sm:$0xff]   ;;  %v20672_v33 = vrot.slane %v20671_v16, 4  ;;  %v20673_v38 = vrot.slane %v16616_v53, 4 }
 0x41f   :  { %v5341_v41 = vsel %vm476_vm1, %v20664_v31, %v5327_v47  ;;  %v5783_v32 = vsel %vm20669_vm6, %v20665_v62, %v5782_v24  ;;  %v6054_v48 = vpop.permute.xlu0 %6053  ;;  %20670 = vst [vmem:[#allocation39_spill] sm:$0xff] %v17201_v45  ;;  %v17217_v24 = vld [vmem:[%s20604_s12 + $0xf0] ss:$8 sps:$4 sm:$0xff]   ;;  %vm20680_vm6 = vcmask 736256  }
 0x420   :  { %v5342_v17 = vsel %vm20668_vm4, %v20663_v61, %v5341_v41  ;;  %v5613_v19 = vpop.permute.xlu1 %5612  ;;  %v12540_v3 = vld [vmem:[#allocation3 + $0x180] ss:$56 sps:$4 sm:$0xff]   ;;  %v12542_v37 = vld [vmem:[#allocation3 + $0x184] ss:$56 sps:$4 sm:$0xff]   ;;  %9777 = vmatpush1.bf16.msra.mxu1 %v17173_v29  ;;  %5797 = vst [vmem:[#allocation3 + $0x228] sm:$0x22] %v5783_v32 }
 0x421   :  { %5356 = vst [vmem:[#allocation3 + $0x1f0] sm:$0x44] %v5342_v17  ;;  %v5621_v39 = vrot.slane %v5613_v19, 4  ;;  %v6062_v20 = vrot.slane %v6054_v48, 4  ;;  %9778 = vmatprep.subr.bf16.mxu1 %v17179_v14  ;;  %8667 = vmatprep.subr.bf16.mxu0 %v12542_v37  ;;  %vm20675_vm4 = vcmask 728064   ;;  %20676 = vst [vmem:[#allocation55_spill] sm:$0xff] %v17217_v24 }
 0x422   :  { %8668 = vmatpush1.bf16.msra.mxu0 %v12540_v3  ;;  %v17223_v19 = vld [vmem:[%s20604_s12 + $0x104] ss:$8 sps:$4 sm:$0xff]   ;;  %v20679_v3 = vrot.slane %v16643_v5, 4 }
 0x423   :  { %v5635_v47 = vsel %vm476_vm1, %v20672_v33, %v5621_v39  ;;  %v6076_v61 = vsel %vm476_vm1, %v20673_v38, %v6062_v20  ;;  %v6348_v42 = vpop.permute.xlu0 %6347  ;;  %20677 = vst [vmem:[#allocation59_spill] sm:$0xff] %v17223_v19 }
 0x424   :  { %v5636_v31 = vsel %vm20674_vm15, %v20671_v16, %v5635_v47  ;;  %v6077_v41 = vsel %vm20675_vm4, %v16616_v53, %v6076_v61  ;;  %v5907_v62 = vpop.permute.xlu1 %5906  ;;  %9779 = vmatpush1.bf16.msra.mxu1 %v17190_v46  ;;  %v6356_v32 = vrot.slane %v6348_v42, 4  ;;  %v20678_v53 = vrot.slane %v16641_v22, 4 }
 0x425   :  { %5650 = vst [vmem:[#allocation3 + $0x228] sm:$0x11] %v5636_v31  ;;  %6091 = vst [vmem:[#allocation3 + $0x228] sm:$0x88] %v6077_v41  ;;  %v5915_v17 = vrot.slane %v5907_v62, 4  ;;  %9780 = vmatprep.subr.bf16.mxu1 %v17201_v45  ;;  %vm20681_vm15 = vcmask 711680  }
 0x426   :  { %v6370_v37 = vsel %vm476_vm1, %v20679_v3, %v6356_v32  ;;  %v20682_v61 = vrot.slane %v16679_v27, 4  ;;  %v20683_v41 = vrot.slane %v16681_v60, 4  ;;  %vm20684_vm4 = vcmask 719872  }
 0x427   :  { %v5929_v48 = vsel %vm476_vm1, %v20678_v53, %v5915_v17  ;;  %v6371_v20 = vsel %vm20681_vm15, %v16643_v5, %v6370_v37  ;;  %v6642_v33 = vpop.permute.xlu0 %6641  ;;  %v20687_v37 = vrot.slane %v16720_v50, 4  ;;  %vm20688_vm15 = vcmask 703488  }
 0x428   :  { %v5930_v39 = vsel %vm20680_vm6, %v16641_v22, %v5929_v48  ;;  %v6201_v16 = vpop.permute.xlu1 %6200  ;;  %9781 = vmatpush1.bf16.msra.mxu1 %v17217_v24  ;;  %6385 = vst [vmem:[#allocation3 + $0x260] sm:$0x22] %v6371_v20  ;;  %v6650_v38 = vrot.slane %v6642_v33, 4  ;;  %vm20685_vm6 = vcmask 695296   ;;  %v20686_v48 = vrot.slane %v16718_v21, 4 }
 0x429   :  { %5944 = vst [vmem:[#allocation3 + $0x228] sm:$0x44] %v5930_v39  ;;  %v6209_v47 = vrot.slane %v6201_v16, 4  ;;  %9803 = vmatprep.subr.bf16.mxu1 %v17223_v19 }
 0x42a   :  { %v6664_v22 = vsel %vm476_vm1, %v20683_v41, %v6650_v38 }
 0x42b   :  { %v6223_v31 = vsel %vm476_vm1, %v20682_v61, %v6209_v47  ;;  %v6665_v62 = vsel %vm20685_vm6, %v16681_v60, %v6664_v22  ;;  %v6936_v17 = vpop.permute.xlu0 %6935  ;;  %v20691_v22 = vrot.slane %v16757_v58, 4  ;;  %vm20692_vm6 = vcmask 687104  }
 0x42c   :  { %v6224_v5 = vsel %vm20684_vm4, %v16679_v27, %v6223_v31  ;;  %v6495_v42 = vpop.permute.xlu1 %6494  ;;  %6679 = vst [vmem:[#allocation3 + $0x260] sm:$0x88] %v6665_v62  ;;  %v6944_v53 = vrot.slane %v6936_v17, 4  ;;  %vm20689_vm4 = vcmask 678912   ;;  %v20690_v31 = vrot.slane %v16755_v54, 4 }
 0x42d   :  { %6238 = vst [vmem:[#allocation3 + $0x260] sm:$0x11] %v6224_v5  ;;  %v6503_v32 = vrot.slane %v6495_v42, 4 }
 0x42e   :  { %v6958_v39 = vsel %vm476_vm1, %v20687_v37, %v6944_v53  ;;  %v20694_v53 = vrot.slane %v16784_v40, 4 }
 0x42f   :  { %v6517_v3 = vsel %vm476_vm1, %v20686_v48, %v6503_v32  ;;  %v6959_v60 = vsel %vm20689_vm4, %v16720_v50, %v6958_v39  ;;  %v7230_v16 = vpop.permute.xlu0 %7229  ;;  %vm20696_vm4 = vcmask 670720  }
 0x430   :  { %v6518_v27 = vsel %vm20688_vm15, %v16718_v21, %v6517_v3  ;;  %v6789_v20 = vpop.permute.xlu1 %6788  ;;  %v12555_v33 = vld [vmem:[#allocation3 + $0x1f0] ss:$56 sps:$4 sm:$0xff]   ;;  %v12557_v47 = vld [vmem:[#allocation3 + $0x1f4] ss:$56 sps:$4 sm:$0xff]   ;;  %6973 = vst [vmem:[#allocation3 + $0x298] sm:$0x22] %v6959_v60 }
 0x431   :  { %6532 = vst [vmem:[#allocation3 + $0x260] sm:$0x44] %v6518_v27  ;;  %v6797_v38 = vrot.slane %v6789_v20, 4  ;;  %v7238_v61 = vrot.slane %v7230_v16, 4  ;;  %8669 = vmatprep.subr.bf16.mxu0 %v12557_v47  ;;  %vm20693_vm15 = vcmask 662528   ;;  %v20695_v3 = vrot.slane %v16786_v56, 4 }
 0x432   :  { %8670 = vmatpush1.bf16.msra.mxu0 %v12555_v33  ;;  %v20697_v60 = vrot.slane %v16810_v44, 4 }
 0x433   :  { %v6811_v41 = vsel %vm476_vm1, %v20690_v31, %v6797_v38  ;;  %v7252_v21 = vsel %vm476_vm1, %v20691_v22, %v7238_v61  ;;  %v7524_v42 = vpop.permute.xlu0 %7523  ;;  %v20699_v38 = vrot.slane %v16825_v23, 4 }
 0x434   :  { %v6812_v50 = vsel %vm20692_vm6, %v16755_v54, %v6811_v41  ;;  %v7253_v5 = vsel %vm20693_vm15, %v16757_v58, %v7252_v21  ;;  %v7083_v62 = vpop.permute.xlu1 %7082  ;;  %v7532_v32 = vrot.slane %v7524_v42, 4  ;;  %vm20698_vm6 = vcmask 654336  }
 0x435   :  { %6826 = vst [vmem:[#allocation3 + $0x298] sm:$0x11] %v6812_v50  ;;  %7267 = vst [vmem:[#allocation3 + $0x298] sm:$0x88] %v7253_v5  ;;  %v7091_v17 = vrot.slane %v7083_v62, 4  ;;  %v20701_v50 = vld [vmem:[#allocation18_spill] sm:$0xff] }
 0x436   :  { %v7546_v37 = vsel %vm476_vm1, %v20695_v3, %v7532_v32 }
 0x437   :  { %v7105_v48 = vsel %vm476_vm1, %v20694_v53, %v7091_v17  ;;  %v7547_v58 = vsel %vm7534_vm13, %v16786_v56, %v7546_v37  ;;  %v20702_v17 = vld [vmem:[#allocation30_spill] sm:$0xff] }
 0x438   :  { %v7106_v54 = vsel %vm20696_vm4, %v16784_v40, %v7105_v48  ;;  %v7377_v39 = vpop.permute.xlu1 %7376  ;;  %7561 = vst [vmem:[#allocation3 + $0x2d0] sm:$0x22] %v7547_v58  ;;  %v20705_v48 = vld [vmem:[#allocation25_spill] sm:$0xff]  ;;  %v20706_v58 = vld [vmem:[#allocation26_spill] sm:$0xff] }
 0x439   :  { %7120 = vst [vmem:[#allocation3 + $0x298] sm:$0x44] %v7106_v54  ;;  %v7385_v27 = vrot.slane %v7377_v39, 4 }
 0x43b   :  { %v7399_v20 = vsel %vm476_vm1, %v20697_v60, %v7385_v27 }
 0x43c   :  { %v7400_v16 = vsel %vm20698_vm6, %v16810_v44, %v7399_v20  ;;  %v7671_v33 = vpop.permute.xlu1 %7670  ;;  %v12933_v20 = vld [vmem:[%s20427_s9] sm:$0xff]  }
 0x43d   :  { %7414 = vst [vmem:[#allocation3 + $0x2d0] sm:$0x11] %v7400_v16  ;;  %v7679_v47 = vrot.slane %v7671_v33, 4  ;;  %v12934_v33 = vld [vmem:[#allocation4 + $0x20] sm:$0xff] }
 0x43f   :  { %v7693_v40 = vsel %vm476_vm1, %v20699_v38, %v7679_v47  ;;  %v20707_v38 = vld [vmem:[#allocation22_spill] sm:$0xff] }
 0x440   :  { %v7694_v56 = vsel %vm7681_vm11, %v16825_v23, %v7693_v40  ;;  %v12570_v61 = vld [vmem:[#allocation3 + $0x260] ss:$56 sps:$4 sm:$0xff]   ;;  %v12572_v31 = vld [vmem:[#allocation3 + $0x264] ss:$56 sps:$4 sm:$0xff]  }
 0x441   :  { %7708 = vst [vmem:[#allocation3 + $0x2d0] sm:$0x44] %v7694_v56  ;;  %8671 = vmatprep.subr.bf16.mxu0 %v12572_v31 }
 0x442   :  { %8672 = vmatpush1.bf16.msra.mxu0 %v12570_v61  ;;  %v20708_v61 = vld [vmem:[#allocation38_spill] sm:$0xff] }
 0x443   :  { %v17287_v41 = vpop.permute.xlu0 %7810 }
 0x444   :  { %20700 = vst [vmem:[#allocation37_spill] sm:$0xff] %v17287_v41  ;;  %v17291_v44 = vadd.f32 %v16654_v59, %v17287_v41  ;;  %v17296_v5 = vadd.f32 %v20701_v50, %v17287_v41  ;;  %v17333_v40 = vadd.f32 %v20707_v38, %v17287_v41 }
 0x446   :  { %v8771_v21 = vmin.f32 %v17291_v44, 0.0  ;;  %v8770_v54 = vmin.f32 %v17296_v5, 0.0  ;;  %vm8715_vm1 = vcmp.gt.f32.partialorder %v17291_v44, 0.0  ;;  %vm8714_vm4 = vcmp.gt.f32.partialorder %v17296_v5, 0.0 }
 0x447   :  { %v17298_v62 = vpop.permute.xlu0 %7825 }
 0x448   :  { %v7803_v22 = vld [vmem:[#allocation3 + $0x2d0] sm:$0x77]  ;;  %v17302_v32 = vadd.f32 %v20702_v17, %v17298_v62  ;;  %v17306_v53 = vadd.f32 %v16836_v51, %v17298_v62  ;;  %v17312_v3 = vadd.f32 %v20705_v48, %v17298_v62  ;;  %v8828_v37 = vmul.f32 1.442695, %v8771_v21 }
 0x449   :  { %v11936_v23 = vcombine.high %v7803_v22, %v7803_v22  ;;  %v11935_v42 = vcombine.low %v7803_v22, %v7803_v22  ;;  %v17317_v39 = vadd.f32 %v20706_v58, %v17298_v62  ;;  %v8826_v47 = vmul.f32 1.442695, %v8770_v54 }
 0x44a   :  { %20703 = vst [vmem:[#allocation43_spill] sm:$0xff] %v17302_v32  ;;  %20704 = vst [vmem:[#allocation58_spill] sm:$0xff] %v17306_v53  ;;  %v8815_v27 = vmin.f32 %v17302_v32, 0.0  ;;  %v8817_v51 = vmin.f32 %v17306_v53, 0.0  ;;  %v8813_v16 = vmin.f32 %v17312_v3, 0.0  ;;  %12731 = vpow2.f32 %v8828_v37 }
 0x44b   :  { %11955 = vmatprep.subr.msk.bf16.mxu0 %vm8300_vm3, %v11936_v23  ;;  %v8338_v59 = vsel %vm8300_vm3, %v11935_v42, 0  ;;  %12733 = vpow2.f32 %v8826_v47 }
 0x44c   :  { %8674 = vmatpush1.bf16.msra.mxu0 %v8338_v59  ;;  %v17322_v60 = vpop.permute.xlu1 %7815  ;;  %v8916_v56 = vmul.f32 1.442695, %v8815_v27  ;;  %v8920_v22 = vmul.f32 1.442695, %v8817_v51  ;;  %v8912_v17 = vmul.f32 1.442695, %v8813_v16 }
 0x44d   :  { %9997 = vmatprep.subr.bf16.mxu0 %v16865_v28  ;;  %v8812_v28 = vmin.f32 %v17317_v39, 0.0  ;;  %v17338_v31 = vadd.f32 %v20708_v61, %v17322_v60  ;;  %v20710_v59 = vld [vmem:[#allocation19_spill] sm:$0xff]  ;;  %v8773_v27 = vmin.f32 %v17333_v40, 0.0 }
 0x44e   :  { %v8536_v21 = vpop.f32.mrb[8].mxu1  ;;  %v17349_v48 = vadd.f32 %v20710_v59, %v17287_v41  ;;  %12735 = vpow2.f32 %v8916_v56  ;;  %v12935_v61 = vld [vmem:[%s20427_s9 + $0x8] sm:$0xff]  }
 0x44f   :  { %11956 = vmatmul.mubr.msk.bf16.vlgmr.msra.gmra.mrb[24].mxu0 %vm4153_vm9, %v12933_v20  ;;  %v17345_v23 = vadd.f32 %v8536_v21, %v17287_v41  ;;  %v8538_v42 = vpop.f32.mrb[9].mxu1  ;;  %v8910_v58 = vmul.f32 1.442695, %v8812_v28  ;;  %12737 = vpow2.f32 %v8920_v22  ;;  %vm8729_vm15 = vcmp.gt.f32.partialorder %v17338_v31, 0.0 }
 0x450   :  { %9998 = vmatpush1.bf16.msra.mxu0 %v16882_v43  ;;  %8703 = vmatprep.mubr.bf16.mxu0 %v12934_v33  ;;  %v20709_v43 = vld [vmem:[#allocation20_spill] sm:$0xff]  ;;  %v17354_v37 = vadd.f32 %v8538_v42, %v17287_v41  ;;  %v8540_v54 = vpop.f32.mrb[10].mxu1  ;;  %v8785_v33 = vmin.f32 %v17338_v31, 0.0  ;;  %12739 = vpow2.f32 %v8912_v17 }
 0x451   :  { %9999 = vmatprep.subr.bf16.mxu0 %v16888_v13  ;;  %v17342_v50 = vadd.f32 %v20709_v43, %v17322_v60  ;;  %v17351_v13 = vpop.permute.xlu1 %7820  ;;  %v8776_v51 = vmin.f32 %v17345_v23, 0.0  ;;  %v17360_v20 = vadd.f32 %v8540_v54, %v17322_v60  ;;  %v8542_v16 = vpop.f32.mrb[11].mxu1  ;;  %12741 = vpow2.f32 %v8910_v58  ;;  %v20712_v54 = vld [vmem:[#allocation24_spill] sm:$0xff] }
 0x452   :  { %v8777_v38 = vmin.f32 %v17354_v37, 0.0  ;;  %v8856_v59 = vmul.f32 1.442695, %v8785_v33  ;;  %vm8720_vm3 = vcmp.gt.f32.partialorder %v17345_v23, 0.0 }
 0x453   :  { %v8784_v47 = vmin.f32 %v17342_v50, 0.0  ;;  %v8838_v28 = vmul.f32 1.442695, %v8776_v51  ;;  %v8790_v56 = vmin.f32 %v17360_v20, 0.0  ;;  %v17384_v51 = vadd.f32 %v20712_v54, %v17322_v60 }
 0x454   :  { %10000 = vmatpush1.bf16.msra.mxu0 %v16907_v4  ;;  %v17366_v4 = vadd.f32 %v8542_v16, %v17322_v60  ;;  %v8840_v22 = vmul.f32 1.442695, %v8777_v38  ;;  %v12732_v16 = vpop.eup %12731  ;;  %vm8734_vm11 = vcmp.gt.f32.partialorder %v17360_v20, 0.0  ;;  %vm8728_vm6 = vcmp.gt.f32.partialorder %v17342_v50, 0.0 }
 0x455   :  { %10001 = vmatprep.subr.bf16.mxu0 %v16913_v36  ;;  %v20711_v36 = vld [vmem:[#allocation44_spill] sm:$0xff]  ;;  %12743 = vpow2.f32 %v8838_v28  ;;  %v8866_v42 = vmul.f32 1.442695, %v8790_v56  ;;  %v17394_v56 = vmul.f32 1.442695, %v8773_v27  ;;  %vm8731_vm8 = vcmp.gt.f32.partialorder %v17384_v51, 0.0 }
 0x456   :  { %v17376_v21 = vadd.f32 %v20711_v36, %v17351_v13  ;;  %v8791_v43 = vmin.f32 %v17366_v4, 0.0  ;;  %12745 = vpow2.f32 %v8840_v22  ;;  %v8546_v38 = vpop.f32.mrb[12].mxu1  ;;  %v8854_v36 = vmul.f32 1.442695, %v8784_v47 }
 0x457   :  { %11957 = vmatmul.mubr.msk.bf16.gmra.mrb[28].mxu0 %vm4153_vm9, %v12935_v61  ;;  %v8589_v61 = vpop.f32.mrb[16].mxu0  ;;  %12747 = vpow2.f32 %v8866_v42  ;;  %v20715_v42 = vld [vmem:[#allocation21_spill] sm:$0xff]  ;;  %v17412_v24 = vadd.f32 %v8546_v38, %v17351_v13  ;;  %vm8721_vm9 = vcmp.gt.f32.partialorder %v17354_v37, 0.0  ;;  %vm8735_vm13 = vcmp.gt.f32.partialorder %v17366_v4, 0.0 }
 0x458   :  { %10002 = vmatpush1.bf16.msra.mxu0 %v16924_v34  ;;  %v8868_v17 = vmul.f32 1.442695, %v8791_v43  ;;  %v20713_v34 = vld [vmem:[#allocation46_spill] sm:$0xff]  ;;  %v17391_v58 = vadd.f32 %v8589_v61, %v17287_v41  ;;  %v8591_v33 = vpop.f32.mrb[17].mxu0  ;;  %v8799_v28 = vmin.f32 %v17376_v21, 0.0  ;;  %v17405_v61 = vadd.f32 %v20715_v42, %v17351_v13 }
 0x459   :  { %10003 = vmatprep.subr.bf16.mxu0 %v16935_v0  ;;  %v17388_v53 = vadd.f32 %v20713_v34, %v17287_v41  ;;  %v8548_v0 = vpop.f32.mrb[13].mxu1  ;;  %v17400_v47 = vadd.f32 %v8591_v33, %v17287_v41  ;;  %v8593_v54 = vpop.f32.mrb[18].mxu0  ;;  %20716 = vst [vmem:[#allocation47_spill] sm:$0xff] %v17412_v24 }
 0x45a   :  { %12749 = vpow2.f32 %v8868_v17  ;;  %v17397_v22 = vadd.f32 %v8548_v0, %v17351_v13  ;;  %v8550_v43 = vpop.f32.mrb[14].mxu1  ;;  %v8778_v34 = vmin.f32 %v17391_v58, 0.0  ;;  %v8595_v27 = vpop.f32.mrb[19].mxu0  ;;  %v11959_v17 = vadd.f32 -1.0, %v12732_v16 }
 0x45b   :  { %20714 = vst [vmem:[#allocation40_spill] sm:$0xff] %v17388_v53  ;;  %v8552_v19 = vpop.f32.mrb[15].mxu1  ;;  %12751 = vpow2.f32 %v8856_v59  ;;  %v8787_v0 = vmin.f32 %v17384_v51, 0.0  ;;  %v12734_v33 = vpop.eup %12733  ;;  %v8779_v42 = vmin.f32 %v17400_v47, 0.0  ;;  %v17419_v59 = vadd.f32 %v8593_v54, %v17322_v60 }
 0x45c   :  { %10004 = vmatpush1.bf16.msra.mxu0 %v16953_v35  ;;  %v8805_v35 = vmin.f32 %v17397_v22, 0.0  ;;  %12753 = vpow2.f32 %v8854_v36  ;;  %v12736_v45 = vpop.eup %12735  ;;  %v17421_v16 = vmul.f32 1.442695, %v8799_v28  ;;  %v17426_v29 = vadd.f32 %v8552_v19, %v17298_v62 }
 0x45d   :  { %10005 = vmatprep.subr.bf16.mxu0 %v16959_v30  ;;  %v8842_v30 = vmul.f32 1.442695, %v8778_v34  ;;  %v17423_v46 = vpop.eup %12737  ;;  %v8844_v14 = vmul.f32 1.442695, %v8779_v42  ;;  %v17429_v36 = vadd.f32 %v8595_v27, %v17322_v60  ;;  %v17439_v28 = vsel %vm8715_vm1, %v17291_v44, %v11959_v17 }
 0x45e   :  { %20717 = vst [vmem:[#allocation60_spill] sm:$0xff] %v17423_v46  ;;  %v8896_v38 = vmul.f32 1.442695, %v8805_v35  ;;  %v17432_v41 = vpop.eup %12739  ;;  %v17442_v19 = vmul.f32 1.442695, %v8787_v0  ;;  %v8804_v27 = vmin.f32 %v17412_v24, 0.0  ;;  %v17450_v46 = vadd.f32 %v8550_v43, %v17298_v62 }
 0x45f   :  { %v17444_v34 = vpop.eup %12741  ;;  %12755 = vpow2.f32 %v8842_v30  ;;  %v8819_v35 = vmin.f32 %v17426_v29, 0.0  ;;  %v8599_v42 = vpop.f32.mrb[20].mxu0  ;;  %v8793_v44 = vmin.f32 %v17429_v36, 0.0  ;;  %v17455_v0 = vadd.f32 -1.0, %v12734_v33 }
 0x460   :  { %10006 = vmatpush1.bf16.msra.mxu0 %v16975_v49  ;;  %v8792_v49 = vmin.f32 %v17419_v59, 0.0  ;;  %12757 = vpow2.f32 %v8896_v38  ;;  %v8601_v17 = vpop.f32.mrb[21].mxu0  ;;  %v17458_v43 = vadd.f32 -1.0, %v12736_v45  ;;  %v17461_v2 = vadd.f32 %v8599_v42, %v17351_v13 }
 0x461   :  { %10007 = vmatprep.subr.bf16.mxu0 %v16981_v10  ;;  %v12744_v10 = vpop.eup %12743  ;;  %12759 = vpow2.f32 %v8844_v14  ;;  %v8924_v1 = vmul.f32 1.442695, %v8819_v35  ;;  %v8603_v63 = vpop.f32.mrb[22].mxu0  ;;  %v8872_v8 = vmul.f32 1.442695, %v8793_v44  ;;  %v17466_v35 = vadd.f32 %v8601_v17, %v17351_v13 }
 0x462   :  { %v12746_v30 = vpop.eup %12745  ;;  %v11964_v54 = vadd.f32 -1.0, %v12744_v10  ;;  %v8870_v24 = vmul.f32 1.442695, %v8792_v49  ;;  %v8605_v32 = vpop.f32.mrb[23].mxu0  ;;  %v8894_v49 = vmul.f32 1.442695, %v8804_v27 }
 0x463   :  { %v12748_v38 = vpop.eup %12747  ;;  %v11965_v53 = vadd.f32 -1.0, %v12746_v30  ;;  %v8818_v10 = vmin.f32 %v17450_v46, 0.0  ;;  %v8806_v27 = vmin.f32 %v17461_v2, 0.0  ;;  %vm8722_vm1 = vcmp.gt.f32.partialorder %v17391_v58, 0.0 }
 0x464   :  { %10008 = vmatpush1.bf16.msra.mxu0 %v16997_v55  ;;  %v12750_v33 = vpop.eup %12749  ;;  %v11978_v14 = vadd.f32 -1.0, %v12748_v38  ;;  %12761 = vpow2.f32 %v8870_v24  ;;  %v17471_v45 = vsel %vm8720_vm3, %v17345_v23, %v11964_v54  ;;  %v17502_v54 = vadd.f32 %v8605_v32, %v17298_v62 }
 0x465   :  { %10009 = vmatprep.subr.bf16.mxu0 %v17003_v6  ;;  %v12752_v55 = vpop.eup %12751  ;;  %v11979_v42 = vadd.f32 -1.0, %v12750_v33  ;;  %12763 = vpow2.f32 %v8924_v1  ;;  %v17477_v6 = vsel %vm8721_vm9, %v17354_v37, %v11965_v53  ;;  %v8807_v53 = vmin.f32 %v17466_v35, 0.0 }
 0x466   :  { %v12754_v44 = vpop.eup %12753  ;;  %v17482_v24 = vsel %vm8734_vm11, %v17360_v20, %v11978_v14  ;;  %12765 = vpow2.f32 %v8872_v8  ;;  %v17496_v37 = vadd.f32 %v8603_v63, %v17298_v62  ;;  %v8898_v8 = vmul.f32 1.442695, %v8806_v27 }
 0x467   :  { %v17491_v1 = vsel %vm8735_vm13, %v17366_v4, %v11979_v42  ;;  %v11973_v20 = vadd.f32 -1.0, %v12752_v55  ;;  %12767 = vpow2.f32 %v8894_v49  ;;  %v8900_v4 = vmul.f32 1.442695, %v8807_v53  ;;  %v17516_v42 = vld [vmem:[%s20604_s12 + $0x100] ss:$8 sps:$4 sm:$0xff]  }
 0x468   :  { %10010 = vmatpush1.bf16.msra.mxu0 %v17014_v7  ;;  %v9057_v7 = vpack.c.bf16 %v17491_v1, %v17477_v6  ;;  %v8820_v17 = vmin.f32 %v17496_v37, 0.0  ;;  %v11972_v30 = vadd.f32 -1.0, %v12754_v44  ;;  %vm8749_vm3 = vcmp.gt.f32.partialorder %v17397_v22, 0.0 }
 0x469   :  { %10011 = vmatprep.subr.bf16.mxu0 %v17025_v15  ;;  %v12756_v38 = vpop.eup %12755  ;;  %vm8723_vm9 = vcmp.gt.f32.partialorder %v17400_v47, 0.0  ;;  %12769 = vpow2.f32 %v8898_v8  ;;  %v9009_v15 = vsel %vm8729_vm15, %v17338_v31, %v11973_v20  ;;  %v8922_v32 = vmul.f32 1.442695, %v8818_v10  ;;  %v17531_v10 = vld [vmem:[%s20604_s12 + $0x114] ss:$8 sps:$4 sm:$0xff]  }
 0x46a   :  { %v12758_v63 = vpop.eup %12757  ;;  %12771 = vpow2.f32 %v8900_v4  ;;  %v8926_v33 = vmul.f32 1.442695, %v8820_v17  ;;  %v9051_v14 = vpack.c.bf16 %v9009_v15, %v17439_v28  ;;  %v11966_v55 = vadd.f32 -1.0, %v12756_v38 }
 0x46b   :  { %v12760_v49 = vpop.eup %12759  ;;  %v8821_v44 = vmin.f32 %v17502_v54, 0.0  ;;  %v9008_v31 = vsel %vm8728_vm6, %v17342_v50, %v11972_v30  ;;  %vm8757_vm11 = vcmp.gt.f32.partialorder %v17312_v3, 0.0  ;;  %vm8736_vm13 = vcmp.gt.f32.partialorder %v17419_v59, 0.0 }
 0x46c   :  { %10012 = vmatpush1.bf16.msra.mxu0 %v17041_v9  ;;  %v8994_v9 = vsel %vm8714_vm4, %v17296_v5, %v17455_v0  ;;  %12773 = vpow2.f32 %v8926_v33  ;;  %9782 = vmatprep.mubr.bf16.mxu1 %v9051_v14  ;;  %vm8763_vm15 = vcmp.gt.f32.partialorder %v17426_v29, 0.0  ;;  %v20718_v50 = vmin.f32 %v17405_v61, 0.0 }
 0x46d   :  { %10013 = vmatprep.subr.bf16.mxu0 %v17047_v26  ;;  %v11993_v26 = vadd.f32 -1.0, %v12758_v63  ;;  %v9050_v28 = vpack.c.bf16 %v9008_v31, %v8994_v9  ;;  %v8928_v5 = vmul.f32 1.442695, %v8821_v44  ;;  %12775 = vpow2.f32 %v17421_v16  ;;  %v20721_v9 = vld [vmem:[#allocation23_spill] sm:$0xff] }
 0x46e   :  { %v12762_v27 = vpop.eup %12761  ;;  %v8882_v0 = vmul.f32 1.442695, %v20718_v50  ;;  %v11967_v8 = vadd.f32 -1.0, %v12760_v49  ;;  %12777 = vpow2.f32 %v8922_v32  ;;  %vm8737_vm4 = vcmp.gt.f32.partialorder %v17429_v36, 0.0  ;;  %v17613_v49 = vld [vmem:[%s20604_s12 + $0x134] ss:$8 sps:$4 sm:$0xff]  }
 0x46f   :  { %v12764_v53 = vpop.eup %12763  ;;  %v11980_v20 = vadd.f32 -1.0, %v12762_v27  ;;  %9783 = vmatmul.mubr.bf16.vlgmr.msra.gmra.mrb[24].mxu1 %v9050_v28  ;;  %12779 = vpow2.f32 %v8928_v5  ;;  %v12001_v16 = vadd.f32 -1.0, %v17432_v41  ;;  %v9002_v30 = vsel %vm8722_vm1, %v17391_v58, %v11966_v55  ;;  %v20720_v55 = vld [vmem:[#allocation42_spill] sm:$0xff]  ;;  %v20722_v5 = vld [vmem:[#allocation28_spill] sm:$0xff] }
 0x470   :  { %10014 = vmatpush1.bf16.msra.mxu0 %v17063_v52  ;;  %v12766_v4 = vpop.eup %12765  ;;  %v12007_v17 = vadd.f32 -1.0, %v12764_v53  ;;  %9804 = vmatpush1.bf16.msra.mxu1 %v17516_v42  ;;  %v17545_v52 = vld [vmem:[%s20604_s12 + $0x110] ss:$8 sps:$4 sm:$0xff]   ;;  %12781 = vpow2.f32 %v8882_v0  ;;  %v17562_v15 = vsel %vm8749_vm3, %v17397_v22, %v11993_v26  ;;  %vm8743_vm6 = vcmp.gt.f32.partialorder %v17376_v21, 0.0 }
 0x471   :  { %10015 = vmatprep.subr.bf16.mxu0 %v17069_v18  ;;  %v11981_v38 = vadd.f32 -1.0, %v12766_v4  ;;  %9805 = vmatprep.subr.bf16.mxu1 %v17531_v10  ;;  %v17554_v18 = vld [vmem:[%s20604_s12 + $0x124] ss:$8 sps:$4 sm:$0xff]   ;;  %v9016_v41 = vsel %vm8736_vm13, %v17419_v59, %v11980_v20  ;;  %vm8756_vm1 = vcmp.gt.f32.partialorder %v17317_v39, 0.0  ;;  %12783 = vpow2.f32 %v17394_v56  ;;  %v20719_v59 = vld [vmem:[#allocation41_spill] sm:$0xff]  ;;  %v17577_v22 = vpop.eup %12767 }
 0x472   :  { %v9058_v58 = vpack.c.bf16 %v9016_v41, %v9002_v30  ;;  %v17571_v63 = vsel %vm8763_vm15, %v17426_v29, %v12007_v17  ;;  %v17575_v32 = vadd.f32 %v20719_v59, %v17322_v60  ;;  %v17582_v33 = vsel %vm8723_vm9, %v17400_v47, %v11967_v8  ;;  %v17600_v47 = vld [vmem:[%s20604_s12 + $0x120] ss:$8 sps:$4 sm:$0xff]  }
 0x473   :  { %12785 = vpow2.f32 %v17442_v19  ;;  %v12770_v56 = vpop.eup %12769  ;;  %vm8750_vm3 = vcmp.gt.f32.partialorder %v17461_v2, 0.0  ;;  %vm8717_vm9 = vcmp.gt.f32.partialorder %v17333_v40, 0.0  ;;  %vm8751_vm13 = vcmp.gt.f32.partialorder %v17466_v35, 0.0  ;;  %v20723_v4 = vld [vmem:[#allocation43_spill] sm:$0xff] }
 0x474   :  { %10016 = vmatpush1.bf16.msra.mxu0 %v17085_v57  ;;  %v17587_v57 = vsel %vm8737_vm4, %v17429_v36, %v11981_v38  ;;  %9806 = vmatpush1.bf16.msra.mxu1 %v17545_v52  ;;  %v8786_v36 = vmin.f32 %v17575_v32, 0.0  ;;  %v12772_v19 = vpop.eup %12771  ;;  %vm8764_vm15 = vcmp.gt.f32.partialorder %v17496_v37, 0.0  ;;  %vm8742_vm4 = vcmp.gt.f32.partialorder %v17405_v61, 0.0  ;;  %v17640_v38 = vld [vmem:[%s20604_s12 + $0x130] ss:$8 sps:$4 sm:$0xff]  }
 0x475   :  { %10017 = vmatprep.subr.bf16.mxu0 %v17091_v11  ;;  %10029 = vmatprep.mubr.bf16.mxu0 %v9058_v58  ;;  %v8772_v11 = vmin.f32 %v17349_v48, 0.0  ;;  %v17617_v44 = vadd.f32 %v20720_v55, %v17351_v13  ;;  %v17621_v31 = vadd.f32 %v20721_v9, %v17351_v13  ;;  %v11994_v26 = vadd.f32 -1.0, %v12770_v56  ;;  %v20724_v56 = vld [vmem:[#allocation49_spill] sm:$0xff]  ;;  %v20725_v55 = vld [vmem:[#allocation32_spill] sm:$0xff]  ;;  %v20741_v29 = vld [vmem:[#allocation59_spill] sm:$0xff] }
 0x476   :  { %9807 = vmatprep.subr.bf16.mxu1 %v17554_v18  ;;  %v8858_v27 = vmul.f32 1.442695, %v8786_v36  ;;  %v17626_v50 = vadd.f32 %v20722_v5, %v17298_v62  ;;  %v12774_v0 = vpop.eup %12773  ;;  %vm8765_vm2 = vcmp.gt.f32.partialorder %v17502_v54, 0.0  ;;  %v9037_v53 = vsel %vm8757_vm11, %v17312_v3, %v12001_v16  ;;  %v17649_v16 = vld [vmem:[%s20604_s12 + $0x144] ss:$8 sps:$4 sm:$0xff]  }
 0x477   :  { %v8830_v28 = vmul.f32 1.442695, %v8772_v11  ;;  %v12000_v8 = vadd.f32 -1.0, %v17444_v34  ;;  %v8801_v20 = vmin.f32 %v17617_v44, 0.0  ;;  %vm8759_vm5 = vcmp.gt.f32.partialorder %v20723_v4, 0.0 }
 0x478   :  { %10018 = vmatpush1.bf16.msra.mxu0 %v17102_v25  ;;  %v12776_v25 = vpop.eup %12775  ;;  %v11995_v17 = vadd.f32 -1.0, %v12772_v19  ;;  %v12008_v30 = vadd.f32 -1.0, %v12774_v0  ;;  %9808 = vmatpush1.bf16.msra.mxu1 %v17600_v47  ;;  %v8800_v3 = vmin.f32 %v17621_v31, 0.0  ;;  %v8814_v58 = vmin.f32 %v17626_v50, 0.0  ;;  %v20726_v0 = vld [vmem:[#allocation54_spill] sm:$0xff] }
 0x479   :  { %10019 = vmatprep.subr.bf16.mxu0 %v17113_v12  ;;  %12787 = vpow2.f32 %v8830_v28  ;;  %v17643_v34 = vpop.eup %12777  ;;  %v11987_v12 = vadd.f32 -1.0, %v12776_v25  ;;  %9809 = vmatprep.subr.bf16.mxu1 %v17613_v49  ;;  %v8888_v41 = vmul.f32 1.442695, %v8801_v20  ;;  %v17656_v11 = vsel %vm8750_vm3, %v17461_v2, %v11994_v26  ;;  %v17677_v25 = vld [vmem:[%s20604_s12 + $0x140] ss:$8 sps:$4 sm:$0xff]  }
 0x47a   :  { %12789 = vpow2.f32 %v8858_v27  ;;  %v12780_v59 = vpop.eup %12779  ;;  %v17661_v36 = vsel %vm8764_vm15, %v17496_v37, %v12008_v30  ;;  %v8886_v19 = vmul.f32 1.442695, %v8800_v3  ;;  %v17665_v9 = vadd.f32 %v20725_v55, %v17322_v60  ;;  %v20728_v55 = vld [vmem:[#allocation33_spill] sm:$0xff] }
 0x47b   :  { %v12782_v28 = vpop.eup %12781  ;;  %v12009_v27 = vadd.f32 -1.0, %v12780_v59  ;;  %v9023_v5 = vsel %vm8743_vm6, %v17376_v21, %v11987_v12  ;;  %v9072_v2 = vpack.c.bf16 %v17661_v36, %v17656_v11  ;;  %12791 = vpow2.f32 %v8888_v41  ;;  %v20727_v41 = vld [vmem:[#allocation40_spill] sm:$0xff] }
 0x47c   :  { %10020 = vmatpush1.bf16.msra.mxu0 %v20724_v56  ;;  %v12784_v26 = vpop.eup %12783  ;;  %v9065_v37 = vpack.c.bf16 %v9037_v53, %v9023_v5  ;;  %v11986_v20 = vadd.f32 -1.0, %v12782_v28  ;;  %9810 = vmatpush1.bf16.msra.mxu1 %v17640_v38  ;;  %12793 = vpow2.f32 %v8886_v19  ;;  %v8914_v30 = vmul.f32 1.442695, %v8814_v58  ;;  %v17686_v53 = vld [vmem:[%s20604_s12 + $0x154] ss:$8 sps:$4 sm:$0xff]  }
 0x47d   :  { %10021 = vmatprep.subr.bf16.mxu0 %v20726_v0  ;;  %v12786_v3 = vpop.eup %12785  ;;  %v9036_v21 = vsel %vm8756_vm1, %v17317_v39, %v12000_v8  ;;  %v11961_v12 = vadd.f32 -1.0, %v12784_v26  ;;  %9811 = vmatprep.subr.bf16.mxu1 %v17649_v16  ;;  %v8775_v59 = vmin.f32 %v20727_v41, 0.0  ;;  %v8789_v56 = vmin.f32 %v17665_v9, 0.0  ;;  %v20729_v5 = vld [vmem:[#allocation36_spill] sm:$0xff] }
 0x47e   :  { %9792 = vmatprep.mubr.bf16.mxu1 %v9065_v37  ;;  %v9022_v58 = vsel %vm8742_vm4, %v17405_v61, %v11986_v20  ;;  %v11975_v19 = vadd.f32 -1.0, %v12786_v3  ;;  %12795 = vpow2.f32 %v8914_v30  ;;  %v17697_v39 = vsel %vm8751_vm13, %v17466_v35, %v11995_v17  ;;  %v17710_v35 = vld [vmem:[%s20604_s12 + $0x150] ss:$8 sps:$4 sm:$0xff]  }
 0x47f   :  { %v9064_v8 = vpack.c.bf16 %v9036_v21, %v9022_v58  ;;  %v8997_v28 = vsel %vm8717_vm9, %v17333_v40, %v11961_v12  ;;  %v8836_v0 = vmul.f32 1.442695, %v8775_v59  ;;  %v8864_v26 = vmul.f32 1.442695, %v8789_v56  ;;  %v20730_v40 = vld [vmem:[#allocation37_spill] sm:$0xff]  ;;  %v20731_v37 = vld [vmem:[#allocation27_spill] sm:$0xff] }
 0x480   :  { %10022 = vmatpush1.bf16.msra.mxu0 %v20728_v55  ;;  %v9011_v61 = vsel %vm8731_vm8, %v17384_v51, %v11975_v19  ;;  %9812 = vmatpush1.bf16.msra.mxu1 %v17677_v25  ;;  %v17715_v17 = vsel %vm8765_vm2, %v17502_v54, %v12009_v27  ;;  %v17719_v20 = vadd.f32 %v20731_v37, %v20730_v40  ;;  %v20732_v30 = vld [vmem:[#allocation29_spill] sm:$0xff]  ;;  %v17729_v21 = vld [vmem:[%s20604_s12 + $0x164] ss:$8 sps:$4 sm:$0xff]   ;;  %vm8716_vm2 = vcmp.gt.f32.partialorder %v17349_v48, 0.0 }
 0x481   :  { %10023 = vmatprep.subr.bf16.mxu0 %v20729_v5  ;;  %v17723_v3 = vadd.f32 %v20732_v30, %v17322_v60  ;;  %9793 = vmatmul.mubr.bf16.gmra.mrb[28].mxu1 %v9064_v8  ;;  %v9053_v51 = vpack.c.bf16 %v9011_v61, %v8997_v28  ;;  %12797 = vpow2.f32 %v8836_v0  ;;  %v20733_v27 = vld [vmem:[#allocation31_spill] sm:$0xff]  ;;  %v20734_v56 = vld [vmem:[#allocation53_spill] sm:$0xff]  ;;  %vm8730_vm8 = vcmp.gt.f32.partialorder %v17575_v32, 0.0 }
 0x482   :  { %9813 = vmatprep.subr.bf16.mxu1 %v17686_v53  ;;  %v17735_v12 = vadd.f32 %v20733_v27, %v17351_v13  ;;  %12799 = vpow2.f32 %v8864_v26  ;;  %v8774_v58 = vmin.f32 %v17719_v20, 0.0  ;;  %v17744_v55 = vld [vmem:[%s20604_s12 + $0x160] ss:$8 sps:$4 sm:$0xff]   ;;  %v17751_v5 = vsel %vm8759_vm5, %v20723_v4, %v17458_v43  ;;  %v17759_v61 = vld [vmem:[%s20604_s12 + $0x174] ss:$8 sps:$4 sm:$0xff]  }
 0x483   :  { %v12788_v59 = vpop.eup %12787  ;;  %9835 = vmatprep.mubr.bf16.mxu1 %v9053_v51  ;;  %v20735_v8 = vld [vmem:[#allocation9_spill] sm:$0xff]  ;;  %v8788_v0 = vmin.f32 %v17723_v3, 0.0  ;;  %vm8745_vm11 = vcmp.gt.f32.partialorder %v17617_v44, 0.0  ;;  %v20736_v51 = vld [vmem:[#allocation51_spill] sm:$0xff]  ;;  %vm8744_vm5 = vcmp.gt.f32.partialorder %v17621_v31, 0.0  ;;  %vm8758_vm6 = vcmp.gt.f32.partialorder %v17626_v50, 0.0 }
 0x484   :  { %10024 = vmatpush1.bf16.msra.mxu0 %v20734_v56  ;;  %v12790_v19 = vpop.eup %12789  ;;  %v11960_v28 = vadd.f32 -1.0, %v12788_v59  ;;  %v8803_v26 = vmin.f32 %v17735_v12, 0.0  ;;  %9814 = vmatpush1.bf16.msra.mxu1 %v17710_v35  ;;  %v8834_v30 = vmul.f32 1.442695, %v8774_v58  ;;  %v17764_v27 = vadd.f32 %v20736_v51, %v17351_v13  ;;  %v20737_v56 = vld [vmem:[#allocation34_spill] sm:$0xff] }
 0x485   :  { %10025 = vmatprep.subr.bf16.mxu0 %v20735_v8  ;;  %v11974_v37 = vadd.f32 -1.0, %v12790_v19  ;;  %v12792_v43 = vpop.eup %12791  ;;  %9815 = vmatprep.subr.bf16.mxu1 %v17729_v21  ;;  %v8862_v4 = vmul.f32 1.442695, %v8788_v0  ;;  %v17770_v8 = vadd.f32 %v20737_v56, %v17298_v62  ;;  %v20738_v19 = vld [vmem:[#allocation35_spill] sm:$0xff]  ;;  %v11992_v14 = vadd.f32 -1.0, %v17577_v22 }
 0x486   :  { %v8892_v59 = vmul.f32 1.442695, %v8803_v26  ;;  %v12794_v23 = vpop.eup %12793  ;;  %v17776_v58 = vsel %vm8716_vm2, %v17349_v48, %v11960_v28  ;;  %v11989_v54 = vadd.f32 -1.0, %v12792_v43  ;;  %12801 = vpow2.f32 %v8834_v30  ;;  %v20739_v0 = vld [vmem:[#allocation39_spill] sm:$0xff] }
 0x487   :  { %v17781_v51 = vsel %vm8730_vm8, %v17575_v32, %v11974_v37  ;;  %v11988_v56 = vadd.f32 -1.0, %v12794_v23  ;;  %12803 = vpow2.f32 %v8862_v4  ;;  %v17791_v48 = vld [vmem:[%s20604_s12 + $0x170] ss:$8 sps:$4 sm:$0xff]   ;;  %v8802_v28 = vmin.f32 %v17764_v27, 0.0  ;;  %v17804_v23 = vld [vmem:[%s20604_s12 + $0x184] ss:$8 sps:$4 sm:$0xff]  }
 0x488   :  { %10026 = vmatpush1.bf16.msra.mxu0 %v20738_v19  ;;  %v12796_v19 = vpop.eup %12795  ;;  %9816 = vmatpush1.bf16.msra.mxu1 %v17744_v55  ;;  %v17796_v32 = vsel %vm8745_vm11, %v17617_v44, %v11989_v54  ;;  %12805 = vpow2.f32 %v8892_v59  ;;  %v8816_v37 = vmin.f32 %v17770_v8, 0.0  ;;  %v20740_v54 = vld [vmem:[#allocation55_spill] sm:$0xff]  ;;  %v12006_v26 = vadd.f32 -1.0, %v17643_v34 }
 0x489   :  { %10027 = vmatprep.subr.bf16.mxu0 %v20739_v0  ;;  %9817 = vmatprep.subr.bf16.mxu1 %v17759_v61  ;;  %v9067_v30 = vpack.c.bf16 %v17751_v5, %v17796_v32  ;;  %v12002_v43 = vadd.f32 -1.0, %v12796_v19  ;;  %v17811_v44 = vsel %vm8744_vm5, %v17621_v31, %v11988_v56  ;;  %v8890_v4 = vmul.f32 1.442695, %v8802_v28  ;;  %v17827_v56 = vld [vmem:[%s20604_s12 + $0x180] ss:$8 sps:$4 sm:$0xff]  }
 0x48a   :  { %v8918_v59 = vmul.f32 1.442695, %v8816_v37  ;;  %vm8719_vm1 = vcmp.gt.f32.partialorder %v20727_v41, 0.0  ;;  %vm8733_vm3 = vcmp.gt.f32.partialorder %v17665_v9, 0.0  ;;  %v20742_v28 = vld [vmem:[#allocation47_spill] sm:$0xff]  ;;  %vm8762_vm13 = vcmp.gt.f32.partialorder %v17450_v46, 0.0 }
 0x48b   :  { %v12798_v0 = vpop.eup %12797  ;;  %v17820_v19 = vsel %vm8758_vm6, %v17626_v50, %v12002_v43  ;;  %12807 = vpow2.f32 %v8890_v4  ;;  %v17836_v50 = vld [vmem:[%s20604_s12 + $0x194] ss:$8 sps:$4 sm:$0xff]   ;;  %vm8748_vm9 = vcmp.gt.f32.partialorder %v20742_v28, 0.0  ;;  %vm8718_vm15 = vcmp.gt.f32.partialorder %v17719_v20, 0.0  ;;  %v20744_v4 = vld [vmem:[#allocation58_spill] sm:$0xff] }
 0x48c   :  { %10028 = vmatpush1.bf16.msra.mxu0 %v20740_v54  ;;  %v12800_v31 = vpop.eup %12799  ;;  %9818 = vmatpush1.bf16.msra.mxu1 %v17791_v48  ;;  %v9066_v22 = vpack.c.bf16 %v17820_v19, %v17811_v44  ;;  %12809 = vpow2.f32 %v8918_v59  ;;  %v17866_v36 = vsel %vm8748_vm9, %v20742_v28, %v11992_v14  ;;  %vm8732_vm4 = vcmp.gt.f32.partialorder %v17723_v3, 0.0  ;;  %v17888_v59 = vld [vmem:[%s20604_s12 + $0x1a0] ss:$8 sps:$4 sm:$0xff]   ;;  %v18044_v32 = vld [vmem:[%s20604_s12 + $0x230] ss:$8 sps:$4 sm:$0xff]  }
 0x48d   :  { %10050 = vmatprep.subr.bf16.mxu0 %v20741_v29  ;;  %v11963_v29 = vadd.f32 -1.0, %v12798_v0  ;;  %9819 = vmatprep.subr.bf16.mxu1 %v17804_v23  ;;  %v11977_v34 = vadd.f32 -1.0, %v12800_v31  ;;  %vm8761_vm2 = vcmp.gt.f32.partialorder %v20744_v4, 0.0  ;;  %vm8747_vm8 = vcmp.gt.f32.partialorder %v17735_v12, 0.0  ;;  %v18024_v5 = vld [vmem:[%s20604_s12 + $0x220] ss:$8 sps:$4 sm:$0xff]  }
 0x48e   :  { %vm8760_vm11 = vcmp.gt.f32.partialorder %v17770_v8, 0.0  ;;  %vm8746_vm5 = vcmp.gt.f32.partialorder %v17764_v27, 0.0  ;;  %v18062_v19 = vld [vmem:[%s20604_s12 + $0x254] ss:$8 sps:$4 sm:$0xff]  }
 0x48f   :  { %10030 = vmatmul.mubr.bf16.vlgmr.msra.gmra.mrb[32].mxu0 %v9057_v7  ;;  %v17851_v37 = vsel %vm8719_vm1, %v20727_v41, %v11963_v29  ;;  %v17854_v6 = vsel %vm8733_vm3, %v17665_v9, %v11977_v34  ;;  %v20743_v7 = vld [vmem:[#allocation60_spill] sm:$0xff]  ;;  %v17875_v41 = vld [vmem:[%s20604_s12 + $0x1a4] ss:$8 sps:$4 sm:$0xff]  }
 0x490   :  { %10039 = vmatprep.mubr.bf16.mxu0 %v9072_v2  ;;  %10051 = vmatpush1.bf16.msra.mxu0 %v17516_v42  ;;  %v12802_v1 = vpop.eup %12801  ;;  %v12005_v11 = vadd.f32 -1.0, %v20743_v7  ;;  %v17861_v42 = vld [vmem:[%s20604_s12 + $0x190] ss:$8 sps:$4 sm:$0xff]   ;;  %v17869_v2 = vsel %vm8762_vm13, %v17450_v46, %v12006_v26 }
 0x491   :  { %10052 = vmatprep.subr.bf16.mxu0 %v17531_v10  ;;  %9820 = vmatpush1.bf16.msra.mxu1 %v17827_v56  ;;  %v9055_v10 = vpack.c.bf16 %v17854_v6, %v17851_v37  ;;  %v12804_v9 = vpop.eup %12803  ;;  %v11962_v43 = vadd.f32 -1.0, %v12802_v1  ;;  %v9070_v14 = vpack.c.bf16 %v17869_v2, %v17866_v36 }
 0x492   :  { %9821 = vmatprep.subr.bf16.mxu1 %v17836_v50  ;;  %v12806_v54 = vpop.eup %12805  ;;  %v11976_v46 = vadd.f32 -1.0, %v12804_v9  ;;  %v12635_v9 = vld [vmem:[%s20604_s12 + $0x1c0] ss:$8 sps:$4 sm:$0xff]  }
 0x493   :  { %v11991_v26 = vadd.f32 -1.0, %v12806_v54  ;;  %v17891_v0 = vsel %vm8718_vm15, %v17719_v20, %v11962_v43 }
 0x494   :  { %10053 = vmatpush1.bf16.msra.mxu0 %v17545_v52  ;;  %v17894_v31 = vsel %vm8732_vm4, %v17723_v3, %v11976_v46  ;;  %v17901_v52 = vld [vmem:[%s20604_s12 + $0x1b4] ss:$8 sps:$4 sm:$0xff]   ;;  %v17912_v3 = vsel %vm8761_vm2, %v20744_v4, %v12005_v11  ;;  %v18088_v4 = vld [vmem:[%s20604_s12 + $0x264] ss:$8 sps:$4 sm:$0xff]  }
 0x495   :  { %10054 = vmatprep.subr.bf16.mxu0 %v17554_v18  ;;  %9822 = vmatpush1.bf16.msra.mxu1 %v17861_v42  ;;  %v20745_v18 = vpack.c.bf16 %v17571_v63, %v17562_v15  ;;  %v9054_v20 = vpack.c.bf16 %v17894_v31, %v17891_v0  ;;  %v17909_v29 = vsel %vm8747_vm8, %v17735_v12, %v11991_v26  ;;  %v12808_v34 = vpop.eup %12807  ;;  %v12632_v63 = vld [vmem:[%s20604_s12 + $0x1b0] ss:$8 sps:$4 sm:$0xff]   ;;  %v18327_v0 = vld [vmem:[%s20604_s12 + $0x324] ss:$8 sps:$4 sm:$0xff]   ;;  %v18339_v31 = vld [vmem:[%s20604_s12 + $0x320] ss:$8 sps:$4 sm:$0xff]  }
 0x496   :  { %9823 = vmatprep.subr.bf16.mxu1 %v17875_v41  ;;  %v9069_v28 = vpack.c.bf16 %v17912_v3, %v17909_v29  ;;  %v12810_v1 = vpop.eup %12809  ;;  %v11990_v15 = vadd.f32 -1.0, %v12808_v34  ;;  %v18098_v34 = vld [vmem:[%s20604_s12 + $0x260] ss:$8 sps:$4 sm:$0xff]   ;;  %v18358_v29 = vld [vmem:[%s20604_s12 + $0x330] ss:$8 sps:$4 sm:$0xff]  }
 0x497   :  { %10040 = vmatmul.mubr.bf16.gmra.mrb[36].mxu0 %v20745_v18  ;;  %v12004_v12 = vadd.f32 -1.0, %v12810_v1  ;;  %v18365_v3 = vld [vmem:[%s20604_s12 + $0x344] ss:$8 sps:$4 sm:$0xff]  }
 0x498   :  { %10055 = vmatpush1.bf16.msra.mxu0 %v17600_v47  ;;  %v12637_v47 = vld [vmem:[%s20604_s12 + $0x1c4] ss:$8 sps:$4 sm:$0xff]  }
 0x499   :  { %10056 = vmatprep.subr.bf16.mxu0 %v17613_v49  ;;  %9824 = vmatpush1.bf16.msra.mxu1 %v17888_v59  ;;  %v17929_v49 = vsel %vm8746_vm5, %v17764_v27, %v11990_v15  ;;  %v17933_v7 = vsel %vm8760_vm11, %v17770_v8, %v12004_v12  ;;  %v12640_v27 = vld [vmem:[%s20604_s12 + $0x1d4] ss:$8 sps:$4 sm:$0xff]   ;;  %v20746_v8 = vpack.c.bf16 %v17781_v51, %v17776_v58  ;;  %v18016_v58 = vld [vmem:[%s20604_s12 + $0x224] ss:$8 sps:$4 sm:$0xff]  }
 0x49a   :  { %9825 = vmatprep.subr.bf16.mxu1 %v17901_v52  ;;  %v9068_v11 = vpack.c.bf16 %v17933_v7, %v17929_v49  ;;  %v18030_v51 = vld [vmem:[%s20604_s12 + $0x234] ss:$8 sps:$4 sm:$0xff]   ;;  %v18387_v7 = vld [vmem:[%s20604_s12 + $0x350] ss:$8 sps:$4 sm:$0xff]  }
 0x49b   :  { %v18380_v49 = vld [vmem:[%s20604_s12 + $0x354] ss:$8 sps:$4 sm:$0xff]  }
 0x49c   :  { %10057 = vmatpush1.bf16.msra.mxu0 %v17640_v38  ;;  %v17949_v38 = vld [vmem:[%s20604_s12 + $0x1d0] ss:$8 sps:$4 sm:$0xff]  }
 0x49d   :  { %10058 = vmatprep.subr.bf16.mxu0 %v17649_v16  ;;  %9826 = vmatpush1.bf16.msra.mxu1 %v12632_v63  ;;  %v17954_v16 = vld [vmem:[%s20604_s12 + $0x1e4] ss:$8 sps:$4 sm:$0xff]  }
 0x49e   :  { %9827 = vmatprep.subr.bf16.mxu1 %v12637_v47 }
 0x4a0   :  { %10059 = vmatpush1.bf16.msra.mxu0 %v17677_v25  ;;  %v17962_v25 = vld [vmem:[%s20604_s12 + $0x1e0] ss:$8 sps:$4 sm:$0xff]  }
 0x4a1   :  { %10060 = vmatprep.subr.bf16.mxu0 %v17686_v53  ;;  %9828 = vmatpush1.bf16.msra.mxu1 %v12635_v9  ;;  %v17968_v53 = vld [vmem:[%s20604_s12 + $0x1f4] ss:$8 sps:$4 sm:$0xff]  }
 0x4a2   :  { %9829 = vmatprep.subr.bf16.mxu1 %v12640_v27 }
 0x4a4   :  { %10061 = vmatpush1.bf16.msra.mxu0 %v17710_v35  ;;  %v17976_v35 = vld [vmem:[%s20604_s12 + $0x1f0] ss:$8 sps:$4 sm:$0xff]  }
 0x4a5   :  { %10062 = vmatprep.subr.bf16.mxu0 %v17729_v21  ;;  %9830 = vmatpush1.bf16.msra.mxu1 %v17949_v38  ;;  %v17982_v21 = vld [vmem:[%s20604_s12 + $0x204] ss:$8 sps:$4 sm:$0xff]  }
 0x4a6   :  { %9831 = vmatprep.subr.bf16.mxu1 %v17954_v16 }
 0x4a8   :  { %10063 = vmatpush1.bf16.msra.mxu0 %v17744_v55  ;;  %v17990_v55 = vld [vmem:[%s20604_s12 + $0x200] ss:$8 sps:$4 sm:$0xff]  }
 0x4a9   :  { %10064 = vmatprep.subr.bf16.mxu0 %v17759_v61  ;;  %9832 = vmatpush1.bf16.msra.mxu1 %v17962_v25  ;;  %v17996_v61 = vld [vmem:[%s20604_s12 + $0x214] ss:$8 sps:$4 sm:$0xff]  }
 0x4aa   :  { %9833 = vmatprep.subr.bf16.mxu1 %v17968_v53 }
 0x4ac   :  { %10065 = vmatpush1.bf16.msra.mxu0 %v17791_v48  ;;  %v18010_v48 = vld [vmem:[%s20604_s12 + $0x210] ss:$8 sps:$4 sm:$0xff]  }
 0x4ad   :  { %10066 = vmatprep.subr.bf16.mxu0 %v17804_v23  ;;  %9834 = vmatpush1.bf16.msra.mxu1 %v17976_v35  ;;  %v18050_v23 = vld [vmem:[%s20604_s12 + $0x244] ss:$8 sps:$4 sm:$0xff]  }
 0x4ae   :  { %9856 = vmatprep.subr.bf16.mxu1 %v17982_v21 }
 0x4b0   :  { %10067 = vmatpush1.bf16.msra.mxu0 %v17827_v56  ;;  %9836 = vmatmul.mubr.bf16.vlgmr.msra.gmra.mrb[24].mxu1 %v20746_v8 }
 0x4b1   :  { %10068 = vmatprep.subr.bf16.mxu0 %v17836_v50  ;;  %9845 = vmatprep.mubr.bf16.mxu1 %v9067_v30  ;;  %v18056_v30 = vld [vmem:[%s20604_s12 + $0x240] ss:$8 sps:$4 sm:$0xff]  }
 0x4b2   :  { %9857 = vmatpush1.bf16.msra.mxu1 %v17990_v55 }
 0x4b3   :  { %9858 = vmatprep.subr.bf16.mxu1 %v17996_v61 }
 0x4b4   :  { %10069 = vmatpush1.bf16.msra.mxu0 %v17861_v42 }
 0x4b5   :  { %10070 = vmatprep.subr.bf16.mxu0 %v17875_v41  ;;  %v18078_v41 = vld [vmem:[%s20604_s12 + $0x250] ss:$8 sps:$4 sm:$0xff]  }
 0x4b6   :  { %9859 = vmatpush1.bf16.msra.mxu1 %v18010_v48 }
 0x4b7   :  { %9860 = vmatprep.subr.bf16.mxu1 %v18016_v58 }
 0x4b8   :  { %10071 = vmatpush1.bf16.msra.mxu0 %v17888_v59  ;;  %9846 = vmatmul.mubr.bf16.gmra.mrb[28].mxu1 %v9066_v22 }
 0x4b9   :  { %10072 = vmatprep.subr.bf16.mxu0 %v17901_v52  ;;  %9888 = vmatprep.mubr.bf16.mxu1 %v9055_v10 }
 0x4ba   :  { %9861 = vmatpush1.bf16.msra.mxu1 %v18024_v5 }
 0x4bb   :  { %9862 = vmatprep.subr.bf16.mxu1 %v18030_v51 }
 0x4bc   :  { %10073 = vmatpush1.bf16.msra.mxu0 %v12632_v63  ;;  %v18104_v63 = vld [vmem:[%s20604_s12 + $0x274] ss:$8 sps:$4 sm:$0xff]  }
 0x4bd   :  { %10074 = vmatprep.subr.bf16.mxu0 %v12637_v47 }
 0x4be   :  { %9863 = vmatpush1.bf16.msra.mxu1 %v18044_v32  ;;  %v8642_v44 = vpop.f32.mrb[16].mxu1 }
 0x4bf   :  { %9864 = vmatprep.subr.bf16.mxu1 %v18050_v23  ;;  %v18065_v56 = vadd.f32 %v8642_v44, %v20730_v40  ;;  %v8644_v22 = vpop.f32.mrb[17].mxu1  ;;  %v18122_v44 = vld [vmem:[%s20604_s12 + $0x270] ss:$8 sps:$4 sm:$0xff]  }
 0x4c0   :  { %v18068_v50 = vadd.f32 %v8644_v22, %v20730_v40  ;;  %v8646_v37 = vpop.f32.mrb[18].mxu1  ;;  %10075 = vmatpush1.bf16.msra.mxu0 %v12635_v9 }
 0x4c1   :  { %v8780_v6 = vmin.f32 %v18065_v56, 0.0  ;;  %v18072_v42 = vadd.f32 %v8646_v37, %v17322_v60  ;;  %v8648_v10 = vpop.f32.mrb[19].mxu1  ;;  %10076 = vmatprep.subr.bf16.mxu0 %v12640_v27  ;;  %vm8724_vm6 = vcmp.gt.f32.partialorder %v18065_v56, 0.0 }
 0x4c2   :  { %9865 = vmatpush1.bf16.msra.mxu1 %v18056_v30  ;;  %v8781_v43 = vmin.f32 %v18068_v50, 0.0  ;;  %v18082_v54 = vadd.f32 %v8648_v10, %v17322_v60  ;;  %vm8725_vm3 = vcmp.gt.f32.partialorder %v18068_v50, 0.0 }
 0x4c3   :  { %9866 = vmatprep.subr.bf16.mxu1 %v18062_v19  ;;  %v8846_v46 = vmul.f32 1.442695, %v8780_v6  ;;  %v8794_v26 = vmin.f32 %v18072_v42, 0.0  ;;  %vm8738_vm1 = vcmp.gt.f32.partialorder %v18072_v42, 0.0 }
 0x4c4   :  { %v8848_v59 = vmul.f32 1.442695, %v8781_v43  ;;  %v8795_v52 = vmin.f32 %v18082_v54, 0.0  ;;  %10077 = vmatpush1.bf16.msra.mxu0 %v17949_v38  ;;  %vm8739_vm9 = vcmp.gt.f32.partialorder %v18082_v54, 0.0 }
 0x4c5   :  { %12811 = vpow2.f32 %v8846_v46  ;;  %v8874_v18 = vmul.f32 1.442695, %v8794_v26  ;;  %10078 = vmatprep.subr.bf16.mxu0 %v17954_v16  ;;  %v18142_v26 = vld [vmem:[%s20604_s12 + $0x280] ss:$8 sps:$4 sm:$0xff]  }
 0x4c6   :  { %9867 = vmatpush1.bf16.msra.mxu1 %v18078_v41  ;;  %12813 = vpow2.f32 %v8848_v59  ;;  %v8876_v1 = vmul.f32 1.442695, %v8795_v52  ;;  %v8652_v15 = vpop.f32.mrb[20].mxu1 }
 0x4c7   :  { %9868 = vmatprep.subr.bf16.mxu1 %v18088_v4  ;;  %12815 = vpow2.f32 %v8874_v18  ;;  %v18107_v12 = vadd.f32 %v8652_v15, %v17351_v13  ;;  %v8654_v47 = vpop.f32.mrb[21].mxu1 }
 0x4c8   :  { %12817 = vpow2.f32 %v8876_v1  ;;  %v18110_v9 = vadd.f32 %v8654_v47, %v17351_v13  ;;  %v8656_v27 = vpop.f32.mrb[22].mxu1  ;;  %10079 = vmatpush1.bf16.msra.mxu0 %v17962_v25  ;;  %v18132_v25 = vld [vmem:[%s20604_s12 + $0x284] ss:$8 sps:$4 sm:$0xff]  }
 0x4c9   :  { %v8808_v38 = vmin.f32 %v18107_v12, 0.0  ;;  %v18115_v16 = vadd.f32 %v8656_v27, %v17298_v62  ;;  %v8658_v8 = vpop.f32.mrb[23].mxu1  ;;  %10080 = vmatprep.subr.bf16.mxu0 %v17968_v53  ;;  %vm8752_vm13 = vcmp.gt.f32.partialorder %v18107_v12, 0.0 }
 0x4ca   :  { %9869 = vmatpush1.bf16.msra.mxu1 %v18098_v34  ;;  %v8809_v22 = vmin.f32 %v18110_v9, 0.0  ;;  %v18126_v37 = vadd.f32 %v8658_v8, %v17298_v62  ;;  %vm8753_vm4 = vcmp.gt.f32.partialorder %v18110_v9, 0.0 }
 0x4cb   :  { %9870 = vmatprep.subr.bf16.mxu1 %v18104_v63  ;;  %v8902_v53 = vmul.f32 1.442695, %v8808_v38  ;;  %v8822_v6 = vmin.f32 %v18115_v16, 0.0  ;;  %v18154_v38 = vld [vmem:[%s20604_s12 + $0x290] ss:$8 sps:$4 sm:$0xff]   ;;  %vm8766_vm15 = vcmp.gt.f32.partialorder %v18115_v16, 0.0 }
 0x4cc   :  { %v8904_v10 = vmul.f32 1.442695, %v8809_v22  ;;  %v8823_v43 = vmin.f32 %v18126_v37, 0.0  ;;  %10081 = vmatpush1.bf16.msra.mxu0 %v17976_v35  ;;  %v18148_v35 = vld [vmem:[%s20604_s12 + $0x294] ss:$8 sps:$4 sm:$0xff]   ;;  %vm8767_vm2 = vcmp.gt.f32.partialorder %v18126_v37, 0.0 }
 0x4cd   :  { %12819 = vpow2.f32 %v8902_v53  ;;  %v8930_v46 = vmul.f32 1.442695, %v8822_v6  ;;  %10103 = vmatprep.subr.bf16.mxu0 %v17982_v21  ;;  %v18162_v22 = vld [vmem:[%s20604_s12 + $0x2a4] ss:$8 sps:$4 sm:$0xff]  }
 0x4ce   :  { %9871 = vmatpush1.bf16.msra.mxu1 %v18122_v44  ;;  %12821 = vpow2.f32 %v8904_v10  ;;  %v8932_v59 = vmul.f32 1.442695, %v8823_v43 }
 0x4cf   :  { %v12812_v52 = vpop.eup %12811  ;;  %9872 = vmatprep.subr.bf16.mxu1 %v18132_v25  ;;  %12823 = vpow2.f32 %v8930_v46 }
 0x4d0   :  { %v12814_v18 = vpop.eup %12813  ;;  %v11968_v21 = vadd.f32 -1.0, %v12812_v52  ;;  %12825 = vpow2.f32 %v8932_v59  ;;  %v18180_v52 = vld [vmem:[%s20604_s12 + $0x2a0] ss:$8 sps:$4 sm:$0xff]  }
 0x4d1   :  { %v12816_v1 = vpop.eup %12815  ;;  %v11969_v15 = vadd.f32 -1.0, %v12814_v18  ;;  %v20747_v18 = vpack.c.bf16 %v17587_v57, %v17582_v33  ;;  %v18205_v57 = vld [vmem:[%s20604_s12 + $0x2c4] ss:$8 sps:$4 sm:$0xff]  }
 0x4d2   :  { %v12818_v47 = vpop.eup %12817  ;;  %v11982_v27 = vadd.f32 -1.0, %v12816_v1  ;;  %9873 = vmatpush1.bf16.msra.mxu1 %v18142_v26  ;;  %v9004_v53 = vsel %vm8724_vm6, %v18065_v56, %v11968_v21 }
 0x4d3   :  { %v11983_v8 = vadd.f32 -1.0, %v12818_v47  ;;  %9874 = vmatprep.subr.bf16.mxu1 %v18148_v35  ;;  %v18169_v10 = vsel %vm8725_vm3, %v18068_v50, %v11969_v15  ;;  %v18186_v50 = vld [vmem:[%s20604_s12 + $0x2b4] ss:$8 sps:$4 sm:$0xff]  }
 0x4d4   :  { %v9018_v6 = vsel %vm8738_vm1, %v18072_v42, %v11982_v27  ;;  %v18196_v27 = vld [vmem:[%s20604_s12 + $0x2b0] ss:$8 sps:$4 sm:$0xff]  }
 0x4d5   :  { %v18172_v43 = vsel %vm8739_vm9, %v18082_v54, %v11983_v8  ;;  %v9060_v46 = vpack.c.bf16 %v9018_v6, %v9004_v53 }
 0x4d6   :  { %v9061_v59 = vpack.c.bf16 %v18172_v43, %v18169_v10  ;;  %9875 = vmatpush1.bf16.msra.mxu1 %v18154_v38 }
 0x4d7   :  { %v12820_v56 = vpop.eup %12819  ;;  %9876 = vmatprep.subr.bf16.mxu1 %v18162_v22  ;;  %10082 = vmatprep.mubr.bf16.mxu0 %v9060_v46  ;;  %v18222_v46 = vld [vmem:[%s20604_s12 + $0x2c0] ss:$8 sps:$4 sm:$0xff]  }
 0x4d8   :  { %v12822_v42 = vpop.eup %12821  ;;  %v11996_v54 = vadd.f32 -1.0, %v12820_v56  ;;  %10083 = vmatmul.mubr.bf16.vlgmr.msra.gmra.mrb[32].mxu0 %v20747_v18 }
 0x4d9   :  { %v12824_v21 = vpop.eup %12823  ;;  %v11997_v1 = vadd.f32 -1.0, %v12822_v42  ;;  %10104 = vmatpush1.bf16.msra.mxu0 %v17990_v55 }
 0x4da   :  { %v12826_v15 = vpop.eup %12825  ;;  %v12010_v47 = vadd.f32 -1.0, %v12824_v21  ;;  %9877 = vmatpush1.bf16.msra.mxu1 %v18180_v52  ;;  %10105 = vmatprep.subr.bf16.mxu0 %v17996_v61  ;;  %v9032_v55 = vsel %vm8752_vm13, %v18107_v12, %v11996_v54 }
 0x4db   :  { %v12011_v33 = vadd.f32 -1.0, %v12826_v15  ;;  %9878 = vmatprep.subr.bf16.mxu1 %v18186_v50  ;;  %v18213_v53 = vsel %vm8753_vm4, %v18110_v9, %v11997_v1  ;;  %v20748_v9 = vpack.c.bf16 %v17715_v17, %v17697_v39  ;;  %v18250_v39 = vld [vmem:[#allocation4 + $0x20] sm:$0xff]  ;;  %vm9965_vm4 = vcmask 1048080  }
 0x4dc   :  { %v9046_v61 = vsel %vm8766_vm15, %v18115_v16, %v12010_v47  ;;  %v18248_v16 = vld [vmem:[%s20604_s12 + $0x2e4] ss:$8 sps:$4 sm:$0xff]   ;;  %v18254_v17 = vpack.i.bf16 %v18250_v39, %v18250_v39  ;;  %vm9962_vm15 = vcmask 56320   ;;  %9966 = vst.msk [vmem:[#allocation4 + $0x8] sm:$0xff] %vm9965_vm4, %v18250_v39  ;;  %9967 = vst.msk [vmem:[#allocation4 + $0x30] sm:$0xff] %vm9965_vm4, %v18250_v39 }
 0x4dd   :  { %v9074_v8 = vpack.c.bf16 %v9046_v61, %v9032_v55  ;;  %10106 = vmatpush1.bf16.msra.mxu0 %v18010_v48  ;;  %v18216_v6 = vsel %vm8767_vm2, %v18126_v37, %v12011_v33  ;;  %v18231_v48 = vld [vmem:[%s20604_s12 + $0x2d4] ss:$8 sps:$4 sm:$0xff]   ;;  %9963 = vst.msk [vmem:[#allocation4] sm:$0xff] %vm9962_vm15, %v18250_v39  ;;  %9964 = vst.msk [vmem:[#allocation4 + $0x28] sm:$0xff] %vm9962_vm15, %v18250_v39  ;;  %vm9991_vm2 = vcmask 1047608  }
 0x4de   :  { %9879 = vmatpush1.bf16.msra.mxu1 %v18196_v27  ;;  %10107 = vmatprep.subr.bf16.mxu0 %v18016_v58  ;;  %v9075_v12 = vpack.c.bf16 %v18216_v6, %v18213_v53  ;;  %v18241_v58 = vld [vmem:[%s20604_s12 + $0x2d0] ss:$8 sps:$4 sm:$0xff]   ;;  %10209 = vst.msk [vmem:[#allocation4 + $0x10] sm:$0xff] %vm9962_vm15, %v18250_v39  ;;  %10210 = vst.msk [vmem:[#allocation4 + $0x38] sm:$0xff] %vm9962_vm15, %v18250_v39 }
 0x4df   :  { %9880 = vmatprep.subr.bf16.mxu1 %v18205_v57  ;;  %10092 = vmatprep.mubr.bf16.mxu0 %v9074_v8  ;;  %10211 = vst.msk [vmem:[#allocation4 + $0x18] sm:$0xff] %vm9965_vm4, %v18250_v39  ;;  %10212 = vst.msk [vmem:[#allocation4 + $0x40] sm:$0xff] %vm9965_vm4, %v18250_v39 }
 0x4e0   :  { %10093 = vmatmul.mubr.bf16.gmra.mrb[36].mxu0 %v20748_v9  ;;  %12304 = vrot.lane.b32.xlu0 %v18254_v17, %s20749_s16 }
 0x4e1   :  { %10108 = vmatpush1.bf16.msra.mxu0 %v18024_v5  ;;  %v18261_v5 = vld [vmem:[%s20604_s12 + $0x2e0] ss:$8 sps:$4 sm:$0xff]   ;;  %12309 = vrot.lane.b32.xlu1 %v18254_v17, %s20275_s4 }
 0x4e2   :  { %9881 = vmatpush1.bf16.msra.mxu1 %v18222_v46  ;;  %10109 = vmatprep.subr.bf16.mxu0 %v18030_v51  ;;  %v18268_v51 = vld [vmem:[%s20604_s12 + $0x2f4] ss:$8 sps:$4 sm:$0xff]  }
 0x4e3   :  { %9882 = vmatprep.subr.bf16.mxu1 %v18231_v48 }
 0x4e4   :  { %12314 = vrot.lane.b32.xlu0 %v18254_v17, %s20750_s20 }
 0x4e5   :  { %10110 = vmatpush1.bf16.msra.mxu0 %v18044_v32  ;;  %v18279_v32 = vld [vmem:[%s20604_s12 + $0x2f0] ss:$8 sps:$4 sm:$0xff]   ;;  %12319 = vrot.lane.b32.xlu1 %v18254_v17, %s20281_s1 }
 0x4e6   :  { %9883 = vmatpush1.bf16.msra.mxu1 %v18241_v58  ;;  %10111 = vmatprep.subr.bf16.mxu0 %v18050_v23  ;;  %v18286_v23 = vld [vmem:[%s20604_s12 + $0x304] ss:$8 sps:$4 sm:$0xff]  }
 0x4e7   :  { %9884 = vmatprep.subr.bf16.mxu1 %v18248_v16 }
 0x4e8   :  { %12324 = vrot.lane.b32.xlu0 %v18254_v17, %s20751_s26 }
 0x4e9   :  { %10112 = vmatpush1.bf16.msra.mxu0 %v18056_v30  ;;  %v18297_v30 = vld [vmem:[%s20604_s12 + $0x300] ss:$8 sps:$4 sm:$0xff]   ;;  %12329 = vrot.lane.b32.xlu1 %v18254_v17, %s20752_s27 }
 0x4ea   :  { %9885 = vmatpush1.bf16.msra.mxu1 %v18261_v5  ;;  %10113 = vmatprep.subr.bf16.mxu0 %v18062_v19  ;;  %v18304_v19 = vld [vmem:[%s20604_s12 + $0x314] ss:$8 sps:$4 sm:$0xff]  }
 0x4eb   :  { %9886 = vmatprep.subr.bf16.mxu1 %v18268_v51 }
 0x4ec   :  { %12334 = vrot.lane.b32.xlu0 %v18254_v17, %s20753_s22 }
 0x4ed   :  { %10114 = vmatpush1.bf16.msra.mxu0 %v18078_v41  ;;  %v18321_v41 = vld [vmem:[%s20604_s12 + $0x310] ss:$8 sps:$4 sm:$0xff]   ;;  %12339 = vrot.lane.b32.xlu1 %v18254_v17, %s20754_s18 }
 0x4ee   :  { %9887 = vmatpush1.bf16.msra.mxu1 %v18279_v32  ;;  %10115 = vmatprep.subr.bf16.mxu0 %v18088_v4  ;;  %v18401_v4 = vld [vmem:[%s20604_s12 + $0x360] ss:$8 sps:$4 sm:$0xff]  }
 0x4ef   :  { %9909 = vmatprep.subr.bf16.mxu1 %v18286_v23 }
 0x4f0   :  { %12344 = vrot.lane.b32.xlu0 %v18254_v17, %s20755_s10 }
 0x4f1   :  { %9889 = vmatmul.mubr.bf16.vlgmr.msra.gmra.mrb[24].mxu1 %v9054_v20  ;;  %10116 = vmatpush1.bf16.msra.mxu0 %v18098_v34  ;;  %v18346_v20 = vld [vmem:[%s20604_s12 + $0x334] ss:$8 sps:$4 sm:$0xff]  }
 0x4f2   :  { %9898 = vmatprep.mubr.bf16.mxu1 %v9069_v28  ;;  %9910 = vmatpush1.bf16.msra.mxu1 %v18297_v30  ;;  %v18373_v28 = vld [vmem:[%s20604_s12 + $0x340] ss:$8 sps:$4 sm:$0xff]   ;;  %v18408_v34 = vld [vmem:[%s20604_s12 + $0x374] ss:$8 sps:$4 sm:$0xff]  }
 0x4f3   :  { %9911 = vmatprep.subr.bf16.mxu1 %v18304_v19  ;;  %10117 = vmatprep.subr.bf16.mxu0 %v18104_v63  ;;  %v18415_v63 = vld [vmem:[%s20604_s12 + $0x370] ss:$8 sps:$4 sm:$0xff]  }
 0x4f5   :  { %10118 = vmatpush1.bf16.msra.mxu0 %v18122_v44  ;;  %v20756_v44 = vpack.c.bf16 %v17482_v24, %v17471_v45 }
 0x4f6   :  { %9912 = vmatpush1.bf16.msra.mxu1 %v18321_v41  ;;  %10119 = vmatprep.subr.bf16.mxu0 %v18132_v25 }
 0x4f7   :  { %9913 = vmatprep.subr.bf16.mxu1 %v18327_v0 }
 0x4f9   :  { %9899 = vmatmul.mubr.bf16.gmra.mrb[28].mxu1 %v9068_v11  ;;  %10120 = vmatpush1.bf16.msra.mxu0 %v18142_v26  ;;  %v18394_v11 = vld [vmem:[%s20604_s12 + $0x364] ss:$8 sps:$4 sm:$0xff]   ;;  %s13067_s12 = smov 7  }
 0x4fa   :  { %9914 = vmatpush1.bf16.msra.mxu1 %v18339_v31  ;;  %9941 = vmatprep.mubr.bf16.mxu1 %v18250_v39 }
 0x4fb   :  { %9915 = vmatprep.subr.bf16.mxu1 %v18346_v20  ;;  %10121 = vmatprep.subr.bf16.mxu0 %v18148_v35 }
 0x4fd   :  { %10122 = vmatpush1.bf16.msra.mxu0 %v18154_v38 }
 0x4fe   :  { %9916 = vmatpush1.bf16.msra.mxu1 %v18358_v29  ;;  %10123 = vmatprep.subr.bf16.mxu0 %v18162_v22 }
 0x4ff   :  { %9917 = vmatprep.subr.bf16.mxu1 %v18365_v3 }
 0x501   :  { %10124 = vmatpush1.bf16.msra.mxu0 %v18180_v52 }
 0x502   :  { %9918 = vmatpush1.bf16.msra.mxu1 %v18373_v28  ;;  %10125 = vmatprep.subr.bf16.mxu0 %v18186_v50 }
 0x503   :  { %9919 = vmatprep.subr.bf16.mxu1 %v18380_v49 }
 0x505   :  { %10126 = vmatpush1.bf16.msra.mxu0 %v18196_v27 }
 0x506   :  { %9920 = vmatpush1.bf16.msra.mxu1 %v18387_v7  ;;  %10127 = vmatprep.subr.bf16.mxu0 %v18205_v57 }
 0x507   :  { %9921 = vmatprep.subr.bf16.mxu1 %v18394_v11 }
 0x509   :  { %10128 = vmatpush1.bf16.msra.mxu0 %v18222_v46 }
 0x50a   :  { %9922 = vmatpush1.bf16.msra.mxu1 %v18401_v4  ;;  %10129 = vmatprep.subr.bf16.mxu0 %v18231_v48 }
 0x50b   :  { %9923 = vmatprep.subr.bf16.mxu1 %v18408_v34 }
 0x50d   :  { %10130 = vmatpush1.bf16.msra.mxu0 %v18241_v58 }
 0x50e   :  { %9924 = vmatpush1.bf16.msra.mxu1 %v18415_v63  ;;  %10131 = vmatprep.subr.bf16.mxu0 %v18248_v16 }
 0x511   :  { %9942 = vmatmul.mubr.bf16.vlgmr.msra.gmra.mrb[24].mxu1 %v20756_v44  ;;  %10132 = vmatpush1.bf16.msra.mxu0 %v18261_v5 }
 0x512   :  { %9951 = vmatprep.mubr.bf16.mxu1 %v18250_v39  ;;  %10133 = vmatprep.subr.bf16.mxu0 %v18268_v51 }
 0x515   :  { %10134 = vmatpush1.bf16.msra.mxu0 %v18279_v32 }
 0x516   :  { %10156 = vmatprep.subr.bf16.mxu0 %v18286_v23 }
 0x519   :  { %9952 = vmatmul.mubr.bf16.gmra.mrb[28].mxu1 %v9070_v14 }
 0x522   :  { %v8695_v37 = vpop.f32.mrb[24].mxu0 }
 0x523   :  { %v8696_v25 = vadd.f32 %v8695_v37, %v20730_v40  ;;  %v8697_v26 = vpop.f32.mrb[25].mxu0 }
 0x524   :  { %v8698_v45 = vadd.f32 %v8697_v26, %v20730_v40  ;;  %v8699_v24 = vpop.f32.mrb[26].mxu0 }
 0x525   :  { %v8782_v35 = vmin.f32 %v8696_v25, 0.0  ;;  %v8700_v38 = vadd.f32 %v8699_v24, %v17322_v60  ;;  %v8701_v22 = vpop.f32.mrb[27].mxu0  ;;  %vm8726_vm8 = vcmp.gt.f32.partialorder %v8696_v25, 0.0 }
 0x526   :  { %v8783_v52 = vmin.f32 %v8698_v45, 0.0  ;;  %v8702_v56 = vadd.f32 %v8701_v22, %v17322_v60  ;;  %vm8727_vm5 = vcmp.gt.f32.partialorder %v8698_v45, 0.0 }
 0x527   :  { %v8850_v50 = vmul.f32 1.442695, %v8782_v35  ;;  %v8796_v42 = vmin.f32 %v8700_v38, 0.0  ;;  %vm8740_vm11 = vcmp.gt.f32.partialorder %v8700_v38, 0.0 }
 0x528   :  { %v8852_v54 = vmul.f32 1.442695, %v8783_v52  ;;  %v8797_v18 = vmin.f32 %v8702_v56, 0.0  ;;  %vm8741_vm6 = vcmp.gt.f32.partialorder %v8702_v56, 0.0 }
 0x529   :  { %12827 = vpow2.f32 %v8850_v50  ;;  %v8878_v36 = vmul.f32 1.442695, %v8796_v42 }
 0x52a   :  { %12829 = vpow2.f32 %v8852_v54  ;;  %v8880_v2 = vmul.f32 1.442695, %v8797_v18  ;;  %v8705_v14 = vpop.f32.mrb[28].mxu0 }
 0x52b   :  { %12831 = vpow2.f32 %v8878_v36  ;;  %v8706_v40 = vadd.f32 %v8705_v14, %v17351_v13  ;;  %v8707_v21 = vpop.f32.mrb[29].mxu0 }
 0x52c   :  { %12833 = vpow2.f32 %v8880_v2  ;;  %v8708_v1 = vadd.f32 %v8707_v21, %v17351_v13  ;;  %v8709_v15 = vpop.f32.mrb[30].mxu0 }
 0x52d   :  { %v8810_v47 = vmin.f32 %v8706_v40, 0.0  ;;  %v8710_v60 = vadd.f32 %v8709_v15, %v17298_v62  ;;  %v8711_v27 = vpop.f32.mrb[31].mxu0  ;;  %vm8754_vm1 = vcmp.gt.f32.partialorder %v8706_v40, 0.0 }
 0x52e   :  { %v8811_v33 = vmin.f32 %v8708_v1, 0.0  ;;  %v8712_v57 = vadd.f32 %v8711_v27, %v17298_v62  ;;  %vm8755_vm9 = vcmp.gt.f32.partialorder %v8708_v1, 0.0 }
 0x52f   :  { %v8906_v55 = vmul.f32 1.442695, %v8810_v47  ;;  %v8824_v61 = vmin.f32 %v8710_v60, 0.0  ;;  %vm8768_vm3 = vcmp.gt.f32.partialorder %v8710_v60, 0.0 }
 0x530   :  { %v8908_v8 = vmul.f32 1.442695, %v8811_v33  ;;  %v8825_v46 = vmin.f32 %v8712_v57, 0.0  ;;  %vm8769_vm13 = vcmp.gt.f32.partialorder %v8712_v57, 0.0 }
 0x531   :  { %12835 = vpow2.f32 %v8906_v55  ;;  %v8934_v48 = vmul.f32 1.442695, %v8824_v61 }
 0x532   :  { %12837 = vpow2.f32 %v8908_v8  ;;  %v8936_v9 = vmul.f32 1.442695, %v8825_v46 }
 0x533   :  { %v12828_v58 = vpop.eup %12827  ;;  %12839 = vpow2.f32 %v8934_v48 }
 0x534   :  { %v12830_v16 = vpop.eup %12829  ;;  %v11970_v13 = vadd.f32 -1.0, %v12828_v58  ;;  %12841 = vpow2.f32 %v8936_v9 }
 0x535   :  { %v12832_v5 = vpop.eup %12831  ;;  %v11971_v51 = vadd.f32 -1.0, %v12830_v16 }
 0x536   :  { %v12834_v32 = vpop.eup %12833  ;;  %v11984_v23 = vadd.f32 -1.0, %v12832_v5  ;;  %v9006_v44 = vsel %vm8726_vm8, %v8696_v25, %v11970_v13  ;;  %vm9993_vm8 = vcmask 539648  }
 0x537   :  { %v11985_v62 = vadd.f32 -1.0, %v12834_v32  ;;  %v9007_v26 = vsel %vm8727_vm5, %v8698_v45, %v11971_v51 }
 0x538   :  { %v9020_v37 = vsel %vm8740_vm11, %v8700_v38, %v11984_v23  ;;  %vm20766_vm11 = vcmask 1039360  }
 0x539   :  { %v9021_v24 = vsel %vm8741_vm6, %v8702_v56, %v11985_v62  ;;  %v9062_v35 = vpack.c.bf16 %v9020_v37, %v9006_v44  ;;  %vm20767_vm5 = vmmov %vm20766_vm11 }
 0x53a   :  { %v9063_v22 = vpack.c.bf16 %v9021_v24, %v9007_v26  ;;  %vm20769_vm6 = vmmov %vm20767_vm5 }
 0x53b   :  { %v12836_v52 = vpop.eup %12835  ;;  %10135 = vmatprep.mubr.bf16.mxu0 %v9062_v35 }
 0x53c   :  { %v12838_v50 = vpop.eup %12837  ;;  %v11998_v42 = vadd.f32 -1.0, %v12836_v52  ;;  %10136 = vmatmul.mubr.bf16.vlgmr.msra.gmra.mrb[32].mxu0 %v9061_v59 }
 0x53d   :  { %v12840_v54 = vpop.eup %12839  ;;  %v11999_v18 = vadd.f32 -1.0, %v12838_v50  ;;  %10157 = vmatpush1.bf16.msra.mxu0 %v18297_v30 }
 0x53e   :  { %v12842_v36 = vpop.eup %12841  ;;  %v12012_v2 = vadd.f32 -1.0, %v12840_v54  ;;  %10158 = vmatprep.subr.bf16.mxu0 %v18304_v19  ;;  %v9034_v45 = vsel %vm8754_vm1, %v8706_v40, %v11998_v42  ;;  %vm20770_vm1 = vmmov %vm20767_vm5 }
 0x53f   :  { %v12013_v25 = vadd.f32 -1.0, %v12842_v36  ;;  %v9035_v10 = vsel %vm8755_vm9, %v8708_v1, %v11999_v18  ;;  %vm20777_vm9 = vmmov %vm20770_vm1 }
 0x540   :  { %v9048_v38 = vsel %vm8768_vm3, %v8710_v60, %v12012_v2  ;;  %vm20775_vm3 = vcmask 973824   ;;  %vm20781_vm4 = vmmov %vm20770_vm1 }
 0x541   :  { %10159 = vmatpush1.bf16.msra.mxu0 %v18321_v41  ;;  %v9076_v56 = vpack.c.bf16 %v9048_v38, %v9034_v45  ;;  %v9049_v43 = vsel %vm8769_vm13, %v8712_v57, %v12013_v25  ;;  %vm20778_vm13 = vmmov %vm20770_vm1 }
 0x542   :  { %10160 = vmatprep.subr.bf16.mxu0 %v18327_v0  ;;  %v9077_v59 = vpack.c.bf16 %v9049_v43, %v9035_v10 }
 0x543   :  { %10145 = vmatprep.mubr.bf16.mxu0 %v9076_v56 }
 0x544   :  { %10146 = vmatmul.mubr.bf16.gmra.mrb[36].mxu0 %v9075_v12 }
 0x545   :  { %10161 = vmatpush1.bf16.msra.mxu0 %v18339_v31  ;;  %10188 = vmatprep.mubr.bf16.mxu0 %v18250_v39 }
 0x546   :  { %10162 = vmatprep.subr.bf16.mxu0 %v18346_v20 }
 0x549   :  { %10163 = vmatpush1.bf16.msra.mxu0 %v18358_v29 }
 0x54a   :  { %10164 = vmatprep.subr.bf16.mxu0 %v18365_v3 }
 0x54d   :  { %10165 = vmatpush1.bf16.msra.mxu0 %v18373_v28 }
 0x54e   :  { %10166 = vmatprep.subr.bf16.mxu0 %v18380_v49 }
 0x551   :  { %10167 = vmatpush1.bf16.msra.mxu0 %v18387_v7 }
 0x552   :  { %10168 = vmatprep.subr.bf16.mxu0 %v18394_v11  ;;  %v18476_v47 = vpop.permute.xlu0 %12304 }
 0x553   :  { %v18478_v60 = vpop.permute.xlu1 %12309 }
 0x555   :  { %10169 = vmatpush1.bf16.msra.mxu0 %v18401_v4 }
 0x556   :  { %10170 = vmatprep.subr.bf16.mxu0 %v18408_v34  ;;  %v18480_v27 = vpop.permute.xlu0 %12314 }
 0x557   :  { %v18482_v33 = vpop.permute.xlu1 %12319 }
 0x559   :  { %10171 = vmatpush1.bf16.msra.mxu0 %v18415_v63 }
 0x55a   :  { %v18484_v57 = vpop.permute.xlu0 %12324 }
 0x55b   :  { %v18486_v55 = vpop.permute.xlu1 %12329 }
 0x55c   :  { %10189 = vmatmul.mubr.bf16.vlgmr.msra.gmra.mrb[32].mxu0 %v9063_v22 }
 0x55d   :  { %10198 = vmatprep.mubr.bf16.mxu0 %v18250_v39 }
 0x55e   :  { %v18488_v61 = vpop.permute.xlu0 %12334 }
 0x55f   :  { %v18490_v8 = vpop.permute.xlu1 %12339 }
 0x560   :  { %20757 = vst [vmem:[#allocation45_spill] sm:$0xff] %v18490_v8 }
 0x562   :  { %v18492_v46 = vpop.permute.xlu0 %12344 }
 0x563   :  { %20758 = vst [vmem:[#allocation50_spill] sm:$0xff] %v18492_v46 }
 0x564   :  { %10199 = vmatmul.mubr.bf16.gmra.mrb[36].mxu0 %v9077_v59 }
 0x5e4   :  { %v9943_v53 = vpop.f32.mrb[24].mxu1 }
 0x5e5   :  { %v9945_v6 = vpop.f32.mrb[25].mxu1 }
 0x5e6   :  { %v9947_v12 = vpop.f32.mrb[26].mxu1 }
 0x5e7   :  { %v9968_v30 = vpack.c.bf16 %v9947_v12, %v9943_v53  ;;  %v9949_v19 = vpop.f32.mrb[27].mxu1 }
 0x5e8   :  { %v9969_v41 = vpack.c.bf16 %v9949_v19, %v9945_v6 }
 0x5e9   :  { %9976 = vrot.lane.b32.xlu1 %v9968_v30, %s13067_s12 }
 0x5ea   :  { %9978 = vrot.lane.b32.xlu0 %v9969_v41, %s13067_s12 }
 0x5ec   :  { %v9953_v0 = vpop.f32.mrb[28].mxu1 }
 0x5ed   :  { %v9955_v31 = vpop.f32.mrb[29].mxu1 }
 0x5ee   :  { %v9957_v20 = vpop.f32.mrb[30].mxu1 }
 0x5ef   :  { %v9970_v29 = vpack.c.bf16 %v9957_v20, %v9953_v0  ;;  %v9959_v3 = vpop.f32.mrb[31].mxu1 }
 0x5f0   :  { %v9971_v28 = vpack.c.bf16 %v9959_v3, %v9955_v31 }
 0x5f1   :  { %9980 = vrot.lane.b32.xlu1 %v9970_v29, %s13067_s12 }
 0x5f2   :  { %9982 = vrot.lane.b32.xlu0 %v9971_v28, %s13067_s12 }
 0x62f   :  { %v10190_v49 = vpop.f32.mrb[32].mxu0 }
 0x630   :  { %v10192_v7 = vpop.f32.mrb[33].mxu0 }
 0x631   :  { %v10194_v39 = vpop.f32.mrb[34].mxu0 }
 0x632   :  { %v10213_v11 = vpack.c.bf16 %v10194_v39, %v10190_v49  ;;  %v10196_v4 = vpop.f32.mrb[35].mxu0  ;;  %v12721_v49 = vld [vmem:[%s20763_s3 + $0x4] ss:$16 sps:$4 sm:$0xff]  }
 0x633   :  { %v10214_v34 = vpack.c.bf16 %v10196_v4, %v10192_v7  ;;  %11382 = vmatprep.mubr.bf16.mxu1 %v12721_v49  ;;  %11488 = vmatprep.mubr.bf16.mxu0 %v12721_v49 }
 0x634   :  { %10221 = vrot.lane.b32.xlu1 %v10213_v11, %s13067_s12 }
 0x635   :  { %10223 = vrot.lane.b32.xlu0 %v10214_v34, %s13067_s12 }
 0x637   :  { %v10200_v63 = vpop.f32.mrb[36].mxu0 }
 0x638   :  { %v10202_v14 = vpop.f32.mrb[37].mxu0 }
 0x639   :  { %v10204_v40 = vpop.f32.mrb[38].mxu0 }
 0x63a   :  { %v10215_v21 = vpack.c.bf16 %v10204_v40, %v10200_v63  ;;  %v10206_v1 = vpop.f32.mrb[39].mxu0 }
 0x63b   :  { %v10216_v15 = vpack.c.bf16 %v10206_v1, %v10202_v14 }
 0x63c   :  { %10225 = vrot.lane.b32.xlu1 %v10215_v21, %s13067_s12 }
 0x63d   :  { %10227 = vrot.lane.b32.xlu0 %v10216_v15, %s13067_s12 }
 0x65b   :  { %v9977_v48 = vpop.permute.xlu1 %9976 }
 0x65c   :  { %9992 = vst.msk [vmem:[#allocation4] sm:$0xff] %vm9991_vm2, %v9977_v48  ;;  %v9979_v9 = vpop.permute.xlu0 %9978 }
 0x65d   :  { %v9985_v58 = vsel %vm9962_vm15, %v9977_v48, %v9979_v9 }
 0x65e   :  { %9994 = vst.msk [vmem:[#allocation4 + $0x8] sm:$0xff] %vm9993_vm8, %v9985_v58 }
 0x663   :  { %v9981_v16 = vpop.permute.xlu1 %9980  ;;  %v18497_v13 = vld [vmem:[#allocation4] sm:$0xff] }
 0x664   :  { %9995 = vst.msk [vmem:[#allocation4 + $0x28] sm:$0xff] %vm9991_vm2, %v9981_v16  ;;  %10277 = vrot.lane.b32.xlu1 %v18497_v13, %s20749_s16  ;;  %10341 = vrot.lane.b32.xlu0 %v18497_v13, %s20275_s4  ;;  %v9983_v5 = vpop.permute.xlu0 %9982 }
 0x665   :  { %v9986_v51 = vsel %vm9962_vm15, %v9981_v16, %v9983_v5  ;;  %v18505_v32 = vld [vmem:[#allocation4 + $0x8] sm:$0xff] }
 0x666   :  { %9996 = vst.msk [vmem:[#allocation4 + $0x30] sm:$0xff] %vm9993_vm8, %v9986_v51  ;;  %11350 = vmatprep.subr.bf16.mxu1 %v18505_v32 }
 0x667   :  { %11351 = vmatpush1.bf16.msra.mxu1 %v18497_v13 }
 0x668   :  { %10405 = vrot.lane.b32.xlu1 %v18497_v13, %s20750_s20  ;;  %10469 = vrot.lane.b32.xlu0 %v18497_v13, %s20281_s1 }
 0x66b   :  { %v18521_v62 = vld [vmem:[#allocation4 + $0x28] sm:$0xff] }
 0x66c   :  { %10533 = vrot.lane.b32.xlu1 %v18497_v13, %s20751_s26  ;;  %10597 = vrot.lane.b32.xlu0 %v18497_v13, %s20752_s27 }
 0x66d   :  { %v18518_v23 = vld [vmem:[#allocation4 + $0x30] sm:$0xff] }
 0x66e   :  { %11352 = vmatprep.subr.bf16.mxu1 %v18518_v23 }
 0x66f   :  { %11353 = vmatpush1.bf16.msra.mxu1 %v18521_v62 }
 0x670   :  { %10661 = vrot.lane.b32.xlu1 %v18497_v13, %s20753_s22  ;;  %10725 = vrot.lane.b32.xlu0 %v18497_v13, %s20754_s18 }
 0x674   :  { %10789 = vrot.lane.b32.xlu1 %v18497_v13, %s20755_s10  ;;  %10279 = vrot.lane.b32.xlu0 %v18505_v32, %s20749_s16 }
 0x678   :  { %10343 = vrot.lane.b32.xlu1 %v18505_v32, %s20275_s4  ;;  %10407 = vrot.lane.b32.xlu0 %v18505_v32, %s20750_s20 }
 0x67c   :  { %10471 = vrot.lane.b32.xlu1 %v18505_v32, %s20281_s1  ;;  %10535 = vrot.lane.b32.xlu0 %v18505_v32, %s20751_s26 }
 0x680   :  { %10599 = vrot.lane.b32.xlu1 %v18505_v32, %s20752_s27  ;;  %10663 = vrot.lane.b32.xlu0 %v18505_v32, %s20753_s22 }
 0x684   :  { %10727 = vrot.lane.b32.xlu1 %v18505_v32, %s20754_s18  ;;  %10791 = vrot.lane.b32.xlu0 %v18505_v32, %s20755_s10 }
 0x688   :  { %10287 = vrot.lane.b32.xlu1 %v18521_v62, %s20749_s16  ;;  %10351 = vrot.lane.b32.xlu0 %v18521_v62, %s20275_s4 }
 0x68c   :  { %10415 = vrot.lane.b32.xlu1 %v18521_v62, %s20750_s20  ;;  %10479 = vrot.lane.b32.xlu0 %v18521_v62, %s20281_s1 }
 0x690   :  { %10543 = vrot.lane.b32.xlu1 %v18521_v62, %s20751_s26  ;;  %10607 = vrot.lane.b32.xlu0 %v18521_v62, %s20752_s27 }
 0x694   :  { %10671 = vrot.lane.b32.xlu1 %v18521_v62, %s20753_s22  ;;  %10735 = vrot.lane.b32.xlu0 %v18521_v62, %s20754_s18 }
 0x698   :  { %10799 = vrot.lane.b32.xlu1 %v18521_v62, %s20755_s10  ;;  %10289 = vrot.lane.b32.xlu0 %v18518_v23, %s20749_s16 }
 0x69c   :  { %10353 = vrot.lane.b32.xlu1 %v18518_v23, %s20275_s4  ;;  %10417 = vrot.lane.b32.xlu0 %v18518_v23, %s20750_s20 }
 0x6a0   :  { %10481 = vrot.lane.b32.xlu1 %v18518_v23, %s20281_s1  ;;  %10545 = vrot.lane.b32.xlu0 %v18518_v23, %s20751_s26 }
 0x6a4   :  { %10609 = vrot.lane.b32.xlu1 %v18518_v23, %s20752_s27  ;;  %10673 = vrot.lane.b32.xlu0 %v18518_v23, %s20753_s22 }
 0x6a6   :  { %v10222_v44 = vpop.permute.xlu1 %10221 }
 0x6a7   :  { %10235 = vst.msk [vmem:[#allocation4 + $0x10] sm:$0xff] %vm9991_vm2, %v10222_v44  ;;  %v10224_v37 = vpop.permute.xlu0 %10223 }
 0x6a8   :  { %10737 = vrot.lane.b32.xlu1 %v18518_v23, %s20754_s18  ;;  %10801 = vrot.lane.b32.xlu0 %v18518_v23, %s20755_s10  ;;  %v10229_v26 = vsel %vm9962_vm15, %v10222_v44, %v10224_v37 }
 0x6a9   :  { %10236 = vst.msk [vmem:[#allocation4 + $0x18] sm:$0xff] %vm9993_vm8, %v10229_v26 }
 0x6ae   :  { %v10226_v24 = vpop.permute.xlu1 %10225  ;;  %v18587_v35 = vld [vmem:[#allocation4 + $0x10] sm:$0xff] }
 0x6af   :  { %10237 = vst.msk [vmem:[#allocation4 + $0x38] sm:$0xff] %vm9991_vm2, %v10226_v24  ;;  %10281 = vrot.lane.b32.xlu1 %v18587_v35, %s20749_s16  ;;  %10345 = vrot.lane.b32.xlu0 %v18587_v35, %s20275_s4  ;;  %v10228_v22 = vpop.permute.xlu0 %10227  ;;  %vm20782_vm2 = vcmask 1014784  }
 0x6b0   :  { %v10230_v52 = vsel %vm9962_vm15, %v10226_v24, %v10228_v22  ;;  %v18595_v50 = vld [vmem:[#allocation4 + $0x18] sm:$0xff]  ;;  %vm20780_vm15 = vmmov %vm20770_vm1 }
 0x6b1   :  { %10238 = vst.msk [vmem:[#allocation4 + $0x40] sm:$0xff] %vm9993_vm8, %v10230_v52  ;;  %11456 = vmatprep.subr.bf16.mxu0 %v18595_v50  ;;  %vm20783_vm8 = vmmov %vm20782_vm2 }
 0x6b2   :  { %11457 = vmatpush1.bf16.msra.mxu0 %v18587_v35 }
 0x6b3   :  { %10409 = vrot.lane.b32.xlu1 %v18587_v35, %s20750_s20  ;;  %10473 = vrot.lane.b32.xlu0 %v18587_v35, %s20281_s1 }
 0x6b6   :  { %v18611_v54 = vld [vmem:[#allocation4 + $0x38] sm:$0xff] }
 0x6b7   :  { %10537 = vrot.lane.b32.xlu1 %v18587_v35, %s20751_s26  ;;  %10601 = vrot.lane.b32.xlu0 %v18587_v35, %s20752_s27 }
 0x6b8   :  { %v18608_v42 = vld [vmem:[#allocation4 + $0x40] sm:$0xff] }
 0x6b9   :  { %11458 = vmatprep.subr.bf16.mxu0 %v18608_v42 }
 0x6ba   :  { %11459 = vmatpush1.bf16.msra.mxu0 %v18611_v54 }
 0x6bb   :  { %10665 = vrot.lane.b32.xlu1 %v18587_v35, %s20753_s22  ;;  %10729 = vrot.lane.b32.xlu0 %v18587_v35, %s20754_s18 }
 0x6bf   :  { %10793 = vrot.lane.b32.xlu1 %v18587_v35, %s20755_s10  ;;  %10347 = vrot.lane.b32.xlu0 %v18595_v50, %s20275_s4 }
 0x6c3   :  { %10475 = vrot.lane.b32.xlu0 %v18595_v50, %s20281_s1  ;;  %10283 = vrot.lane.b32.xlu1 %v18595_v50, %s20749_s16 }
 0x6c7   :  { %10603 = vrot.lane.b32.xlu0 %v18595_v50, %s20752_s27  ;;  %10411 = vrot.lane.b32.xlu1 %v18595_v50, %s20750_s20 }
 0x6cb   :  { %10731 = vrot.lane.b32.xlu0 %v18595_v50, %s20754_s18  ;;  %10539 = vrot.lane.b32.xlu1 %v18595_v50, %s20751_s26 }
 0x6cf   :  { %10355 = vrot.lane.b32.xlu0 %v18611_v54, %s20275_s4  ;;  %10667 = vrot.lane.b32.xlu1 %v18595_v50, %s20753_s22 }
 0x6d3   :  { %10483 = vrot.lane.b32.xlu0 %v18611_v54, %s20281_s1  ;;  %10795 = vrot.lane.b32.xlu1 %v18595_v50, %s20755_s10 }
 0x6d6   :  { %v18642_v18 = vpop.permute.xlu1 %10277  ;;  %v18644_v36 = vpop.permute.xlu0 %10341 }
 0x6d7   :  { %10611 = vrot.lane.b32.xlu0 %v18611_v54, %s20752_s27  ;;  %10291 = vrot.lane.b32.xlu1 %v18611_v54, %s20749_s16 }
 0x6da   :  { %v18650_v2 = vpop.permute.xlu1 %10405  ;;  %v18652_v25 = vpop.permute.xlu0 %10469 }
 0x6db   :  { %10739 = vrot.lane.b32.xlu0 %v18611_v54, %s20754_s18  ;;  %10419 = vrot.lane.b32.xlu1 %v18611_v54, %s20750_s20 }
 0x6de   :  { %v18658_v45 = vpop.permute.xlu1 %10533  ;;  %v18660_v38 = vpop.permute.xlu0 %10597 }
 0x6df   :  { %10547 = vrot.lane.b32.xlu1 %v18611_v54, %s20751_s26  ;;  %10293 = vrot.lane.b32.xlu0 %v18608_v42, %s20749_s16  ;;  %s20861_s16 = sld [smem:[#allocation70_spill]] }
 0x6e2   :  { %v18666_v56 = vpop.permute.xlu1 %10661  ;;  %v18668_v10 = vpop.permute.xlu0 %10725 }
 0x6e3   :  { %10675 = vrot.lane.b32.xlu1 %v18611_v54, %s20753_s22  ;;  %10859 = vrot.lane.b32.xlu0 %v18595_v50, %s20759_s0 }
 0x6e6   :  { %v18674_v43 = vpop.permute.xlu1 %10789  ;;  %v18676_v59 = vpop.permute.xlu0 %10279 }
 0x6e7   :  { %20760 = vst [vmem:[#allocation63_spill] sm:$0xff] %v18674_v43  ;;  %10803 = vrot.lane.b32.xlu1 %v18611_v54, %s20755_s10  ;;  %10857 = vrot.lane.b32.xlu0 %v18587_v35, %s20759_s0  ;;  %v10297_v44 = vsel %vm20767_vm5, %v18642_v18, %v18676_v59  ;;  %vm20786_vm5 = vcmask 1006592  }
 0x6ea   :  { %v18682_v53 = vpop.permute.xlu1 %10343  ;;  %v18684_v6 = vpop.permute.xlu0 %10407 }
 0x6eb   :  { %10357 = vrot.lane.b32.xlu1 %v18608_v42, %s20275_s4  ;;  %10853 = vrot.lane.b32.xlu0 %v18497_v13, %s20759_s0  ;;  %s20762_s4 = smov 117  }
 0x6ee   :  { %v18690_v12 = vpop.permute.xlu1 %10471  ;;  %v18692_v30 = vpop.permute.xlu0 %10535 }
 0x6ef   :  { %12349 = vrot.lane.b32.xlu1 %v18254_v17, %s20759_s0  ;;  %10421 = vrot.lane.b32.xlu0 %v18608_v42, %s20750_s20  ;;  %s13068_s20 = smov [#allocation6]  }
 0x6f2   :  { %v18698_v19 = vpop.permute.xlu1 %10599  ;;  %v18700_v41 = vpop.permute.xlu0 %10663 }
 0x6f3   :  { %10855 = vrot.lane.b32.xlu1 %v18505_v32, %s20759_s0  ;;  %10867 = vrot.lane.b32.xlu0 %v18611_v54, %s20759_s0 }
 0x6f6   :  { %v18706_v0 = vpop.permute.xlu1 %10727  ;;  %v18708_v31 = vpop.permute.xlu0 %10791 }
 0x6f7   :  { %20761 = vst [vmem:[#allocation48_spill] sm:$0xff] %v18708_v31  ;;  %10865 = vrot.lane.b32.xlu1 %v18518_v23, %s20759_s0  ;;  %10863 = vrot.lane.b32.xlu0 %v18521_v62, %s20759_s0 }
 0x6fa   :  { %v18714_v20 = vpop.permute.xlu1 %10287  ;;  %v18716_v29 = vpop.permute.xlu0 %10351 }
 0x6fb   :  { %10485 = vrot.lane.b32.xlu1 %v18608_v42, %s20281_s1  ;;  %12354 = vrot.lane.b32.xlu0 %v18254_v17, %s20762_s4  ;;  %s20768_s1 = smov 115  }
 0x6fe   :  { %v18722_v3 = vpop.permute.xlu1 %10415  ;;  %v18724_v28 = vpop.permute.xlu0 %10479 }
 0x6ff   :  { %10923 = vrot.lane.b32.xlu1 %v18595_v50, %s20762_s4  ;;  %10549 = vrot.lane.b32.xlu0 %v18608_v42, %s20751_s26 }
 0x702   :  { %v18733_v7 = vpop.permute.xlu1 %10543  ;;  %v18735_v39 = vpop.permute.xlu0 %10607 }
 0x703   :  { %10921 = vrot.lane.b32.xlu1 %v18587_v35, %s20762_s4  ;;  %10919 = vrot.lane.b32.xlu0 %v18505_v32, %s20762_s4 }
 0x706   :  { %v18741_v11 = vpop.permute.xlu1 %10671  ;;  %v18743_v4 = vpop.permute.xlu0 %10735 }
 0x707   :  { %10917 = vrot.lane.b32.xlu1 %v18497_v13, %s20762_s4  ;;  %10929 = vrot.lane.b32.xlu0 %v18518_v23, %s20762_s4 }
 0x70a   :  { %v18749_v34 = vpop.permute.xlu1 %10799  ;;  %v18751_v63 = vpop.permute.xlu0 %10289 }
 0x70b   :  { %20764 = vst [vmem:[#allocation56_spill] sm:$0xff] %v18749_v34  ;;  %10613 = vrot.lane.b32.xlu1 %v18608_v42, %s20752_s27  ;;  %10987 = vrot.lane.b32.xlu0 %v18595_v50, %s20423_s11  ;;  %s20779_s27 = sld [smem:[#allocation68_spill]] }
 0x70e   :  { %v18757_v14 = vpop.permute.xlu1 %10353  ;;  %v18759_v40 = vpop.permute.xlu0 %10417 }
 0x70f   :  { %10931 = vrot.lane.b32.xlu1 %v18611_v54, %s20762_s4  ;;  %10677 = vrot.lane.b32.xlu0 %v18608_v42, %s20753_s22 }
 0x712   :  { %v18765_v21 = vpop.permute.xlu1 %10481  ;;  %v18767_v1 = vpop.permute.xlu0 %10545 }
 0x713   :  { %10927 = vrot.lane.b32.xlu1 %v18521_v62, %s20762_s4  ;;  %10985 = vrot.lane.b32.xlu0 %v18587_v35, %s20423_s11 }
 0x716   :  { %v18773_v15 = vpop.permute.xlu1 %10609  ;;  %v18775_v48 = vpop.permute.xlu0 %10673 }
 0x717   :  { %12359 = vrot.lane.b32.xlu1 %v18254_v17, %s20423_s11  ;;  %10981 = vrot.lane.b32.xlu0 %v18497_v13, %s20423_s11 }
 0x71a   :  { %v18785_v9 = vpop.permute.xlu1 %10737  ;;  %v18787_v58 = vpop.permute.xlu0 %10801 }
 0x71b   :  { %10741 = vrot.lane.b32.xlu1 %v18608_v42, %s20754_s18  ;;  %10995 = vrot.lane.b32.xlu0 %v18611_v54, %s20423_s11  ;;  %20765 = vst [vmem:[#allocation61_spill] sm:$0xff] %v18787_v58 }
 0x71f   :  { %10983 = vrot.lane.b32.xlu1 %v18505_v32, %s20423_s11  ;;  %10805 = vrot.lane.b32.xlu0 %v18608_v42, %s20755_s10 }
 0x721   :  { %v10282_v16 = vpop.permute.xlu1 %10281  ;;  %v18793_v5 = vpop.permute.xlu0 %10345 }
 0x722   :  { %v10298_v51 = vsel %vm20766_vm11, %v18676_v59, %v10282_v16  ;;  %vm20784_vm11 = vmmov %vm20782_vm2 }
 0x723   :  { %10993 = vrot.lane.b32.xlu1 %v18518_v23, %s20423_s11  ;;  %10991 = vrot.lane.b32.xlu0 %v18521_v62, %s20423_s11 }
 0x724   :  { %11354 = vmatprep.subr.bf16.mxu1 %v10298_v51  ;;  %v12306_v51 = vunpack.i.l.bf16 %v18476_v47 }
 0x725   :  { %11355 = vmatpush1.bf16.msra.mxu1 %v10297_v44  ;;  %v18804_v37 = vpop.permute.xlu1 %10409  ;;  %v18806_v26 = vpop.permute.xlu0 %10473 }
 0x727   :  { %11051 = vrot.lane.b32.xlu1 %v18595_v50, %s20768_s1  ;;  %12364 = vrot.lane.b32.xlu0 %v18254_v17, %s20768_s1 }
 0x729   :  { %v18812_v24 = vpop.permute.xlu1 %10537  ;;  %v18814_v22 = vpop.permute.xlu0 %10601 }
 0x72b   :  { %10869 = vrot.lane.b32.xlu1 %v18608_v42, %s20759_s0  ;;  %11047 = vrot.lane.b32.xlu0 %v18505_v32, %s20768_s1  ;;  %s20860_s0 = sld [smem:[#allocation69_spill]] }
 0x72d   :  { %v18820_v52 = vpop.permute.xlu1 %10665  ;;  %v18822_v18 = vpop.permute.xlu0 %10729 }
 0x72f   :  { %11049 = vrot.lane.b32.xlu1 %v18587_v35, %s20768_s1  ;;  %10933 = vrot.lane.b32.xlu0 %v18608_v42, %s20762_s4 }
 0x731   :  { %v18828_v59 = vpop.permute.xlu1 %10793  ;;  %v18830_v49 = vpop.permute.xlu0 %10347 }
 0x733   :  { %11045 = vrot.lane.b32.xlu1 %v18497_v13, %s20768_s1  ;;  %11057 = vrot.lane.b32.xlu0 %v18518_v23, %s20768_s1 }
 0x735   :  { %v10284_v44 = vpop.permute.xlu1 %10283  ;;  %v18837_v46 = vpop.permute.xlu0 %10475 }
 0x736   :  { %v10299_v34 = vsel %vm20769_vm6, %v10282_v16, %v10284_v44  ;;  %v10300_v58 = vsel %vm20770_vm1, %v10284_v44, %v12306_v51  ;;  %vm20787_vm6 = vmmov %vm20786_vm5 }
 0x737   :  { %11059 = vrot.lane.b32.xlu1 %v18611_v54, %s20768_s1  ;;  %11460 = vmatprep.subr.bf16.mxu0 %v10300_v58  ;;  %vm20788_vm1 = vmmov %vm20786_vm5 }
 0x738   :  { %11115 = vrot.lane.b32.xlu0 %v18595_v50, %s20301_s17  ;;  %11461 = vmatpush1.bf16.msra.mxu0 %v10299_v34 }
 0x739   :  { %v18845_v43 = vpop.permute.xlu1 %10411  ;;  %v18847_v8 = vpop.permute.xlu0 %10603 }
 0x73a   :  { %v18852_v31 = vsel %vm1213_vm10, %v18814_v22, %v18847_v8 }
 0x73b   :  { %10997 = vrot.lane.b32.xlu1 %v18608_v42, %s20423_s11 }
 0x73c   :  { %11113 = vrot.lane.b32.xlu0 %v18587_v35, %s20301_s17 }
 0x73d   :  { %v18858_v58 = vpop.permute.xlu1 %10539  ;;  %v18860_v16 = vpop.permute.xlu0 %10731 }
 0x73e   :  { %20771 = vst [vmem:[#allocation52_spill] sm:$0xff] %v18860_v16  ;;  %v18865_v50 = vsel %vm1507_vm7, %v18822_v18, %v18860_v16 }
 0x73f   :  { %20772 = vst [vmem:[#allocation10_spill] sm:$0xff] %v18865_v50  ;;  %11055 = vrot.lane.b32.xlu1 %v18521_v62, %s20768_s1 }
 0x740   :  { %11061 = vrot.lane.b32.xlu0 %v18608_v42, %s20768_s1 }
 0x741   :  { %v18871_v34 = vpop.permute.xlu1 %10667  ;;  %v18873_v51 = vpop.permute.xlu0 %10355 }
 0x742   :  { %v18878_v35 = vsel %vm1360_vm14, %v18820_v52, %v18871_v34 }
 0x743   :  { %20773 = vst [vmem:[#allocation57_spill] sm:$0xff] %v18878_v35  ;;  %12369 = vrot.lane.b32.xlu1 %v18254_v17, %s20301_s17 }
 0x744   :  { %11109 = vrot.lane.b32.xlu0 %v18497_v13, %s20301_s17 }
 0x745   :  { %v18884_v44 = vpop.permute.xlu1 %10795  ;;  %v18886_v50 = vpop.permute.xlu0 %10483 }
 0x746   :  { %20774 = vst [vmem:[#allocation62_spill] sm:$0xff] %v18884_v44  ;;  %v18891_v16 = vsel %vm20775_vm3, %v18828_v59, %v18884_v44 }
 0x747   :  { %20776 = vst [vmem:[#allocation11_spill] sm:$0xff] %v18891_v16  ;;  %11111 = vrot.lane.b32.xlu1 %v18505_v32, %s20301_s17  ;;  %v10301_v16 = vsel %vm20778_vm13, %v18714_v20, %v18751_v63  ;;  %v10362_v32 = vsel %vm625_vm0, %v18682_v53, %v18793_v5  ;;  %v12307_v20 = vunpack.i.h.bf16 %v18476_v47 }
 0x748   :  { %11123 = vrot.lane.b32.xlu0 %v18611_v54, %s20301_s17 }
 0x749   :  { %v10292_v35 = vpop.permute.xlu1 %10291  ;;  %v18897_v17 = vpop.permute.xlu0 %10611 }
 0x74a   :  { %v10302_v13 = vsel %vm20777_vm9, %v18751_v63, %v10292_v35  ;;  %v10366_v63 = vsel %vm625_vm0, %v18757_v14, %v18873_v51  ;;  %vm20791_vm9 = vmmov %vm20788_vm1 }
 0x74b   :  { %11125 = vrot.lane.b32.xlu1 %v18608_v42, %s20301_s17  ;;  %11356 = vmatprep.subr.bf16.mxu1 %v10302_v13  ;;  %v11282_v42 = vld [vmem:[%s20779_s27 + $0x8] sm:$0xff] }
 0x74c   :  { %11119 = vrot.lane.b32.xlu0 %v18521_v62, %s20301_s17  ;;  %11357 = vmatpush1.bf16.msra.mxu1 %v10301_v16  ;;  %v10361_v62 = vsel %vm625_vm0, %v18644_v36, %v18682_v53  ;;  %v11281_v16 = vld [vmem:[%s20779_s27] sm:$0xff]  ;;  %v11284_v36 = vld [vmem:[%s20779_s27 + $0x18] sm:$0xff] }
 0x74d   :  { %v18911_v54 = vpop.permute.xlu1 %10419  ;;  %11358 = vmatprep.subr.bf16.mxu1 %v10362_v32  ;;  %v18913_v44 = vpop.permute.xlu0 %10739  ;;  %v12311_v32 = vunpack.i.l.bf16 %v18478_v60 }
 0x74f   :  { %11121 = vrot.lane.b32.xlu1 %v18518_v23, %s20301_s17 }
 0x750   :  { %11292 = vperm.xlu0 %12301, %v11282_v42   ;;  %11359 = vmatpush1.bf16.msra.mxu1 %v10361_v62  ;;  %v10365_v42 = vsel %vm625_vm0, %v18716_v29, %v18757_v14  ;;  %v10426_v62 = vsel %vm772_vm12, %v18684_v6, %v18804_v37  ;;  %v10425_v29 = vsel %vm772_vm12, %v18650_v2, %v18684_v6  ;;  %v12312_v2 = vunpack.i.h.bf16 %v18478_v60 }
 0x751   :  { %v18930_v13 = vpop.permute.xlu1 %10547  ;;  %11360 = vmatprep.subr.bf16.mxu1 %v10366_v63  ;;  %v10294_v23 = vpop.permute.xlu0 %10293  ;;  %v10364_v63 = vsel %vm625_vm0, %v18830_v49, %v12311_v32  ;;  %v10363_v14 = vsel %vm625_vm0, %v18793_v5, %v18830_v49  ;;  %v10490_v6 = vsel %vm20782_vm2, %v18690_v12, %v18806_v26  ;;  %v12316_v32 = vunpack.i.l.bf16 %v18480_v27 }
 0x752   :  { %v10303_v47 = vsel %vm20780_vm15, %v10292_v35, %v10294_v23  ;;  %v10304_v53 = vsel %vm20781_vm4, %v10294_v23, %v12307_v20  ;;  %v11283_v35 = vld [vmem:[%s20779_s27 + $0x10] sm:$0xff]  ;;  %v10430_v23 = vsel %vm772_vm12, %v18759_v40, %v18911_v54  ;;  %v10489_v60 = vsel %vm20783_vm8, %v18652_v25, %v18690_v12  ;;  %vm20794_vm4 = vmmov %vm20788_vm1 }
 0x753   :  { %11287 = vperm.xlu1 %12302, %v11281_v16   ;;  %11462 = vmatprep.subr.bf16.mxu0 %v10304_v53  ;;  %v10429_v53 = vsel %vm772_vm12, %v18722_v3, %v18759_v40  ;;  %v10494_v3 = vsel %vm20784_vm11, %v18765_v21, %v18886_v50  ;;  %v10428_v40 = vsel %vm772_vm12, %v18845_v43, %v12316_v32  ;;  %vm20796_vm8 = vmmov %vm20788_vm1 }
 0x754   :  { %11302 = vperm.xlu0 %12301, %v11284_v36   ;;  %11361 = vmatpush1.bf16.msra.mxu1 %v10365_v42  ;;  %v10427_v25 = vsel %vm772_vm12, %v18804_v37, %v18845_v43  ;;  %v12321_v43 = vunpack.i.l.bf16 %v18482_v33  ;;  %vm20797_vm11 = vmmov %vm20788_vm1 }
 0x755   :  { %11463 = vmatpush1.bf16.msra.mxu0 %v10303_v47  ;;  %v18947_v20 = vpop.permute.xlu1 %10675  ;;  %11362 = vmatprep.subr.bf16.mxu1 %v10426_v62  ;;  %v18951_v16 = vpop.permute.xlu0 %10859 }
 0x756   :  { %11464 = vmatprep.subr.bf16.mxu0 %v10364_v63  ;;  %v12317_v63 = vunpack.i.h.bf16 %v18480_v27 }
 0x757   :  { %11297 = vperm.xlu1 %12302, %v11283_v35  }
 0x758   :  { %11363 = vmatpush1.bf16.msra.mxu1 %v10425_v29  ;;  %v10554_v29 = vsel %vm20786_vm5, %v18692_v30, %v18812_v24 }
 0x759   :  { %11465 = vmatpush1.bf16.msra.mxu0 %v10363_v14  ;;  %v18962_v36 = vpop.permute.xlu1 %10803  ;;  %11364 = vmatprep.subr.bf16.mxu1 %v10430_v23  ;;  %v18964_v47 = vpop.permute.xlu0 %10857 }
 0x75c   :  { %11365 = vmatpush1.bf16.msra.mxu1 %v10429_v53 }
 0x75d   :  { %v10358_v5 = vpop.permute.xlu1 %10357  ;;  %11366 = vmatprep.subr.bf16.mxu1 %v10490_v6  ;;  %v18973_v49 = vpop.permute.xlu0 %10853 }
 0x75e   :  { %v10367_v42 = vsel %vm625_vm0, %v18873_v51, %v10358_v5  ;;  %v10368_v62 = vsel %vm625_vm0, %v10358_v5, %v12312_v2  ;;  %vm20785_vm0 = vmmov %vm20782_vm2  ;;  %v10618_v5 = vsel %vm1213_vm10, %v18698_v19, %v18814_v22 }
 0x75f   :  { %11466 = vmatprep.subr.bf16.mxu0 %v10368_v62  ;;  %v10493_v12 = vsel %vm20785_vm0, %v18724_v28, %v18765_v21  ;;  %v10553_v28 = vsel %vm20787_vm6, %v18658_v45, %v18692_v30  ;;  %v10558_v21 = vsel %vm20788_vm1, %v18767_v1, %v18930_v13  ;;  %vm20789_vm3 = vmmov %vm20785_vm0  ;;  %v10557_v45 = vsel %vm20791_vm9, %v18733_v7, %v18767_v1 }
 0x760   :  { %11367 = vmatpush1.bf16.msra.mxu1 %v10489_v60  ;;  %11467 = vmatpush1.bf16.msra.mxu0 %v10367_v42  ;;  %v10492_v53 = vsel %vm20789_vm3, %v18837_v46, %v12321_v43  ;;  %v12322_v30 = vunpack.i.h.bf16 %v18482_v33  ;;  %v12326_v62 = vunpack.i.l.bf16 %v18484_v57  ;;  %vm20792_vm13 = vmmov %vm20785_vm0  ;;  %v10617_v33 = vsel %vm1213_vm10, %v18660_v38, %v18698_v19 }
 0x761   :  { %v18987_v35 = vpop.permute.xlu1 %12349  ;;  %11368 = vmatprep.subr.bf16.mxu1 %v10494_v3  ;;  %11468 = vmatprep.subr.bf16.mxu0 %v10428_v40  ;;  %v10422_v51 = vpop.permute.xlu0 %10421  ;;  %vm20793_vm15 = vmmov %vm20785_vm0  ;;  %v10622_v7 = vsel %vm1213_vm10, %v18773_v15, %v18897_v17  ;;  %v12327_v60 = vunpack.i.h.bf16 %v18484_v57  ;;  %v10621_v19 = vsel %vm1213_vm10, %v18735_v39, %v18773_v15  ;;  %v10682_v3 = vsel %vm1360_vm14, %v18700_v41, %v18820_v52 }
 0x762   :  { %v10432_v14 = vsel %vm772_vm12, %v10422_v51, %v12317_v63  ;;  %v10431_v37 = vsel %vm772_vm12, %v18911_v54, %v10422_v51  ;;  %vm20790_vm12 = vmmov %vm20785_vm0  ;;  %v10556_v1 = vsel %vm20794_vm4, %v18858_v58, %v12326_v62  ;;  %v10681_v39 = vsel %vm1360_vm14, %v18666_v56, %v18700_v41  ;;  %v12719_v56 = vld [vmem:[%s20763_s3] ss:$16 sps:$4 sm:$0xff]  }
 0x763   :  { %v10491_v54 = vsel %vm20790_vm12, %v18806_v26, %v18837_v46  ;;  %vm20795_vm2 = vmmov %vm20788_vm1  ;;  %v10686_v15 = vsel %vm1360_vm14, %v18775_v48, %v18947_v20  ;;  %v12332_v41 = vunpack.i.h.bf16 %v18486_v55  ;;  %vm20811_vm1 = vcmask 965632  }
 0x764   :  { %11369 = vmatpush1.bf16.msra.mxu1 %v10493_v12  ;;  %11469 = vmatpush1.bf16.msra.mxu0 %v10427_v25  ;;  %v10555_v38 = vsel %vm20795_vm2, %v18812_v24, %v18858_v58  ;;  %v12331_v24 = vunpack.i.l.bf16 %v18486_v55  ;;  %v10745_v55 = vsel %vm1507_vm7, %v18668_v10, %v18706_v0  ;;  %v12337_v10 = vunpack.i.h.bf16 %v18488_v61  ;;  %vm20813_vm3 = vmmov %vm20811_vm1 }
 0x765   :  { %v19000_v23 = vpop.permute.xlu1 %10855  ;;  %11370 = vmatprep.subr.bf16.mxu1 %v10554_v29  ;;  %11470 = vmatprep.subr.bf16.mxu0 %v10432_v14  ;;  %v19002_v27 = vpop.permute.xlu0 %10867  ;;  %v12336_v14 = vunpack.i.l.bf16 %v18488_v61  ;;  %v12724_v61 = vld [vmem:[%s20763_s3 + $0x20] ss:$16 sps:$4 sm:$0xff]   ;;  %vm20814_vm12 = vmmov %vm20811_vm1 }
 0x766   :  { %v10620_v52 = vsel %vm1213_vm10, %v18847_v8, %v12331_v24  ;;  %v10746_v8 = vsel %vm1507_vm7, %v18706_v0, %v18822_v18  ;;  %v10749_v0 = vsel %vm1507_vm7, %v18743_v4, %v18785_v9  ;;  %v20801_v4 = vld [vmem:[#allocation45_spill] sm:$0xff]  ;;  %v20812_v24 = vld [vmem:[#allocation50_spill] sm:$0xff] }
 0x767   :  { %v10684_v18 = vsel %vm1360_vm14, %v18871_v34, %v12336_v14  ;;  %v20799_v34 = vld [vmem:[#allocation48_spill] sm:$0xff]  ;;  %v20818_v14 = vld [vmem:[#allocation11_spill] sm:$0xff] }
 0x768   :  { %11371 = vmatpush1.bf16.msra.mxu1 %v10553_v28  ;;  %11471 = vmatpush1.bf16.msra.mxu0 %v10431_v37  ;;  %v20798_v28 = vld [vmem:[#allocation57_spill] sm:$0xff] }
 0x769   :  { %v19015_v2 = vpop.permute.xlu1 %10865  ;;  %11372 = vmatprep.subr.bf16.mxu1 %v10558_v21  ;;  %11472 = vmatprep.subr.bf16.mxu0 %v10492_v53  ;;  %v19017_v6 = vpop.permute.xlu0 %10863 }
 0x76c   :  { %11373 = vmatpush1.bf16.msra.mxu1 %v10557_v45  ;;  %11473 = vmatpush1.bf16.msra.mxu0 %v10491_v54 }
 0x76d   :  { %v10486_v32 = vpop.permute.xlu1 %10485  ;;  %11374 = vmatprep.subr.bf16.mxu1 %v10618_v5  ;;  %v19029_v42 = vpop.permute.xlu0 %12354  ;;  %v20802_v5 = vld [vmem:[#allocation63_spill] sm:$0xff] }
 0x76e   :  { %v10495_v46 = vsel %vm20792_vm13, %v18886_v50, %v10486_v32  ;;  %v10496_v26 = vsel %vm20793_vm15, %v10486_v32, %v12322_v30  ;;  %v20804_v32 = vld [vmem:[#allocation61_spill] sm:$0xff]  ;;  %vm20819_vm13 = vcmask 957440  }
 0x76f   :  { %11474 = vmatprep.subr.bf16.mxu0 %v10496_v26  ;;  %vm20822_vm2 = vmmov %vm20819_vm13 }
 0x770   :  { %11375 = vmatpush1.bf16.msra.mxu1 %v10617_v33  ;;  %11475 = vmatpush1.bf16.msra.mxu0 %v10495_v46  ;;  %v20806_v46 = vld [vmem:[#allocation52_spill] sm:$0xff]  ;;  %v12727_v33 = vld [vmem:[%s20763_s3 + $0xc] ss:$16 sps:$4 sm:$0xff]  }
 0x771   :  { %v19043_v22 = vpop.permute.xlu1 %10923  ;;  %11376 = vmatprep.subr.bf16.mxu1 %v10622_v7  ;;  %11476 = vmatprep.subr.bf16.mxu0 %v10556_v1  ;;  %v10550_v50 = vpop.permute.xlu0 %10549  ;;  %v20808_v1 = vld [vmem:[#allocation56_spill] sm:$0xff] }
 0x772   :  { %v10560_v40 = vsel %vm20796_vm8, %v10550_v50, %v12327_v60  ;;  %v10559_v58 = vsel %vm20797_vm11, %v18930_v13, %v10550_v50  ;;  %v10685_v13 = vsel %vm1360_vm14, %v18741_v11, %v18775_v48  ;;  %v12342_v60 = vunpack.i.h.bf16 %v20801_v4  ;;  %vm20824_vm11 = vmmov %vm20822_vm2 }
 0x774   :  { %11377 = vmatpush1.bf16.msra.mxu1 %v10621_v19  ;;  %11477 = vmatpush1.bf16.msra.mxu0 %v10555_v38  ;;  %v20810_v38 = vld [vmem:[#allocation10_spill] sm:$0xff]  ;;  %v10874_v19 = vsel %vm20811_vm1, %v19000_v23, %v18964_v47 }
 0x775   :  { %v19056_v51 = vpop.permute.xlu1 %10921  ;;  %11378 = vmatprep.subr.bf16.mxu1 %v10682_v3  ;;  %11478 = vmatprep.subr.bf16.mxu0 %v10560_v40  ;;  %v19058_v57 = vpop.permute.xlu0 %10919 }
 0x778   :  { %11379 = vmatpush1.bf16.msra.mxu1 %v10681_v39  ;;  %11479 = vmatpush1.bf16.msra.mxu0 %v10559_v58  ;;  %v12346_v58 = vunpack.i.l.bf16 %v20812_v24 }
 0x779   :  { %v19071_v63 = vpop.permute.xlu1 %10917  ;;  %11380 = vmatprep.subr.bf16.mxu1 %v10686_v15  ;;  %11480 = vmatprep.subr.bf16.mxu0 %v10620_v52  ;;  %v19073_v25 = vpop.permute.xlu0 %10929  ;;  %v10873_v52 = vsel %vm20813_vm3, %v18973_v49, %v19000_v23  ;;  %v12351_v23 = vunpack.i.l.bf16 %v18987_v35 }
 0x77c   :  { %11381 = vmatpush1.bf16.msra.mxu1 %v10685_v13  ;;  %11481 = vmatpush1.bf16.msra.mxu0 %v18852_v31  ;;  %v10750_v31 = vsel %vm1507_vm7, %v18785_v9, %v18913_v44  ;;  %v12341_v9 = vunpack.i.l.bf16 %v20801_v4  ;;  %v10878_v13 = vsel %vm20814_vm12, %v19015_v2, %v19002_v27  ;;  %v12357_v4 = vunpack.i.h.bf16 %v19029_v42 }
 0x77d   :  { %v10614_v12 = vpop.permute.xlu1 %10613  ;;  %11403 = vmatprep.subr.bf16.mxu1 %v10746_v8  ;;  %v19086_v29 = vpop.permute.xlu0 %10987 }
 0x77e   :  { %v10623_v11 = vsel %vm1213_vm10, %v18897_v17, %v10614_v12  ;;  %v10624_v48 = vsel %vm1213_vm10, %v10614_v12, %v12332_v41  ;;  %v12722_v17 = vld [vmem:[%s20763_s3 + $0x24] ss:$16 sps:$4 sm:$0xff]   ;;  %vm20800_vm10 = vcmask 973824   ;;  %v10748_v26 = vsel %vm1507_vm7, %v20806_v46, %v12341_v9 }
 0x77f   :  { %11482 = vmatprep.subr.bf16.mxu0 %v10624_v48  ;;  %11383 = vmatmul.mubr.bf16.vlgmr.msra.gmra.mrb[32].mxu1 %v12719_v56  ;;  %v10810_v21 = vsel %vm20800_vm10, %v20799_v34, %v18828_v59  ;;  %vm20803_vm0 = vmmov %vm20800_vm10  ;;  %v12347_v12 = vunpack.i.h.bf16 %v20812_v24 }
 0x780   :  { %11404 = vmatpush1.bf16.msra.mxu1 %v10745_v55  ;;  %11483 = vmatpush1.bf16.msra.mxu0 %v10623_v11  ;;  %v10809_v59 = vsel %vm20803_vm0, %v20802_v5, %v20799_v34  ;;  %vm20805_vm5 = vmmov %vm20803_vm0  ;;  %v10938_v11 = vsel %vm20819_vm13, %v19058_v57, %v19056_v51 }
 0x781   :  { %v19103_v43 = vpop.permute.xlu1 %10931  ;;  %11405 = vmatprep.subr.bf16.mxu1 %v10750_v31  ;;  %11484 = vmatprep.subr.bf16.mxu0 %v10684_v18  ;;  %v10678_v37 = vpop.permute.xlu0 %10677  ;;  %v10814_v62 = vsel %vm20805_vm5, %v20804_v32, %v18962_v36  ;;  %vm20809_vm6 = vmmov %vm20803_vm0 }
 0x782   :  { %11392 = vmatprep.mubr.bf16.mxu1 %v12722_v17  ;;  %v10688_v53 = vsel %vm1360_vm14, %v10678_v37, %v12337_v10  ;;  %v10687_v30 = vsel %vm1360_vm14, %v18947_v20, %v10678_v37  ;;  %vm20807_vm14 = vcmask 785408   ;;  %v10813_v50 = vsel %vm20809_vm6, %v20808_v1, %v20804_v32  ;;  %vm20816_vm9 = vmmov %vm20803_vm0 }
 0x783   :  { %vm20820_vm15 = vmmov %vm20803_vm0  ;;  %v10942_v18 = vsel %vm20824_vm11, %v19073_v25, %v19103_v43 }
 0x784   :  { %11406 = vmatpush1.bf16.msra.mxu1 %v10749_v0  ;;  %11485 = vmatpush1.bf16.msra.mxu0 %v20798_v28  ;;  %vm20821_vm4 = vmmov %vm20807_vm14  ;;  %v12356_v0 = vunpack.i.l.bf16 %v19029_v42 }
 0x785   :  { %v19114_v54 = vpop.permute.xlu1 %10927  ;;  %11407 = vmatprep.subr.bf16.mxu1 %v10810_v21  ;;  %11486 = vmatprep.subr.bf16.mxu0 %v10688_v53  ;;  %v19116_v45 = vpop.permute.xlu0 %10985  ;;  %vm20823_vm8 = vmmov %vm20803_vm0 }
 0x786   :  { %vm20825_vm10 = vmmov %vm20811_vm1 }
 0x787   :  { %11393 = vmatmul.mubr.bf16.gmra.mrb[36].mxu1 %v12724_v61  ;;  %vm20826_vm0 = vmmov %vm20811_vm1 }
 0x788   :  { %11408 = vmatpush1.bf16.msra.mxu1 %v10809_v59  ;;  %11487 = vmatpush1.bf16.msra.mxu0 %v10687_v30  ;;  %vm20827_vm5 = vmmov %vm20822_vm2 }
 0x789   :  { %v19135_v7 = vpop.permute.xlu1 %12359  ;;  %11409 = vmatprep.subr.bf16.mxu1 %v10814_v62  ;;  %11509 = vmatprep.subr.bf16.mxu0 %v10748_v26  ;;  %v10982_v20 = vpop.permute.xlu0 %10981  ;;  %vm20829_vm6 = vmmov %vm20826_vm0 }
 0x78a   :  { %12134 = vmatprep.mubr.msk.bf16.mxu1 %vm20807_vm14, %v12727_v33  ;;  %vm20828_vm14 = vcmask 949248   ;;  %v12361_v30 = vunpack.i.l.bf16 %v19135_v7  ;;  %v12362_v1 = vunpack.i.h.bf16 %v19135_v7 }
 0x78b   :  { %11489 = vmatmul.mubr.bf16.vlgmr.msra.gmra.mrb[40].mxu0 %v12719_v56  ;;  %v20815_v56 = vld [vmem:[#allocation62_spill] sm:$0xff]  ;;  %vm20831_vm3 = vmmov %vm20828_vm14 }
 0x78c   :  { %11410 = vmatpush1.bf16.msra.mxu1 %v10813_v50  ;;  %11510 = vmatpush1.bf16.msra.mxu0 %v20810_v38  ;;  %v10812_v41 = vsel %vm20816_vm9, %v20815_v56, %v12346_v58  ;;  %vm20832_vm12 = vmmov %vm20831_vm3 }
 0x78d   :  { %v10742_v3 = vpop.permute.xlu1 %10741  ;;  %11411 = vmatprep.subr.bf16.mxu1 %v10874_v19  ;;  %v19146_v40 = vpop.permute.xlu0 %10995  ;;  %11498 = vmatprep.mubr.bf16.mxu0 %v12722_v17  ;;  %v10876_v17 = vsel %vm20825_vm10, %v18951_v16, %v12351_v23  ;;  %vm20833_vm9 = vmmov %vm20822_vm2 }
 0x78e   :  { %v10751_v39 = vsel %vm1507_vm7, %v18913_v44, %v10742_v3  ;;  %v10752_v15 = vsel %vm1507_vm7, %v10742_v3, %v12342_v60  ;;  %vm20817_vm7 = vmmov %vm20811_vm1 }
 0x78f   :  { %11511 = vmatprep.subr.bf16.mxu0 %v10752_v15  ;;  %v10877_v49 = vsel %vm20817_vm7, %v19017_v6, %v19015_v2  ;;  %v10937_v2 = vsel %vm20822_vm2, %v19071_v63, %v19058_v57  ;;  %v10875_v57 = vsel %vm20826_vm0, %v18964_v47, %v18951_v16  ;;  %v12352_v63 = vunpack.i.h.bf16 %v18987_v35  ;;  %vm20830_vm1 = vmmov %vm20826_vm0 }
 0x790   :  { %11412 = vmatpush1.bf16.msra.mxu1 %v10873_v52  ;;  %11512 = vmatpush1.bf16.msra.mxu0 %v10751_v39  ;;  %vm20834_vm7 = vmmov %vm20822_vm2 }
 0x791   :  { %v10984_v8 = vpop.permute.xlu1 %10983  ;;  %11413 = vmatprep.subr.bf16.mxu1 %v10878_v13  ;;  %11513 = vmatprep.subr.bf16.mxu0 %v10812_v41  ;;  %v10806_v44 = vpop.permute.xlu0 %10805  ;;  %vm20835_vm13 = vmmov %vm20831_vm3 }
 0x792   :  { %v10816_v48 = vsel %vm20820_vm15, %v10806_v44, %v12347_v12  ;;  %v10815_v6 = vsel %vm20823_vm8, %v18962_v36, %v10806_v44  ;;  %v10941_v36 = vsel %vm20827_vm5, %v19114_v54, %v19073_v25  ;;  %v11002_v28 = vsel %vm20828_vm14, %v10984_v8, %v19116_v45  ;;  %vm20840_vm11 = vmmov %vm20831_vm3 }
 0x793   :  { %11499 = vmatmul.mubr.bf16.gmra.mrb[44].mxu0 %v12724_v61  ;;  %v11001_v47 = vsel %vm20831_vm3, %v10982_v20, %v10984_v8  ;;  %v10940_v25 = vsel %vm20833_vm9, %v19043_v22, %v12356_v0  ;;  %vm20836_vm15 = vcmask 941056   ;;  %vm20842_vm0 = vmmov %vm20831_vm3 }
 0x794   :  { %11414 = vmatpush1.bf16.msra.mxu1 %v10877_v49  ;;  %11514 = vmatpush1.bf16.msra.mxu0 %v20818_v14  ;;  %v11003_v20 = vsel %vm20842_vm0, %v19116_v45, %v19086_v29  ;;  %vm20843_vm5 = vmmov %vm20842_vm0 }
 0x795   :  { %v10994_v55 = vpop.permute.xlu1 %10993  ;;  %11415 = vmatprep.subr.bf16.mxu1 %v10938_v11  ;;  %11515 = vmatprep.subr.bf16.mxu0 %v10816_v48  ;;  %v10992_v31 = vpop.permute.xlu0 %10991  ;;  %vm20844_vm14 = vmmov %vm20842_vm0  ;;  %vm20858_vm0 = vcmask 785408  }
 0x796   :  { %12136 = vmatprep.mubr.msk.bf16.mxu0 %vm20821_vm4, %v12727_v33  ;;  %v11006_v35 = vsel %vm20832_vm12, %v10994_v55, %v19146_v40  ;;  %v11005_v9 = vsel %vm20835_vm13, %v10992_v31, %v10994_v55  ;;  %vm20837_vm4 = vmmov %vm20822_vm2  ;;  %v12725_v55 = vld [vmem:[%s20763_s3 + $0x8] ss:$16 sps:$4 sm:$0xff]   ;;  %v12728_v31 = vld [vmem:[%s20763_s3 + $0x2c] ss:$16 sps:$4 sm:$0xff]  }
 0x797   :  { %vm20838_vm2 = vmmov %vm20836_vm15 }
 0x798   :  { %11416 = vmatpush1.bf16.msra.mxu1 %v10937_v2  ;;  %11516 = vmatpush1.bf16.msra.mxu0 %v10815_v6  ;;  %vm20839_vm8 = vmmov %vm20837_vm4 }
 0x799   :  { %v19181_v37 = vpop.permute.xlu1 %11051  ;;  %11417 = vmatprep.subr.bf16.mxu1 %v10942_v18  ;;  %11517 = vmatprep.subr.bf16.mxu0 %v10876_v17  ;;  %v19183_v10 = vpop.permute.xlu0 %12364  ;;  %vm20841_vm10 = vmmov %vm20838_vm2 }
 0x79a   :  { %v12366_v50 = vunpack.i.l.bf16 %v19183_v10 }
 0x79c   :  { %11418 = vmatpush1.bf16.msra.mxu1 %v10941_v36  ;;  %11518 = vmatpush1.bf16.msra.mxu0 %v10875_v57 }
 0x79d   :  { %v10870_v34 = vpop.permute.xlu1 %10869  ;;  %11419 = vmatprep.subr.bf16.mxu1 %v11002_v28  ;;  %v11048_v21 = vpop.permute.xlu0 %11047 }
 0x79e   :  { %v10879_v53 = vsel %vm20829_vm6, %v19002_v27, %v10870_v34  ;;  %v10880_v16 = vsel %vm20830_vm1, %v10870_v34, %v12352_v63  ;;  %v10939_v27 = vsel %vm20834_vm7, %v19056_v51, %v19043_v22  ;;  %v11004_v22 = vsel %vm20840_vm11, %v19086_v29, %v12361_v30  ;;  %vm20845_vm6 = vmmov %vm20838_vm2 }
 0x79f   :  { %11519 = vmatprep.subr.bf16.mxu0 %v10880_v16  ;;  %v11068_v3 = vsel %vm20845_vm6, %v19181_v37, %v12366_v50  ;;  %v12367_v29 = vunpack.i.h.bf16 %v19183_v10  ;;  %vm20846_vm1 = vmmov %vm20838_vm2  ;;  %vm20850_vm7 = vcmask 932864  }
 0x7a0   :  { %11420 = vmatpush1.bf16.msra.mxu1 %v11001_v47  ;;  %11520 = vmatpush1.bf16.msra.mxu0 %v10879_v53  ;;  %vm20847_vm3 = vmmov %vm20846_vm1 }
 0x7a1   :  { %v11050_v54 = vpop.permute.xlu1 %11049  ;;  %11421 = vmatprep.subr.bf16.mxu1 %v11006_v35  ;;  %v10934_v61 = vpop.permute.xlu0 %10933  ;;  %11521 = vmatprep.subr.bf16.mxu0 %v10940_v25  ;;  %vm20848_vm12 = vmmov %vm20846_vm1 }
 0x7a2   :  { %v11066_v5 = vsel %vm20836_vm15, %v11048_v21, %v11050_v54  ;;  %v10944_v59 = vsel %vm20837_vm4, %v10934_v61, %v12357_v4  ;;  %v10943_v46 = vsel %vm20839_vm8, %v19103_v43, %v10934_v61  ;;  %v11067_v58 = vsel %vm20847_vm3, %v11050_v54, %v19181_v37  ;;  %vm20849_vm9 = vmmov %vm20846_vm1  ;;  %v12730_v37 = vld [vmem:[%s20763_s3 + $0x28] ss:$16 sps:$4 sm:$0xff]   ;;  %s11815_s3 = sshll.u32 %s13068_s20, 4  ;;  %s11816_s3 = int_to_ptr.vmem [resolvable:$true] %s11815_s3 }
 0x7a3   :  { %vm20851_vm13 = vmmov %vm20850_vm7  ;;  %s12987_s1 = scalar_lea.vmem %s11816_s3, 32  ;;  %p12992_p1 = scmp.lt.s32.totalorder %s11816_s3, %s11816_s3 }
 0x7a4   :  { %11422 = vmatpush1.bf16.msra.mxu1 %v11005_v9  ;;  %11522 = vmatpush1.bf16.msra.mxu0 %v10939_v27  ;;  %vm20852_vm15 = vmmov %vm20850_vm7  ;;  %p12988_p0 = scmp.ne.s32.totalorder %s11816_s3, %s12987_s1  ;;  %p12993_p2 = scmp.lt.s32.totalorder %s12987_s1, %s12987_s1 }
 0x7a5   :  { %v11046_v32 = vpop.permute.xlu1 %11045  ;;  %11423 = vmatprep.subr.bf16.mxu1 %v11066_v5  ;;  %v11058_v62 = vpop.permute.xlu0 %11057  ;;  %11523 = vmatprep.subr.bf16.mxu0 %v10944_v59  ;;  %vm20853_vm4 = vmmov %vm20850_vm7 }
 0x7a6   :  { %v11065_v42 = vsel %vm20838_vm2, %v11046_v32, %v11048_v21  ;;  %vm20854_vm2 = vmmov %vm20853_vm4  ;;  %p12994_p3 = por %p12993_p2, %p12992_p1 }
 0x7a7   :  { %vm20855_vm8 = vmmov %vm20854_vm2 }
 0x7a8   :  { %11424 = vmatpush1.bf16.msra.mxu1 %v11065_v42  ;;  %11524 = vmatpush1.bf16.msra.mxu0 %v10943_v46  ;;  %vm20856_vm11 = vmmov %vm20854_vm2  ;;  %p12995_p4 = pnand %p12994_p3, %p12988_p0 }
 0x7a9   :  { %v11060_v51 = vpop.permute.xlu1 %11059  ;;  %11525 = vmatprep.subr.bf16.mxu0 %v11004_v22 }
 0x7aa   :  { %v11116_v26 = vpop.permute.xlu0 %11115  ;;  %v11070_v33 = vsel %vm20841_vm10, %v11058_v62, %v11060_v51  ;;  %vm20857_vm10 = vmmov %vm20854_vm2 }
 0x7ab   :  { %11425 = vmatprep.subr.bf16.mxu1 %v11070_v33 }
 0x7ac   :  { %11526 = vmatpush1.bf16.msra.mxu0 %v11003_v20 }
 0x7ad   :  { %v10998_v43 = vpop.permute.xlu1 %10997 }
 0x7ae   :  { %v11007_v60 = vsel %vm20843_vm5, %v19146_v40, %v10998_v43  ;;  %v11114_v38 = vpop.permute.xlu0 %11113  ;;  %v11008_v19 = vsel %vm20844_vm14, %v10998_v43, %v12362_v1  ;;  %vm20859_vm5 = vmmov %vm20858_vm0 }
 0x7af   :  { %11527 = vmatprep.subr.bf16.mxu0 %v11008_v19  ;;  %v11131_v12 = vsel %vm20853_vm4, %v11114_v38, %v11116_v26 }
 0x7b0   :  { %11528 = vmatpush1.bf16.msra.mxu0 %v11007_v60 }
 0x7b1   :  { %v11056_v24 = vpop.permute.xlu1 %11055  ;;  %11529 = vmatprep.subr.bf16.mxu0 %v11068_v3 }
 0x7b2   :  { %v11069_v45 = vsel %vm20846_vm1, %v11056_v24, %v11058_v62  ;;  %v11062_v7 = vpop.permute.xlu0 %11061 }
 0x7b3   :  { %11426 = vmatpush1.bf16.msra.mxu1 %v11069_v45  ;;  %v11072_v40 = vsel %vm20848_vm12, %v11062_v7, %v12367_v29  ;;  %v11071_v13 = vsel %vm20849_vm9, %v11060_v51, %v11062_v7 }
 0x7b4   :  { %11530 = vmatpush1.bf16.msra.mxu0 %v11067_v58 }
 0x7b5   :  { %v12370_v39 = vpop.permute.xlu1 %12369  ;;  %11531 = vmatprep.subr.bf16.mxu0 %v11072_v40 }
 0x7b6   :  { %v12371_v15 = vunpack.i.l.bf16 %v12370_v39  ;;  %v11110_v52 = vpop.permute.xlu0 %11109  ;;  %v12372_v23 = vunpack.i.h.bf16 %v12370_v39 }
 0x7b8   :  { %11532 = vmatpush1.bf16.msra.mxu0 %v11071_v13  ;;  %v11132_v56 = vsel %vm20850_vm7, %v11116_v26, %v12371_v15 }
 0x7b9   :  { %v11112_v41 = vpop.permute.xlu1 %11111  ;;  %11533 = vmatprep.subr.bf16.mxu0 %v11132_v56 }
 0x7ba   :  { %v11129_v8 = vsel %vm20851_vm13, %v11110_v52, %v11112_v41  ;;  %v11130_v44 = vsel %vm20852_vm15, %v11112_v41, %v11114_v38  ;;  %v11124_v49 = vpop.permute.xlu0 %11123 }
 0x7bb   :  { %11427 = vmatprep.subr.bf16.mxu1 %v11130_v44 }
 0x7bc   :  { %11428 = vmatpush1.bf16.msra.mxu1 %v11129_v8  ;;  %11534 = vmatpush1.bf16.msra.mxu0 %v11131_v12 }
 0x7bd   :  { %v11126_v14 = vpop.permute.xlu1 %11125 }
 0x7be   :  { %v11135_v11 = vsel %vm20854_vm2, %v11124_v49, %v11126_v14  ;;  %v11136_v48 = vsel %vm20855_vm8, %v11126_v14, %v12372_v23  ;;  %v11120_v2 = vpop.permute.xlu0 %11119 }
 0x7bf   :  { %11535 = vmatprep.subr.bf16.mxu0 %v11136_v48 }
 0x7c0   :  { %11536 = vmatpush1.bf16.msra.mxu0 %v11135_v11 }
 0x7c1   :  { %v11122_v6 = vpop.permute.xlu1 %11121 }
 0x7c2   :  { %v11133_v18 = vsel %vm20856_vm11, %v11120_v2, %v11122_v6  ;;  %v11134_v17 = vsel %vm20857_vm10, %v11122_v6, %v11124_v49 }
 0x7c3   :  { %11429 = vmatprep.subr.bf16.mxu1 %v11134_v17  ;;  %11542 = vmatmul.mubr.bf16.vlgmr.msra.gmra.mrb[40].mxu0 %v12725_v55 }
 0x7c4   :  { %11430 = vmatpush1.bf16.msra.mxu1 %v11133_v18  ;;  %12137 = vmatprep.mubr.msk.bf16.mxu0 %vm20858_vm0, %v12728_v31 }
 0x7c7   :  { %11436 = vmatmul.mubr.bf16.vlgmr.msra.gmra.mrb[32].mxu1 %v12725_v55 }
 0x7c8   :  { %12135 = vmatprep.mubr.msk.bf16.mxu1 %vm20859_vm5, %v12728_v31 }
 0x7cb   :  { %11552 = vmatmul.mubr.bf16.gmra.mrb[44].mxu0 %v12730_v37 }
 0x7cf   :  { %11446 = vmatmul.mubr.bf16.gmra.mrb[36].mxu1 %v12730_v37  ;;  %v11293_v0 = vpop.permute.xlu0 %11292 }
 0x7d2   :  { %v11288_v10 = vpop.permute.xlu1 %11287 }
 0x7d3   :  { %v11303_v29 = vpop.permute.xlu0 %11302 }
 0x7d6   :  { %v11298_v26 = vpop.permute.xlu1 %11297 }
 0x896   :  { %v11543_v57 = vpop.f32.mrb[40].mxu0 }
 0x897   :  { %v19252_v36 = vadd.f32 %v11543_v57, %v11288_v10  ;;  %v11545_v63 = vpop.f32.mrb[41].mxu0 }
 0x898   :  { %v19254_v28 = vadd.f32 %v11545_v63, %v11288_v10  ;;  %v11547_v34 = vpop.f32.mrb[42].mxu0 }
 0x899   :  { %v11580_v21 = vmin.f32 %v19252_v36, 0.0  ;;  %v19257_v53 = vadd.f32 %v11547_v34, %v11293_v0  ;;  %v11549_v16 = vpop.f32.mrb[43].mxu0  ;;  %vm11564_vm14 = vcmp.gt.f32.partialorder %v19252_v36, 0.0 }
 0x89a   :  { %v11581_v47 = vmin.f32 %v19254_v28, 0.0  ;;  %v19260_v35 = vadd.f32 %v11549_v16, %v11293_v0  ;;  %v11437_v25 = vpop.f32.mrb[32].mxu1  ;;  %vm11565_vm6 = vcmp.gt.f32.partialorder %v19254_v28, 0.0  ;;  %v11658_v16 = vld [vmem:[%s20860_s0] sm:$0xff] }
 0x89b   :  { %v11598_v54 = vmul.f32 1.442695, %v11580_v21  ;;  %v11584_v61 = vmin.f32 %v19257_v53, 0.0  ;;  %v19263_v4 = vadd.f32 %v11437_v25, %v11288_v10  ;;  %v11439_v27 = vpop.f32.mrb[33].mxu1  ;;  %vm11568_vm1 = vcmp.gt.f32.partialorder %v19257_v53, 0.0 }
 0x89c   :  { %v11600_v9 = vmul.f32 1.442695, %v11581_v47  ;;  %v11585_v30 = vmin.f32 %v19260_v35, 0.0  ;;  %v19266_v5 = vadd.f32 %v11439_v27, %v11288_v10  ;;  %v11441_v59 = vpop.f32.mrb[34].mxu1  ;;  %vm11569_vm3 = vcmp.gt.f32.partialorder %v19260_v35, 0.0 }
 0x89d   :  { %12843 = vpow2.f32 %v11598_v54  ;;  %v11606_v32 = vmul.f32 1.442695, %v11584_v61  ;;  %v11578_v62 = vmin.f32 %v19263_v4, 0.0  ;;  %v11443_v42 = vpop.f32.mrb[35].mxu1  ;;  %v19270_v20 = vadd.f32 %v11441_v59, %v11293_v0 }
 0x89e   :  { %12845 = vpow2.f32 %v11600_v9  ;;  %v11608_v46 = vmul.f32 1.442695, %v11585_v30  ;;  %v11579_v22 = vmin.f32 %v19266_v5, 0.0  ;;  %v11553_v51 = vpop.f32.mrb[44].mxu0  ;;  %v19272_v1 = vadd.f32 %v11443_v42, %v11293_v0 }
 0x89f   :  { %12847 = vpow2.f32 %v11606_v32  ;;  %v11594_v33 = vmul.f32 1.442695, %v11578_v62  ;;  %v11555_v50 = vpop.f32.mrb[45].mxu0  ;;  %v19274_v60 = vadd.f32 %v11553_v51, %v11298_v26  ;;  %v11582_v3 = vmin.f32 %v19270_v20, 0.0 }
 0x8a0   :  { %12849 = vpow2.f32 %v11608_v46  ;;  %v11596_v43 = vmul.f32 1.442695, %v11579_v22  ;;  %v19276_v38 = vadd.f32 %v11555_v50, %v11298_v26  ;;  %v11557_v19 = vpop.f32.mrb[46].mxu0  ;;  %v11583_v45 = vmin.f32 %v19272_v1, 0.0  ;;  %v12154_v50 = vld [vmem:[%s20860_s0 + $0x40] sm:$0xff] }
 0x8a1   :  { %12851 = vpow2.f32 %v11594_v33  ;;  %v11559_v24 = vpop.f32.mrb[47].mxu0  ;;  %v11588_v7 = vmin.f32 %v19274_v60, 0.0  ;;  %v11602_v40 = vmul.f32 1.442695, %v11582_v3  ;;  %v19284_v15 = vadd.f32 %v11557_v19, %v11303_v29 }
 0x8a2   :  { %12853 = vpow2.f32 %v11596_v43  ;;  %v11447_v58 = vpop.f32.mrb[36].mxu1  ;;  %v11589_v39 = vmin.f32 %v19276_v38, 0.0  ;;  %v11604_v13 = vmul.f32 1.442695, %v11583_v45  ;;  %v19286_v41 = vadd.f32 %v11559_v24, %v11303_v29 }
 0x8a3   :  { %v11449_v52 = vpop.f32.mrb[37].mxu1  ;;  %v11614_v56 = vmul.f32 1.442695, %v11588_v7  ;;  %v19288_v8 = vadd.f32 %v11447_v58, %v11298_v26  ;;  %12855 = vpow2.f32 %v11602_v40  ;;  %v11592_v49 = vmin.f32 %v19284_v15, 0.0 }
 0x8a4   :  { %v11451_v44 = vpop.f32.mrb[38].mxu1  ;;  %v11616_v12 = vmul.f32 1.442695, %v11589_v39  ;;  %vm11562_vm12 = vcmp.gt.f32.partialorder %v19263_v4, 0.0  ;;  %vm11563_vm9 = vcmp.gt.f32.partialorder %v19266_v5, 0.0  ;;  %12857 = vpow2.f32 %v11604_v13 }
 0x8a5   :  { %v11453_v23 = vpop.f32.mrb[39].mxu1  ;;  %v11593_v14 = vmin.f32 %v19286_v41, 0.0  ;;  %12859 = vpow2.f32 %v11614_v56  ;;  %v11622_v48 = vmul.f32 1.442695, %v11592_v49  ;;  %v11586_v55 = vmin.f32 %v19288_v8, 0.0  ;;  %v11660_v56 = vld [vmem:[%s20860_s0 + $0x10] sm:$0xff] }
 0x8a6   :  { %v19297_v31 = vadd.f32 %v11449_v52, %v11298_v26  ;;  %12861 = vpow2.f32 %v11616_v12  ;;  %v19299_v17 = vadd.f32 %v11451_v44, %v11303_v29  ;;  %vm11566_vm7 = vcmp.gt.f32.partialorder %v19270_v20, 0.0 }
 0x8a7   :  { %v12844_v11 = vpop.eup %12843  ;;  %v11624_v18 = vmul.f32 1.442695, %v11593_v14  ;;  %12863 = vpow2.f32 %v11622_v48  ;;  %v11610_v57 = vmul.f32 1.442695, %v11586_v55  ;;  %vm11567_vm13 = vcmp.gt.f32.partialorder %v19272_v1, 0.0 }
 0x8a8   :  { %v12846_v2 = vpop.eup %12845  ;;  %v12140_v6 = vadd.f32 -1.0, %v12844_v11  ;;  %v11587_v21 = vmin.f32 %v19297_v31, 0.0  ;;  %vm11572_vm15 = vcmp.gt.f32.partialorder %v19274_v60, 0.0  ;;  %vm11573_vm4 = vcmp.gt.f32.partialorder %v19276_v38, 0.0 }
 0x8a9   :  { %v12848_v37 = vpop.eup %12847  ;;  %v12141_v10 = vadd.f32 -1.0, %v12846_v2  ;;  %12865 = vpow2.f32 %v11624_v18  ;;  %v11590_v30 = vmin.f32 %v19299_v17, 0.0  ;;  %vm11576_vm2 = vcmp.gt.f32.partialorder %v19284_v15, 0.0  ;;  %v12157_v18 = vld [vmem:[%s20860_s0 + $0x58] sm:$0xff] }
 0x8aa   :  { %v12850_v63 = vpop.eup %12849  ;;  %v11644_v0 = vsel %vm11564_vm14, %v19252_v36, %v12140_v6  ;;  %v12144_v34 = vadd.f32 -1.0, %v12848_v37  ;;  %12867 = vpow2.f32 %v11610_v57  ;;  %v11659_v36 = vld [vmem:[%s20860_s0 + $0x8] sm:$0xff]  ;;  %v11612_v9 = vmul.f32 1.442695, %v11587_v21 }
 0x8ab   :  { %v12852_v47 = vpop.eup %12851  ;;  %v19313_v25 = vsel %vm11565_vm6, %v19254_v28, %v12141_v10  ;;  %v12145_v54 = vadd.f32 -1.0, %v12850_v63  ;;  %v19327_v32 = vadd.f32 %v11453_v23, %v11303_v29  ;;  %v11735_v62 = vmul.f32 %v11658_v16, %v11644_v0 }
 0x8ac   :  { %v12854_v61 = vpop.eup %12853  ;;  %v12138_v27 = vadd.f32 -1.0, %v12852_v47  ;;  %v19324_v28 = vsel %vm11568_vm1, %v19257_v53, %v12144_v34  ;;  %vm11577_vm8 = vcmp.gt.f32.partialorder %v19286_v41, 0.0  ;;  %12869 = vpow2.f32 %v11612_v9 }
 0x8ad   :  { %v12139_v59 = vadd.f32 -1.0, %v12854_v61  ;;  %v11618_v46 = vmul.f32 1.442695, %v11590_v30  ;;  %v11736_v22 = vmul.f32 %v11659_v36, %v19313_v25  ;;  %v12856_v51 = vpop.eup %12855  ;;  %v19337_v53 = vsel %vm11569_vm3, %v19260_v35, %v12145_v54  ;;  %v12155_v35 = vld [vmem:[%s20860_s0 + $0x48] sm:$0xff]  ;;  %v12158_v61 = vld [vmem:[%s20860_s0 + $0x60] sm:$0xff] }
 0x8ae   :  { %v11642_v42 = vsel %vm11562_vm12, %v19263_v4, %v12138_v27  ;;  %vm11570_vm11 = vcmp.gt.f32.partialorder %v19288_v8, 0.0  ;;  %v11591_v4 = vmin.f32 %v19327_v32, 0.0  ;;  %v12858_v43 = vpop.eup %12857  ;;  %v12142_v19 = vadd.f32 -1.0, %v12856_v51 }
 0x8af   :  { %v11643_v26 = vsel %vm11563_vm9, %v19266_v5, %v12139_v59  ;;  %v11675_v33 = vmul.f32 %v11658_v16, %v11642_v42  ;;  %12871 = vpow2.f32 %v11618_v46  ;;  %v11743_v3 = vadd.f32 %v11736_v22, %v11735_v62  ;;  %v12860_v29 = vpop.eup %12859  ;;  %v11663_v59 = vld [vmem:[%s20860_s0 + $0x28] sm:$0xff] }
 0x8b0   :  { %v11676_v24 = vmul.f32 %v11659_v36, %v11643_v26  ;;  %v12143_v5 = vadd.f32 -1.0, %v12858_v43  ;;  %v11620_v45 = vmul.f32 1.442695, %v11591_v4  ;;  %v11704_v7 = vmul.f32 %v12154_v50, %v11642_v42  ;;  %v12862_v40 = vpop.eup %12861 }
 0x8b1   :  { %v11705_v58 = vmul.f32 %v12155_v35, %v11643_v26  ;;  %v11646_v39 = vsel %vm11566_vm7, %v19270_v20, %v12142_v19  ;;  %v12148_v52 = vadd.f32 -1.0, %v12860_v29  ;;  %vm11571_vm10 = vcmp.gt.f32.partialorder %v19297_v31, 0.0  ;;  %11744 = vadd.xlane.f32.xlu1 %v11743_v3  ;;  %v12864_v12 = vpop.eup %12863  ;;  %v11661_v20 = vld [vmem:[%s20860_s0 + $0x18] sm:$0xff] }
 0x8b2   :  { %v11683_v13 = vadd.f32 %v11676_v24, %v11675_v33  ;;  %v11764_v44 = vmul.f32 %v12154_v50, %v11644_v0  ;;  %v11647_v49 = vsel %vm11567_vm13, %v19272_v1, %v12143_v5  ;;  %v12149_v23 = vadd.f32 -1.0, %v12862_v40  ;;  %v12156_v1 = vld [vmem:[%s20860_s0 + $0x50] sm:$0xff] }
 0x8b3   :  { %12873 = vpow2.f32 %v11620_v45  ;;  %v11677_v14 = vmul.f32 %v11660_v56, %v11646_v39  ;;  %v12866_v11 = vpop.eup %12865  ;;  %v11652_v48 = vsel %vm11572_vm15, %v19274_v60, %v12148_v52  ;;  %v12152_v55 = vadd.f32 -1.0, %v12864_v12  ;;  %v12160_v50 = vld [vmem:[%s20860_s0 + $0x70] sm:$0xff]  ;;  %v11665_v45 = vld [vmem:[%s20860_s0 + $0x38] sm:$0xff] }
 0x8b4   :  { %11684 = vadd.xlane.f32.xlu0 %v11683_v13  ;;  %v11678_v2 = vmul.f32 %v11661_v20, %v11647_v49  ;;  %v11712_v6 = vadd.f32 %v11705_v58, %v11704_v7  ;;  %v12868_v37 = vpop.eup %12867  ;;  %v11653_v10 = vsel %vm11573_vm4, %v19276_v38, %v12149_v23  ;;  %v12153_v57 = vadd.f32 -1.0, %v12866_v11  ;;  %v11664_v24 = vld [vmem:[%s20860_s0 + $0x30] sm:$0xff] }
 0x8b5   :  { %v11706_v63 = vmul.f32 %v12156_v1, %v11646_v39  ;;  %v11707_v60 = vmul.f32 %v12157_v18, %v11647_v49  ;;  %v11656_v0 = vsel %vm11576_vm2, %v19284_v15, %v12152_v55  ;;  %v12146_v34 = vadd.f32 -1.0, %v12868_v37  ;;  %v12159_v15 = vld [vmem:[%s20860_s0 + $0x68] sm:$0xff] }
 0x8b6   :  { %v11686_v21 = vadd.f32 %v11678_v2, %v11677_v14  ;;  %v11765_v16 = vmul.f32 %v12155_v35, %v19313_v25  ;;  %v11657_v47 = vsel %vm11577_vm8, %v19286_v41, %v12153_v57  ;;  %v11766_v36 = vmul.f32 %v12156_v1, %v19324_v28  ;;  %v11662_v25 = vld [vmem:[%s20860_s0 + $0x20] sm:$0xff]  ;;  %v12870_v27 = vpop.eup %12869 }
 0x8b7   :  { %v11715_v54 = vadd.f32 %v11707_v60, %v11706_v63  ;;  %v11767_v38 = vmul.f32 %v12157_v18, %v19337_v53  ;;  %v11650_v41 = vsel %vm11570_vm11, %v19288_v8, %v12146_v34  ;;  %vm11574_vm0 = vcmp.gt.f32.partialorder %v19299_v17, 0.0 }
 0x8b8   :  { %11687 = vadd.xlane.f32.xlu1 %v11686_v21  ;;  %11713 = vadd.xlane.f32.xlu0 %v11712_v6  ;;  %v11772_v9 = vadd.f32 %v11765_v16, %v11764_v44  ;;  %v11737_v30 = vmul.f32 %v11660_v56, %v19324_v28  ;;  %v12147_v62 = vadd.f32 -1.0, %v12870_v27  ;;  %v11738_v46 = vmul.f32 %v11661_v20, %v19337_v53  ;;  %v12161_v28 = vld [vmem:[%s20860_s0 + $0x78] sm:$0xff] }
 0x8b9   :  { %v11775_v42 = vadd.f32 %v11767_v38, %v11766_v36  ;;  %v11708_v22 = vmul.f32 %v12158_v61, %v11650_v41  ;;  %v12872_v51 = vpop.eup %12871  ;;  %v11679_v26 = vmul.f32 %v11662_v25, %v11650_v41  ;;  %v11768_v4 = vmul.f32 %v12158_v61, %v11652_v48 }
 0x8ba   :  { %v11769_v8 = vmul.f32 %v12159_v15, %v11653_v10  ;;  %v11739_v33 = vmul.f32 %v11662_v25, %v11652_v48  ;;  %v11651_v43 = vsel %vm11571_vm10, %v19297_v31, %v12147_v62  ;;  %v12150_v19 = vadd.f32 -1.0, %v12872_v51 }
 0x8bb   :  { %v11746_v53 = vadd.f32 %v11738_v46, %v11737_v30  ;;  %v11740_v3 = vmul.f32 %v11663_v59, %v11653_v10  ;;  %vm11575_vm5 = vcmp.gt.f32.partialorder %v19327_v32, 0.0  ;;  %v11709_v35 = vmul.f32 %v12159_v15, %v11651_v43 }
 0x8bc   :  { %11716 = vadd.xlane.f32.xlu1 %v11715_v54  ;;  %11773 = vadd.xlane.f32.xlu0 %v11772_v9  ;;  %v11680_v29 = vmul.f32 %v11663_v59, %v11651_v43  ;;  %v11778_v5 = vadd.f32 %v11769_v8, %v11768_v4  ;;  %v11654_v31 = vsel %vm11574_vm0, %v19299_v17, %v12150_v19  ;;  %vm11733_vm14 = vcmask 7168  }
 0x8bd   :  { %v12874_v7 = vpop.eup %12873  ;;  %v11749_v58 = vadd.f32 %v11740_v3, %v11739_v33  ;;  %v11770_v40 = vmul.f32 %v12160_v50, %v11656_v0  ;;  %v11771_v39 = vmul.f32 %v12161_v28, %v11657_v47  ;;  %v11718_v13 = vadd.f32 %v11709_v35, %v11708_v22 }
 0x8be   :  { %v12151_v52 = vadd.f32 -1.0, %v12874_v7  ;;  %v11689_v56 = vadd.f32 %v11680_v29, %v11679_v26  ;;  %v11741_v44 = vmul.f32 %v11664_v24, %v11656_v0  ;;  %v11742_v49 = vmul.f32 %v11665_v45, %v11657_v47 }
 0x8bf   :  { %v11781_v12 = vadd.f32 %v11771_v39, %v11770_v40  ;;  %v11710_v23 = vmul.f32 %v12160_v50, %v11654_v31  ;;  %v11681_v20 = vmul.f32 %v11664_v24, %v11654_v31  ;;  %vm11797_vm6 = vcmask 1040384  }
 0x8c0   :  { %v11655_v14 = vsel %vm11575_vm5, %v19327_v32, %v12151_v52  ;;  %11776 = vadd.xlane.f32.xlu1 %v11775_v42  ;;  %11747 = vadd.xlane.f32.xlu0 %v11746_v53  ;;  %v11752_v11 = vadd.f32 %v11742_v49, %v11741_v44  ;;  %vm11807_vm1 = vcmask 9216  }
 0x8c1   :  { %v11711_v48 = vmul.f32 %v12161_v28, %v11655_v14  ;;  %v11682_v17 = vmul.f32 %v11665_v45, %v11655_v14 }
 0x8c3   :  { %v11721_v55 = vadd.f32 %v11711_v48, %v11710_v23  ;;  %v11692_v2 = vadd.f32 %v11682_v17, %v11681_v20 }
 0x8c4   :  { %11719 = vadd.xlane.f32.xlu1 %v11718_v13  ;;  %11690 = vadd.xlane.f32.xlu0 %v11689_v56 }
 0x8c8   :  { %11779 = vadd.xlane.f32.xlu1 %v11778_v5  ;;  %11750 = vadd.xlane.f32.xlu0 %v11749_v58 }
 0x8cc   :  { %11782 = vadd.xlane.f32.xlu1 %v11781_v12  ;;  %11753 = vadd.xlane.f32.xlu0 %v11752_v11  ;;  %v12162_v12 = vld [vmem:[%s20861_s16] ss:$0 sm:$0xff] }
 0x8d0   :  { %11722 = vadd.xlane.f32.xlu1 %v11721_v55  ;;  %11693 = vadd.xlane.f32.xlu0 %v11692_v2 }
 0x93e   :  { %v11745_v6 = vpop.xlane.xlu1 %11744 }
 0x941   :  { %v11685_v1 = vpop.xlane.xlu0 %11684 }
 0x945   :  { %v11688_v18 = vpop.xlane.xlu1 %11687  ;;  %v11714_v37 = vpop.xlane.xlu0 %11713 }
 0x946   :  { %v11695_v15 = vadd.f32 %v11688_v18, %v11685_v1 }
 0x949   :  { %v11717_v32 = vpop.xlane.xlu1 %11716  ;;  %v11774_v10 = vpop.xlane.xlu0 %11773 }
 0x94a   :  { %v11724_v25 = vadd.f32 %v11717_v32, %v11714_v37 }
 0x94d   :  { %v11777_v57 = vpop.xlane.xlu1 %11776  ;;  %v11748_v63 = vpop.xlane.xlu0 %11747 }
 0x94e   :  { %v11784_v16 = vadd.f32 %v11777_v57, %v11774_v10  ;;  %v11755_v47 = vadd.f32 %v11748_v63, %v11745_v6 }
 0x951   :  { %v11720_v60 = vpop.xlane.xlu1 %11719  ;;  %v11691_v0 = vpop.xlane.xlu0 %11690 }
 0x952   :  { %v11725_v9 = vadd.f32 %v11724_v25, %v11720_v60  ;;  %v11696_v30 = vadd.f32 %v11695_v15, %v11691_v0 }
 0x955   :  { %v11780_v34 = vpop.xlane.xlu1 %11779  ;;  %v11751_v21 = vpop.xlane.xlu0 %11750 }
 0x956   :  { %v11785_v54 = vadd.f32 %v11784_v16, %v11780_v34  ;;  %v11756_v36 = vadd.f32 %v11755_v47, %v11751_v21 }
 0x959   :  { %v11783_v38 = vpop.xlane.xlu1 %11782  ;;  %v11754_v61 = vpop.xlane.xlu0 %11753 }
 0x95a   :  { %v11786_v27 = vadd.f32 %v11785_v54, %v11783_v38  ;;  %v11757_v41 = vadd.f32 %v11756_v36, %v11754_v61 }
 0x95c   :  { %v11787_v59 = vrot.slane %v11786_v27, 4  ;;  %v11758_v62 = vrot.slane %v11757_v41, 4 }
 0x95d   :  { %v11723_v42 = vpop.xlane.xlu1 %11722  ;;  %v11694_v46 = vpop.xlane.xlu0 %11693 }
 0x95e   :  { %v11788_v22 = vadd.f32 %v11787_v59, %v11786_v27  ;;  %v11759_v51 = vadd.f32 %v11758_v62, %v11757_v41  ;;  %v11726_v26 = vadd.f32 %v11725_v9, %v11723_v42  ;;  %v11697_v4 = vadd.f32 %v11696_v30, %v11694_v46 }
 0x960   :  { %v11789_v8 = vrot.slane %v11788_v22, 2  ;;  %v11760_v33 = vrot.slane %v11759_v51, 2  ;;  %v11727_v50 = vrot.slane %v11726_v26, 4  ;;  %v11698_v28 = vrot.slane %v11697_v4, 4 }
 0x962   :  { %v11790_v43 = vadd.f32 %v11789_v8, %v11788_v22  ;;  %v11761_v19 = vadd.f32 %v11760_v33, %v11759_v51  ;;  %v11728_v53 = vadd.f32 %v11727_v50, %v11726_v26  ;;  %v11699_v3 = vadd.f32 %v11698_v28, %v11697_v4 }
 0x964   :  { %v11791_v24 = vrot.slane %v11790_v43, 1  ;;  %v11762_v35 = vrot.slane %v11761_v19, 1  ;;  %v11729_v29 = vrot.slane %v11728_v53, 2  ;;  %v11700_v5 = vrot.slane %v11699_v3, 2 }
 0x966   :  { %v11792_v45 = vadd.f32 %v11791_v24, %v11790_v43  ;;  %v11763_v7 = vadd.f32 %v11762_v35, %v11761_v19  ;;  %v11730_v31 = vadd.f32 %v11729_v29, %v11728_v53  ;;  %v11701_v58 = vadd.f32 %v11700_v5, %v11699_v3 }
 0x968   :  { %v11731_v40 = vrot.slane %v11730_v31, 1  ;;  %v11702_v39 = vrot.slane %v11701_v58, 1  ;;  %v11793_v52 = vsel %vm11733_vm14, %v11763_v7, %v11792_v45 }
 0x969   :  { %v11795_v44 = vrot.slane %v11793_v52, 7 }
 0x96a   :  { %v11732_v13 = vadd.f32 %v11731_v40, %v11730_v31  ;;  %v11703_v56 = vadd.f32 %v11702_v39, %v11701_v58 }
 0x96c   :  { %v11734_v49 = vsel %vm11733_vm14, %v11703_v56, %v11732_v13 }
 0x96d   :  { %v11798_v23 = vsel %vm11797_vm6, %v11734_v49, %v11795_v44 }
 0x96e   :  { %v11806_v20 = vadd.f32 %v12162_v12, %v11798_v23 }
 0x970   :  { %11808 = vst.msk [vmem:[#allocation6] sm:$0x3] %vm11807_vm1, %v11806_v20 }
 0x971   :  { %12998 = shalt.err (!%p12995_p4)
}
 0x972   :  { %s20862_s27 = sld [smem:[#allocation71_spill]] }
 0x978   :  { %s12999_s22 = scalar_lea.hbm %s20862_s27, 32 }
 0x979   :  { %p13000_p5 = scmp.ne.s32.totalorder %s20862_s27, %s12999_s22  ;;  %p13003_p6 = scmp.lt.u32.totalorder %s12999_s22, %s20862_s27 }
 0x97b   :  { %p13005_p7 = pnand %p13003_p6, %p13000_p5 }
 0x97d   :  { %13008 = shalt.err (!%p13005_p7)
}
 0x97e   :  { %11818 = dma.vmem_to_hbm [thread:$0]  %s11816_s3, 32, %s20862_s27, [#allocation7]  }
 0x97f   :  { %13009 = dma.done.wait [#allocation7], 32  }
 0x980   :  { %13010 = vsyncadd [#allocation7], 4294967264 }
 0x981   :  { %11822 = vsyncpa [#allocation7], 1 }

</bundles_post_ra>
